<compile_context>
chip_gen: v5e
topology: v5e:2x2
jax: 0.10.0
libtpu: 0.0.40
codegen_flags: <defaults>
</compile_context>

<pallas_src>
import numpy as np
import jax
import jax.numpy as jnp
from jax import lax
from jax.experimental import pallas as pl
from jax.experimental.pallas import tpu as pltpu

KH = KW = 3          # 3x3 convs, padding=1
BN_EPS = 1e-5
LANE = 128


def _round_up(x, m):
    return ((x + m - 1) // m) * m


# ----------------------------------------------------------------------------
# In-kernel helpers (operate on VMEM values)
# ----------------------------------------------------------------------------
def _pad_hw1(x):
    """Zero-pad a (N, H, W, C) value by 1 on each side of H and W (in VMEM)."""
    n, h, w, c = x.shape
    zr = jnp.zeros((n, 1, w, c), x.dtype)
    x = jnp.concatenate([zr, x, zr], axis=1)
    zc = jnp.zeros((n, h + 2, 1, c), x.dtype)
    return jnp.concatenate([zc, x, zc], axis=2)


def _im2col3x3(xpad, th, tw):
    """(N, TH+2, TW+2, C) -> (N*TH*TW, 9*C); tap order (dy, dx), channel fastest."""
    n, c = xpad.shape[0], xpad.shape[3]
    taps = [xpad[:, dy:dy + th, dx:dx + tw, :]
            for dy in range(KH) for dx in range(KW)]
    return jnp.concatenate(taps, axis=-1).reshape(n * th * tw, KH * KW * c)


# ----------------------------------------------------------------------------
# Pallas kernel: conv1 + bn1 + relu + conv2 + bn2 + relu for Nb images.
# xu_ref : (Nb, TH, TW, C)        upsampled x, NHWC, bf16
# sk_ref : (Nb, TH, TW, Cs)       skip, NHWC, bf16
# w1_ref : (9*Cin, Cmidp)         BN1-scale-folded conv1 weight, bf16
# b1_ref : (1, Cmidp)             BN1 shift (conv bias folded), f32
# w2_ref : (9*Cmidp, Coutp)       BN2-scale-folded conv2 weight, bf16
# b2_ref : (1, Coutp)             BN2 shift, f32
# o_ref  : (Nb, TH*TW, Coutp)     lane-dense output, f32
# ----------------------------------------------------------------------------
def upblock_kernel(xu_ref, sk_ref, w1_ref, b1_ref, w2_ref, b2_ref, o_ref):
    nb, th, tw, _ = xu_ref.shape
    cmidp = w1_ref.shape[1]
    coutp = w2_ref.shape[1]

    # concat(x_up, skip) along channels + zero halo, all in VMEM
    x = jnp.concatenate([xu_ref[...], sk_ref[...]], axis=-1)
    xpad = _pad_hw1(x)

    # conv1: one MXU matmul, K = 9*Cin, bf16 in / f32 accumulate
    p1 = _im2col3x3(xpad, th, tw)
    acc1 = jnp.dot(p1, w1_ref[...], preferred_element_type=jnp.float32)
    h = jnp.maximum(acc1 + b1_ref[...], 0.0)          # BN scale already in w1

    # conv2: re-pad the activation (value-level, no scratch zeroing), one matmul
    hpad = _pad_hw1(h.reshape(nb, th, tw, cmidp).astype(jnp.bfloat16))
    p2 = _im2col3x3(hpad, th, tw)
    acc2 = jnp.dot(p2, w2_ref[...], preferred_element_type=jnp.float32)
    out = jnp.maximum(acc2 + b2_ref[...], 0.0)

    # lane-dense store (Coutp is a multiple of 128)
    o_ref[...] = out.reshape(nb, th * tw, coutp).astype(o_ref.dtype)


# ----------------------------------------------------------------------------
# Glue (plain JAX)
# ----------------------------------------------------------------------------
def bilinear_upsample_nhwc(x, out_h, out_w):
    """F.interpolate(..., mode='bilinear', align_corners=False) in NHWC."""
    n, h, w, c = x.shape

    def coords(out_size, in_size):
        idx = (jnp.arange(out_size, dtype=jnp.float32) + 0.5) * (in_size / out_size) - 0.5
        idx = jnp.maximum(idx, 0.0)
        i0 = jnp.floor(idx).astype(jnp.int32)
        i0 = jnp.minimum(i0, in_size - 1)
        i1 = jnp.minimum(i0 + 1, in_size - 1)
        frac = jnp.clip(idx - i0.astype(jnp.float32), 0.0, 1.0)
        return i0, i1, frac

    y0, y1, fy = coords(out_h, h)
    x0, x1, fx = coords(out_w, w)
    top = x[:, y0, :, :]
    bot = x[:, y1, :, :]
    fy = fy[None, :, None, None]
    rows = top * (1.0 - fy) + bot * fy
    left = rows[:, :, x0, :]
    right = rows[:, :, x1, :]
    fx = fx[None, None, :, None]
    return left * (1.0 - fx) + right * fx


def fold_bn(conv_bias, gamma, beta, mean, var, eps=BN_EPS):
    scale = gamma / jnp.sqrt(var + eps)
    shift = beta + (conv_bias - mean) * scale
    return scale, shift


def init_params(key, in_channels, skip_channels, out_channels):
    c_in = in_channels + skip_channels
    ks = jax.random.split(key, 12)
    return {
        "w1": 0.1 * jax.random.normal(ks[0], (out_channels, c_in, KH, KW), jnp.float32),
        "b1": 0.1 * jax.random.normal(ks[1], (out_channels,), jnp.float32),
        "bn1_gamma": 1.0 + 0.1 * jax.random.normal(ks[2], (out_channels,), jnp.float32),
        "bn1_beta": 0.1 * jax.random.normal(ks[3], (out_channels,), jnp.float32),
        "bn1_mean": 0.1 * jax.random.normal(ks[4], (out_channels,), jnp.float32),
        "bn1_var": jax.random.uniform(ks[5], (out_channels,), jnp.float32, 0.5, 1.5),
        "w2": 0.1 * jax.random.normal(ks[6], (out_channels, out_channels, KH, KW), jnp.float32),
        "b2": 0.1 * jax.random.normal(ks[7], (out_channels,), jnp.float32),
        "bn2_gamma": 1.0 + 0.1 * jax.random.normal(ks[8], (out_channels,), jnp.float32),
        "bn2_beta": 0.1 * jax.random.normal(ks[9], (out_channels,), jnp.float32),
        "bn2_mean": 0.1 * jax.random.normal(ks[10], (out_channels,), jnp.float32),
        "bn2_var": jax.random.uniform(ks[11], (out_channels,), jnp.float32, 0.5, 1.5),
    }


def _choose_nb(n_img, th, tw, cin, cmidp, coutp, budget_bytes=4 * 1024 * 1024):
    """Pick how many images per grid step from a rough VMEM budget."""
    hw = th * tw
    per_img = (hw * cin * 2                                 # input blocks (bf16)
               + hw * coutp * 4                             # output block (f32)
               + (th + 2) * (tw + 2) * (cin + cmidp) * 2    # padded concat + padded h
               + hw * 9 * (cin + cmidp) * 2                 # im2col matrices (bf16)
               + hw * (cmidp + coutp) * 4)                  # f32 accumulators
    nb = int(max(1, min(n_img, budget_bytes // max(per_img, 1))))
    while n_img % nb != 0:
        nb -= 1
    return nb


def upblock_pallas(x, skip, params):
    bz, nf, C, H, W = x.shape
    Cs = skip.shape[2]
    tH, tW = skip.shape[3], skip.shape[4]
    N = bz * nf
    cin = C + Cs
    cmid = params["w1"].shape[0]
    cout = params["w2"].shape[0]
    cmidp = _round_up(cmid, LANE)
    coutp = _round_up(cout, LANE)

    # glue in NHWC (transpose + upsample fuse into one XLA pass); bf16 activations
    x_nhwc = jnp.transpose(x.reshape(N, C, H, W), (0, 2, 3, 1))
    x_up = bilinear_upsample_nhwc(x_nhwc, tH, tW).astype(jnp.bfloat16)
    sk_nhwc = jnp.transpose(skip.reshape(N, Cs, tH, tW), (0, 2, 3, 1)).astype(jnp.bfloat16)

    # fold BN scale into conv weights; keep only per-channel shifts
    s1, sh1 = fold_bn(params["b1"], params["bn1_gamma"], params["bn1_beta"],
                      params["bn1_mean"], params["bn1_var"])
    s2, sh2 = fold_bn(params["b2"], params["bn2_gamma"], params["bn2_beta"],
                      params["bn2_mean"], params["bn2_var"])

    w1 = jnp.transpose(params["w1"], (2, 3, 1, 0)) * s1[None, None, None, :]  # (3,3,cin,cmid)
    w1_mat = jnp.pad(w1.reshape(KH * KW * cin, cmid),
                     ((0, 0), (0, cmidp - cmid))).astype(jnp.bfloat16)
    b1_row = jnp.pad(sh1, (0, cmidp - cmid)).reshape(1, cmidp)

    w2 = jnp.transpose(params["w2"], (2, 3, 1, 0)) * s2[None, None, None, :]  # (3,3,cmid,cout)
    w2 = jnp.pad(w2, ((0, 0), (0, 0), (0, cmidp - cmid), (0, coutp - cout)))
    w2_mat = w2.reshape(KH * KW * cmidp, coutp).astype(jnp.bfloat16)
    b2_row = jnp.pad(sh2, (0, coutp - cout)).reshape(1, coutp)

    nb = _choose_nb(N, tH, tW, cin, cmidp, coutp)

    out_flat = pl.pallas_call(
        upblock_kernel,
        out_shape=jax.ShapeDtypeStruct((N, tH * tW, coutp), jnp.float32),
        grid_spec=pltpu.PrefetchScalarGridSpec(
            num_scalar_prefetch=0,
            grid=(N // nb,),
            in_specs=[
                pl.BlockSpec((nb, tH, tW, C), lambda n: (n, 0, 0, 0)),
                pl.BlockSpec((nb, tH, tW, Cs), lambda n: (n, 0, 0, 0)),
                pl.BlockSpec((KH * KW * cin, cmidp), lambda n: (0, 0)),
                pl.BlockSpec((1, cmidp), lambda n: (0, 0)),
                pl.BlockSpec((KH * KW * cmidp, coutp), lambda n: (0, 0)),
                pl.BlockSpec((1, coutp), lambda n: (0, 0)),
            ],
            out_specs=pl.BlockSpec((nb, tH * tW, coutp), lambda n: (n, 0, 0)),
        ),
        compiler_params=pltpu.CompilerParams(
            dimension_semantics=("parallel",),
            vmem_limit_bytes=48 * 1024 * 1024),
    )(x_up, sk_nhwc, w1_mat, b1_row, w2_mat, b2_row)

    out = out_flat[:, :, :cout].reshape(N, tH, tW, cout)
    out = jnp.transpose(out, (0, 3, 1, 2))
    return out.reshape(bz, nf, cout, tH, tW)


# ----------------------------------------------------------------------------
# Pure-JAX f32 reference (same math as the PyTorch module with eval-mode BN)
# ----------------------------------------------------------------------------
def upblock_reference(x, skip, params, eps=BN_EPS):
    bz, nf, C, H, W = x.shape
    Cs = skip.shape[2]
    tH, tW = skip.shape[3], skip.shape[4]
    N = bz * nf
    x_nhwc = jnp.transpose(x.reshape(N, C, H, W), (0, 2, 3, 1))
    x_up = jnp.transpose(bilinear_upsample_nhwc(x_nhwc, tH, tW), (0, 3, 1, 2))
    h = jnp.concatenate([x_up, skip.reshape(N, Cs, tH, tW)], axis=1)

    def conv_bn_relu(h, w, b, gamma, beta, mean, var):
        y = lax.conv_general_dilated(
            h, w, window_strides=(1, 1), padding=((1, 1), (1, 1)),
            dimension_numbers=("NCHW", "OIHW", "NCHW"))
        y = y + b[None, :, None, None]
        y = (y - mean[None, :, None, None]) / jnp.sqrt(var[None, :, None, None] + eps)
        y = y * gamma[None, :, None, None] + beta[None, :, None, None]
        return jnp.maximum(y, 0.0)

    h = conv_bn_relu(h, params["w1"], params["b1"], params["bn1_gamma"],
                     params["bn1_beta"], params["bn1_mean"], params["bn1_var"])
    h = conv_bn_relu(h, params["w2"], params["b2"], params["bn2_gamma"],
                     params["bn2_beta"], params["bn2_mean"], params["bn2_var"])
    return h.reshape(bz, nf, -1, tH, tW)


if __name__ == "__main__":
    bz, nf = 2, 2
    in_channels, skip_channels, out_channels = 4, 4, 8
    H = W = 8
    tH = tW = 16

    key = jax.random.PRNGKey(0)
    kx, ks, kp = jax.random.split(key, 3)
    x = jax.random.normal(kx, (bz, nf, in_channels, H, W), jnp.float32)
    skip = jax.random.normal(ks, (bz, nf, skip_channels, tH, tW), jnp.float32)
    params = init_params(kp, in_channels, skip_channels, out_channels)

    out = jax.block_until_ready(upblock_pallas(x, skip, params))
    ref = upblock_reference(x, skip, params)

    assert out.shape == (bz, nf, out_channels, tH, tW), out.shape
    out_np, ref_np = np.asarray(out), np.asarray(ref)
    max_err = np.max(np.abs(out_np - ref_np))
    mean_err = np.mean(np.abs(out_np - ref_np))
    # bf16 MXU inputs (f32 accumulation) -> loosened tolerance vs f32 reference
    assert np.allclose(out_np, ref_np, atol=1e-1, rtol=5e-2), (
        f"mismatch vs reference: max abs err = {max_err}")
    assert mean_err < 2e-2, f"mean abs err too large: {mean_err}"

    print("KERNEL_OK")
</pallas_src>

<mosaic_0001>
module attributes {stable_mosaic.version = 11 : i64} {
  func.func @upblock_kernel(%arg0: i32, %arg1: memref<2x16x16x4xbf16, #tpu.memory_space<vmem>>, %arg2: memref<2x16x16x4xbf16, #tpu.memory_space<vmem>>, %arg3: memref<72x128xbf16, #tpu.memory_space<vmem>>, %arg4: memref<1x128xf32, #tpu.memory_space<vmem>>, %arg5: memref<1152x128xbf16, #tpu.memory_space<vmem>>, %arg6: memref<1x128xf32, #tpu.memory_space<vmem>>, %arg7: memref<2x256x128xf32, #tpu.memory_space<vmem>>) attributes {dimension_semantics = [#tpu.dimension_semantics<parallel>], iteration_bounds = array<i64: 2>, scalar_prefetch = 0 : i64, scratch_operands = 0 : i64, tpu.core_type = #tpu.core_type<tc>, window_params = [{transform_indices = @transform_0, window_bounds = array<i64: 2, 16, 16, 4>}, {transform_indices = @transform_1, window_bounds = array<i64: 2, 16, 16, 4>}, {pipeline_mode = #tpu.pipeline_mode<synchronous>, transform_indices = @transform_2, window_bounds = array<i64: 72, 128>}, {pipeline_mode = #tpu.pipeline_mode<synchronous>, transform_indices = @transform_3, window_bounds = array<i64: 1, 128>}, {pipeline_mode = #tpu.pipeline_mode<synchronous>, transform_indices = @transform_4, window_bounds = array<i64: 1152, 128>}, {pipeline_mode = #tpu.pipeline_mode<synchronous>, transform_indices = @transform_5, window_bounds = array<i64: 1, 128>}, {transform_indices = @transform_6, window_bounds = array<i64: 2, 256, 128>}]} {
    %c0 = arith.constant 0 : index
    %c0_0 = arith.constant 0 : index
    %c0_1 = arith.constant 0 : index
    %c0_2 = arith.constant 0 : index
    %0 = vector.load %arg1[%c0, %c0_0, %c0_1, %c0_2] : memref<2x16x16x4xbf16, #tpu.memory_space<vmem>>, vector<2x16x16x4xbf16>
    %c0_3 = arith.constant 0 : index
    %c0_4 = arith.constant 0 : index
    %c0_5 = arith.constant 0 : index
    %c0_6 = arith.constant 0 : index
    %1 = vector.load %arg2[%c0_3, %c0_4, %c0_5, %c0_6] : memref<2x16x16x4xbf16, #tpu.memory_space<vmem>>, vector<2x16x16x4xbf16>
    %2 = tpu.concatenate %0, %1 in 3 : vector<2x16x16x4xbf16>, vector<2x16x16x4xbf16> -> vector<2x16x16x8xbf16>
    %cst = arith.constant 0.000000e+00 : bf16
    %3 = vector.broadcast %cst : bf16 to vector<2x1x16x8xbf16>
    %4 = tpu.concatenate %3, %2, %3 in 1 : vector<2x1x16x8xbf16>, vector<2x16x16x8xbf16>, vector<2x1x16x8xbf16> -> vector<2x18x16x8xbf16>
    %cst_7 = arith.constant 0.000000e+00 : bf16
    %5 = vector.broadcast %cst_7 : bf16 to vector<2x18x1x8xbf16>
    %6 = tpu.concatenate %5, %4, %5 in 2 : vector<2x18x1x8xbf16>, vector<2x18x16x8xbf16>, vector<2x18x1x8xbf16> -> vector<2x18x18x8xbf16>
    %7 = vector.extract_strided_slice %6 {offsets = [0, 0, 0, 0], sizes = [2, 16, 16, 8], strides = [1, 1, 1, 1]} : vector<2x18x18x8xbf16> to vector<2x16x16x8xbf16>
    %8 = vector.extract_strided_slice %6 {offsets = [0, 0, 1, 0], sizes = [2, 16, 16, 8], strides = [1, 1, 1, 1]} : vector<2x18x18x8xbf16> to vector<2x16x16x8xbf16>
    %9 = vector.extract_strided_slice %6 {offsets = [0, 0, 2, 0], sizes = [2, 16, 16, 8], strides = [1, 1, 1, 1]} : vector<2x18x18x8xbf16> to vector<2x16x16x8xbf16>
    %10 = vector.extract_strided_slice %6 {offsets = [0, 1, 0, 0], sizes = [2, 16, 16, 8], strides = [1, 1, 1, 1]} : vector<2x18x18x8xbf16> to vector<2x16x16x8xbf16>
    %11 = vector.extract_strided_slice %6 {offsets = [0, 1, 1, 0], sizes = [2, 16, 16, 8], strides = [1, 1, 1, 1]} : vector<2x18x18x8xbf16> to vector<2x16x16x8xbf16>
    %12 = vector.extract_strided_slice %6 {offsets = [0, 1, 2, 0], sizes = [2, 16, 16, 8], strides = [1, 1, 1, 1]} : vector<2x18x18x8xbf16> to vector<2x16x16x8xbf16>
    %13 = vector.extract_strided_slice %6 {offsets = [0, 2, 0, 0], sizes = [2, 16, 16, 8], strides = [1, 1, 1, 1]} : vector<2x18x18x8xbf16> to vector<2x16x16x8xbf16>
    %14 = vector.extract_strided_slice %6 {offsets = [0, 2, 1, 0], sizes = [2, 16, 16, 8], strides = [1, 1, 1, 1]} : vector<2x18x18x8xbf16> to vector<2x16x16x8xbf16>
    %15 = vector.extract_strided_slice %6 {offsets = [0, 2, 2, 0], sizes = [2, 16, 16, 8], strides = [1, 1, 1, 1]} : vector<2x18x18x8xbf16> to vector<2x16x16x8xbf16>
    %16 = tpu.concatenate %7, %8, %9, %10, %11, %12, %13, %14, %15 in 3 : vector<2x16x16x8xbf16>, vector<2x16x16x8xbf16>, vector<2x16x16x8xbf16>, vector<2x16x16x8xbf16>, vector<2x16x16x8xbf16>, vector<2x16x16x8xbf16>, vector<2x16x16x8xbf16>, vector<2x16x16x8xbf16>, vector<2x16x16x8xbf16> -> vector<2x16x16x72xbf16>
    %17 = vector.shape_cast %16 : vector<2x16x16x72xbf16> to vector<512x72xbf16>
    %c0_8 = arith.constant 0 : index
    %c0_9 = arith.constant 0 : index
    %18 = vector.load %arg3[%c0_8, %c0_9] : memref<72x128xbf16, #tpu.memory_space<vmem>>, vector<72x128xbf16>
    %cst_10 = arith.constant dense<0.000000e+00> : vector<512x128xf32>
    %19 = tpu.matmul %17, %18, %cst_10 {dimension_numbers = #tpu.dot_dimension_numbers<[1], [0], [0], [1], [0, 0, 1, 1], [], []>} : vector<512x72xbf16>, vector<72x128xbf16>, vector<512x128xf32> -> vector<512x128xf32>
    %c0_11 = arith.constant 0 : index
    %c0_12 = arith.constant 0 : index
    %20 = vector.load %arg4[%c0_11, %c0_12] : memref<1x128xf32, #tpu.memory_space<vmem>>, vector<1x128xf32>
    %21 = vector.broadcast %20 : vector<1x128xf32> to vector<512x128xf32>
    %22 = arith.addf %19, %21 : vector<512x128xf32>
    %cst_13 = arith.constant 0.000000e+00 : f32
    %23 = vector.broadcast %cst_13 : f32 to vector<512x128xf32>
    %24 = arith.maximumf %22, %23 : vector<512x128xf32>
    %25 = vector.shape_cast %24 : vector<512x128xf32> to vector<2x16x16x128xf32>
    %26 = arith.truncf %25 : vector<2x16x16x128xf32> to vector<2x16x16x128xbf16>
    %cst_14 = arith.constant 0.000000e+00 : bf16
    %27 = vector.broadcast %cst_14 : bf16 to vector<2x1x16x128xbf16>
    %28 = tpu.concatenate %27, %26, %27 in 1 : vector<2x1x16x128xbf16>, vector<2x16x16x128xbf16>, vector<2x1x16x128xbf16> -> vector<2x18x16x128xbf16>
    %cst_15 = arith.constant 0.000000e+00 : bf16
    %29 = vector.broadcast %cst_15 : bf16 to vector<2x18x1x128xbf16>
    %30 = tpu.concatenate %29, %28, %29 in 2 : vector<2x18x1x128xbf16>, vector<2x18x16x128xbf16>, vector<2x18x1x128xbf16> -> vector<2x18x18x128xbf16>
    %31 = vector.extract_strided_slice %30 {offsets = [0, 0, 0, 0], sizes = [2, 16, 16, 128], strides = [1, 1, 1, 1]} : vector<2x18x18x128xbf16> to vector<2x16x16x128xbf16>
    %32 = vector.extract_strided_slice %30 {offsets = [0, 0, 1, 0], sizes = [2, 16, 16, 128], strides = [1, 1, 1, 1]} : vector<2x18x18x128xbf16> to vector<2x16x16x128xbf16>
    %33 = vector.extract_strided_slice %30 {offsets = [0, 0, 2, 0], sizes = [2, 16, 16, 128], strides = [1, 1, 1, 1]} : vector<2x18x18x128xbf16> to vector<2x16x16x128xbf16>
    %34 = vector.extract_strided_slice %30 {offsets = [0, 1, 0, 0], sizes = [2, 16, 16, 128], strides = [1, 1, 1, 1]} : vector<2x18x18x128xbf16> to vector<2x16x16x128xbf16>
    %35 = vector.extract_strided_slice %30 {offsets = [0, 1, 1, 0], sizes = [2, 16, 16, 128], strides = [1, 1, 1, 1]} : vector<2x18x18x128xbf16> to vector<2x16x16x128xbf16>
    %36 = vector.extract_strided_slice %30 {offsets = [0, 1, 2, 0], sizes = [2, 16, 16, 128], strides = [1, 1, 1, 1]} : vector<2x18x18x128xbf16> to vector<2x16x16x128xbf16>
    %37 = vector.extract_strided_slice %30 {offsets = [0, 2, 0, 0], sizes = [2, 16, 16, 128], strides = [1, 1, 1, 1]} : vector<2x18x18x128xbf16> to vector<2x16x16x128xbf16>
    %38 = vector.extract_strided_slice %30 {offsets = [0, 2, 1, 0], sizes = [2, 16, 16, 128], strides = [1, 1, 1, 1]} : vector<2x18x18x128xbf16> to vector<2x16x16x128xbf16>
    %39 = vector.extract_strided_slice %30 {offsets = [0, 2, 2, 0], sizes = [2, 16, 16, 128], strides = [1, 1, 1, 1]} : vector<2x18x18x128xbf16> to vector<2x16x16x128xbf16>
    %40 = tpu.concatenate %31, %32, %33, %34, %35, %36, %37, %38, %39 in 3 : vector<2x16x16x128xbf16>, vector<2x16x16x128xbf16>, vector<2x16x16x128xbf16>, vector<2x16x16x128xbf16>, vector<2x16x16x128xbf16>, vector<2x16x16x128xbf16>, vector<2x16x16x128xbf16>, vector<2x16x16x128xbf16>, vector<2x16x16x128xbf16> -> vector<2x16x16x1152xbf16>
    %41 = vector.shape_cast %40 : vector<2x16x16x1152xbf16> to vector<512x1152xbf16>
    %c0_16 = arith.constant 0 : index
    %c0_17 = arith.constant 0 : index
    %42 = vector.load %arg5[%c0_16, %c0_17] : memref<1152x128xbf16, #tpu.memory_space<vmem>>, vector<1152x128xbf16>
    %cst_18 = arith.constant dense<0.000000e+00> : vector<512x128xf32>
    %43 = tpu.matmul %41, %42, %cst_18 {dimension_numbers = #tpu.dot_dimension_numbers<[1], [0], [0], [1], [0, 0, 1, 1], [], []>} : vector<512x1152xbf16>, vector<1152x128xbf16>, vector<512x128xf32> -> vector<512x128xf32>
    %c0_19 = arith.constant 0 : index
    %c0_20 = arith.constant 0 : index
    %44 = vector.load %arg6[%c0_19, %c0_20] : memref<1x128xf32, #tpu.memory_space<vmem>>, vector<1x128xf32>
    %45 = vector.broadcast %44 : vector<1x128xf32> to vector<512x128xf32>
    %46 = arith.addf %43, %45 : vector<512x128xf32>
    %cst_21 = arith.constant 0.000000e+00 : f32
    %47 = vector.broadcast %cst_21 : f32 to vector<512x128xf32>
    %48 = arith.maximumf %46, %47 : vector<512x128xf32>
    %49 = vector.shape_cast %48 : vector<512x128xf32> to vector<2x256x128xf32>
    %c0_22 = arith.constant 0 : index
    %c0_23 = arith.constant 0 : index
    %c0_24 = arith.constant 0 : index
    %50 = vector.load %arg7[%c0_22, %c0_23, %c0_24] : memref<2x256x128xf32, #tpu.memory_space<vmem>>, vector<2x256x128xf32>
    tpu.vector_store %arg7[%c0_22, %c0_23, %c0_24], %49 {strides = array<i32>} : memref<2x256x128xf32, #tpu.memory_space<vmem>>, vector<2x256x128xf32>,
    return
  }
  func.func @transform_0(%arg0: i32) -> (i32, i32, i32, i32) {
    %c0_i32 = arith.constant 0 : i32
    %c0_i32_0 = arith.constant 0 : i32
    %c0_i32_1 = arith.constant 0 : i32
    %c0_i32_2 = arith.constant 0 : i32
    return %arg0, %c0_i32, %c0_i32_0, %c0_i32_1 : i32, i32, i32, i32
  }
  func.func @transform_1(%arg0: i32) -> (i32, i32, i32, i32) {
    %c0_i32 = arith.constant 0 : i32
    %c0_i32_0 = arith.constant 0 : i32
    %c0_i32_1 = arith.constant 0 : i32
    %c0_i32_2 = arith.constant 0 : i32
    return %arg0, %c0_i32, %c0_i32_0, %c0_i32_1 : i32, i32, i32, i32
  }
  func.func @transform_2(%arg0: i32) -> (i32, i32) {
    %c0_i32 = arith.constant 0 : i32
    %c0_i32_0 = arith.constant 0 : i32
    %c0_i32_1 = arith.constant 0 : i32
    return %c0_i32, %c0_i32_0 : i32, i32
  }
  func.func @transform_3(%arg0: i32) -> (i32, i32) {
    %c0_i32 = arith.constant 0 : i32
    %c0_i32_0 = arith.constant 0 : i32
    %c0_i32_1 = arith.constant 0 : i32
    return %c0_i32, %c0_i32_0 : i32, i32
  }
  func.func @transform_4(%arg0: i32) -> (i32, i32) {
    %c0_i32 = arith.constant 0 : i32
    %c0_i32_0 = arith.constant 0 : i32
    %c0_i32_1 = arith.constant 0 : i32
    return %c0_i32, %c0_i32_0 : i32, i32
  }
  func.func @transform_5(%arg0: i32) -> (i32, i32) {
    %c0_i32 = arith.constant 0 : i32
    %c0_i32_0 = arith.constant 0 : i32
    %c0_i32_1 = arith.constant 0 : i32
    return %c0_i32, %c0_i32_0 : i32, i32
  }
  func.func @transform_6(%arg0: i32) -> (i32, i32, i32) {
    %c0_i32 = arith.constant 0 : i32
    %c0_i32_0 = arith.constant 0 : i32
    %c0_i32_1 = arith.constant 0 : i32
    return %arg0, %c0_i32, %c0_i32_0 : i32, i32, i32
  }
}

</mosaic_0001>

<bundles_post_ra>
// kernel: tpu_custom_call.1
= control target key start
LH: loop header
LB: loop body
LE: loop exit
PB: predicated region body
PF: predicated region fallthrough
CT: control target
= control target key end

     0   :  { %11 = vsyncpa [#allocation3], 0  ;;  %s11998_s0 = inlined_call_operand.vmem [shape: bf16[4,16,16,4], index: 0, kind: input, shape index: {}]   ;;  %s11999_s1 = inlined_call_operand.vmem [shape: bf16[4,16,16,4], index: 1, kind: input, shape index: {}]   ;;  %s12000_s2 = inlined_call_operand.vmem [shape: bf16[72,128], index: 2, kind: input, shape index: {}]   ;;  %s12001_s3 = inlined_call_operand.vmem [shape: f32[1,128], index: 3, kind: input, shape index: {}]   ;;  %s12002_s4 = inlined_call_operand.vmem [shape: bf16[1152,128], index: 4, kind: input, shape index: {}]   ;;  %s12003_s5 = inlined_call_operand.vmem [shape: f32[1,128], index: 5, kind: input, shape index: {}]   ;;  %s12004_s6 = inlined_call_operand.hbm [shape: f32[4,256,128], index: 6, kind: output, shape index: {}]  }
   0x1   :  { %13 = vsyncpa [#allocation3 + $0x1], 0  ;;  %s7584_s21 = smov 0   ;;  %s7586_s22 = smov 0  }
   0x2   :  { %s7588_s23 = smov 0   ;;  %s7590_s24 = smov 0  }
   0x3 LB: > { %s7605_s25 = sadd.s32 4294967295, %s7536_s24   ;;  %s6651_s26 = sadd.s32 4294967294, %s7536_s24   ;;  %s7536_s24 = sphi %s7590_s24, %s13079_s24   ;;  %s7532_s23 = sphi %s7588_s23, %s13078_s23   ;;  %s7528_s22 = sphi %s7586_s22, %s13077_s22   ;;  %s7524_s21 = sphi %s7584_s21, %s13076_s21  }
   0x4   : > { %s7609_s27 = sadd.s32 1, %s7536_s24   ;;  %s162_s28 = sadd.s32 1, %s7532_s23 }
   0x5   : > { %s159_s29 = ssub.s32 %s7536_s24, %s7609_s27  ;;  %p172_p0 = scmp.ne.s32.totalorder %s7532_s23, %s7528_s22 }
   0x6   : > { %p160_p1 = scmp.eq.s32.totalorder %s159_s29, 0  ;;  %p173_p2 = scmp.eq.s32.totalorder %s7605_s25, 1 }
   0x7   : > { %p178_p3 = scmp.ne.s32.totalorder %s7528_s22, %s7524_s21  ;;  %p179_p4 = scmp.eq.s32.totalorder %s6651_s26, 1 }
   0x8   : > { %s7620_s30 = scalar_select %p160_p1, %s7532_s23, %s162_s28  }
   0x9   : > { %p7622_p5 = por %p173_p2, %p172_p0  ;;  %p7626_p6 = por %p179_p4, %p178_p3 }
   0xa   : > { %p6654_p7 = scmp.ge.s32.totalorder %s7536_s24, 1  ;;  %p229_p8 = scmp.lt.s32.totalorder %s7536_s24, 3 }
   0xc   : > { %p230_p9 = pnand %p6654_p7, %p229_p8 }
   0xe   : > { %233 = sbr.rel (%p230_p9) target bundleno = 2434 (0x982), region = 44 }
  0x13   : > { %s6656_s9 = sshll.u32 %s7605_s25, 1  ;;  %s7538_s14 = smov 4   ;;  %vm1156_vm0 = vcmask 1040384   ;;  %vm1157_vm1 = vsmask.f32 256  ;;  %v7539_v11 = vmov 0  }
  0x14   : > { %p267_p10 = scmp.lt.s32.totalorder %s6656_s9, 3  ;;  %vm7663_vm2 = vmand %vm1156_vm0, %vm1157_vm1  ;;  %v894_v12 = vrot.slane %v7539_v11, 7  ;;  %vm1722_vm3 = vcmask 1046528   ;;  %s7540_s15 = smov 16   ;;  %vm1225_vm4 = vsmask.f32 7424 }
  0x15   : > { %s7541_s16 = smov 8   ;;  %vm794_vm5 = vcmask 31744   ;;  %s7542_s20 = smov 24   ;;  %vm2908_vm6 = vcmask 1043456   ;;  %vm2290_vm7 = vcmask 64512   ;;  %vm2353_vm8 = vcmask 130048  }
  0x16   : > { %s13081_s9 = smov (!%p267_p10, %s6656_s9), 3  ;;  %v7669_v13 = vsel %vm7663_vm2, 0, %v894_v12  ;;  %v1192_v14 = vsel %vm7663_vm2, %v894_v12, 0  ;;  %s7543_s26 = smov 40   ;;  %vm2416_vm9 = vcmask 195584   ;;  %vm2481_vm10 = vcmask 261120  }
  0x17   : > { %s7260_s10 = sshll.u32 %s13081_s9, 7  ;;  %12136 = vst [vmem:[#allocation5_spill] sm:$0xff] %v7669_v13  ;;  %v1723_v15 = vrot.slane %v7669_v13, 1  ;;  %v1724_v16 = vrot.slane %v1192_v14, 1  ;;  %v1229_v17 = vshll.u32 %v7669_v13, 16  ;;  %v1227_v19 = vshrl.u32 %v7669_v13, 16 }
  0x18   : > { %s7641_s13 = scalar_lea.vmem %s11999_s1, %s7260_s10  ;;  %v1234_v21 = vshll.u32 %v1192_v14, 16  ;;  %s7691_s19 = scalar_lea.vmem %s11998_s0, %s7260_s10  ;;  %vm2546_vm11 = vcmask 326656   ;;  %vm2611_vm12 = vcmask 392192   ;;  %vm2675_vm13 = vcmask 457728  }
  0x19   : > { %v7294_v0 = vld [vmem:[%s7641_s13] sm:$0xff]  ;;  %v7296_v1 = vld [vmem:[%s7641_s13 + $0x10] sm:$0xff]  ;;  %v7295_v3 = vld [vmem:[%s7641_s13 + $0x8] sm:$0xff]  ;;  %v7676_v18 = vsel %vm1722_vm3, %v1723_v15, %v1724_v16  ;;  %v1231_v20 = vrot.slane %v1229_v17, 1  ;;  %s7544_s28 = smov 32   ;;  %s7545_s29 = smov 48  }
  0x1a   : > { %v7298_v2 = vld [vmem:[%s7641_s13 + $0x20] sm:$0xff]  ;;  %730 = vrot.lane.b32.xlu0 %v7294_v0, %s7538_s14  ;;  %734 = vrot.lane.b32.xlu1 %v7296_v1, %s7538_s14  ;;  %v7297_v4 = vld [vmem:[%s7641_s13 + $0x18] sm:$0xff]  ;;  %12137 = vst [vmem:[#allocation6_spill] sm:$0xff] %v7676_v18  ;;  %v1236_v23 = vrot.slane %v1234_v21, 1  ;;  %s7546_s9 = smov 64   ;;  %s7547_s10 = smov 56  }
  0x1b   : > { %738 = vrot.lane.b32.xlu2 %v7298_v2, %s7538_s14  ;;  %v7299_v5 = vld [vmem:[%s7641_s13 + $0x28] sm:$0xff]  ;;  %v7300_v6 = vld [vmem:[%s7641_s13 + $0x30] sm:$0xff]  ;;  %v7301_v7 = vld [vmem:[%s7641_s13 + $0x38] sm:$0xff]  ;;  %v1232_v22 = vor.u32 %v1231_v20, %v1227_v19  ;;  %vm2739_vm14 = vcmask 523264   ;;  %vm2843_vm15 = vcmask 588800   ;;  %s7403_s18 = sshll.u32 %s7605_s25, 9 }
  0x1c   : > { %v7302_v8 = vld [vmem:[%s7641_s13 + $0x40] sm:$0xff]  ;;  %v7303_v9 = vld [vmem:[%s7641_s13 + $0x48] sm:$0xff]  ;;  %v7264_v47 = vld [vmem:[%s7691_s19 + $0x10] sm:$0xff] }
  0x1d   : > { %v7682_v24 = vsel %vm1225_vm4, %v1232_v22, %v1236_v23  ;;  %v7262_v25 = vld [vmem:[%s7691_s19] sm:$0xff]  ;;  %v7263_v31 = vld [vmem:[%s7691_s19 + $0x8] sm:$0xff] }
  0x1e   : > { %12138 = vst [vmem:[#allocation7_spill] sm:$0xff] %v7682_v24 }
  0x22   : > { %732 = vrot.lane.b32.xlu0 %v7295_v3, %s7538_s14  ;;  %736 = vrot.lane.b32.xlu1 %v7297_v4, %s7538_s14 }
  0x23   : > { %1598 = vrot.lane.b32.xlu2 %v7682_v24, %s7541_s16 }
  0x2a   : > { %740 = vrot.lane.b32.xlu1 %v7299_v5, %s7538_s14  ;;  %1816 = vrot.lane.b32.xlu0 %v7676_v18, %s7540_s15 }
  0x32   : > { %742 = vrot.lane.b32.xlu1 %v7300_v6, %s7538_s14  ;;  %v7265_v6 = vld [vmem:[%s7691_s19 + $0x18] sm:$0xff] }
  0x3a   : > { %744 = vrot.lane.b32.xlu1 %v7301_v7, %s7538_s14 }
  0x42   : > { %746 = vrot.lane.b32.xlu1 %v7302_v8, %s7538_s14 }
  0x4a   : > { %748 = vrot.lane.b32.xlu1 %v7303_v9, %s7538_s14 }
  0x8c   : > { %v731_v26 = vpop.permute.xlu0 %730  ;;  %v735_v50 = vpop.permute.xlu1 %734 }
  0x8d   : > { %v797_v27 = vsel %vm794_vm5, %v7262_v25, %v731_v26  ;;  %v803_v55 = vsel %vm794_vm5, %v7264_v47, %v735_v50 }
  0x8e   : > { %v898_v28 = vshrl.u32 %v797_v27, 16  ;;  %v901_v30 = vshll.u32 %v797_v27, 16  ;;  %v910_v63 = vshrl.u32 %v803_v55, 16  ;;  %v913_v4 = vshll.u32 %v803_v55, 16 }
  0x90   : > { %v900_v29 = vrot.slane %v898_v28, 7  ;;  %v912_v3 = vrot.slane %v910_v63, 7  ;;  %v7266_v28 = vld [vmem:[%s7691_s19 + $0x20] sm:$0xff] }
  0x92   : > { %v903_v32 = vor.u32 %v901_v30, %v900_v29  ;;  %v1193_v33 = vsel %vm7663_vm2, %v900_v29, 0  ;;  %v915_v5 = vor.u32 %v913_v4, %v912_v3  ;;  %v1195_v11 = vsel %vm7663_vm2, %v912_v3, 0  ;;  %v739_v29 = vpop.permute.xlu2 %738 }
  0x93   : > { %v1246_v34 = vshll.u32 %v1193_v33, 16  ;;  %v1727_v39 = vrot.slane %v1193_v33, 1  ;;  %v1270_v15 = vshll.u32 %v1195_v11, 16  ;;  %v1733_v17 = vrot.slane %v1195_v11, 1 }
  0x94   : > { %v733_v35 = vpop.permute.xlu0 %732  ;;  %v7700_v36 = vsel %vm7663_vm2, 0, %v903_v32  ;;  %v737_v7 = vpop.permute.xlu1 %736  ;;  %v7735_v8 = vsel %vm7663_vm2, 0, %v915_v5  ;;  %v809_v32 = vsel %vm794_vm5, %v7266_v28, %v739_v29  ;;  %v7326_v28 = vld [vmem:[%s12000_s2] sm:$0xff]  ;;  %v7269_v29 = vld [vmem:[%s7691_s19 + $0x38] sm:$0xff] }
  0x95   : > { %v800_v37 = vsel %vm794_vm5, %v7263_v31, %v733_v35  ;;  %1880 = vrot.lane.b32.xlu1 %v7700_v36, %s7542_s20  ;;  %v1726_v38 = vrot.slane %v7700_v36, 1  ;;  %v1241_v40 = vshll.u32 %v7700_v36, 16  ;;  %v1239_v43 = vshrl.u32 %v7700_v36, 16 }
  0x96   : > { %v904_v41 = vshrl.u32 %v800_v37, 16  ;;  %v907_v46 = vshll.u32 %v800_v37, 16  ;;  %v1248_v49 = vrot.slane %v1246_v34, 1  ;;  %v806_v9 = vsel %vm794_vm5, %v7265_v6, %v737_v7 }
  0x97   : > { %v1728_v42 = vsel %vm1722_vm3, %v1726_v38, %v1727_v39  ;;  %v1243_v44 = vrot.slane %v1241_v40, 1  ;;  %v1265_v12 = vshll.u32 %v7735_v8, 16  ;;  %v916_v14 = vshrl.u32 %v806_v9, 16  ;;  %v7267_v40 = vld [vmem:[%s7691_s19 + $0x28] sm:$0xff] }
  0x98   : > { %v906_v45 = vrot.slane %v904_v41, 7  ;;  %2040 = vrot.lane.b32.xlu0 %v1728_v42, %s7543_s26  ;;  %v1732_v16 = vrot.slane %v7735_v8, 1  ;;  %v1263_v19 = vshrl.u32 %v7735_v8, 16  ;;  %v919_v22 = vshll.u32 %v806_v9, 16 }
  0x99   : > { %v1244_v48 = vor.u32 %v1243_v44, %v1239_v43  ;;  %v1267_v20 = vrot.slane %v1265_v12, 1  ;;  %v918_v21 = vrot.slane %v916_v14, 7  ;;  %v1272_v26 = vrot.slane %v1270_v15, 1  ;;  %v7329_v15 = vld [vmem:[%s12000_s2 + $0x18] sm:$0xff] }
  0x9a   : > { %v909_v51 = vor.u32 %v907_v46, %v906_v45  ;;  %v1194_v52 = vsel %vm7663_vm2, %v906_v45, 0  ;;  %v1734_v23 = vsel %vm1722_vm3, %v1732_v16, %v1733_v17  ;;  %v922_v33 = vshrl.u32 %v809_v32, 16 }
  0x9b   : > { %v1249_v53 = vsel %vm1225_vm4, %v1244_v48, %v1248_v49  ;;  %v1258_v56 = vshll.u32 %v1194_v52, 16  ;;  %v1730_v58 = vrot.slane %v1194_v52, 1  ;;  %v1268_v25 = vor.u32 %v1267_v20, %v1263_v19 }
  0x9c   : > { %v7716_v54 = vsel %vm7663_vm2, 0, %v909_v51  ;;  %1968 = vrot.lane.b32.xlu2 %v1249_v53, %s7544_s28  ;;  %v921_v27 = vor.u32 %v919_v22, %v918_v21  ;;  %v924_v34 = vrot.slane %v922_v33, 7  ;;  %v925_v35 = vshll.u32 %v809_v32, 16 }
  0x9d   : > { %2104 = vrot.lane.b32.xlu1 %v7716_v54, %s7545_s29  ;;  %v1729_v57 = vrot.slane %v7716_v54, 1  ;;  %v1253_v59 = vshll.u32 %v7716_v54, 16  ;;  %v1251_v61 = vshrl.u32 %v7716_v54, 16  ;;  %v1260_v1 = vrot.slane %v1258_v56, 1 }
  0x9e   : > { %v1273_v30 = vsel %vm1225_vm4, %v1268_v25, %v1272_v26  ;;  %v7756_v31 = vsel %vm7663_vm2, 0, %v921_v27  ;;  %v1196_v37 = vsel %vm7663_vm2, %v918_v21, 0  ;;  %v927_v39 = vor.u32 %v925_v35, %v924_v34  ;;  %v7328_v21 = vld [vmem:[%s12000_s2 + $0x10] sm:$0xff]  ;;  %v1599_v26 = vpop.permute.xlu2 %1598  ;;  %v7327_v27 = vld [vmem:[%s12000_s2 + $0x8] sm:$0xff] }
  0x9f   : > { %v1731_v60 = vsel %vm1722_vm3, %v1729_v57, %v1730_v58  ;;  %v1255_v62 = vrot.slane %v1253_v59, 1  ;;  %v1277_v38 = vshll.u32 %v7756_v31, 16  ;;  %v1282_v41 = vshll.u32 %v1196_v37, 16  ;;  %v7268_v58 = vld [vmem:[%s7691_s19 + $0x30] sm:$0xff] }
  0xa0   : > { %2228 = vrot.lane.b32.xlu0 %v1731_v60, %s7546_s9  ;;  %v1735_v43 = vrot.slane %v7756_v31, 1  ;;  %v1736_v44 = vrot.slane %v1196_v37, 1  ;;  %v1275_v45 = vshrl.u32 %v7756_v31, 16  ;;  %v7775_v47 = vsel %vm7663_vm2, 0, %v927_v39 }
  0xa1   : > { %v1256_v0 = vor.u32 %v1255_v62, %v1251_v61  ;;  %v1279_v46 = vrot.slane %v1277_v38, 1  ;;  %v1284_v51 = vrot.slane %v1282_v41, 1  ;;  %v2811_v61 = vld [vmem:[%s12000_s2 + $0x20] sm:$0xf]  ;;  %v1738_v6 = vrot.slane %v7775_v47, 1 }
  0xa2   : > { %v1737_v49 = vsel %vm1722_vm3, %v1735_v43, %v1736_v44  ;;  %v2833_v63 = vunpack.c.l.b16 %v2811_v61  ;;  %v1287_v9 = vshrl.u32 %v7775_v47, 16 }
  0xa3   : > { %v1261_v2 = vsel %vm1225_vm4, %v1256_v0, %v1260_v1  ;;  %v1280_v50 = vor.u32 %v1279_v46, %v1275_v45  ;;  %v1197_v0 = vsel %vm7663_vm2, %v924_v34, 0  ;;  %v1289_v1 = vshll.u32 %v7775_v47, 16 }
  0xa4   : > { %2166 = vrot.lane.b32.xlu2 %v1261_v2, %s7547_s10  ;;  %v1294_v5 = vshll.u32 %v1197_v0, 16  ;;  %v1739_v7 = vrot.slane %v1197_v0, 1  ;;  %v7305_v0 = vld [vmem:[%s7641_s13 + $0x58] sm:$0xff] }
  0xa5   : > { %1882 = vrot.lane.b32.xlu1 %v7716_v54, %s7542_s20  ;;  %v1291_v11 = vrot.slane %v1289_v1, 1 }
  0xa6   : > { %v1740_v16 = vsel %vm1722_vm3, %v1738_v6, %v1739_v7  ;;  %v1296_v19 = vrot.slane %v1294_v5, 1 }
  0xa7   : > { %v1292_v17 = vor.u32 %v1291_v11, %v1287_v9 }
  0xa8   : > { %1818 = vrot.lane.b32.xlu0 %v1728_v42, %s7540_s15  ;;  %v741_v42 = vpop.permute.xlu1 %740 }
  0xa9   : > { %v812_v48 = vsel %vm794_vm5, %v7267_v40, %v741_v42 }
  0xaa   : > { %v928_v52 = vshrl.u32 %v812_v48, 16  ;;  %v931_v56 = vshll.u32 %v812_v48, 16 }
  0xac   : > { %1600 = vrot.lane.b32.xlu2 %v1249_v53, %s7541_s16  ;;  %v1285_v53 = vsel %vm1225_vm4, %v1280_v50, %v1284_v51  ;;  %v7784_v55 = vrot.slane %v928_v52, 7 }
  0xad   : > { %2106 = vrot.lane.b32.xlu1 %v7735_v8, %s7545_s29 }
  0xae   : > { %v933_v57 = vor.u32 %v931_v56, %v7784_v55  ;;  %v1198_v35 = vsel %vm7663_vm2, %v7784_v55, 0  ;;  %v2292_v55 = vsel %vm2290_vm7, %v7669_v13, %v1599_v26 }
  0xaf   : > { %v1306_v39 = vshll.u32 %v1198_v35, 16  ;;  %v1742_v41 = vrot.slane %v1198_v35, 1 }
  0xb0   : > { %2042 = vrot.lane.b32.xlu0 %v1731_v60, %s7543_s26  ;;  %v743_v59 = vpop.permute.xlu1 %742 }
  0xb1   : > { %v815_v62 = vsel %vm794_vm5, %v7268_v58, %v743_v59  ;;  %v1308_v51 = vrot.slane %v1306_v39, 1 }
  0xb2   : > { %v934_v3 = vshrl.u32 %v815_v62, 16  ;;  %v937_v14 = vshll.u32 %v815_v62, 16  ;;  %v7270_v62 = vld [vmem:[%s7691_s19 + $0x40] sm:$0xff] }
  0xb4   : > { %1970 = vrot.lane.b32.xlu2 %v1261_v2, %s7544_s28  ;;  %v7809_v12 = vrot.slane %v934_v3, 7 }
  0xb5   : > { %1884 = vrot.lane.b32.xlu1 %v7735_v8, %s7542_s20 }
  0xb6   : > { %v939_v20 = vor.u32 %v937_v14, %v7809_v12  ;;  %v1199_v5 = vsel %vm7663_vm2, %v7809_v12, 0 }
  0xb8   : > { %2230 = vrot.lane.b32.xlu0 %v1734_v23, %s7546_s9  ;;  %v745_v22 = vpop.permute.xlu1 %744  ;;  %v7826_v25 = vsel %vm7663_vm2, 0, %v939_v20  ;;  %v1745_v20 = vrot.slane %v1199_v5, 1 }
  0xb9   : > { %v818_v32 = vsel %vm794_vm5, %v7269_v29, %v745_v22  ;;  %v1313_v9 = vshll.u32 %v7826_v25, 16 }
  0xba   : > { %v940_v38 = vshrl.u32 %v818_v32, 16  ;;  %v943_v45 = vshll.u32 %v818_v32, 16 }
  0xbb   : > { %v1315_v22 = vrot.slane %v1313_v9, 1 }
  0xbc   : > { %2168 = vrot.lane.b32.xlu2 %v1273_v30, %s7547_s10  ;;  %v7850_v44 = vrot.slane %v940_v38, 7 }
  0xbd   : > { %2108 = vrot.lane.b32.xlu1 %v7756_v31, %s7545_s29 }
  0xbe   : > { %v945_v52 = vor.u32 %v943_v45, %v7850_v44  ;;  %v7306_v45 = vld [vmem:[%s7641_s13 + $0x60] sm:$0xff] }
  0xc0   : > { %1820 = vrot.lane.b32.xlu0 %v1731_v60, %s7540_s15  ;;  %v7794_v60 = vsel %vm7663_vm2, 0, %v933_v57  ;;  %v747_v33 = vpop.permute.xlu1 %746  ;;  %v7870_v57 = vsel %vm7663_vm2, 0, %v945_v52 }
  0xc1   : > { %v1301_v37 = vshll.u32 %v7794_v60, 16  ;;  %v1741_v40 = vrot.slane %v7794_v60, 1  ;;  %v1299_v42 = vshrl.u32 %v7794_v60, 16  ;;  %v821_v3 = vsel %vm794_vm5, %v7270_v62, %v747_v33 }
  0xc2   : > { %v946_v11 = vshrl.u32 %v821_v3, 16  ;;  %v949_v26 = vshll.u32 %v821_v3, 16 }
  0xc3   : > { %v1303_v43 = vrot.slane %v1301_v37, 1 }
  0xc4   : > { %1602 = vrot.lane.b32.xlu2 %v1261_v2, %s7541_s16  ;;  %v2838_v2 = vpack.c.b16 %v2833_v63, %v2833_v63 }
  0xc5   : > { %1886 = vrot.lane.b32.xlu1 %v7756_v31, %s7542_s20  ;;  %v1304_v50 = vor.u32 %v1303_v43, %v1299_v42  ;;  %v7271_v43 = vld [vmem:[%s7691_s19 + $0x48] sm:$0xff] }
  0xc6   : > { %v2910_v4 = vsel %vm2908_vm6, %v2838_v2, 0 }
  0xc7   : > { %2915 = vmatpush.bf16.msra.mxu0 %v2910_v4  ;;  %7404 = vmatpush.bf16.msra.mxu3 %v2910_v4  ;;  %v7866_v56 = vsel %vm1225_vm4, %v1304_v50, %v1308_v51 }
  0xc8   : > { %2044 = vrot.lane.b32.xlu0 %v1734_v23, %s7543_s26  ;;  %v7855_v48 = vpop.permute.xlu1 %748 }
  0xc9   : > { %v824_v51 = vsel %vm794_vm5, %v7271_v43, %v7855_v48  ;;  %v1747_v48 = vrot.slane %v7870_v57, 1 }
  0xcb   : > { %2916 = vmatpush.bf16.msra.mxu0 %v7329_v15  ;;  %7405 = vmatpush.bf16.msra.mxu3 %v7329_v15 }
  0xcc   : > { %1972 = vrot.lane.b32.xlu2 %v1273_v30, %s7544_s28 }
  0xcd   : > { %2110 = vrot.lane.b32.xlu1 %v7775_v47, %s7545_s29 }
  0xcf   : > { %2917 = vmatpush.bf16.msra.mxu0 %v7328_v21  ;;  %7406 = vmatpush.bf16.msra.mxu3 %v7328_v21  ;;  %v1311_v21 = vshrl.u32 %v7826_v25, 16 }
  0xd0   : > { %2232 = vrot.lane.b32.xlu0 %v1737_v49, %s7546_s9 }
  0xd3   : > { %2918 = vmatpush.bf16.msra.mxu0 %v7327_v27  ;;  %7407 = vmatpush.bf16.msra.mxu3 %v7327_v27 }
  0xd4   : > { %2170 = vrot.lane.b32.xlu2 %v1285_v53, %s7547_s10 }
  0xd5   : > { %1888 = vrot.lane.b32.xlu1 %v7775_v47, %s7542_s20 }
  0xd7   : > { %2919 = vmatpush.bf16.msra.mxu0 %v7326_v28  ;;  %7408 = vmatpush.bf16.msra.mxu3 %v7326_v28 }
  0xd8   : > { %1822 = vrot.lane.b32.xlu0 %v1734_v23, %s7540_s15  ;;  %v1297_v23 = vsel %vm1225_vm4, %v1292_v17, %v1296_v19  ;;  %v1744_v19 = vrot.slane %v7826_v25, 1 }
  0xda   : > { %v1746_v29 = vsel %vm1722_vm3, %v1744_v19, %v1745_v20 }
  0xdc   : > { %1604 = vrot.lane.b32.xlu2 %v1273_v30, %s7541_s16  ;;  %v7304_v30 = vld [vmem:[%s7641_s13 + $0x50] sm:$0xff] }
  0xdd   : > { %2112 = vrot.lane.b32.xlu1 %v7794_v60, %s7545_s29 }
  0xe0   : > { %2046 = vrot.lane.b32.xlu0 %v1737_v49, %s7543_s26 }
  0xe4   : > { %1974 = vrot.lane.b32.xlu2 %v1285_v53, %s7544_s28 }
  0xe5   : > { %1890 = vrot.lane.b32.xlu1 %v7794_v60, %s7542_s20 }
  0xe8   : > { %2234 = vrot.lane.b32.xlu0 %v1740_v16, %s7546_s9 }
  0xec   : > { %2172 = vrot.lane.b32.xlu2 %v1297_v23, %s7547_s10 }
  0xed   : > { %2114 = vrot.lane.b32.xlu1 %v7826_v25, %s7545_s29 }
  0xf0   : > { %1824 = vrot.lane.b32.xlu0 %v1737_v49, %s7540_s15  ;;  %v7858_v49 = vsel %vm1722_vm3, %v1741_v40, %v1742_v41 }
  0xf4   : > { %1606 = vrot.lane.b32.xlu2 %v1285_v53, %s7541_s16  ;;  %v1817_v53 = vpop.permute.xlu0 %1816 }
  0xf5   : > { %750 = vrot.lane.b32.xlu1 %v7304_v30, %s7538_s14  ;;  %v7877_v58 = vsel %vm2353_vm8, %v2292_v55, %v1817_v53  ;;  %v1316_v30 = vor.u32 %v1315_v22, %v1311_v21 }
  0xf6   : > { %v1969_v34 = vpop.permute.xlu2 %1968 }
  0xf8   : > { %2048 = vrot.lane.b32.xlu0 %v1740_v16, %s7543_s26 }
  0xfc   : > { %1976 = vrot.lane.b32.xlu2 %v1297_v23, %s7544_s28 }
  0xfd   : > { %1892 = vrot.lane.b32.xlu1 %v7826_v25, %s7542_s20 }
  0xfe   : > { %v2167_v46 = vpop.permute.xlu2 %2166 }
 0x100   : > { %2236 = vrot.lane.b32.xlu0 %v7858_v49, %s7546_s9 }
 0x104   : > { %2174 = vrot.lane.b32.xlu2 %v7866_v56, %s7547_s10 }
 0x105   : > { %2116 = vrot.lane.b32.xlu1 %v7870_v57, %s7545_s29 }
 0x106   : > { %v1601_v59 = vpop.permute.xlu2 %1600 }
 0x107   : > { %v1881_v61 = vpop.permute.xlu1 %1880  ;;  %v2294_v38 = vsel %vm2290_vm7, %v7700_v36, %v1601_v59  ;;  %v1325_v59 = vshll.u32 %v7870_v57, 16 }
 0x108   : > { %1826 = vrot.lane.b32.xlu0 %v1740_v16, %s7540_s15  ;;  %v2418_v63 = vsel %vm2416_vm9, %v7877_v58, %v1881_v61  ;;  %v1318_v16 = vshll.u32 %v1199_v5, 16  ;;  %v952_v61 = vshrl.u32 %v824_v51, 16 }
 0x109   : > { %v2483_v2 = vsel %vm2481_vm10, %v2418_v63, %v1969_v34 }
 0x10a   : > { %v2041_v1 = vpop.permute.xlu0 %2040  ;;  %v1320_v32 = vrot.slane %v1318_v16, 1  ;;  %v7943_v3 = vrot.slane %v952_v61, 7 }
 0x10b   : > { %v2548_v6 = vsel %vm2546_vm11, %v2483_v2, %v2041_v1  ;;  %v1323_v2 = vshrl.u32 %v7870_v57, 16 }
 0x10c   : > { %1608 = vrot.lane.b32.xlu2 %v1297_v23, %s7541_s16  ;;  %v7900_v23 = vrot.slane %v946_v11, 7  ;;  %v1321_v35 = vsel %vm1225_vm4, %v1316_v30, %v1320_v32 }
 0x10d   : > { %752 = vrot.lane.b32.xlu1 %v7305_v0, %s7538_s14 }
 0x10e   : > { %v1971_v4 = vpop.permute.xlu2 %1970  ;;  %v951_v33 = vor.u32 %v949_v26, %v7900_v23  ;;  %v7307_v26 = vld [vmem:[%s7641_s13 + $0x68] sm:$0xff]  ;;  %v1201_v32 = vsel %vm7663_vm2, %v7900_v23, 0 }
 0x10f   : > { %v2105_v7 = vpop.permute.xlu1 %2104 }
 0x110   : > { %v2613_v14 = vsel %vm2611_vm12, %v2548_v6, %v2105_v7  ;;  %2050 = vrot.lane.b32.xlu0 %v7858_v49, %s7543_s26  ;;  %v7913_v37 = vsel %vm7663_vm2, 0, %v951_v33 }
 0x111   : > { %v2677_v15 = vsel %vm2675_vm13, %v2613_v14, %v2167_v46  ;;  %v1335_v43 = vshrl.u32 %v7913_v37, 16 }
 0x112   : > { %v2229_v17 = vpop.permute.xlu0 %2228 }
 0x113   : > { %v2741_v12 = vsel %vm2739_vm14, %v2677_v15, %v2229_v17 }
 0x114   : > { %1978 = vrot.lane.b32.xlu2 %v7866_v56, %s7544_s28  ;;  %6934 = vmatmul.msk.bf16.vlgmr.msra.gmra.mxu0 %vm2843_vm15, %v2741_v12 }
 0x115   : > { %1894 = vrot.lane.b32.xlu1 %v7870_v57, %s7542_s20 }
 0x116   : > { %v2169_v27 = vpop.permute.xlu2 %2168 }
 0x117   : > { %v1883_v28 = vpop.permute.xlu1 %1882 }
 0x118   : > { %2238 = vrot.lane.b32.xlu0 %v1746_v29, %s7546_s9 }
 0x11a   : > { %v1819_v34 = vpop.permute.xlu0 %1818 }
 0x11b   : > { %v2357_v39 = vsel %vm2353_vm8, %v2294_v38, %v1819_v34  ;;  %v1342_v38 = vshll.u32 %v1201_v32, 16 }
 0x11c   : > { %2176 = vrot.lane.b32.xlu2 %v1321_v35, %s7547_s10  ;;  %v2420_v42 = vsel %vm2416_vm9, %v2357_v39, %v1883_v28 }
 0x11d   : > { %2118 = vrot.lane.b32.xlu1 %v7913_v37, %s7545_s29  ;;  %v2485_v50 = vsel %vm2481_vm10, %v2420_v42, %v1971_v4  ;;  %v955_v4 = vshll.u32 %v824_v51, 16  ;;  %v1751_v42 = vrot.slane %v1201_v32, 1  ;;  %v1344_v51 = vrot.slane %v1342_v38, 1 }
 0x11e   : > { %v1603_v40 = vpop.permute.xlu2 %1602 }
 0x11f   : > { %v2107_v41 = vpop.permute.xlu1 %2106  ;;  %v957_v14 = vor.u32 %v955_v4, %v7943_v3  ;;  %v2296_v19 = vsel %vm2290_vm7, %v7716_v54, %v1603_v40 }
 0x120   : > { %1828 = vrot.lane.b32.xlu0 %v7858_v49, %s7540_s15  ;;  %v1200_v49 = vsel %vm7663_vm2, %v7850_v44, 0  ;;  %v1327_v44 = vrot.slane %v1325_v59, 1 }
 0x121   : > { %v1330_v62 = vshll.u32 %v1200_v49, 16  ;;  %v1748_v1 = vrot.slane %v1200_v49, 1  ;;  %v7955_v17 = vsel %vm7663_vm2, 0, %v957_v14 }
 0x122   : > { %v2043_v46 = vpop.permute.xlu0 %2042  ;;  %v1328_v9 = vor.u32 %v1327_v44, %v1323_v2  ;;  %v1349_v44 = vshll.u32 %v7955_v17, 16  ;;  %v1347_v14 = vshrl.u32 %v7955_v17, 16 }
 0x123   : > { %v2550_v36 = vsel %vm2546_vm11, %v2485_v50, %v2043_v46  ;;  %v1749_v7 = vsel %vm1722_vm3, %v1747_v48, %v1748_v1  ;;  %v1332_v11 = vrot.slane %v1330_v62, 1 }
 0x124   : > { %1610 = vrot.lane.b32.xlu2 %v7866_v56, %s7541_s16  ;;  %v2615_v53 = vsel %vm2611_vm12, %v2550_v36, %v2107_v41 }
 0x125   : > { %754 = vrot.lane.b32.xlu1 %v7306_v45, %s7538_s14  ;;  %v2679_v63 = vsel %vm2675_vm13, %v2615_v53, %v2169_v27  ;;  %v1333_v16 = vsel %vm1225_vm4, %v1328_v9, %v1332_v11 }
 0x126   : > { %v1973_v52 = vpop.permute.xlu2 %1972 }
 0x127   : > { %v1885_v55 = vpop.permute.xlu1 %1884 }
 0x128   : > { %2052 = vrot.lane.b32.xlu0 %v1746_v29, %s7543_s26 }
 0x12a   : > { %v2231_v56 = vpop.permute.xlu0 %2230 }
 0x12b   : > { %v2743_v0 = vsel %vm2739_vm14, %v2679_v63, %v2231_v56 }
 0x12c   : > { %1980 = vrot.lane.b32.xlu2 %v1321_v35, %s7544_s28  ;;  %6935 = vmatmul.msk.bf16.gmra.mxu0 %vm2843_vm15, %v2743_v0  ;;  %v1202_v0 = vsel %vm7663_vm2, %v7943_v3, 0  ;;  %v1351_v3 = vrot.slane %v1349_v44, 1 }
 0x12d   : > { %1896 = vrot.lane.b32.xlu1 %v7913_v37, %s7542_s20  ;;  %v1354_v4 = vshll.u32 %v1202_v0, 16  ;;  %v1754_v11 = vrot.slane %v1202_v0, 1 }
 0x12e   : > { %v2171_v5 = vpop.permute.xlu2 %2170 }
 0x12f   : > { %v2109_v6 = vpop.permute.xlu1 %2108 }
 0x130   : > { %2240 = vrot.lane.b32.xlu0 %v1749_v7, %s7546_s9 }
 0x132   : > { %v1821_v15 = vpop.permute.xlu0 %1820 }
 0x133   : > { %v2359_v12 = vsel %vm2353_vm8, %v2296_v19, %v1821_v15  ;;  %v7337_v15 = vld [vmem:[%s12002_s4 + $0x38] sm:$0xff] }
 0x134   : > { %2178 = vrot.lane.b32.xlu2 %v1333_v16, %s7547_s10  ;;  %v2422_v22 = vsel %vm2416_vm9, %v2359_v12, %v1885_v55  ;;  %4911 = vmatpush.bf16.msra.mxu1 %v7337_v15 }
 0x135   : > { %2120 = vrot.lane.b32.xlu1 %v7955_v17, %s7545_s29  ;;  %v2487_v28 = vsel %vm2481_vm10, %v2422_v22, %v1973_v52  ;;  %7409 = vmatpush.bf16.msra.mxu2 %v7337_v15  ;;  %v7336_v22 = vld [vmem:[%s12002_s4 + $0x30] sm:$0xff]  ;;  %v7273_v15 = vld [vmem:[%s7691_s19 + $0x58] sm:$0xff] }
 0x136   : > { %v1605_v20 = vpop.permute.xlu2 %1604 }
 0x137   : > { %v1887_v21 = vpop.permute.xlu1 %1886  ;;  %v2298_v53 = vsel %vm2290_vm7, %v7735_v8, %v1605_v20  ;;  %v1352_v20 = vor.u32 %v1351_v3, %v1347_v14 }
 0x138   : > { %1830 = vrot.lane.b32.xlu0 %v1746_v29, %s7540_s15  ;;  %v1337_v29 = vshll.u32 %v7913_v37, 16  ;;  %4912 = vmatpush.bf16.msra.mxu1 %v7336_v22 }
 0x139   : > { %7410 = vmatpush.bf16.msra.mxu2 %v7336_v22 }
 0x13a   : > { %v2045_v27 = vpop.permute.xlu0 %2044  ;;  %v1339_v45 = vrot.slane %v1337_v29, 1  ;;  %v7334_v29 = vld [vmem:[%s12002_s4 + $0x20] sm:$0xff] }
 0x13b   : > { %v2552_v30 = vsel %vm2546_vm11, %v2487_v28, %v2045_v27  ;;  %v7335_v28 = vld [vmem:[%s12002_s4 + $0x28] sm:$0xff] }
 0x13c   : > { %1612 = vrot.lane.b32.xlu2 %v1321_v35, %s7541_s16  ;;  %v2617_v33 = vsel %vm2611_vm12, %v2552_v30, %v2109_v6  ;;  %v1750_v35 = vrot.slane %v7913_v37, 1  ;;  %v1340_v36 = vor.u32 %v1339_v45, %v1335_v43  ;;  %4913 = vmatpush.bf16.msra.mxu1 %v7335_v28 }
 0x13d   : > { %756 = vrot.lane.b32.xlu1 %v7307_v26, %s7538_s14  ;;  %v2681_v40 = vsel %vm2675_vm13, %v2617_v33, %v2171_v5  ;;  %7411 = vmatpush.bf16.msra.mxu2 %v7335_v28 }
 0x13e   : > { %v1975_v54 = vpop.permute.xlu2 %1974  ;;  %v1752_v50 = vsel %vm1722_vm3, %v1750_v35, %v1751_v42  ;;  %v7987_v49 = vsel %vm1225_vm4, %v1340_v36, %v1344_v51  ;;  %v7333_v35 = vld [vmem:[%s12002_s4 + $0x18] sm:$0xff] }
 0x13f   : > { %v2111_v34 = vpop.permute.xlu1 %2110 }
 0x140   : > { %2054 = vrot.lane.b32.xlu0 %v1749_v7, %s7543_s26  ;;  %4914 = vmatpush.bf16.msra.mxu1 %v7334_v29 }
 0x141   : > { %7412 = vmatpush.bf16.msra.mxu2 %v7334_v29 }
 0x142   : > { %v2233_v39 = vpop.permute.xlu0 %2232 }
 0x143   : > { %v2745_v41 = vsel %vm2739_vm14, %v2681_v40, %v2233_v39 }
 0x144   : > { %1982 = vrot.lane.b32.xlu2 %v1333_v16, %s7544_s28  ;;  %6936 = vmatmul.msk.bf16.gmra.mxu0 %vm2843_vm15, %v2745_v41 }
 0x145   : > { %1898 = vrot.lane.b32.xlu1 %v7955_v17, %s7542_s20  ;;  %4915 = vmatpush.bf16.msra.mxu1 %v7333_v35 }
 0x146   : > { %v2173_v23 = vpop.permute.xlu2 %2172  ;;  %7413 = vmatpush.bf16.msra.mxu2 %v7333_v35 }
 0x147   : > { %v1889_v46 = vpop.permute.xlu1 %1888 }
 0x148   : > { %2242 = vrot.lane.b32.xlu0 %v1752_v50, %s7546_s9 }
 0x14a   : > { %v1823_v52 = vpop.permute.xlu0 %1822 }
 0x14b   : > { %v2361_v55 = vsel %vm2353_vm8, %v2298_v53, %v1823_v52  ;;  %v7332_v52 = vld [vmem:[%s12002_s4 + $0x10] sm:$0xff] }
 0x14c   : > { %2180 = vrot.lane.b32.xlu2 %v7987_v49, %s7547_s10  ;;  %v2424_v62 = vsel %vm2416_vm9, %v2361_v55, %v1887_v21  ;;  %v1356_v21 = vrot.slane %v1354_v4, 1  ;;  %4916 = vmatpush.bf16.msra.mxu1 %v7332_v52 }
 0x14d   : > { %v2489_v63 = vsel %vm2481_vm10, %v2424_v62, %v1975_v54  ;;  %v7272_v54 = vld [vmem:[%s7691_s19 + $0x50] sm:$0xff]  ;;  %7414 = vmatpush.bf16.msra.mxu2 %v7332_v52 }
 0x14e   : > { %v1607_v59 = vpop.permute.xlu2 %1606  ;;  %v8030_v27 = vsel %vm1225_vm4, %v1352_v20, %v1356_v21 }
 0x14f   : > { %v7994_v61 = vpop.permute.xlu1 %2112  ;;  %v2300_v30 = vsel %vm2290_vm7, %v7756_v31, %v1607_v59 }
 0x150   : > { %1832 = vrot.lane.b32.xlu0 %v1749_v7, %s7540_s15  ;;  %v1753_v7 = vrot.slane %v7955_v17, 1 }
 0x152   : > { %v2047_v56 = vpop.permute.xlu0 %2046  ;;  %v8022_v12 = vsel %vm1722_vm3, %v1753_v7, %v1754_v11  ;;  %v7330_v7 = vld [vmem:[%s12002_s4] sm:$0xff] }
 0x153   : > { %v2554_v48 = vsel %vm2546_vm11, %v2489_v63, %v2047_v56  ;;  %v7331_v63 = vld [vmem:[%s12002_s4 + $0x8] sm:$0xff] }
 0x154   : > { %1614 = vrot.lane.b32.xlu2 %v1333_v16, %s7541_s16  ;;  %v2619_v1 = vsel %vm2611_vm12, %v2554_v48, %v2111_v34  ;;  %v7308_v48 = vld [vmem:[%s7641_s13 + $0x70] sm:$0xff]  ;;  %4917 = vmatpush.bf16.msra.mxu1 %v7331_v63 }
 0x155   : > { %v2683_v6 = vsel %vm2675_vm13, %v2619_v1, %v2173_v23  ;;  %7415 = vmatpush.bf16.msra.mxu2 %v7331_v63 }
 0x156   : > { %v1977_v8 = vpop.permute.xlu2 %1976 }
 0x157   : > { %v8005_v2 = vpop.permute.xlu1 %1890 }
 0x158   : > { %2056 = vrot.lane.b32.xlu0 %v1752_v50, %s7543_s26  ;;  %4918 = vmatpush.bf16.msra.mxu1 %v7330_v7 }
 0x159   : > { %7416 = vmatpush.bf16.msra.mxu2 %v7330_v7 }
 0x15a   : > { %v2235_v5 = vpop.permute.xlu0 %2234 }
 0x15b   : > { %v2747_v9 = vsel %vm2739_vm14, %v2683_v6, %v2235_v5  ;;  %4919 = vmatmul.bf16.vlgmr.msra.gmra.mxu1 %v7669_v13 }
 0x15c   : > { %1984 = vrot.lane.b32.xlu2 %v7987_v49, %s7544_s28  ;;  %6937 = vmatmul.msk.bf16.gmra.mxu0 %vm2843_vm15, %v2747_v9 }
 0x15d   : > { %4999 = vmatmul.bf16.vlgmr.msra.gmra.mxu2 %v7669_v13 }
 0x15e   : > { %v2175_v16 = vpop.permute.xlu2 %2174 }
 0x15f   : > { %v8019_v19 = vpop.permute.xlu1 %2114 }
 0x160   : > { %2244 = vrot.lane.b32.xlu0 %v8022_v12, %s7546_s9 }
 0x162   : > { %v1825_v26 = vpop.permute.xlu0 %1824 }
 0x163   : > { %v2363_v32 = vsel %vm2353_vm8, %v2300_v30, %v1825_v26 }
 0x164   : > { %2182 = vrot.lane.b32.xlu2 %v8030_v27, %s7547_s10  ;;  %v2426_v38 = vsel %vm2416_vm9, %v2363_v32, %v1889_v46 }
 0x165   : > { %v2491_v43 = vsel %vm2481_vm10, %v2426_v38, %v1977_v8 }
 0x166   : > { %v1609_v33 = vpop.permute.xlu2 %1608 }
 0x167   : > { %v751_v34 = vpop.permute.xlu1 %750  ;;  %v2302_v3 = vsel %vm2290_vm7, %v7775_v47, %v1609_v33 }
 0x168   : > { %v827_v39 = vsel %vm794_vm5, %v7272_v54, %v751_v34  ;;  %1834 = vrot.lane.b32.xlu0 %v1752_v50, %s7540_s15 }
 0x169   : > { %v958_v31 = vshrl.u32 %v827_v39, 16  ;;  %v961_v42 = vshll.u32 %v827_v39, 16 }
 0x16a   : > { %v2049_v40 = vpop.permute.xlu0 %2048 }
 0x16b   : > { %v960_v41 = vrot.slane %v958_v31, 7  ;;  %v2556_v45 = vsel %vm2546_vm11, %v2491_v43, %v2049_v40 }
 0x16c   : > { %1616 = vrot.lane.b32.xlu2 %v7987_v49, %s7541_s16  ;;  %v2621_v36 = vsel %vm2611_vm12, %v2556_v45, %v7994_v61 }
 0x16d   : > { %v963_v23 = vor.u32 %v961_v42, %v960_v41  ;;  %v1203_v53 = vsel %vm7663_vm2, %v960_v41, 0  ;;  %v2685_v59 = vsel %vm2675_vm13, %v2621_v36, %v2175_v16  ;;  %v7309_v42 = vld [vmem:[%s7641_s13 + $0x78] sm:$0xff] }
 0x16e   : > { %v1979_v46 = vpop.permute.xlu2 %1978  ;;  %v1366_v8 = vshll.u32 %v1203_v53, 16  ;;  %v1757_v0 = vrot.slane %v1203_v53, 1  ;;  %v8150_v53 = vld [vmem:[%s12001_s3] ss:$0 sm:$0xff] }
 0x16f   : > { %v8056_v50 = vsel %vm7663_vm2, 0, %v963_v23  ;;  %v8060_v51 = vpop.permute.xlu1 %1892 }
 0x170   : > { %2122 = vrot.lane.b32.xlu1 %v8056_v50, %s7545_s29  ;;  %2058 = vrot.lane.b32.xlu0 %v8022_v12, %s7543_s26  ;;  %v1361_v49 = vshll.u32 %v8056_v50, 16  ;;  %v1756_v62 = vrot.slane %v8056_v50, 1  ;;  %v1359_v1 = vshrl.u32 %v8056_v50, 16  ;;  %v1368_v9 = vrot.slane %v1366_v8, 1 }
 0x172   : > { %v2237_v55 = vpop.permute.xlu0 %2236  ;;  %v1363_v56 = vrot.slane %v1361_v49, 1  ;;  %v8086_v5 = vsel %vm1722_vm3, %v1756_v62, %v1757_v0 }
 0x173   : > { %v2749_v61 = vsel %vm2739_vm14, %v2685_v59, %v2237_v55 }
 0x174   : > { %1986 = vrot.lane.b32.xlu2 %v8030_v27, %s7544_s28  ;;  %6938 = vmatmul.msk.bf16.gmra.mxu0 %vm2843_vm15, %v2749_v61  ;;  %v1364_v6 = vor.u32 %v1363_v56, %v1359_v1 }
 0x176   : > { %v2177_v44 = vpop.permute.xlu2 %2176  ;;  %v8095_v14 = vsel %vm1225_vm4, %v1364_v6, %v1368_v9 }
 0x177   : > { %v8083_v4 = vpop.permute.xlu1 %2116 }
 0x178   : > { %758 = vrot.lane.b32.xlu1 %v7308_v48, %s7538_s14  ;;  %2246 = vrot.lane.b32.xlu0 %v8086_v5, %s7546_s9  ;;  %v7274_v48 = vld [vmem:[%s7691_s19 + $0x60] sm:$0xff] }
 0x17a   : > { %v1827_v11 = vpop.permute.xlu0 %1826 }
 0x17b   : > { %v2365_v16 = vsel %vm2353_vm8, %v2302_v3, %v1827_v11 }
 0x17c   : > { %2184 = vrot.lane.b32.xlu2 %v8095_v14, %s7547_s10  ;;  %v2428_v22 = vsel %vm2416_vm9, %v2365_v16, %v8005_v2 }
 0x17d   : > { %v2493_v32 = vsel %vm2481_vm10, %v2428_v22, %v1979_v46 }
 0x17e   : > { %v1611_v20 = vpop.permute.xlu2 %1610 }
 0x17f   : > { %v753_v21 = vpop.permute.xlu1 %752  ;;  %v2304_v56 = vsel %vm2290_vm7, %v7794_v60, %v1611_v20 }
 0x180   : > { %v830_v26 = vsel %vm794_vm5, %v7273_v15, %v753_v21  ;;  %1900 = vrot.lane.b32.xlu1 %v8056_v50, %s7542_s20  ;;  %1836 = vrot.lane.b32.xlu0 %v8022_v12, %s7540_s15 }
 0x181   : > { %v964_v47 = vshrl.u32 %v830_v26, 16  ;;  %v967_v54 = vshll.u32 %v830_v26, 16 }
 0x182   : > { %v2051_v28 = vpop.permute.xlu0 %2050 }
 0x183   : > { %v966_v30 = vrot.slane %v964_v47, 7  ;;  %v2558_v33 = vsel %vm2546_vm11, %v2493_v32, %v2051_v28 }
 0x184   : > { %1618 = vrot.lane.b32.xlu2 %v8030_v27, %s7541_s16  ;;  %v2623_v12 = vsel %vm2611_vm12, %v2558_v33, %v8019_v19 }
 0x185   : > { %v969_v2 = vor.u32 %v967_v54, %v966_v30  ;;  %v1204_v39 = vsel %vm7663_vm2, %v966_v30, 0  ;;  %v2687_v40 = vsel %vm2675_vm13, %v2623_v12, %v2177_v44 }
 0x186   : > { %v1981_v34 = vpop.permute.xlu2 %1980  ;;  %v1378_v43 = vshll.u32 %v1204_v39, 16  ;;  %v1760_v45 = vrot.slane %v1204_v39, 1 }
 0x187   : > { %v8118_v29 = vsel %vm7663_vm2, 0, %v969_v2  ;;  %v8122_v38 = vpop.permute.xlu1 %1894 }
 0x188   : > { %2124 = vrot.lane.b32.xlu1 %v8118_v29, %s7545_s29  ;;  %2060 = vrot.lane.b32.xlu0 %v8086_v5, %s7543_s26  ;;  %v1373_v27 = vshll.u32 %v8118_v29, 16  ;;  %v1759_v19 = vrot.slane %v8118_v29, 1  ;;  %v1371_v23 = vshrl.u32 %v8118_v29, 16  ;;  %v1380_v59 = vrot.slane %v1378_v43, 1 }
 0x18a   : > { %v2239_v31 = vpop.permute.xlu0 %2238  ;;  %v1375_v41 = vrot.slane %v1373_v27, 1  ;;  %v8142_v52 = vsel %vm1722_vm3, %v1759_v19, %v1760_v45 }
 0x18b   : > { %v2751_v35 = vsel %vm2739_vm14, %v2687_v40, %v2239_v31 }
 0x18c   : > { %1988 = vrot.lane.b32.xlu2 %v8095_v14, %s7544_s28  ;;  %6939 = vmatmul.msk.bf16.gmra.mxu0 %vm2843_vm15, %v2751_v35  ;;  %v1376_v49 = vor.u32 %v1375_v41, %v1371_v23 }
 0x18e   : > { %v2179_v46 = vpop.permute.xlu2 %2178  ;;  %v1381_v62 = vsel %vm1225_vm4, %v1376_v49, %v1380_v59 }
 0x18f   : > { %v8139_v36 = vpop.permute.xlu1 %2118 }
 0x190   : > { %760 = vrot.lane.b32.xlu1 %v7309_v42, %s7538_s14  ;;  %2248 = vrot.lane.b32.xlu0 %v8142_v52, %s7546_s9 }
 0x191   : > { %v2921_v55 = vpop.f32.mrf.mxu0 }
 0x192   : > { %v1829_v61 = vpop.permute.xlu0 %1828  ;;  %v2922_v63 = vadd.f32 %v8150_v53, %v2921_v55 }
 0x193   : > { %v2367_v8 = vsel %vm2353_vm8, %v2304_v56, %v1829_v61 }
 0x194   : > { %2186 = vrot.lane.b32.xlu2 %v1381_v62, %s7547_s10  ;;  %v3081_v44 = vmax.f32 %v2922_v63, 0.0  ;;  %v2430_v6 = vsel %vm2416_vm9, %v2367_v8, %v8060_v51 }
 0x195   : > { %v2495_v20 = vsel %vm2481_vm10, %v2430_v6, %v1981_v34 }
 0x196   : > { %v1613_v0 = vpop.permute.xlu2 %1612  ;;  %v3145_v21 = vpack.c.bf16 %v3081_v44, %v3081_v44 }
 0x197   : > { %v755_v1 = vpop.permute.xlu1 %754  ;;  %v2306_v8 = vsel %vm2290_vm7, %v7826_v25, %v1613_v0 }
 0x198   : > { %v833_v7 = vsel %vm794_vm5, %v7274_v48, %v755_v1  ;;  %1902 = vrot.lane.b32.xlu1 %v8118_v29, %s7542_s20  ;;  %1838 = vrot.lane.b32.xlu0 %v8086_v5, %s7540_s15  ;;  %v3273_v33 = vunpack.c.l.b16 %v3145_v21  ;;  %v7275_v1 = vld [vmem:[%s7691_s19 + $0x68] sm:$0xff] }
 0x199   : > { %v970_v60 = vshrl.u32 %v833_v7, 16  ;;  %v973_v9 = vshll.u32 %v833_v7, 16  ;;  %v2923_v11 = vpop.f32.mrf.mxu0 }
 0x19a   : > { %v2924_v3 = vadd.f32 %v8150_v53, %v2923_v11  ;;  %v2053_v15 = vpop.permute.xlu0 %2052 }
 0x19b   : > { %v972_v16 = vrot.slane %v970_v60, 7  ;;  %v2560_v51 = vsel %vm2546_vm11, %v2495_v20, %v2053_v15 }
 0x19c   : > { %v3082_v22 = vmax.f32 %v2924_v3, 0.0  ;;  %1620 = vrot.lane.b32.xlu2 %v8095_v14, %s7541_s16  ;;  %v2625_v54 = vsel %vm2611_vm12, %v2560_v51, %v8083_v4 }
 0x19d   : > { %v975_v26 = vor.u32 %v973_v9, %v972_v16  ;;  %v1205_v5 = vsel %vm7663_vm2, %v972_v16, 0  ;;  %v2689_v40 = vsel %vm2675_vm13, %v2625_v54, %v2179_v46 }
 0x19e   : > { %v3146_v47 = vpack.c.bf16 %v3082_v22, %v3082_v22  ;;  %v1983_v28 = vpop.permute.xlu2 %1982  ;;  %v1390_v34 = vshll.u32 %v1205_v5, 16  ;;  %v1763_v27 = vrot.slane %v1205_v5, 1 }
 0x19f   : > { %v8175_v30 = vsel %vm7663_vm2, 0, %v975_v26  ;;  %v8179_v32 = vpop.permute.xlu1 %1896 }
 0x1a0   : > { %v3274_v2 = vunpack.c.l.b16 %v3146_v47  ;;  %2126 = vrot.lane.b32.xlu1 %v8175_v30, %s7545_s29  ;;  %2062 = vrot.lane.b32.xlu0 %v8142_v52, %s7543_s26  ;;  %v1385_v14 = vshll.u32 %v8175_v30, 16  ;;  %v1762_v12 = vrot.slane %v8175_v30, 1  ;;  %v1383_v39 = vshrl.u32 %v8175_v30, 16 }
 0x1a1   : > { %v1392_v45 = vrot.slane %v1390_v34, 1 }
 0x1a2   : > { %v3337_v31 = vpack.c.b16 %v3274_v2, %v3273_v33  ;;  %v2241_v4 = vpop.permute.xlu0 %2240  ;;  %v1387_v35 = vrot.slane %v1385_v14, 1  ;;  %v8193_v42 = vsel %vm1722_vm3, %v1762_v12, %v1763_v27 }
 0x1a3   : > { %v2753_v19 = vsel %vm2739_vm14, %v2689_v40, %v2241_v4 }
 0x1a4   : > { %v3370_v41 = vshrl.u32 %v3337_v31, 16  ;;  %1990 = vrot.lane.b32.xlu2 %v1381_v62, %s7544_s28  ;;  %6940 = vmatmul.msk.bf16.gmra.mxu0 %vm2843_vm15, %v2753_v19  ;;  %v1388_v43 = vor.u32 %v1387_v35, %v1383_v39  ;;  %v3373_v49 = vshll.u32 %v3337_v31, 16 }
 0x1a6   : > { %v8195_v23 = vrot.slane %v3370_v41, 7  ;;  %v2181_v55 = vpop.permute.xlu2 %2180  ;;  %v8204_v56 = vsel %vm1225_vm4, %v1388_v43, %v1392_v45  ;;  %v7310_v41 = vld [vmem:[%s7641_s13 + $0x80] sm:$0xff] }
 0x1a7   : > { %v8197_v59 = vpop.permute.xlu1 %2120 }
 0x1a8   : > { %1622 = vrot.lane.b32.xlu1 %v1381_v62, %s7541_s16  ;;  %2250 = vrot.lane.b32.xlu0 %v8193_v42, %s7546_s9  ;;  %v3375_v46 = vor.u32 %v3373_v49, %v8195_v23 }
 0x1a9   : > { %v2926_v61 = vpop.f32.mrf.mxu0 }
 0x1aa   : > { %v1831_v63 = vpop.permute.xlu0 %1830  ;;  %v8208_v48 = vsel %vm7663_vm2, 0, %v3375_v46  ;;  %v2927_v62 = vadd.f32 %v8150_v53, %v2926_v61 }
 0x1ab   : > { %4924 = vmatmul.bf16.gmra.mxu1 %v8208_v48  ;;  %v2369_v44 = vsel %vm2353_vm8, %v2306_v8, %v1831_v63 }
 0x1ac   : > { %2188 = vrot.lane.b32.xlu2 %v8204_v56, %s7547_s10  ;;  %v3083_v60 = vmax.f32 %v2927_v62, 0.0  ;;  %v2432_v9 = vsel %vm2416_vm9, %v2369_v44, %v8122_v38 }
 0x1ad   : > { %v2497_v21 = vsel %vm2481_vm10, %v2432_v9, %v1983_v28 }
 0x1ae   : > { %v1615_v6 = vpop.permute.xlu2 %1614  ;;  %v3147_v22 = vpack.c.bf16 %v3083_v60, %v3083_v60 }
 0x1af   : > { %v757_v7 = vpop.permute.xlu1 %756  ;;  %v2308_v60 = vsel %vm2290_vm7, %v7870_v57, %v1615_v6 }
 0x1b0   : > { %v836_v11 = vsel %vm794_vm5, %v7275_v1, %v757_v7  ;;  %1904 = vrot.lane.b32.xlu0 %v8175_v30, %s7542_s20  ;;  %1992 = vrot.lane.b32.xlu1 %v8204_v56, %s7544_s28  ;;  %v3275_v14 = vunpack.c.l.b16 %v3147_v22  ;;  %v7311_v7 = vld [vmem:[%s7641_s13 + $0x88] sm:$0xff] }
 0x1b1   : > { %v976_v25 = vshrl.u32 %v836_v11, 16  ;;  %v979_v0 = vshll.u32 %v836_v11, 16  ;;  %v2928_v3 = vpop.f32.mrf.mxu0 }
 0x1b2   : > { %v2929_v15 = vadd.f32 %v8150_v53, %v2928_v3  ;;  %v2055_v16 = vpop.permute.xlu0 %2054 }
 0x1b3   : > { %v978_v20 = vrot.slane %v976_v25, 7  ;;  %v2562_v38 = vsel %vm2546_vm11, %v2497_v21, %v2055_v16 }
 0x1b4   : > { %v3084_v51 = vmax.f32 %v2929_v15, 0.0  ;;  %1840 = vrot.lane.b32.xlu2 %v8142_v52, %s7540_s15  ;;  %v2627_v28 = vsel %vm2611_vm12, %v2562_v38, %v8139_v36 }
 0x1b5   : > { %v981_v26 = vor.u32 %v979_v0, %v978_v20  ;;  %v1206_v5 = vsel %vm7663_vm2, %v978_v20, 0  ;;  %v2691_v31 = vsel %vm2675_vm13, %v2627_v28, %v2181_v55 }
 0x1b6   : > { %v1402_v47 = vshll.u32 %v1206_v5, 16  ;;  %v3148_v54 = vpack.c.bf16 %v3084_v51, %v3084_v51  ;;  %v1985_v33 = vpop.permute.xlu2 %1984  ;;  %v1766_v45 = vrot.slane %v1206_v5, 1 }
 0x1b7   : > { %v8234_v2 = vsel %vm7663_vm2, 0, %v981_v26 }
 0x1b8   : > { %v3276_v34 = vunpack.c.l.b16 %v3148_v54  ;;  %2128 = vrot.lane.b32.xlu0 %v8234_v2, %s7545_s29  ;;  %v1395_v52 = vshrl.u32 %v8234_v2, 16  ;;  %v1397_v12 = vshll.u32 %v8234_v2, 16  ;;  %v1404_v40 = vrot.slane %v1402_v47, 1 }
 0x1b9   : > { %v1765_v43 = vrot.slane %v8234_v2, 1 }
 0x1ba   : > { %v3338_v27 = vpack.c.b16 %v3276_v34, %v3275_v14  ;;  %v2243_v39 = vpop.permute.xlu0 %2242  ;;  %v1399_v4 = vrot.slane %v1397_v12, 1  ;;  %v1899_v12 = vpop.permute.xlu1 %1898 }
 0x1bb   : > { %v2755_v35 = vsel %vm2739_vm14, %v2691_v31, %v2243_v39  ;;  %v8259_v62 = vsel %vm1722_vm3, %v1765_v43, %v1766_v45 }
 0x1bc   : > { %v3377_v19 = vshrl.u32 %v3338_v27, 16  ;;  %2064 = vrot.lane.b32.xlu2 %v8193_v42, %s7543_s26  ;;  %6941 = vmatmul.msk.bf16.gmra.mxu0 %vm2843_vm15, %v2755_v35  ;;  %v1400_v36 = vor.u32 %v1399_v4, %v1395_v52  ;;  %v3380_v46 = vshll.u32 %v3338_v27, 16 }
 0x1be   : > { %v8249_v49 = vrot.slane %v3377_v19, 7  ;;  %v2183_v55 = vpop.permute.xlu2 %2182  ;;  %v8252_v61 = vsel %vm1225_vm4, %v1400_v36, %v1404_v40 }
 0x1bf   : > { %2190 = vrot.lane.b32.xlu1 %v8252_v61, %s7547_s10 }
 0x1c0   : > { %v3382_v63 = vor.u32 %v3380_v46, %v8249_v49  ;;  %762 = vrot.lane.b32.xlu0 %v7310_v41, %s7538_s14 }
 0x1c1   : > { %v2931_v8 = vpop.f32.mrf.mxu0 }
 0x1c2   : > { %v1833_v1 = vpop.permute.xlu0 %1832  ;;  %v8263_v44 = vsel %vm7663_vm2, 0, %v3382_v63  ;;  %v2932_v9 = vadd.f32 %v8150_v53, %v2931_v8 }
 0x1c3   : > { %12139 = vst [vmem:[#allocation8_spill] sm:$0xff] %v8263_v44  ;;  %4929 = vmatmul.bf16.gmra.mxu1 %v8263_v44  ;;  %v2371_v11 = vsel %vm2353_vm8, %v2308_v60, %v1833_v1  ;;  %v7276_v60 = vld [vmem:[%s7691_s19 + $0x70] sm:$0xff] }
 0x1c4   : > { %2252 = vrot.lane.b32.xlu2 %v8259_v62, %s7546_s9  ;;  %v3085_v0 = vmax.f32 %v2932_v9, 0.0  ;;  %v2434_v3 = vsel %vm2416_vm9, %v2371_v11, %v8179_v32 }
 0x1c5   : > { %v2499_v16 = vsel %vm2481_vm10, %v2434_v3, %v1985_v33 }
 0x1c6   : > { %v1617_v25 = vpop.permute.xlu2 %1616  ;;  %v3149_v20 = vpack.c.bf16 %v3085_v0, %v3085_v0 }
 0x1c7   : > { %764 = vrot.lane.b32.xlu1 %v7311_v7, %s7538_s14  ;;  %v2310_v31 = vsel %vm2290_vm7, %v7913_v37, %v1617_v25 }
 0x1c8   : > { %1842 = vrot.lane.b32.xlu0 %v8193_v42, %s7540_s15  ;;  %v3277_v42 = vunpack.c.l.b16 %v3149_v20 }
 0x1c9   : > { %v2933_v15 = vpop.f32.mrf.mxu0 }
 0x1ca   : > { %v2934_v57 = vadd.f32 %v8150_v53, %v2933_v15  ;;  %v2057_v6 = vpop.permute.xlu0 %2056 }
 0x1cb   : > { %v2564_v22 = vsel %vm2546_vm11, %v2499_v16, %v2057_v6 }
 0x1cc   : > { %v3086_v21 = vmax.f32 %v2934_v57, 0.0  ;;  %1624 = vrot.lane.b32.xlu2 %v8204_v56, %s7541_s16  ;;  %v2629_v32 = vsel %vm2611_vm12, %v2564_v22, %v8197_v59 }
 0x1cd   : > { %v2693_v54 = vsel %vm2675_vm13, %v2629_v32, %v2183_v55 }
 0x1ce   : > { %v3150_v51 = vpack.c.bf16 %v3086_v21, %v3086_v21  ;;  %v1987_v38 = vpop.permute.xlu2 %1986 }
 0x1cf   : > { %1906 = vrot.lane.b32.xlu1 %v8234_v2, %s7542_s20 }
 0x1d0   : > { %v3278_v26 = vunpack.c.l.b16 %v3150_v51  ;;  %2066 = vrot.lane.b32.xlu0 %v8259_v62, %s7543_s26 }
 0x1d2   : > { %v3339_v5 = vpack.c.b16 %v3278_v26, %v3277_v42  ;;  %v2245_v47 = vpop.permute.xlu0 %2244 }
 0x1d3   : > { %v2757_v33 = vsel %vm2739_vm14, %v2693_v54, %v2245_v47 }
 0x1d4   : > { %v3384_v56 = vshrl.u32 %v3339_v5, 16  ;;  %6942 = vmatmul.msk.bf16.gmra.mxu0 %vm2843_vm15, %v2757_v33  ;;  %1994 = vrot.lane.b32.xlu2 %v8252_v61, %s7544_s28  ;;  %v3387_v28 = vshll.u32 %v3339_v5, 16 }
 0x1d6   : > { %v8294_v59 = vrot.slane %v3384_v56, 7  ;;  %v2185_v14 = vpop.permute.xlu2 %2184 }
 0x1d8   : > { %v3389_v34 = vor.u32 %v3387_v28, %v8294_v59 }
 0x1d9   : > { %v2936_v52 = vpop.f32.mrf.mxu0 }
 0x1da   : > { %v1835_v27 = vpop.permute.xlu0 %1834  ;;  %v8299_v39 = vsel %vm7663_vm2, 0, %v3389_v34  ;;  %v2937_v4 = vadd.f32 %v8150_v53, %v2936_v52 }
 0x1db   : > { %12140 = vst [vmem:[#allocation9_spill] sm:$0xff] %v8299_v39  ;;  %4934 = vmatmul.bf16.gmra.mxu1 %v8299_v39  ;;  %v2373_v40 = vsel %vm2353_vm8, %v2310_v31, %v1835_v27 }
 0x1dc   : > { %v3087_v35 = vmax.f32 %v2937_v4, 0.0  ;;  %v2436_v19 = vsel %vm2416_vm9, %v2373_v40, %v1899_v12 }
 0x1dd   : > { %v2501_v55 = vsel %vm2481_vm10, %v2436_v19, %v1987_v38 }
 0x1de   : > { %v1619_v36 = vpop.permute.xlu2 %1618  ;;  %v3151_v63 = vpack.c.bf16 %v3087_v35, %v3087_v35 }
 0x1df   : > { %v2312_v27 = vsel %vm2290_vm7, %v7955_v17, %v1619_v36 }
 0x1e0   : > { %v3279_v9 = vunpack.c.l.b16 %v3151_v63 }
 0x1e1   : > { %v2938_v41 = vpop.f32.mrf.mxu0 }
 0x1e2   : > { %v2939_v43 = vadd.f32 %v8150_v53, %v2938_v41  ;;  %v2123_v45 = vpop.permute.xlu1 %2122  ;;  %v2059_v46 = vpop.permute.xlu0 %2058 }
 0x1e3   : > { %v2566_v37 = vsel %vm2546_vm11, %v2501_v55, %v2059_v46  ;;  %v7312_v46 = vld [vmem:[%s7641_s13 + $0x90] sm:$0xff] }
 0x1e4   : > { %v3088_v8 = vmax.f32 %v2939_v43, 0.0  ;;  %v2631_v7 = vsel %vm2611_vm12, %v2566_v37, %v2123_v45 }
 0x1e5   : > { %v2695_v15 = vsel %vm2675_vm13, %v2631_v7, %v2185_v14 }
 0x1e6   : > { %v3152_v1 = vpack.c.bf16 %v3088_v8, %v3088_v8  ;;  %v1989_v57 = vpop.permute.xlu2 %1988 }
 0x1e8   : > { %v3280_v11 = vunpack.c.l.b16 %v3152_v1 }
 0x1ea   : > { %v3340_v25 = vpack.c.b16 %v3280_v11, %v3279_v9  ;;  %v759_v0 = vpop.permute.xlu1 %758  ;;  %v2247_v3 = vpop.permute.xlu0 %2246 }
 0x1eb   : > { %v839_v6 = vsel %vm794_vm5, %v7276_v60, %v759_v0  ;;  %v2759_v16 = vsel %vm2739_vm14, %v2695_v15, %v2247_v3  ;;  %v7277_v15 = vld [vmem:[%s7691_s19 + $0x78] sm:$0xff] }
 0x1ec   : > { %v3391_v20 = vshrl.u32 %v3340_v25, 16  ;;  %v982_v21 = vshrl.u32 %v839_v6, 16  ;;  %6943 = vmatmul.msk.bf16.gmra.mxu0 %vm2843_vm15, %v2759_v16  ;;  %v3394_v51 = vshll.u32 %v3340_v25, 16  ;;  %v985_v32 = vshll.u32 %v839_v6, 16 }
 0x1ee   : > { %v8316_v22 = vrot.slane %v3391_v20, 7  ;;  %v984_v38 = vrot.slane %v982_v21, 7  ;;  %v2187_v4 = vpop.permute.xlu2 %2186 }
 0x1f0   : > { %v3396_v42 = vor.u32 %v3394_v51, %v8316_v22  ;;  %v987_v26 = vor.u32 %v985_v32, %v984_v38  ;;  %v1207_v5 = vsel %vm7663_vm2, %v984_v38, 0 }
 0x1f1   : > { %v2941_v47 = vpop.f32.mrf.mxu0  ;;  %v1414_v14 = vshll.u32 %v1207_v5, 16  ;;  %v1769_v52 = vrot.slane %v1207_v5, 1 }
 0x1f2   : > { %v8323_v54 = vsel %vm7663_vm2, 0, %v987_v26  ;;  %v1901_v33 = vpop.permute.xlu1 %1900  ;;  %v1837_v56 = vpop.permute.xlu0 %1836  ;;  %v8327_v28 = vsel %vm7663_vm2, 0, %v3396_v42  ;;  %v2942_v31 = vadd.f32 %v8150_v53, %v2941_v47 }
 0x1f3   : > { %12141 = vst [vmem:[#allocation10_spill] sm:$0xff] %v8327_v28  ;;  %2130 = vrot.lane.b32.xlu1 %v8323_v54, %s7545_s29  ;;  %4939 = vmatmul.bf16.gmra.mxu1 %v8327_v28  ;;  %v1768_v34 = vrot.slane %v8323_v54, 1  ;;  %v1409_v12 = vshll.u32 %v8323_v54, 16  ;;  %v2375_v40 = vsel %vm2353_vm8, %v2312_v27, %v1837_v56  ;;  %v1407_v19 = vshrl.u32 %v8323_v54, 16 }
 0x1f4   : > { %v1416_v45 = vrot.slane %v1414_v14, 1  ;;  %v3089_v55 = vmax.f32 %v2942_v31, 0.0  ;;  %v2438_v17 = vsel %vm2416_vm9, %v2375_v40, %v1901_v33 }
 0x1f5   : > { %v8339_v35 = vsel %vm1722_vm3, %v1768_v34, %v1769_v52  ;;  %v1411_v41 = vrot.slane %v1409_v12, 1  ;;  %v2503_v7 = vsel %vm2481_vm10, %v2438_v17, %v1989_v57 }
 0x1f6   : > { %2254 = vrot.lane.b32.xlu0 %v8339_v35, %s7546_s9  ;;  %v3153_v60 = vpack.c.bf16 %v3089_v55, %v3089_v55  ;;  %v1621_v0 = vpop.permute.xlu2 %1620 }
 0x1f7   : > { %v1412_v43 = vor.u32 %v1411_v41, %v1407_v19 }
 0x1f8   : > { %v3281_v6 = vunpack.c.l.b16 %v3153_v60 }
 0x1f9   : > { %v2943_v36 = vpop.f32.mrf.mxu0  ;;  %v8347_v63 = vsel %vm1225_vm4, %v1412_v43, %v1416_v45  ;;  %v2314_v45 = vsel %vm2290_vm7, %v8056_v50, %v1621_v0 }
 0x1fa   : > { %v2944_v8 = vadd.f32 %v8150_v53, %v2943_v36  ;;  %v2125_v37 = vpop.permute.xlu1 %2124  ;;  %v2061_v1 = vpop.permute.xlu0 %2060  ;;  %2192 = vrot.lane.b32.xlu2 %v8347_v63, %s7547_s10 }
 0x1fb   : > { %766 = vrot.lane.b32.xlu1 %v7312_v46, %s7538_s14  ;;  %v2568_v11 = vsel %vm2546_vm11, %v2503_v7, %v2061_v1  ;;  %v7313_v7 = vld [vmem:[%s7641_s13 + $0x98] sm:$0xff] }
 0x1fc   : > { %v3090_v9 = vmax.f32 %v2944_v8, 0.0  ;;  %v2633_v3 = vsel %vm2611_vm12, %v2568_v11, %v2125_v37 }
 0x1fd   : > { %v2697_v57 = vsel %vm2675_vm13, %v2633_v3, %v2187_v4 }
 0x1fe   : > { %v3154_v25 = vpack.c.bf16 %v3090_v9, %v3090_v9  ;;  %1844 = vrot.lane.b32.xlu0 %v8259_v62, %s7540_s15  ;;  %v1991_v34 = vpop.permute.xlu2 %1990 }
 0x200   : > { %v3282_v16 = vunpack.c.l.b16 %v3154_v25 }
 0x202   : > { %v3341_v20 = vpack.c.b16 %v3282_v16, %v3281_v6  ;;  %v761_v21 = vpop.permute.xlu1 %760  ;;  %v2249_v51 = vpop.permute.xlu0 %2248  ;;  %1626 = vrot.lane.b32.xlu2 %v8252_v61, %s7541_s16 }
 0x203   : > { %v842_v38 = vsel %vm794_vm5, %v7277_v15, %v761_v21  ;;  %1908 = vrot.lane.b32.xlu1 %v8323_v54, %s7542_s20  ;;  %v2761_v62 = vsel %vm2739_vm14, %v2697_v57, %v2249_v51 }
 0x204   : > { %v3398_v32 = vshrl.u32 %v3341_v20, 16  ;;  %v988_v42 = vshrl.u32 %v842_v38, 16  ;;  %6944 = vmatmul.msk.bf16.gmra.mxu0 %vm2843_vm15, %v2761_v62  ;;  %v3401_v5 = vshll.u32 %v3341_v20, 16  ;;  %v991_v33 = vshll.u32 %v842_v38, 16 }
 0x206   : > { %v8367_v26 = vrot.slane %v3398_v32, 7  ;;  %v990_v47 = vrot.slane %v988_v42, 7  ;;  %2068 = vrot.lane.b32.xlu0 %v8339_v35, %s7543_s26  ;;  %v2189_v15 = vpop.permute.xlu2 %2188 }
 0x208   : > { %v3403_v61 = vor.u32 %v3401_v5, %v8367_v26  ;;  %v993_v56 = vor.u32 %v991_v33, %v990_v47  ;;  %v1208_v14 = vsel %vm7663_vm2, %v990_v47, 0 }
 0x209   : > { %v2946_v52 = vpop.f32.mrf.mxu0  ;;  %v1952_v40 = vshll.u32 %v1208_v14, 16  ;;  %v2035_v41 = vrot.slane %v1208_v14, 1 }
 0x20a   : > { %v1903_v12 = vpop.permute.xlu1 %1902  ;;  %v1839_v27 = vpop.permute.xlu0 %1838  ;;  %1996 = vrot.lane.b32.xlu2 %v8347_v63, %s7544_s28  ;;  %v1175_v31 = vsel %vm7663_vm2, 0, %v993_v56  ;;  %v8380_v4 = vsel %vm7663_vm2, 0, %v3403_v61  ;;  %v2947_v46 = vadd.f32 %v8150_v53, %v2946_v52 }
 0x20b   : > { %12142 = vst [vmem:[#allocation11_spill] sm:$0xff] %v8380_v4  ;;  %2132 = vrot.lane.b32.xlu1 %v1175_v31, %s7545_s29  ;;  %4944 = vmatmul.bf16.gmra.mxu1 %v8380_v4  ;;  %v2034_v19 = vrot.slane %v1175_v31, 1  ;;  %v1947_v43 = vshll.u32 %v1175_v31, 16  ;;  %v2377_v55 = vsel %vm2353_vm8, %v2314_v45, %v1839_v27  ;;  %v1945_v36 = vshrl.u32 %v1175_v31, 16 }
 0x20c   : > { %v1954_v1 = vrot.slane %v1952_v40, 1  ;;  %v3091_v60 = vmax.f32 %v2947_v46, 0.0  ;;  %v2440_v9 = vsel %vm2416_vm9, %v2377_v55, %v1903_v12  ;;  %v7314_v40 = vld [vmem:[%s7641_s13 + $0xa0] sm:$0xff] }
 0x20d   : > { %v2036_v17 = vsel %vm1722_vm3, %v2034_v19, %v2035_v41  ;;  %v1949_v8 = vrot.slane %v1947_v43, 1  ;;  %v2505_v3 = vsel %vm2481_vm10, %v2440_v9, %v1991_v34 }
 0x20e   : > { %2256 = vrot.lane.b32.xlu0 %v2036_v17, %s7546_s9  ;;  %v3155_v6 = vpack.c.bf16 %v3091_v60, %v3091_v60 }
 0x20f   : > { %v1950_v37 = vor.u32 %v1949_v8, %v1945_v36 }
 0x210   : > { %v3283_v38 = vunpack.c.l.b16 %v3155_v6 }
 0x211   : > { %v2948_v11 = vpop.f32.mrf.mxu0  ;;  %v1955_v25 = vsel %vm1225_vm4, %v1950_v37, %v1954_v1 }
 0x212   : > { %v2949_v50 = vadd.f32 %v8150_v53, %v2948_v11  ;;  %v2063_v0 = vpop.permute.xlu0 %2062  ;;  %2194 = vrot.lane.b32.xlu2 %v1955_v25, %s7547_s10  ;;  %v2127_v20 = vpop.permute.xlu1 %2126 }
 0x213   : > { %768 = vrot.lane.b32.xlu1 %v7313_v7, %s7538_s14  ;;  %v2570_v21 = vsel %vm2546_vm11, %v2505_v3, %v2063_v0  ;;  %v7278_v7 = vld [vmem:[%s7691_s19 + $0x80] sm:$0xff] }
 0x214   : > { %v3092_v16 = vmax.f32 %v2949_v50, 0.0  ;;  %v2635_v57 = vsel %vm2611_vm12, %v2570_v21, %v2127_v20 }
 0x215   : > { %v2699_v5 = vsel %vm2675_vm13, %v2635_v57, %v2189_v15 }
 0x216   : > { %v3156_v51 = vpack.c.bf16 %v3092_v16, %v3092_v16  ;;  %1846 = vrot.lane.b32.xlu0 %v8339_v35, %s7540_s15  ;;  %v1841_v35 = vpop.permute.xlu2 %1840 }
 0x218   : > { %v3284_v62 = vunpack.c.l.b16 %v3156_v51 }
 0x21a   : > { %v3342_v32 = vpack.c.b16 %v3284_v62, %v3283_v38  ;;  %v2251_v42 = vpop.permute.xlu0 %2250  ;;  %1628 = vrot.lane.b32.xlu2 %v8347_v63, %s7541_s16  ;;  %v1623_v14 = vpop.permute.xlu1 %1622 }
 0x21b   : > { %1910 = vrot.lane.b32.xlu1 %v1175_v31, %s7542_s20  ;;  %v2763_v47 = vsel %vm2739_vm14, %v2699_v5, %v2251_v42  ;;  %v2316_v31 = vsel %vm2290_vm7, %v8118_v29, %v1623_v14  ;;  %v7279_v42 = vld [vmem:[%s7691_s19 + $0x88] sm:$0xff] }
 0x21c   : > { %v3405_v33 = vshrl.u32 %v3342_v32, 16  ;;  %6945 = vmatmul.msk.bf16.gmra.mxu0 %vm2843_vm15, %v2763_v47  ;;  %v3408_v56 = vshll.u32 %v3342_v32, 16  ;;  %v2379_v43 = vsel %vm2353_vm8, %v2316_v31, %v1841_v35 }
 0x21e   : > { %v8407_v61 = vrot.slane %v3405_v33, 7  ;;  %2070 = vrot.lane.b32.xlu0 %v2036_v17, %s7543_s26  ;;  %v2065_v19 = vpop.permute.xlu2 %2064 }
 0x220   : > { %v3410_v34 = vor.u32 %v3408_v56, %v8407_v61 }
 0x221   : > { %v2951_v63 = vpop.f32.mrf.mxu0 }
 0x222   : > { %v1905_v52 = vpop.permute.xlu0 %1904  ;;  %1998 = vrot.lane.b32.xlu2 %v1955_v25, %s7544_s28  ;;  %v8414_v12 = vsel %vm7663_vm2, 0, %v3410_v34  ;;  %v2952_v27 = vadd.f32 %v8150_v53, %v2951_v63  ;;  %v1993_v45 = vpop.permute.xlu1 %1992 }
 0x223   : > { %12143 = vst [vmem:[#allocation12_spill] sm:$0xff] %v8414_v12  ;;  %2134 = vrot.lane.b32.xlu1 %v7669_v13, %s7545_s29  ;;  %4949 = vmatmul.bf16.gmra.mxu1 %v8414_v12  ;;  %v2442_v55 = vsel %vm2416_vm9, %v2379_v43, %v1905_v52 }
 0x224   : > { %v3093_v41 = vmax.f32 %v2952_v27, 0.0  ;;  %v2507_v37 = vsel %vm2481_vm10, %v2442_v55, %v1993_v45 }
 0x225   : > { %v2572_v11 = vsel %vm2546_vm11, %v2507_v37, %v2065_v19 }
 0x226   : > { %2258 = vrot.lane.b32.xlu0 %v7676_v18, %s7546_s9  ;;  %v3157_v29 = vpack.c.bf16 %v3093_v41, %v3093_v41  ;;  %v2253_v0 = vpop.permute.xlu2 %2252 }
 0x228   : > { %v3285_v60 = vunpack.c.l.b16 %v3157_v29 }
 0x229   : > { %v2953_v46 = vpop.f32.mrf.mxu0 }
 0x22a   : > { %v2954_v17 = vadd.f32 %v8150_v53, %v2953_v46  ;;  %v2129_v36 = vpop.permute.xlu0 %2128  ;;  %2196 = vrot.lane.b32.xlu2 %v7682_v24, %s7547_s10 }
 0x22b   : > { %770 = vrot.lane.b32.xlu1 %v7314_v40, %s7538_s14  ;;  %v2637_v25 = vsel %vm2611_vm12, %v2572_v11, %v2129_v36 }
 0x22c   : > { %v3094_v8 = vmax.f32 %v2954_v17, 0.0 }
 0x22e   : > { %v3158_v1 = vpack.c.bf16 %v3094_v8, %v3094_v8 }
 0x230   : > { %v3286_v9 = vunpack.c.l.b16 %v3158_v1 }
 0x231   : > { %v2191_v50 = vpop.permute.xlu1 %2190 }
 0x232   : > { %v3343_v3 = vpack.c.b16 %v3286_v9, %v3285_v60  ;;  %v2701_v15 = vsel %vm2675_vm13, %v2637_v25, %v2191_v50  ;;  %v763_v6 = vpop.permute.xlu0 %762 }
 0x233   : > { %v845_v16 = vsel %vm794_vm5, %v7278_v7, %v763_v6  ;;  %v2765_v20 = vsel %vm2739_vm14, %v2701_v15, %v2253_v0  ;;  %v1625_v6 = vpop.permute.xlu2 %1624 }
 0x234   : > { %v3412_v21 = vshrl.u32 %v3343_v3, 16  ;;  %v994_v51 = vshrl.u32 %v845_v16, 16  ;;  %v997_v57 = vshll.u32 %v845_v16, 16  ;;  %6946 = vmatmul.msk.bf16.gmra.mxu0 %vm2843_vm15, %v2765_v20  ;;  %v3415_v62 = vshll.u32 %v3343_v3, 16 }
 0x236   : > { %v8439_v38 = vrot.slane %v3412_v21, 7  ;;  %v996_v32 = vrot.slane %v994_v51, 7 }
 0x238   : > { %v3417_v5 = vor.u32 %v3415_v62, %v8439_v38  ;;  %v999_v47 = vor.u32 %v997_v57, %v996_v32  ;;  %v1209_v33 = vsel %vm7663_vm2, %v996_v32, 0 }
 0x239   : > { %v1426_v35 = vshll.u32 %v1209_v33, 16  ;;  %v765_v56 = vpop.permute.xlu1 %764  ;;  %v2956_v14 = vpop.f32.mrf.mxu0  ;;  %v1772_v34 = vrot.slane %v1209_v33, 1 }
 0x23a   : > { %v848_v63 = vsel %vm794_vm5, %v7279_v42, %v765_v56  ;;  %v8448_v52 = vsel %vm7663_vm2, 0, %v999_v47  ;;  %v8452_v27 = vsel %vm7663_vm2, 0, %v3417_v5  ;;  %v2957_v19 = vadd.f32 %v8150_v53, %v2956_v14  ;;  %v7315_v42 = vld [vmem:[%s7641_s13 + $0xa8] sm:$0xff] }
 0x23b   : > { %12144 = vst [vmem:[#allocation13_spill] sm:$0xff] %v8452_v27  ;;  %v1000_v31 = vshrl.u32 %v848_v63, 16  ;;  %v1003_v40 = vshll.u32 %v848_v63, 16  ;;  %1912 = vrot.lane.b32.xlu2 %v8448_v52, %s7542_s20  ;;  %4954 = vmatmul.bf16.gmra.mxu1 %v8452_v27  ;;  %v1419_v41 = vshrl.u32 %v8448_v52, 16  ;;  %v1421_v43 = vshll.u32 %v8448_v52, 16  ;;  %v1995_v56 = vpop.permute.xlu2 %1994 }
 0x23c   : > { %v1771_v45 = vrot.slane %v8448_v52, 1  ;;  %v1428_v55 = vrot.slane %v1426_v35, 1  ;;  %v3095_v37 = vmax.f32 %v2957_v19, 0.0 }
 0x23d   : > { %v1002_v46 = vrot.slane %v1000_v31, 7  ;;  %v1423_v17 = vrot.slane %v1421_v43, 1 }
 0x23e   : > { %v1773_v36 = vsel %vm1722_vm3, %v1771_v45, %v1772_v34  ;;  %v3159_v16 = vpack.c.bf16 %v3095_v37, %v3095_v37  ;;  %v1843_v45 = vpop.permute.xlu0 %1842 }
 0x23f   : > { %v1005_v29 = vor.u32 %v1003_v40, %v1002_v46  ;;  %v1210_v8 = vsel %vm7663_vm2, %v1002_v46, 0  ;;  %2072 = vrot.lane.b32.xlu1 %v1773_v36, %s7543_s26  ;;  %v1424_v1 = vor.u32 %v1423_v17, %v1419_v41 }
 0x240   : > { %v1438_v60 = vshll.u32 %v1210_v8, 16  ;;  %v1775_v9 = vrot.slane %v1210_v8, 1  ;;  %v3287_v5 = vunpack.c.l.b16 %v3159_v16 }
 0x241   : > { %v8467_v7 = vsel %vm7663_vm2, 0, %v1005_v29  ;;  %v2958_v11 = vpop.f32.mrf.mxu0  ;;  %v1429_v50 = vsel %vm1225_vm4, %v1424_v1, %v1428_v55  ;;  %v2318_v1 = vsel %vm2290_vm7, %v8175_v30, %v1625_v6 }
 0x242   : > { %v2959_v25 = vadd.f32 %v8150_v53, %v2958_v11  ;;  %2000 = vrot.lane.b32.xlu0 %v1429_v50, %s7544_s28  ;;  %v1431_v0 = vshrl.u32 %v8467_v7, 16  ;;  %v1433_v3 = vshll.u32 %v8467_v7, 16  ;;  %v1774_v15 = vrot.slane %v8467_v7, 1 }
 0x243   : > { %2136 = vrot.lane.b32.xlu2 %v8467_v7, %s7545_s29  ;;  %v1440_v21 = vrot.slane %v1438_v60, 1  ;;  %v2381_v60 = vsel %vm2353_vm8, %v2318_v1, %v1843_v45 }
 0x244   : > { %v3096_v20 = vmax.f32 %v2959_v25, 0.0  ;;  %v1435_v51 = vrot.slane %v1433_v3, 1  ;;  %v8478_v57 = vsel %vm1722_vm3, %v1774_v15, %v1775_v9 }
 0x246   : > { %v3160_v62 = vpack.c.bf16 %v3096_v20, %v3096_v20  ;;  %v1436_v32 = vor.u32 %v1435_v51, %v1431_v0  ;;  %v2067_v25 = vpop.permute.xlu0 %2066 }
 0x247   : > { %2260 = vrot.lane.b32.xlu1 %v8478_v57, %s7546_s9 }
 0x248   : > { %v3288_v47 = vunpack.c.l.b16 %v3160_v62  ;;  %v8484_v33 = vsel %vm1225_vm4, %v1436_v32, %v1440_v21 }
 0x24a   : > { %v3344_v35 = vpack.c.b16 %v3288_v47, %v3287_v5  ;;  %2198 = vrot.lane.b32.xlu0 %v8484_v33, %s7547_s10 }
 0x24b   : > { %772 = vrot.lane.b32.xlu2 %v7315_v42, %s7538_s14 }
 0x24c   : > { %v3419_v14 = vshrl.u32 %v3344_v35, 16  ;;  %v3422_v63 = vshll.u32 %v3344_v35, 16 }
 0x24e   : > { %v8489_v34 = vrot.slane %v3419_v14, 7  ;;  %v7280_v14 = vld [vmem:[%s7691_s19 + $0x90] sm:$0xff] }
 0x24f   : > { %1848 = vrot.lane.b32.xlu1 %v1773_v36, %s7540_s15  ;;  %v1907_v36 = vpop.permute.xlu1 %1906 }
 0x250   : > { %v3424_v31 = vor.u32 %v3422_v63, %v8489_v34  ;;  %v2444_v11 = vsel %vm2416_vm9, %v2381_v60, %v1907_v36 }
 0x251   : > { %v2961_v40 = vpop.f32.mrf.mxu0  ;;  %v2509_v3 = vsel %vm2481_vm10, %v2444_v11, %v1995_v56 }
 0x252   : > { %v8495_v19 = vsel %vm7663_vm2, 0, %v3424_v31  ;;  %1630 = vrot.lane.b32.xlu0 %v1429_v50, %s7541_s16  ;;  %v2962_v41 = vadd.f32 %v8150_v53, %v2961_v40  ;;  %v2574_v20 = vsel %vm2546_vm11, %v2509_v3, %v2067_v25 }
 0x253   : > { %12145 = vst [vmem:[#allocation14_spill] sm:$0xff] %v8495_v19  ;;  %4959 = vmatmul.bf16.gmra.mxu1 %v8495_v19  ;;  %1914 = vrot.lane.b32.xlu2 %v8467_v7, %s7542_s20 }
 0x254   : > { %v2193_v43 = vpop.permute.xlu2 %2192  ;;  %v3097_v46 = vmax.f32 %v2962_v41, 0.0 }
 0x256   : > { %v3161_v29 = vpack.c.bf16 %v3097_v46, %v3097_v46 }
 0x257   : > { %2074 = vrot.lane.b32.xlu1 %v8478_v57, %s7543_s26 }
 0x258   : > { %v3289_v50 = vunpack.c.l.b16 %v3161_v29 }
 0x259   : > { %v2963_v55 = vpop.f32.mrf.mxu0 }
 0x25a   : > { %v2964_v17 = vadd.f32 %v8150_v53, %v2963_v55  ;;  %2002 = vrot.lane.b32.xlu0 %v8484_v33, %s7544_s28 }
 0x25c   : > { %v3098_v8 = vmax.f32 %v2964_v17, 0.0  ;;  %v1627_v37 = vpop.permute.xlu2 %1626 }
 0x25d   : > { %v2320_v11 = vsel %vm2290_vm7, %v8234_v2, %v1627_v37 }
 0x25e   : > { %v3162_v9 = vpack.c.bf16 %v3098_v8, %v3098_v8 }
 0x260   : > { %v3290_v0 = vunpack.c.l.b16 %v3162_v9 }
 0x262   : > { %v3345_v15 = vpack.c.b16 %v3290_v0, %v3289_v50 }
 0x264   : > { %v3426_v16 = vshrl.u32 %v3345_v15, 16  ;;  %v1997_v21 = vpop.permute.xlu2 %1996  ;;  %v3429_v30 = vshll.u32 %v3345_v15, 16 }
 0x265   : > { %v2131_v51 = vpop.permute.xlu1 %2130 }
 0x266   : > { %v8513_v62 = vrot.slane %v3426_v16, 7  ;;  %v2639_v6 = vsel %vm2611_vm12, %v2574_v20, %v2131_v51 }
 0x267   : > { %v2703_v32 = vsel %vm2675_vm13, %v2639_v6, %v2193_v43 }
 0x268   : > { %v3431_v42 = vor.u32 %v3429_v30, %v8513_v62  ;;  %v2255_v5 = vpop.permute.xlu0 %2254 }
 0x269   : > { %v2767_v47 = vsel %vm2739_vm14, %v2703_v32, %v2255_v5  ;;  %v2966_v35 = vpop.f32.mrf.mxu0 }
 0x26a   : > { %6947 = vmatmul.msk.bf16.gmra.mxu0 %vm2843_vm15, %v2767_v47  ;;  %v8522_v56 = vsel %vm7663_vm2, 0, %v3431_v42  ;;  %v2967_v63 = vadd.f32 %v8150_v53, %v2966_v35 }
 0x26b   : > { %12146 = vst [vmem:[#allocation15_spill] sm:$0xff] %v8522_v56  ;;  %4964 = vmatmul.bf16.gmra.mxu1 %v8522_v56 }
 0x26c   : > { %v2195_v41 = vpop.permute.xlu2 %2194  ;;  %v3099_v45 = vmax.f32 %v2967_v63, 0.0 }
 0x26d   : > { %v767_v31 = vpop.permute.xlu1 %766 }
 0x26e   : > { %v851_v40 = vsel %vm794_vm5, %v7280_v14, %v767_v31  ;;  %v3163_v60 = vpack.c.bf16 %v3099_v45, %v3099_v45  ;;  %v7316_v14 = vld [vmem:[%s7641_s13 + $0xb0] sm:$0xff] }
 0x26f   : > { %v1006_v43 = vshrl.u32 %v851_v40, 16  ;;  %v1009_v17 = vshll.u32 %v851_v40, 16 }
 0x270   : > { %v1845_v46 = vpop.permute.xlu0 %1844  ;;  %v3291_v37 = vunpack.c.l.b16 %v3163_v60 }
 0x271   : > { %v1008_v55 = vrot.slane %v1006_v43, 7  ;;  %v2968_v36 = vpop.f32.mrf.mxu0  ;;  %v2383_v3 = vsel %vm2353_vm8, %v2320_v11, %v1845_v46  ;;  %v7281_v11 = vld [vmem:[%s7691_s19 + $0x98] sm:$0xff] }
 0x272   : > { %v2969_v29 = vadd.f32 %v8150_v53, %v2968_v36 }
 0x273   : > { %v1011_v8 = vor.u32 %v1009_v17, %v1008_v55  ;;  %v1211_v1 = vsel %vm7663_vm2, %v1008_v55, 0 }
 0x274   : > { %v3100_v9 = vmax.f32 %v2969_v29, 0.0  ;;  %v1778_v0 = vrot.slane %v1211_v1, 1  ;;  %v1450_v16 = vshll.u32 %v1211_v1, 16  ;;  %v1629_v32 = vpop.permute.xlu2 %1628 }
 0x275   : > { %v8535_v25 = vsel %vm7663_vm2, 0, %v1011_v8  ;;  %v1909_v50 = vpop.permute.xlu1 %1908 }
 0x276   : > { %v3164_v15 = vpack.c.bf16 %v3100_v9, %v3100_v9  ;;  %2138 = vrot.lane.b32.xlu2 %v8535_v25, %s7545_s29  ;;  %v1777_v53 = vrot.slane %v8535_v25, 1  ;;  %v2446_v20 = vsel %vm2416_vm9, %v2383_v3, %v1909_v50  ;;  %v1445_v2 = vshll.u32 %v8535_v25, 16  ;;  %v8579_v3 = vpop.f32.mrf.mxu1 }
 0x277   : > { %v1443_v42 = vshrl.u32 %v8535_v25, 16  ;;  %v2511_v35 = vsel %vm2481_vm10, %v2446_v20, %v1997_v21  ;;  %v1452_v63 = vrot.slane %v1450_v16, 1  ;;  %12148 = vst [vmem:[#allocation17_spill] sm:$0xff] %v8579_v3 }
 0x278   : > { %v3292_v51 = vunpack.c.l.b16 %v3164_v15  ;;  %v2069_v30 = vpop.permute.xlu0 %2068  ;;  %v8544_v6 = vsel %vm1722_vm3, %v1777_v53, %v1778_v0  ;;  %v1447_v5 = vrot.slane %v1445_v2, 1 }
 0x279   : > { %2262 = vrot.lane.b32.xlu1 %v8544_v6, %s7546_s9  ;;  %v2576_v43 = vsel %vm2546_vm11, %v2511_v35, %v2069_v30 }
 0x27a   : > { %v3346_v47 = vpack.c.b16 %v3292_v51, %v3291_v37  ;;  %v1448_v31 = vor.u32 %v1447_v5, %v1443_v42 }
 0x27c   : > { %v3433_v40 = vshrl.u32 %v3346_v47, 16  ;;  %v8553_v46 = vsel %vm1225_vm4, %v1448_v31, %v1452_v63  ;;  %v3436_v17 = vshll.u32 %v3346_v47, 16  ;;  %v1999_v50 = vpop.permute.xlu2 %1998 }
 0x27d   : > { %v2133_v45 = vpop.permute.xlu1 %2132  ;;  %2200 = vrot.lane.b32.xlu0 %v8553_v46, %s7547_s10 }
 0x27e   : > { %v8555_v55 = vrot.slane %v3433_v40, 7  ;;  %v2641_v36 = vsel %vm2611_vm12, %v2576_v43, %v2133_v45  ;;  %774 = vrot.lane.b32.xlu2 %v7316_v14, %s7538_s14  ;;  %v2322_v14 = vsel %vm2290_vm7, %v8323_v54, %v1629_v32 }
 0x27f   : > { %v2705_v21 = vsel %vm2675_vm13, %v2641_v36, %v2195_v41  ;;  %v8576_v41 = vld [vmem:[%s12001_s3] ss:$0 sm:$0xff]  ;;  %v8605_v36 = vpop.f32.mrf.mxu1 }
 0x280   : > { %v3438_v29 = vor.u32 %v3436_v17, %v8555_v55  ;;  %v2257_v8 = vpop.permute.xlu0 %2256  ;;  %12149 = vst [vmem:[#allocation18_spill] sm:$0xff] %v8605_v36 }
 0x281   : > { %v2769_v1 = vsel %vm2739_vm14, %v2705_v21, %v2257_v8  ;;  %1850 = vrot.lane.b32.xlu1 %v8478_v57, %s7540_s15  ;;  %v2971_v60 = vpop.f32.mrf.mxu0 }
 0x282   : > { %6948 = vmatmul.msk.bf16.gmra.mxu0 %vm2843_vm15, %v2769_v1  ;;  %v8569_v9 = vsel %vm7663_vm2, 0, %v3438_v29  ;;  %v2972_v0 = vadd.f32 %v8576_v41, %v2971_v60  ;;  %v7361_v29 = vld [vmem:[%s12002_s4 + $0xf8] sm:$0xff] }
 0x283   : > { %12147 = vst [vmem:[#allocation16_spill] sm:$0xff] %v8569_v9  ;;  %4969 = vmatmul.bf16.gmra.mxu1 %v8569_v9  ;;  %5418 = vmatpush.bf16.msrb.mxu0 %v7361_v29  ;;  %v7282_v29 = vld [vmem:[%s7691_s19 + $0xa0] sm:$0xff] }
 0x284   : > { %v3101_v16 = vmax.f32 %v2972_v0, 0.0  ;;  %v8591_v47 = vpop.permute.xlu2 %2196 }
 0x285   : > { %v769_v57 = vpop.permute.xlu1 %768  ;;  %1632 = vrot.lane.b32.xlu0 %v8484_v33, %s7541_s16 }
 0x286   : > { %v854_v15 = vsel %vm794_vm5, %v7281_v11, %v769_v57  ;;  %1916 = vrot.lane.b32.xlu2 %v8535_v25, %s7542_s20  ;;  %v3165_v33 = vpack.c.bf16 %v3101_v16, %v3101_v16  ;;  %v7317_v16 = vld [vmem:[%s7641_s13 + $0xb8] sm:$0xff] }
 0x287   : > { %v1012_v53 = vshrl.u32 %v854_v15, 16  ;;  %v1015_v37 = vshll.u32 %v854_v15, 16 }
 0x288   : > { %v1847_v20 = vpop.permute.xlu0 %1846  ;;  %v3293_v8 = vunpack.c.l.b16 %v3165_v33 }
 0x289   : > { %v1014_v2 = vrot.slane %v1012_v53, 7  ;;  %2076 = vrot.lane.b32.xlu1 %v8544_v6, %s7543_s26  ;;  %v2973_v51 = vpop.f32.mrf.mxu0  ;;  %v2385_v43 = vsel %vm2353_vm8, %v2322_v14, %v1847_v20 }
 0x28a   : > { %v2974_v30 = vadd.f32 %v8576_v41, %v2973_v51 }
 0x28b   : > { %v1017_v42 = vor.u32 %v1015_v37, %v1014_v2  ;;  %v1212_v5 = vsel %vm7663_vm2, %v1014_v2, 0  ;;  %v7360_v37 = vld [vmem:[%s12002_s4 + $0xf0] sm:$0xff] }
 0x28c   : > { %v3102_v35 = vmax.f32 %v2974_v30, 0.0  ;;  %v1781_v40 = vrot.slane %v1212_v5, 1  ;;  %v1462_v54 = vshll.u32 %v1212_v5, 16  ;;  %5419 = vmatpush.bf16.msrb.mxu0 %v7360_v37 }
 0x28d   : > { %v8597_v63 = vsel %vm7663_vm2, 0, %v1017_v42  ;;  %v1911_v31 = vpop.permute.xlu1 %1910  ;;  %2004 = vrot.lane.b32.xlu0 %v8553_v46, %s7544_s28 }
 0x28e   : > { %v3166_v45 = vpack.c.bf16 %v3102_v35, %v3102_v35  ;;  %2140 = vrot.lane.b32.xlu2 %v8597_v63, %s7545_s29  ;;  %v1780_v17 = vrot.slane %v8597_v63, 1  ;;  %v2448_v32 = vsel %vm2416_vm9, %v2385_v43, %v1911_v31  ;;  %v1457_v21 = vshll.u32 %v8597_v63, 16 }
 0x28f   : > { %v1455_v0 = vshrl.u32 %v8597_v63, 16  ;;  %v2513_v53 = vsel %vm2481_vm10, %v2448_v32, %v1999_v50  ;;  %v1464_v20 = vrot.slane %v1462_v54, 1 }
 0x290   : > { %v3294_v1 = vunpack.c.l.b16 %v3166_v45  ;;  %v2071_v60 = vpop.permute.xlu0 %2070  ;;  %v8613_v11 = vsel %vm1722_vm3, %v1780_v17, %v1781_v40  ;;  %v1459_v57 = vrot.slane %v1457_v21, 1  ;;  %v7359_v40 = vld [vmem:[%s12002_s4 + $0xe8] sm:$0xff]  ;;  %v8646_v17 = vpop.f32.mrf.mxu1 }
 0x291   : > { %2264 = vrot.lane.b32.xlu1 %v8613_v11, %s7546_s9  ;;  %v2578_v30 = vsel %vm2546_vm11, %v2513_v53, %v2071_v60  ;;  %12150 = vst [vmem:[#allocation19_spill] sm:$0xff] %v8646_v17  ;;  %5420 = vmatpush.bf16.msrb.mxu0 %v7359_v40  ;;  %v7357_v53 = vld [vmem:[%s12002_s4 + $0xd8] sm:$0xff] }
 0x292   : > { %v3347_v15 = vpack.c.b16 %v3294_v1, %v3293_v8  ;;  %v1460_v2 = vor.u32 %v1459_v57, %v1455_v0  ;;  %v7358_v8 = vld [vmem:[%s12002_s4 + $0xe0] sm:$0xff] }
 0x294   : > { %v3440_v51 = vshrl.u32 %v3347_v15, 16  ;;  %v8627_v5 = vsel %vm1225_vm4, %v1460_v2, %v1464_v20  ;;  %v3443_v50 = vshll.u32 %v3347_v15, 16 }
 0x295   : > { %v8624_v42 = vpop.permute.xlu1 %2134  ;;  %v8629_v33 = vpop.permute.xlu2 %1912  ;;  %2202 = vrot.lane.b32.xlu0 %v8627_v5, %s7547_s10  ;;  %5421 = vmatpush.bf16.msrb.mxu0 %v7358_v8 }
 0x296   : > { %v8631_v35 = vrot.slane %v3440_v51, 7  ;;  %v2643_v14 = vsel %vm2611_vm12, %v2578_v30, %v8624_v42  ;;  %776 = vrot.lane.b32.xlu2 %v7317_v16, %s7538_s14 }
 0x297   : > { %v2707_v31 = vsel %vm2675_vm13, %v2643_v14, %v8591_v47  ;;  %v7356_v14 = vld [vmem:[%s12002_s4 + $0xd0] sm:$0xff] }
 0x298   : > { %v3445_v43 = vor.u32 %v3443_v50, %v8631_v35  ;;  %v8644_v45 = vpop.permute.xlu0 %2258  ;;  %v8676_v51 = vpop.f32.mrf.mxu1  ;;  %v7283_v50 = vld [vmem:[%s7691_s19 + $0xa8] sm:$0xff] }
 0x299   : > { %v2771_v54 = vsel %vm2739_vm14, %v2707_v31, %v8644_v45  ;;  %1852 = vrot.lane.b32.xlu1 %v8544_v6, %s7540_s15  ;;  %v2976_v32 = vpop.f32.mrf.mxu0  ;;  %5422 = vmatpush.bf16.msrb.mxu0 %v7357_v53  ;;  %12152 = vst [vmem:[#allocation21_spill] sm:$0xff] %v8676_v51 }
 0x29a   : > { %6949 = vmatmul.msk.bf16.gmra.mxu0 %vm2843_vm15, %v2771_v54  ;;  %v8655_v21 = vsel %vm7663_vm2, 0, %v3445_v43  ;;  %v2977_v1 = vadd.f32 %v8576_v41, %v2976_v32 }
 0x29b   : > { %12151 = vst [vmem:[#allocation20_spill] sm:$0xff] %v8655_v21  ;;  %4974 = vmatmul.bf16.gmra.mxu1 %v8655_v21 }
 0x29c   : > { %v3103_v16 = vmax.f32 %v2977_v1, 0.0 }
 0x29d   : > { %v771_v60 = vpop.permute.xlu1 %770  ;;  %v8663_v0 = vpop.permute.xlu2 %2136  ;;  %1634 = vrot.lane.b32.xlu0 %v8553_v46, %s7541_s16  ;;  %5423 = vmatpush.bf16.msrb.mxu0 %v7356_v14  ;;  %v7318_v14 = vld [vmem:[%s7641_s13 + $0xc0] sm:$0xff] }
 0x29e   : > { %v857_v6 = vsel %vm794_vm5, %v7282_v29, %v771_v60  ;;  %1918 = vrot.lane.b32.xlu2 %v8597_v63, %s7542_s20  ;;  %v3167_v31 = vpack.c.bf16 %v3103_v16, %v3103_v16 }
 0x29f   : > { %v1018_v57 = vshrl.u32 %v857_v6, 16  ;;  %v1021_v15 = vshll.u32 %v857_v6, 16 }
 0x2a0   : > { %v3295_v53 = vunpack.c.l.b16 %v3167_v31  ;;  %v7354_v31 = vld [vmem:[%s12002_s4 + $0xc0] sm:$0xff] }
 0x2a1   : > { %v1020_v20 = vrot.slane %v1018_v57, 7  ;;  %2078 = vrot.lane.b32.xlu1 %v8613_v11, %s7543_s26  ;;  %v2978_v2 = vpop.f32.mrf.mxu0 }
 0x2a2   : > { %v2979_v37 = vadd.f32 %v8576_v41, %v2978_v2 }
 0x2a3   : > { %v1023_v46 = vor.u32 %v1021_v15, %v1020_v20  ;;  %v1213_v30 = vsel %vm7663_vm2, %v1020_v20, 0  ;;  %v7355_v15 = vld [vmem:[%s12002_s4 + $0xc8] sm:$0xff] }
 0x2a4   : > { %v1784_v40 = vrot.slane %v1213_v30, 1  ;;  %v3104_v43 = vmax.f32 %v2979_v37, 0.0  ;;  %v1474_v32 = vshll.u32 %v1213_v30, 16  ;;  %5424 = vmatpush.bf16.msrb.mxu0 %v7355_v15 }
 0x2a5   : > { %v8686_v54 = vsel %vm7663_vm2, 0, %v1023_v46  ;;  %2006 = vrot.lane.b32.xlu0 %v8627_v5, %s7544_s28  ;;  %v773_v1 = vpop.permute.xlu2 %772 }
 0x2a6   : > { %v3168_v29 = vpack.c.bf16 %v3104_v43, %v3104_v43  ;;  %2142 = vrot.lane.b32.xlu2 %v8686_v54, %s7545_s29  ;;  %v1783_v8 = vrot.slane %v8686_v54, 1  ;;  %v1467_v60 = vshrl.u32 %v8686_v54, 16  ;;  %v1469_v6 = vshll.u32 %v8686_v54, 16  ;;  %v8705_v43 = vpop.f32.mrf.mxu1 }
 0x2a7   : > { %v860_v57 = vsel %vm794_vm5, %v7283_v50, %v773_v1  ;;  %v1476_v37 = vrot.slane %v1474_v32, 1  ;;  %12153 = vst [vmem:[#allocation22_spill] sm:$0xff] %v8705_v43 }
 0x2a8   : > { %v3296_v16 = vunpack.c.l.b16 %v3168_v29  ;;  %v8700_v20 = vsel %vm1722_vm3, %v1783_v8, %v1784_v40  ;;  %v1024_v2 = vshrl.u32 %v860_v57, 16  ;;  %v1471_v46 = vrot.slane %v1469_v6, 1  ;;  %5425 = vmatpush.bf16.msrb.mxu0 %v7354_v31 }
 0x2a9   : > { %2266 = vrot.lane.b32.xlu1 %v8700_v20, %s7546_s9  ;;  %v1027_v40 = vshll.u32 %v860_v57, 16 }
 0x2aa   : > { %v3348_v30 = vpack.c.b16 %v3296_v16, %v3295_v53  ;;  %v1472_v50 = vor.u32 %v1471_v46, %v1467_v60  ;;  %v1026_v1 = vrot.slane %v1024_v2, 7 }
 0x2ac   : > { %v3447_v29 = vshrl.u32 %v3348_v30, 16  ;;  %v8711_v8 = vsel %vm1225_vm4, %v1472_v50, %v1476_v37  ;;  %v3450_v6 = vshll.u32 %v3348_v30, 16  ;;  %v1029_v15 = vor.u32 %v1027_v40, %v1026_v1 }
 0x2ad   : > { %2204 = vrot.lane.b32.xlu0 %v8711_v8, %s7547_s10 }
 0x2ae   : > { %v8713_v32 = vrot.slane %v3447_v29, 7  ;;  %778 = vrot.lane.b32.xlu2 %v7318_v14, %s7538_s14  ;;  %v8728_v2 = vsel %vm7663_vm2, 0, %v1029_v15  ;;  %v8731_v46 = vpop.f32.mrf.mxu1  ;;  %v1214_v14 = vsel %vm7663_vm2, %v1026_v1, 0 }
 0x2af   : > { %12155 = vst [vmem:[#allocation24_spill] sm:$0xff] %v8731_v46  ;;  %v1481_v31 = vshll.u32 %v8728_v2, 16  ;;  %v1479_v15 = vshrl.u32 %v8728_v2, 16 }
 0x2b0   : > { %v3452_v60 = vor.u32 %v3450_v6, %v8713_v32  ;;  %v1787_v6 = vrot.slane %v1214_v14, 1 }
 0x2b1   : > { %1854 = vrot.lane.b32.xlu1 %v8613_v11, %s7540_s15  ;;  %v2981_v53 = vpop.f32.mrf.mxu0  ;;  %v2073_v16 = vpop.permute.xlu1 %2072  ;;  %v2450_v11 = vsel %vm2416_vm9, %v7877_v58, %v8629_v33  ;;  %v1786_v33 = vrot.slane %v8728_v2, 1  ;;  %v1483_v1 = vrot.slane %v1481_v31, 1 }
 0x2b2   : > { %v8723_v57 = vsel %vm7663_vm2, 0, %v3452_v60  ;;  %v2982_v37 = vadd.f32 %v8576_v41, %v2981_v53  ;;  %v1486_v60 = vshll.u32 %v1214_v14, 16 }
 0x2b3   : > { %12154 = vst [vmem:[#allocation23_spill] sm:$0xff] %v8723_v57  ;;  %4979 = vmatmul.bf16.gmra.mxu1 %v8723_v57  ;;  %v8760_v14 = vsel %vm1722_vm3, %v1786_v33, %v1787_v6  ;;  %v1915_v33 = vpop.permute.xlu2 %1914 }
 0x2b4   : > { %v2001_v30 = vpop.permute.xlu0 %2000  ;;  %v3105_v29 = vmax.f32 %v2982_v37, 0.0 }
 0x2b5   : > { %1636 = vrot.lane.b32.xlu0 %v8627_v5, %s7541_s16  ;;  %v2515_v50 = vsel %vm2481_vm10, %v2450_v11, %v2001_v30 }
 0x2b6   : > { %1920 = vrot.lane.b32.xlu2 %v8686_v54, %s7542_s20  ;;  %v2580_v58 = vsel %vm2546_vm11, %v2515_v50, %v2073_v16  ;;  %v3169_v53 = vpack.c.bf16 %v3105_v29, %v3105_v29  ;;  %v8750_v46 = vpop.f32.mrf.mxu1  ;;  %v1488_v50 = vrot.slane %v1486_v60, 1  ;;  %v1484_v29 = vor.u32 %v1483_v1, %v1479_v15 }
 0x2b7   : > { %12156 = vst [vmem:[#allocation25_spill] sm:$0xff] %v8750_v46  ;;  %v2645_v51 = vsel %vm2611_vm12, %v2580_v58, %v8663_v0 }
 0x2b8   : > { %v8768_v58 = vsel %vm1225_vm4, %v1484_v29, %v1488_v50 }
 0x2b9   : > { %2080 = vrot.lane.b32.xlu1 %v8700_v20, %s7543_s26  ;;  %v2983_v40 = vpop.f32.mrf.mxu0  ;;  %v2261_v11 = vpop.permute.xlu1 %2260 }
 0x2ba   : > { %v2984_v5 = vadd.f32 %v8576_v41, %v2983_v40  ;;  %v3297_v40 = vunpack.c.l.b16 %v3169_v53 }
 0x2bc   : > { %v3106_v30 = vmax.f32 %v2984_v5, 0.0  ;;  %v2199_v37 = vpop.permute.xlu0 %2198 }
 0x2bd   : > { %v2709_v16 = vsel %vm2675_vm13, %v2645_v51, %v2199_v37  ;;  %2008 = vrot.lane.b32.xlu0 %v8711_v8, %s7544_s28  ;;  %v7319_v51 = vld [vmem:[%s7641_s13 + $0xc8] sm:$0xff] }
 0x2be   : > { %v3170_v36 = vpack.c.bf16 %v3106_v30, %v3106_v30  ;;  %2144 = vrot.lane.b32.xlu2 %v8728_v2, %s7545_s29  ;;  %v2773_v31 = vsel %vm2739_vm14, %v2709_v16, %v2261_v11 }
 0x2bf   : > { %6950 = vmatmul.msk.bf16.gmra.mxu0 %vm2843_vm15, %v2773_v31 }
 0x2c0   : > { %v3298_v5 = vunpack.c.l.b16 %v3170_v36  ;;  %v8775_v36 = vpop.f32.mrf.mxu1 }
 0x2c1   : > { %2268 = vrot.lane.b32.xlu1 %v8760_v14, %s7546_s9  ;;  %12157 = vst [vmem:[#allocation26_spill] sm:$0xff] %v8775_v36  ;;  %v1849_v50 = vpop.permute.xlu1 %1848 }
 0x2c2   : > { %v3349_v0 = vpack.c.b16 %v3298_v5, %v3297_v40 }
 0x2c4   : > { %v3454_v30 = vshrl.u32 %v3349_v0, 16  ;;  %v3457_v6 = vshll.u32 %v3349_v0, 16  ;;  %v1631_v5 = vpop.permute.xlu0 %1630 }
 0x2c5   : > { %2206 = vrot.lane.b32.xlu0 %v8768_v58, %s7547_s10 }
 0x2c6   : > { %v8770_v37 = vrot.slane %v3454_v30, 7  ;;  %780 = vrot.lane.b32.xlu2 %v7319_v51, %s7538_s14 }
 0x2c8   : > { %v3459_v60 = vor.u32 %v3457_v6, %v8770_v37  ;;  %v8789_v1 = vpop.f32.mrf.mxu1 }
 0x2c9   : > { %1856 = vrot.lane.b32.xlu1 %v8700_v20, %s7540_s15  ;;  %12158 = vst [vmem:[#allocation27_spill] sm:$0xff] %v8789_v1  ;;  %v7284_v20 = vld [vmem:[%s7691_s19 + $0xb0] sm:$0xff] }
 0x2ca   : > { %v8782_v15 = vsel %vm7663_vm2, 0, %v3459_v60 }
 0x2cb   : > { %4984 = vmatmul.bf16.gmra.mxu1 %v8782_v15 }
 0x2cd   : > { %1638 = vrot.lane.b32.xlu0 %v8711_v8, %s7541_s16 }
 0x2ce   : > { %1922 = vrot.lane.b32.xlu2 %v8728_v2, %s7542_s20 }
 0x2cf   : > { %5426 = vmatmul.bf16.vlgmr.msrb.gmra.mxu0 %v8208_v48 }
 0x2d0   : > { %v2139_v53 = vpop.permute.xlu2 %2138  ;;  %v8797_v16 = vpop.f32.mrf.mxu1 }
 0x2d1   : > { %2082 = vrot.lane.b32.xlu1 %v8760_v14, %s7543_s26  ;;  %12159 = vst [vmem:[#allocation28_spill] sm:$0xff] %v8797_v16 }
 0x2d5   : > { %2010 = vrot.lane.b32.xlu0 %v8768_v58, %s7544_s28 }
 0x2d8   : > { %v775_v11 = vpop.permute.xlu2 %774  ;;  %v8809_v60 = vpop.f32.mrf.mxu1 }
 0x2d9   : > { %v863_v8 = vsel %vm794_vm5, %v7284_v20, %v775_v11  ;;  %12160 = vst [vmem:[#allocation29_spill] sm:$0xff] %v8809_v60  ;;  %v7320_v60 = vld [vmem:[%s7641_s13 + $0xd0] sm:$0xff] }
 0x2da   : > { %v1030_v31 = vshrl.u32 %v863_v8, 16  ;;  %v1033_v40 = vshll.u32 %v863_v8, 16 }
 0x2dc   : > { %v1032_v29 = vrot.slane %v1030_v31, 7 }
 0x2de   : > { %v1035_v0 = vor.u32 %v1033_v40, %v1032_v29  ;;  %v1215_v51 = vsel %vm7663_vm2, %v1032_v29, 0  ;;  %v2075_v29 = vpop.permute.xlu1 %2074 }
 0x2df   : > { %5431 = vmatmul.bf16.gmra.mxu0 %v8263_v44  ;;  %v1498_v20 = vshll.u32 %v1215_v51, 16  ;;  %v1790_v11 = vrot.slane %v1215_v51, 1  ;;  %v2324_v51 = vsel %vm2290_vm7, %v8448_v52, %v1631_v5 }
 0x2e0   : > { %v8804_v30 = vsel %vm7663_vm2, 0, %v1035_v0  ;;  %v8807_v6 = vpop.permute.xlu2 %1916  ;;  %v8837_v5 = vpop.f32.mrf.mxu1 }
 0x2e1   : > { %2146 = vrot.lane.b32.xlu2 %v8804_v30, %s7545_s29  ;;  %v1789_v8 = vrot.slane %v8804_v30, 1  ;;  %v1493_v31 = vshll.u32 %v8804_v30, 16  ;;  %v1491_v0 = vshrl.u32 %v8804_v30, 16  ;;  %v1500_v36 = vrot.slane %v1498_v20, 1  ;;  %12161 = vst [vmem:[#allocation30_spill] sm:$0xff] %v8837_v5 }
 0x2e3   : > { %v8816_v40 = vsel %vm1722_vm3, %v1789_v8, %v1790_v11  ;;  %v1495_v16 = vrot.slane %v1493_v31, 1  ;;  %v2387_v11 = vsel %vm2353_vm8, %v2324_v51, %v1849_v50  ;;  %v2003_v8 = vpop.permute.xlu0 %2002 }
 0x2e4   : > { %2270 = vrot.lane.b32.xlu1 %v8816_v40, %s7546_s9 }
 0x2e5   : > { %v1496_v13 = vor.u32 %v1495_v16, %v1491_v0  ;;  %v7369_v16 = vld [vmem:[%s12002_s4 + $0x138] sm:$0xff] }
 0x2e6   : > { %5587 = vmatpush.bf16.msrb.mxu1 %v7369_v16  ;;  %v7285_v0 = vld [vmem:[%s7691_s19 + $0xb8] sm:$0xff]  ;;  %v7367_v16 = vld [vmem:[%s12002_s4 + $0x128] sm:$0xff] }
 0x2e7   : > { %v2986_v1 = vpop.f32.mrf.mxu0  ;;  %v8825_v46 = vsel %vm1225_vm4, %v1496_v13, %v1500_v36  ;;  %v2452_v13 = vsel %vm2416_vm9, %v2387_v11, %v1915_v33 }
 0x2e8   : > { %2208 = vrot.lane.b32.xlu0 %v8825_v46, %s7547_s10  ;;  %v8830_v31 = vpop.permute.xlu2 %2140  ;;  %v2987_v52 = vadd.f32 %v8576_v41, %v2986_v1  ;;  %v2517_v50 = vsel %vm2481_vm10, %v2452_v13, %v2003_v8  ;;  %v7368_v1 = vld [vmem:[%s12002_s4 + $0x130] sm:$0xff]  ;;  %v8861_v13 = vpop.f32.mrf.mxu1 }
 0x2e9   : > { %782 = vrot.lane.b32.xlu2 %v7320_v60, %s7538_s14  ;;  %v2582_v60 = vsel %vm2546_vm11, %v2517_v50, %v2075_v29  ;;  %12162 = vst [vmem:[#allocation31_spill] sm:$0xff] %v8861_v13 }
 0x2ea   : > { %v3107_v20 = vmax.f32 %v2987_v52, 0.0  ;;  %v2647_v5 = vsel %vm2611_vm12, %v2582_v60, %v2139_v53  ;;  %5588 = vmatpush.bf16.msrb.mxu1 %v7368_v1 }
 0x2eb   : > { %v2263_v36 = vpop.permute.xlu1 %2262 }
 0x2ec   : > { %1858 = vrot.lane.b32.xlu1 %v8760_v14, %s7540_s15  ;;  %v3171_v8 = vpack.c.bf16 %v3107_v20, %v3107_v20 }
 0x2ee   : > { %5589 = vmatpush.bf16.msrb.mxu1 %v7367_v16 }
 0x2ef   : > { %v2988_v51 = vpop.f32.mrf.mxu0  ;;  %v2201_v43 = vpop.permute.xlu0 %2200  ;;  %5436 = vmatmul.bf16.gmra.mxu0 %v8299_v39 }
 0x2f0   : > { %v2989_v33 = vadd.f32 %v8576_v41, %v2988_v51  ;;  %1640 = vrot.lane.b32.xlu0 %v8768_v58, %s7541_s16  ;;  %v2711_v14 = vsel %vm2675_vm13, %v2647_v5, %v2201_v43  ;;  %v777_v11 = vpop.permute.xlu2 %776 }
 0x2f1   : > { %1924 = vrot.lane.b32.xlu2 %v8804_v30, %s7542_s20  ;;  %v866_v52 = vsel %vm794_vm5, %v7285_v0, %v777_v11  ;;  %v2775_v53 = vsel %vm2739_vm14, %v2711_v14, %v2263_v36  ;;  %v3299_v0 = vunpack.c.l.b16 %v3171_v8  ;;  %v7366_v36 = vld [vmem:[%s12002_s4 + $0x120] sm:$0xff] }
 0x2f2   : > { %v3108_v29 = vmax.f32 %v2989_v33, 0.0  ;;  %v1036_v58 = vshrl.u32 %v866_v52, 16  ;;  %6951 = vmatmul.msk.bf16.vlgmr.msra.gmra.mxu3 %vm2843_vm15, %v2775_v53  ;;  %v1039_v20 = vshll.u32 %v866_v52, 16  ;;  %5590 = vmatpush.bf16.msrb.mxu1 %v7366_v36  ;;  %v7365_v53 = vld [vmem:[%s12002_s4 + $0x118] sm:$0xff]  ;;  %v8890_v36 = vpop.f32.mrf.mxu1 }
 0x2f3   : > { %v1851_v43 = vpop.permute.xlu1 %1850  ;;  %12163 = vst [vmem:[#allocation32_spill] sm:$0xff] %v8890_v36 }
 0x2f4   : > { %v3172_v5 = vpack.c.bf16 %v3108_v29, %v3108_v29  ;;  %2084 = vrot.lane.b32.xlu1 %v8816_v40, %s7543_s26  ;;  %v1038_v50 = vrot.slane %v1036_v58, 7 }
 0x2f6   : > { %v3300_v1 = vunpack.c.l.b16 %v3172_v5  ;;  %v1041_v60 = vor.u32 %v1039_v20, %v1038_v50  ;;  %v1216_v51 = vsel %vm7663_vm2, %v1038_v50, 0  ;;  %5591 = vmatpush.bf16.msrb.mxu1 %v7365_v53 }
 0x2f7   : > { %v1633_v14 = vpop.permute.xlu0 %1632  ;;  %v1510_v52 = vshll.u32 %v1216_v51, 16  ;;  %v1793_v16 = vrot.slane %v1216_v51, 1 }
 0x2f8   : > { %v3350_v33 = vpack.c.b16 %v3300_v1, %v3299_v0  ;;  %2012 = vrot.lane.b32.xlu0 %v8825_v46, %s7544_s28  ;;  %v8875_v11 = vsel %vm7663_vm2, 0, %v1041_v60  ;;  %v8877_v29 = vpop.permute.xlu2 %1918  ;;  %v2326_v58 = vsel %vm2290_vm7, %v8467_v7, %v1633_v14  ;;  %v7321_v14 = vld [vmem:[%s7641_s13 + $0xd8] sm:$0xff] }
 0x2f9   : > { %2148 = vrot.lane.b32.xlu2 %v8875_v11, %s7545_s29  ;;  %v1792_v50 = vrot.slane %v8875_v11, 1  ;;  %v1505_v20 = vshll.u32 %v8875_v11, 16  ;;  %v1503_v13 = vshrl.u32 %v8875_v11, 16  ;;  %v2389_v7 = vsel %vm2353_vm8, %v2326_v58, %v1851_v43 }
 0x2fa   : > { %v3461_v8 = vshrl.u32 %v3350_v33, 16  ;;  %v3464_v1 = vshll.u32 %v3350_v33, 16  ;;  %v2454_v43 = vsel %vm2416_vm9, %v2389_v7, %v8807_v6  ;;  %v7363_v6 = vld [vmem:[%s12002_s4 + $0x108] sm:$0xff] }
 0x2fb   : > { %v2077_v5 = vpop.permute.xlu1 %2076  ;;  %v8893_v60 = vsel %vm1722_vm3, %v1792_v50, %v1793_v16  ;;  %v1507_v17 = vrot.slane %v1505_v20, 1  ;;  %v7364_v16 = vld [vmem:[%s12002_s4 + $0x110] sm:$0xff] }
 0x2fc   : > { %v8888_v0 = vrot.slane %v3461_v8, 7  ;;  %2272 = vrot.lane.b32.xlu1 %v8893_v60, %s7546_s9  ;;  %v1512_v8 = vrot.slane %v1510_v52, 1  ;;  %5592 = vmatpush.bf16.msrb.mxu1 %v7364_v16 }
 0x2fd   : > { %v1508_v33 = vor.u32 %v1507_v17, %v1503_v13 }
 0x2fe   : > { %v3466_v51 = vor.u32 %v3464_v1, %v8888_v0  ;;  %v8925_v1 = vpop.f32.mrf.mxu1 }
 0x2ff   : > { %v2991_v3 = vpop.f32.mrf.mxu0  ;;  %v2005_v50 = vpop.permute.xlu0 %2004  ;;  %5441 = vmatmul.bf16.gmra.mxu0 %v8327_v28  ;;  %v8912_v58 = vsel %vm1225_vm4, %v1508_v33, %v1512_v8  ;;  %12164 = vst [vmem:[#allocation33_spill] sm:$0xff] %v8925_v1 }
 0x300   : > { %v8907_v53 = vsel %vm7663_vm2, 0, %v3466_v51  ;;  %v8914_v52 = vpop.permute.xlu2 %2142  ;;  %v2519_v17 = vsel %vm2481_vm10, %v2454_v43, %v2005_v50  ;;  %v2992_v13 = vadd.f32 %v8576_v41, %v2991_v3  ;;  %2210 = vrot.lane.b32.xlu0 %v8912_v58, %s7547_s10  ;;  %v7286_v3 = vld [vmem:[%s7691_s19 + $0xc0] sm:$0xff]  ;;  %5593 = vmatpush.bf16.msrb.mxu1 %v7363_v6 }
 0x301   : > { %4989 = vmatmul.bf16.gmra.mxu1 %v8907_v53  ;;  %784 = vrot.lane.b32.xlu2 %v7321_v14, %s7538_s14  ;;  %v2584_v51 = vsel %vm2546_vm11, %v2519_v17, %v2077_v5  ;;  %v7362_v14 = vld [vmem:[%s12002_s4 + $0x100] sm:$0xff] }
 0x302   : > { %v3109_v7 = vmax.f32 %v2992_v13, 0.0  ;;  %v2649_v16 = vsel %vm2611_vm12, %v2584_v51, %v8830_v31 }
 0x303   : > { %v2265_v20 = vpop.permute.xlu1 %2264 }
 0x304   : > { %1860 = vrot.lane.b32.xlu1 %v8816_v40, %s7540_s15  ;;  %v3173_v17 = vpack.c.bf16 %v3109_v7, %v3109_v7  ;;  %5594 = vmatpush.bf16.msrb.mxu1 %v7362_v14 }
 0x306   : > { %v3301_v7 = vunpack.c.l.b16 %v3173_v17 }
 0x307   : > { %v2993_v8 = vpop.f32.mrf.mxu0  ;;  %v2203_v33 = vpop.permute.xlu0 %2202 }
 0x308   : > { %v2994_v50 = vadd.f32 %v8576_v41, %v2993_v8  ;;  %v2713_v43 = vsel %vm2675_vm13, %v2649_v16, %v2203_v33  ;;  %v779_v5 = vpop.permute.xlu2 %778  ;;  %1642 = vrot.lane.b32.xlu0 %v8825_v46, %s7541_s16  ;;  %v8947_v46 = vpop.f32.mrf.mxu1 }
 0x309   : > { %v869_v40 = vsel %vm794_vm5, %v7286_v3, %v779_v5  ;;  %1926 = vrot.lane.b32.xlu2 %v8875_v11, %s7542_s20  ;;  %v2777_v6 = vsel %vm2739_vm14, %v2713_v43, %v2265_v20  ;;  %12165 = vst [vmem:[#allocation34_spill] sm:$0xff] %v8947_v46 }
 0x30a   : > { %v3110_v13 = vmax.f32 %v2994_v50, 0.0  ;;  %v1042_v36 = vshrl.u32 %v869_v40, 16  ;;  %v1045_v1 = vshll.u32 %v869_v40, 16  ;;  %6952 = vmatmul.msk.bf16.gmra.mxu3 %vm2843_vm15, %v2777_v6 }
 0x30b   : > { %v1853_v31 = vpop.permute.xlu1 %1852 }
 0x30c   : > { %v3174_v51 = vpack.c.bf16 %v3110_v13, %v3110_v13  ;;  %v1044_v8 = vrot.slane %v1042_v36, 7  ;;  %2086 = vrot.lane.b32.xlu1 %v8893_v60, %s7543_s26 }
 0x30e   : > { %v3302_v33 = vunpack.c.l.b16 %v3174_v51  ;;  %v1047_v3 = vor.u32 %v1045_v1, %v1044_v8  ;;  %v1217_v16 = vsel %vm7663_vm2, %v1044_v8, 0 }
 0x30f   : > { %v1635_v50 = vpop.permute.xlu0 %1634  ;;  %5446 = vmatmul.bf16.gmra.mxu0 %v8380_v4  ;;  %v1522_v36 = vshll.u32 %v1217_v16, 16  ;;  %v1796_v43 = vrot.slane %v1217_v16, 1 }
 0x310   : > { %v3351_v20 = vpack.c.b16 %v3302_v33, %v3301_v7  ;;  %v8954_v14 = vsel %vm7663_vm2, 0, %v1047_v3  ;;  %v8956_v5 = vpop.permute.xlu2 %1920  ;;  %2014 = vrot.lane.b32.xlu0 %v8912_v58, %s7544_s28  ;;  %v2328_v1 = vsel %vm2290_vm7, %v8535_v25, %v1635_v50  ;;  %v7322_v25 = vld [vmem:[%s7641_s13 + $0xe0] sm:$0xff]  ;;  %v8977_v50 = vpop.f32.mrf.mxu1 }
 0x311   : > { %2150 = vrot.lane.b32.xlu2 %v8954_v14, %s7545_s29  ;;  %v1795_v40 = vrot.slane %v8954_v14, 1  ;;  %v1515_v6 = vshrl.u32 %v8954_v14, 16  ;;  %v1517_v51 = vshll.u32 %v8954_v14, 16  ;;  %v1524_v33 = vrot.slane %v1522_v36, 1  ;;  %12166 = vst [vmem:[#allocation35_spill] sm:$0xff] %v8977_v50 }
 0x312   : > { %v3468_v17 = vshrl.u32 %v3351_v20, 16  ;;  %v3471_v7 = vshll.u32 %v3351_v20, 16  ;;  %v2391_v24 = vsel %vm2353_vm8, %v2328_v1, %v1853_v31 }
 0x313   : > { %v2079_v13 = vpop.permute.xlu1 %2078  ;;  %v8970_v3 = vsel %vm1722_vm3, %v1795_v40, %v1796_v43  ;;  %v1519_v16 = vrot.slane %v1517_v51, 1  ;;  %v2456_v36 = vsel %vm2416_vm9, %v2391_v24, %v8877_v29  ;;  %v9003_v24 = vsel %vm7663_vm2, %v8195_v23, 0 }
 0x314   : > { %v8967_v8 = vrot.slane %v3468_v17, 7  ;;  %2274 = vrot.lane.b32.xlu1 %v8970_v3, %s7546_s9  ;;  %12168 = vst [vmem:[#allocation37_spill] sm:$0xff] %v9003_v24 }
 0x315   : > { %v1520_v18 = vor.u32 %v1519_v16, %v1515_v6 }
 0x316   : > { %v3473_v46 = vor.u32 %v3471_v7, %v8967_v8 }
 0x317   : > { %v2007_v17 = vpop.permute.xlu0 %2006  ;;  %v8986_v43 = vsel %vm1225_vm4, %v1520_v18, %v1524_v33  ;;  %v7287_v18 = vld [vmem:[%s7691_s19 + $0xc8] sm:$0xff] }
 0x318   : > { %v8981_v20 = vsel %vm7663_vm2, 0, %v3473_v46  ;;  %v8988_v31 = vpop.permute.xlu2 %2144  ;;  %v2521_v1 = vsel %vm2481_vm10, %v2456_v36, %v2007_v17  ;;  %2212 = vrot.lane.b32.xlu0 %v8986_v43, %s7547_s10  ;;  %v3724_v46 = vshll.u32 %v8208_v48, 16  ;;  %v9008_v33 = vpop.f32.mrf.mxu1 }
 0x319   : > { %12167 = vst [vmem:[#allocation36_spill] sm:$0xff] %v8981_v20  ;;  %4994 = vmatmul.bf16.gmra.mxu1 %v8981_v20  ;;  %786 = vrot.lane.b32.xlu2 %v7322_v25, %s7538_s14  ;;  %v2586_v6 = vsel %vm2546_vm11, %v2521_v1, %v2079_v13  ;;  %v3729_v25 = vshll.u32 %v9003_v24, 16 }
 0x31a   : > { %v2651_v51 = vsel %vm2611_vm12, %v2586_v6, %v8914_v52  ;;  %v3726_v7 = vrot.slane %v3724_v46, 1  ;;  %12169 = vst [vmem:[#allocation38_spill] sm:$0xff] %v9008_v33  ;;  %v3722_v52 = vshrl.u32 %v8208_v48, 16  ;;  %v7323_v33 = vld [vmem:[%s7641_s13 + $0xe8] sm:$0xff] }
 0x31b   : > { %v2267_v40 = vpop.permute.xlu1 %2266 }
 0x31c   : > { %1862 = vrot.lane.b32.xlu1 %v8893_v60, %s7540_s15  ;;  %v3727_v1 = vor.u32 %v3726_v7, %v3722_v52 }
 0x31f   : > { %v2205_v29 = vpop.permute.xlu0 %2204  ;;  %5451 = vmatmul.bf16.gmra.mxu0 %v8414_v12 }
 0x320   : > { %v2715_v13 = vsel %vm2675_vm13, %v2651_v51, %v2205_v29  ;;  %v781_v16 = vpop.permute.xlu2 %780  ;;  %1644 = vrot.lane.b32.xlu0 %v8912_v58, %s7541_s16  ;;  %v3731_v58 = vrot.slane %v3729_v25, 1 }
 0x321   : > { %v872_v60 = vsel %vm794_vm5, %v7287_v18, %v781_v16  ;;  %1928 = vrot.lane.b32.xlu2 %v8954_v14, %s7542_s20  ;;  %v2779_v23 = vsel %vm2739_vm14, %v2715_v13, %v2267_v40  ;;  %v9027_v13 = vpop.f32.mrf.mxu1 }
 0x322   : > { %v1048_v17 = vshrl.u32 %v872_v60, 16  ;;  %v1051_v36 = vshll.u32 %v872_v60, 16  ;;  %6953 = vmatmul.msk.bf16.gmra.mxu3 %vm2843_vm15, %v2779_v23  ;;  %v9025_v51 = vsel %vm1225_vm4, %v3727_v1, %v3731_v58  ;;  %12171 = vst [vmem:[#allocation40_spill] sm:$0xff] %v9027_v13  ;;  %v9038_v23 = vpop.f32.mrf.mxu0  ;;  %v3736_v1 = vshll.u32 %v8263_v44, 16 }
 0x323   : > { %v1855_v6 = vpop.permute.xlu1 %1854  ;;  %12170 = vst [vmem:[#allocation39_spill] sm:$0xff] %v9025_v51  ;;  %v9056_v13 = vsel %vm7663_vm2, %v8249_v49, 0  ;;  %v3734_v49 = vshrl.u32 %v8263_v44, 16 }
 0x324   : > { %v1050_v46 = vrot.slane %v1048_v17, 7  ;;  %2088 = vrot.lane.b32.xlu1 %v8970_v3, %s7543_s26  ;;  %12172 = vst [vmem:[#allocation41_spill] sm:$0xff] %v9056_v13 }
 0x326   : > { %v1053_v18 = vor.u32 %v1051_v36, %v1050_v46  ;;  %v1218_v29 = vsel %vm7663_vm2, %v1050_v46, 0 }
 0x327   : > { %v1637_v40 = vpop.permute.xlu0 %1636  ;;  %v1534_v7 = vshll.u32 %v1218_v29, 16  ;;  %v1799_v60 = vrot.slane %v1218_v29, 1 }
 0x328   : > { %v9031_v16 = vsel %vm7663_vm2, 0, %v1053_v18  ;;  %2016 = vrot.lane.b32.xlu0 %v8986_v43, %s7544_s28  ;;  %v2330_v52 = vsel %vm2290_vm7, %v8597_v63, %v1637_v40 }
 0x329   : > { %5595 = vmatmul.bf16.vlgmr.msrb.gmra.mxu1 %v9025_v51  ;;  %2152 = vrot.lane.b32.xlu2 %v9031_v16, %s7545_s29  ;;  %v1798_v25 = vrot.slane %v9031_v16, 1  ;;  %v1527_v17 = vshrl.u32 %v9031_v16, 16  ;;  %v1529_v36 = vshll.u32 %v9031_v16, 16  ;;  %v1536_v46 = vrot.slane %v1534_v7, 1 }
 0x32a   : > { %v2393_v29 = vsel %vm2353_vm8, %v2330_v52, %v1855_v6  ;;  %v3738_v7 = vrot.slane %v3736_v1, 1 }
 0x32b   : > { %v9047_v58 = vsel %vm1722_vm3, %v1798_v25, %v1799_v60  ;;  %v1531_v18 = vrot.slane %v1529_v36, 1  ;;  %v2081_v63 = vpop.permute.xlu1 %2080  ;;  %v2458_v60 = vsel %vm2416_vm9, %v2393_v29, %v8956_v5  ;;  %v3741_v25 = vshll.u32 %v9056_v13, 16  ;;  %v9072_v36 = vpop.permute.xlu2 %1922 }
 0x32c   : > { %2276 = vrot.lane.b32.xlu1 %v9047_v58, %s7546_s9  ;;  %v3739_v1 = vor.u32 %v3738_v7, %v3734_v49  ;;  %v9074_v5 = vpop.f32.mrf.mxu0  ;;  %v3748_v7 = vshll.u32 %v8299_v39, 16 }
 0x32d   : > { %v1532_v40 = vor.u32 %v1531_v18, %v1527_v17  ;;  %v9070_v17 = vpop.f32.mrf.mxu1 }
 0x32e   : > { %12173 = vst [vmem:[#allocation42_spill] sm:$0xff] %v9070_v17 }
 0x32f   : > { %v2009_v50 = vpop.permute.xlu0 %2008  ;;  %5456 = vmatmul.bf16.gmra.mxu0 %v8452_v27  ;;  %v9062_v6 = vsel %vm1225_vm4, %v1532_v40, %v1536_v46 }
 0x330   : > { %v2523_v52 = vsel %vm2481_vm10, %v2458_v60, %v2009_v50  ;;  %2214 = vrot.lane.b32.xlu0 %v9062_v6, %s7547_s10  ;;  %v3743_v50 = vrot.slane %v3741_v25, 1  ;;  %v7288_v25 = vld [vmem:[%s7691_s19 + $0xd0] sm:$0xff] }
 0x331   : > { %788 = vrot.lane.b32.xlu2 %v7323_v33, %s7538_s14  ;;  %v2588_v46 = vsel %vm2546_vm11, %v2523_v52, %v2081_v63 }
 0x332   : > { %v2653_v33 = vsel %vm2611_vm12, %v2588_v46, %v8988_v31  ;;  %v9082_v29 = vsel %vm1225_vm4, %v3739_v1, %v3743_v50  ;;  %v3750_v1 = vrot.slane %v3748_v7, 1  ;;  %v3746_v46 = vshrl.u32 %v8299_v39, 16 }
 0x333   : > { %12174 = vst [vmem:[#allocation43_spill] sm:$0xff] %v9082_v29  ;;  %v2269_v40 = vpop.permute.xlu1 %2268 }
 0x334   : > { %1864 = vrot.lane.b32.xlu1 %v8970_v3, %s7540_s15 }
 0x335   : > { %v9091_v63 = vpop.f32.mrf.mxu1 }
 0x336   : > { %12175 = vst [vmem:[#allocation44_spill] sm:$0xff] %v9091_v63 }
 0x337   : > { %v2207_v18 = vpop.permute.xlu0 %2206 }
 0x338   : > { %v2717_v60 = vsel %vm2675_vm13, %v2653_v33, %v2207_v18  ;;  %1646 = vrot.lane.b32.xlu0 %v8986_v43, %s7541_s16  ;;  %v9102_v43 = vsel %vm7663_vm2, %v8294_v59, 0  ;;  %v3751_v59 = vor.u32 %v3750_v1, %v3746_v46 }
 0x339   : > { %5600 = vmatmul.bf16.gmra.mxu1 %v9082_v29  ;;  %1930 = vrot.lane.b32.xlu2 %v9031_v16, %s7542_s20  ;;  %v2781_v3 = vsel %vm2739_vm14, %v2717_v60, %v2269_v40  ;;  %12176 = vst [vmem:[#allocation45_spill] sm:$0xff] %v9102_v43  ;;  %v3753_v50 = vshll.u32 %v9102_v43, 16 }
 0x33a   : > { %6954 = vmatmul.msk.bf16.gmra.mxu3 %vm2843_vm15, %v2781_v3 }
 0x33b   : > { %v9094_v31 = vpop.permute.xlu2 %2146  ;;  %v1857_v33 = vpop.permute.xlu1 %1856  ;;  %v3755_v7 = vrot.slane %v3753_v50, 1 }
 0x33c   : > { %v3001_v52 = vpop.f32.mrf.mxu0  ;;  %2090 = vrot.lane.b32.xlu1 %v9047_v58, %s7543_s26 }
 0x33d   : > { %v3002_v49 = vadd.f32 %v8576_v41, %v3001_v52  ;;  %v9112_v3 = vpop.f32.mrf.mxu1  ;;  %v9116_v43 = vsel %vm1225_vm4, %v3751_v59, %v3755_v7 }
 0x33e   : > { %12177 = vst [vmem:[#allocation46_spill] sm:$0xff] %v9112_v3 }
 0x33f   : > { %5461 = vmatmul.bf16.gmra.mxu0 %v8495_v19  ;;  %v3113_v40 = vmax.f32 %v3002_v49, 0.0  ;;  %v1639_v29 = vpop.permute.xlu0 %1638  ;;  %12178 = vst [vmem:[#allocation47_spill] sm:$0xff] %v9116_v43 }
 0x340   : > { %2018 = vrot.lane.b32.xlu0 %v9062_v6, %s7544_s28 }
 0x341   : > { %v3177_v44 = vpack.c.bf16 %v3113_v40, %v3113_v40 }
 0x343   : > { %v783_v18 = vpop.permute.xlu2 %782  ;;  %v3305_v46 = vunpack.c.l.b16 %v3177_v44 }
 0x344   : > { %v875_v60 = vsel %vm794_vm5, %v7288_v25, %v783_v18  ;;  %v3003_v17 = vpop.f32.mrf.mxu0 }
 0x345   : > { %v1054_v52 = vshrl.u32 %v875_v60, 16  ;;  %v3004_v63 = vadd.f32 %v8576_v41, %v3003_v17  ;;  %v1057_v13 = vshll.u32 %v875_v60, 16  ;;  %v3760_v17 = vshll.u32 %v8327_v28, 16  ;;  %v2083_v60 = vpop.permute.xlu1 %2082 }
 0x347   : > { %v1056_v51 = vrot.slane %v1054_v52, 7  ;;  %v3114_v39 = vmax.f32 %v3004_v63, 0.0 }
 0x349   : > { %v1059_v24 = vor.u32 %v1057_v13, %v1056_v51  ;;  %v1219_v49 = vsel %vm7663_vm2, %v1056_v51, 0  ;;  %5605 = vmatmul.bf16.gmra.mxu1 %v9116_v43  ;;  %v3178_v25 = vpack.c.bf16 %v3114_v39, %v3114_v39  ;;  %v9131_v51 = vpop.f32.mrf.mxu1  ;;  %v2332_v39 = vsel %vm2290_vm7, %v8686_v54, %v1639_v29 }
 0x34a   : > { %v1802_v63 = vrot.slane %v1219_v49, 1  ;;  %12179 = vst [vmem:[#allocation48_spill] sm:$0xff] %v9131_v51  ;;  %v9147_v54 = vsel %vm7663_vm2, %v8316_v22, 0  ;;  %v2395_v29 = vsel %vm2353_vm8, %v2332_v39, %v1857_v33 }
 0x34b   : > { %v9123_v1 = vsel %vm7663_vm2, 0, %v1059_v24  ;;  %v9125_v41 = vpop.permute.xlu2 %1924  ;;  %v3306_v50 = vunpack.c.l.b16 %v3178_v25  ;;  %v1546_v24 = vshll.u32 %v1219_v49, 16  ;;  %v7324_v25 = vld [vmem:[%s7641_s13 + $0xf0] sm:$0xff]  ;;  %v3765_v51 = vshll.u32 %v9147_v54, 16 }
 0x34c   : > { %2154 = vrot.lane.b32.xlu2 %v9123_v1, %s7545_s29  ;;  %v1801_v13 = vrot.slane %v9123_v1, 1  ;;  %v9135_v18 = vpop.f32.mrf.mxu0  ;;  %v1541_v40 = vshll.u32 %v9123_v1, 16  ;;  %v1539_v52 = vshrl.u32 %v9123_v1, 16  ;;  %v2460_v22 = vsel %vm2416_vm9, %v2395_v29, %v9072_v36 }
 0x34d   : > { %12180 = vst [vmem:[#allocation49_spill] sm:$0xff] %v9135_v18  ;;  %v3353_v44 = vpack.c.b16 %v3306_v50, %v3305_v46  ;;  %v3762_v46 = vrot.slane %v3760_v17, 1  ;;  %v2011_v50 = vpop.permute.xlu0 %2010  ;;  %v3767_v29 = vrot.slane %v3765_v51, 1 }
 0x34e   : > { %v9139_v59 = vsel %vm1722_vm3, %v1801_v13, %v1802_v63  ;;  %v1543_v7 = vrot.slane %v1541_v40, 1  ;;  %v1548_v63 = vrot.slane %v1546_v24, 1  ;;  %v3758_v40 = vshrl.u32 %v8327_v28, 16 }
 0x34f   : > { %2278 = vrot.lane.b32.xlu1 %v9139_v59, %s7546_s9  ;;  %v3482_v49 = vshrl.u32 %v3353_v44, 16  ;;  %5466 = vmatmul.bf16.gmra.mxu0 %v8522_v56  ;;  %v3485_v18 = vshll.u32 %v3353_v44, 16  ;;  %v2525_v39 = vsel %vm2481_vm10, %v2460_v22, %v2011_v50 }
 0x350   : > { %v1544_v13 = vor.u32 %v1543_v7, %v1539_v52  ;;  %v3763_v44 = vor.u32 %v3762_v46, %v3758_v40 }
 0x351   : > { %v9152_v3 = vrot.slane %v3482_v49, 7  ;;  %v9174_v49 = vpop.f32.mrf.mxu1 }
 0x352   : > { %v9159_v33 = vsel %vm1225_vm4, %v1544_v13, %v1548_v63  ;;  %12182 = vst [vmem:[#allocation51_spill] sm:$0xff] %v9174_v49  ;;  %v2590_v63 = vsel %vm2546_vm11, %v2525_v39, %v2083_v60  ;;  %v3772_v13 = vshll.u32 %v8380_v4, 16 }
 0x353   : > { %2216 = vrot.lane.b32.xlu0 %v9159_v33, %s7547_s10  ;;  %v9164_v17 = vpop.permute.xlu2 %2148  ;;  %v3487_v24 = vor.u32 %v3485_v18, %v9152_v3  ;;  %v9181_v18 = vsel %vm1225_vm4, %v3763_v44, %v3767_v29  ;;  %v2655_v50 = vsel %vm2611_vm12, %v2590_v63, %v9094_v31 }
 0x354   : > { %790 = vrot.lane.b32.xlu2 %v7324_v25, %s7538_s14  ;;  %v9168_v52 = vpop.f32.mrf.mxu0  ;;  %12183 = vst [vmem:[#allocation52_spill] sm:$0xff] %v9181_v18  ;;  %v7289_v25 = vld [vmem:[%s7691_s19 + $0xd8] sm:$0xff]  ;;  %v3774_v29 = vrot.slane %v3772_v13, 1 }
 0x355   : > { %12181 = vst [vmem:[#allocation50_spill] sm:$0xff] %v9168_v52  ;;  %v9172_v36 = vsel %vm7663_vm2, 0, %v3487_v24 }
 0x356   : > { %v2271_v7 = vpop.permute.xlu1 %2270  ;;  %5004 = vmatmul.bf16.gmra.mxu2 %v9172_v36 }
 0x357   : > { %1866 = vrot.lane.b32.xlu1 %v9047_v58, %s7540_s15 }
 0x359   : > { %5610 = vmatmul.bf16.gmra.mxu1 %v9181_v18  ;;  %v9198_v24 = vpop.f32.mrf.mxu1 }
 0x35a   : > { %v2209_v46 = vpop.permute.xlu0 %2208  ;;  %12185 = vst [vmem:[#allocation54_spill] sm:$0xff] %v9198_v24 }
 0x35b   : > { %v2719_v51 = vsel %vm2675_vm13, %v2655_v50, %v2209_v46  ;;  %1648 = vrot.lane.b32.xlu0 %v9062_v6, %s7541_s16  ;;  %v785_v60 = vpop.permute.xlu2 %784  ;;  %v9205_v6 = vsel %vm7663_vm2, %v8367_v26, 0  ;;  %v3770_v50 = vshrl.u32 %v8380_v4, 16 }
 0x35c   : > { %1932 = vrot.lane.b32.xlu2 %v9123_v1, %s7542_s20  ;;  %v2783_v58 = vsel %vm2739_vm14, %v2719_v51, %v2271_v7  ;;  %v878_v40 = vsel %vm794_vm5, %v7289_v25, %v785_v60  ;;  %v9195_v22 = vpop.f32.mrf.mxu0  ;;  %12186 = vst [vmem:[#allocation55_spill] sm:$0xff] %v9205_v6  ;;  %v3777_v51 = vshll.u32 %v9205_v6, 16 }
 0x35d   : > { %12184 = vst [vmem:[#allocation53_spill] sm:$0xff] %v9195_v22  ;;  %6955 = vmatmul.msk.bf16.gmra.mxu3 %vm2843_vm15, %v2783_v58  ;;  %v1060_v31 = vshrl.u32 %v878_v40, 16  ;;  %v1063_v7 = vshll.u32 %v878_v40, 16  ;;  %v3775_v58 = vor.u32 %v3774_v29, %v3770_v50 }
 0x35e   : > { %v1859_v39 = vpop.permute.xlu1 %1858  ;;  %v3779_v49 = vrot.slane %v3777_v51, 1  ;;  %v7325_v51 = vld [vmem:[%s7641_s13 + $0xf8] sm:$0xff]  ;;  %s6573_s13 = scalar_lea.hbm %s12004_s6, %s7403_s18 }
 0x35f   : > { %2092 = vrot.lane.b32.xlu1 %v9139_v59, %s7543_s26  ;;  %v1062_v44 = vrot.slane %v1060_v31, 7  ;;  %5471 = vmatmul.bf16.gmra.mxu0 %v8569_v9 }
 0x360   : > { %v9234_v29 = vsel %vm1225_vm4, %v3775_v58, %v3779_v49  ;;  %v3784_v49 = vshll.u32 %v8414_v12, 16 }
 0x361   : > { %v1065_v63 = vor.u32 %v1063_v7, %v1062_v44  ;;  %v1220_v25 = vsel %vm7663_vm2, %v1062_v44, 0  ;;  %12188 = vst [vmem:[#allocation57_spill] sm:$0xff] %v9234_v29 }
 0x362   : > { %v1641_v46 = vpop.permute.xlu0 %1640  ;;  %v1805_v13 = vrot.slane %v1220_v25, 1  ;;  %v1558_v44 = vshll.u32 %v1220_v25, 16  ;;  %v9237_v25 = vpop.f32.mrf.mxu1 }
 0x363   : > { %v9214_v60 = vsel %vm7663_vm2, 0, %v1065_v63  ;;  %2020 = vrot.lane.b32.xlu0 %v9159_v33, %s7544_s28  ;;  %v9218_v26 = vpop.permute.xlu2 %1926  ;;  %v2334_v22 = vsel %vm2290_vm7, %v8728_v2, %v1641_v46  ;;  %12189 = vst [vmem:[#allocation58_spill] sm:$0xff] %v9237_v25 }
 0x364   : > { %v9220_v40 = vpop.f32.mrf.mxu0  ;;  %2156 = vrot.lane.b32.xlu2 %v9214_v60, %s7545_s29  ;;  %v1804_v31 = vrot.slane %v9214_v60, 1  ;;  %v1553_v63 = vshll.u32 %v9214_v60, 16  ;;  %v1551_v50 = vshrl.u32 %v9214_v60, 16  ;;  %v1560_v24 = vrot.slane %v1558_v44, 1 }
 0x365   : > { %12187 = vst [vmem:[#allocation56_spill] sm:$0xff] %v9220_v40  ;;  %v2397_v2 = vsel %vm2353_vm8, %v2334_v22, %v1859_v39  ;;  %v9259_v39 = vsel %vm7663_vm2, %v8407_v61, 0 }
 0x366   : > { %v2085_v7 = vpop.permute.xlu1 %2084  ;;  %v9229_v52 = vsel %vm1722_vm3, %v1804_v31, %v1805_v13  ;;  %v1555_v40 = vrot.slane %v1553_v63, 1  ;;  %v2462_v58 = vsel %vm2416_vm9, %v2397_v2, %v9125_v41  ;;  %12191 = vst [vmem:[#allocation60_spill] sm:$0xff] %v9259_v39  ;;  %v3786_v41 = vrot.slane %v3784_v49, 1 }
 0x367   : > { %2280 = vrot.lane.b32.xlu1 %v9229_v52, %s7546_s9  ;;  %v3789_v2 = vshll.u32 %v9259_v39, 16 }
 0x368   : > { %v1556_v13 = vor.u32 %v1555_v40, %v1551_v50  ;;  %v7290_v50 = vld [vmem:[%s7691_s19 + $0xe0] sm:$0xff] }
 0x369   : > { %5615 = vmatmul.bf16.gmra.mxu1 %v9234_v29 }
 0x36a   : > { %v2013_v46 = vpop.permute.xlu0 %2012  ;;  %v9243_v31 = vsel %vm1225_vm4, %v1556_v13, %v1560_v24  ;;  %v9264_v40 = vpop.f32.mrf.mxu1 }
 0x36b   : > { %v9245_v18 = vpop.permute.xlu2 %2150  ;;  %2218 = vrot.lane.b32.xlu0 %v9243_v31, %s7547_s10  ;;  %v2527_v22 = vsel %vm2481_vm10, %v2462_v58, %v2013_v46  ;;  %12192 = vst [vmem:[#allocation61_spill] sm:$0xff] %v9264_v40 }
 0x36c   : > { %v9252_v63 = vpop.f32.mrf.mxu0  ;;  %792 = vrot.lane.b32.xlu2 %v7325_v51, %s7538_s14  ;;  %v2592_v44 = vsel %vm2546_vm11, %v2527_v22, %v2085_v7  ;;  %v3782_v51 = vshrl.u32 %v8414_v12, 16 }
 0x36d   : > { %12190 = vst [vmem:[#allocation59_spill] sm:$0xff] %v9252_v63  ;;  %v2657_v61 = vsel %vm2611_vm12, %v2592_v44, %v9164_v17  ;;  %v3791_v17 = vrot.slane %v3789_v2, 1 }
 0x36e   : > { %v2273_v24 = vpop.permute.xlu1 %2272  ;;  %v3787_v58 = vor.u32 %v3786_v41, %v3782_v51 }
 0x36f   : > { %5476 = vmatmul.bf16.gmra.mxu0 %v8655_v21  ;;  %1868 = vrot.lane.b32.xlu1 %v9139_v59, %s7540_s15 }
 0x372   : > { %v2211_v46 = vpop.permute.xlu0 %2210 }
 0x373   : > { %v787_v13 = vpop.permute.xlu2 %786  ;;  %v2721_v25 = vsel %vm2675_vm13, %v2657_v61, %v2211_v46  ;;  %1650 = vrot.lane.b32.xlu0 %v9159_v33, %s7541_s16  ;;  %v9285_v33 = vsel %vm1225_vm4, %v3787_v58, %v3791_v17 }
 0x374   : > { %v881_v59 = vsel %vm794_vm5, %v7290_v50, %v787_v13  ;;  %v9276_v49 = vpop.f32.mrf.mxu0  ;;  %1934 = vrot.lane.b32.xlu2 %v9214_v60, %s7542_s20  ;;  %v2785_v40 = vsel %vm2739_vm14, %v2721_v25, %v2273_v24  ;;  %12194 = vst [vmem:[#allocation63_spill] sm:$0xff] %v9285_v33  ;;  %v9290_v50 = vld [vmem:[%s12001_s3] ss:$0 sm:$0xff] }
 0x375   : > { %12193 = vst [vmem:[#allocation62_spill] sm:$0xff] %v9276_v49  ;;  %v1066_v7 = vshrl.u32 %v881_v59, 16  ;;  %v1069_v22 = vshll.u32 %v881_v59, 16  ;;  %v3006_v63 = vpop.f32.mrf.mxu3  ;;  %6956 = vmatmul.msk.bf16.gmra.mxu3 %vm2843_vm15, %v2785_v40  ;;  %v9296_v40 = vpop.f32.mrf.mxu1  ;;  %v3796_v59 = vshll.u32 %v8452_v27, 16 }
 0x376   : > { %v1861_v44 = vpop.permute.xlu1 %1860  ;;  %v3007_v51 = vadd.f32 %v9290_v50, %v3006_v63  ;;  %12195 = vst [vmem:[#allocation64_spill] sm:$0xff] %v9296_v40 }
 0x377   : > { %v1068_v41 = vrot.slane %v1066_v7, 7  ;;  %2094 = vrot.lane.b32.xlu1 %v9229_v52, %s7543_s26  ;;  %v3798_v43 = vrot.slane %v3796_v59, 1 }
 0x378   : > { %v3115_v63 = vmax.f32 %v3007_v51, 0.0 }
 0x379   : > { %5620 = vmatmul.bf16.gmra.mxu1 %v9285_v33  ;;  %v1071_v25 = vor.u32 %v1069_v22, %v1068_v41  ;;  %v1221_v24 = vsel %vm7663_vm2, %v1068_v41, 0 }
 0x37a   : > { %v1808_v2 = vrot.slane %v1221_v24, 1  ;;  %v1570_v61 = vshll.u32 %v1221_v24, 16  ;;  %v1643_v13 = vpop.permute.xlu0 %1642 }
 0x37b   : > { %v9300_v46 = vsel %vm7663_vm2, 0, %v1071_v25  ;;  %v9302_v58 = vpop.permute.xlu2 %1928  ;;  %2022 = vrot.lane.b32.xlu0 %v9243_v31, %s7544_s28  ;;  %v2336_v24 = vsel %vm2290_vm7, %v8804_v30, %v1643_v13  ;;  %v3179_v30 = vpack.c.bf16 %v3115_v63, %v3115_v63 }
 0x37c   : > { %v9307_v7 = vpop.f32.mrf.mxu0  ;;  %2158 = vrot.lane.b32.xlu2 %v9300_v46, %s7545_s29  ;;  %v1807_v22 = vrot.slane %v9300_v46, 1  ;;  %v1563_v41 = vshrl.u32 %v9300_v46, 16  ;;  %v1565_v25 = vshll.u32 %v9300_v46, 16  ;;  %v1572_v49 = vrot.slane %v1570_v61, 1 }
 0x37d   : > { %12196 = vst [vmem:[#allocation65_spill] sm:$0xff] %v9307_v7  ;;  %v3008_v17 = vpop.f32.mrf.mxu3  ;;  %v9323_v7 = vsel %vm7663_vm2, %v8439_v38, 0  ;;  %v3307_v59 = vunpack.c.l.b16 %v3179_v30 }
 0x37e   : > { %v3009_v51 = vadd.f32 %v9290_v50, %v3008_v17  ;;  %v9318_v40 = vsel %vm1722_vm3, %v1807_v22, %v1808_v2  ;;  %v2087_v33 = vpop.permute.xlu1 %2086  ;;  %v1567_v29 = vrot.slane %v1565_v25, 1  ;;  %v2399_v17 = vsel %vm2353_vm8, %v2336_v24, %v1861_v44  ;;  %v9331_v12 = vpop.f32.mrf.mxu1 }
 0x37f   : > { %5481 = vmatmul.bf16.gmra.mxu0 %v8723_v57  ;;  %2282 = vrot.lane.b32.xlu1 %v9318_v40, %s7546_s9  ;;  %v3794_v22 = vshrl.u32 %v8452_v27, 16  ;;  %v3801_v39 = vshll.u32 %v9323_v7, 16  ;;  %12197 = vst [vmem:[#allocation66_spill] sm:$0xff] %v9331_v12 }
 0x380   : > { %v3116_v13 = vmax.f32 %v3009_v51, 0.0  ;;  %v1568_v2 = vor.u32 %v1567_v29, %v1563_v41  ;;  %v2464_v29 = vsel %vm2416_vm9, %v2399_v17, %v9218_v26 }
 0x381   : > { %v3799_v25 = vor.u32 %v3798_v43, %v3794_v22  ;;  %v3803_v41 = vrot.slane %v3801_v39, 1 }
 0x382   : > { %v3180_v38 = vpack.c.bf16 %v3116_v13, %v3116_v13  ;;  %v2015_v61 = vpop.permute.xlu0 %2014  ;;  %v9334_v6 = vsel %vm1225_vm4, %v1568_v2, %v1572_v49  ;;  %v7291_v13 = vld [vmem:[%s7691_s19 + $0xe8] sm:$0xff] }
 0x383   : > { %v9336_v4 = vpop.permute.xlu2 %2152  ;;  %2220 = vrot.lane.b32.xlu0 %v9334_v6, %s7547_s10  ;;  %v2529_v49 = vsel %vm2481_vm10, %v2464_v29, %v2015_v61  ;;  %v9350_v43 = vsel %vm1225_vm4, %v3799_v25, %v3803_v41 }
 0x384   : > { %v3308_v63 = vunpack.c.l.b16 %v3180_v38  ;;  %v9342_v44 = vpop.f32.mrf.mxu0  ;;  %1652 = vrot.lane.b32.xlu2 %v9243_v31, %s7541_s16  ;;  %12199 = vst [vmem:[#allocation68_spill] sm:$0xff] %v9350_v43  ;;  %v2594_v30 = vsel %vm2546_vm11, %v2529_v49, %v2087_v33  ;;  %v3808_v38 = vshll.u32 %v8495_v19, 16 }
 0x385   : > { %12198 = vst [vmem:[#allocation67_spill] sm:$0xff] %v9342_v44  ;;  %v2659_v39 = vsel %vm2611_vm12, %v2594_v30, %v9245_v18 }
 0x386   : > { %v3354_v24 = vpack.c.b16 %v3308_v63, %v3307_v59  ;;  %v2275_v51 = vpop.permute.xlu1 %2274  ;;  %v9369_v63 = vpop.f32.mrf.mxu1  ;;  %v3810_v30 = vrot.slane %v3808_v38, 1 }
 0x387   : > { %1936 = vrot.lane.b32.xlu1 %v9300_v46, %s7542_s20  ;;  %12201 = vst [vmem:[#allocation70_spill] sm:$0xff] %v9369_v63 }
 0x388   : > { %v3489_v26 = vshrl.u32 %v3354_v24, 16  ;;  %v3492_v31 = vshll.u32 %v3354_v24, 16  ;;  %v9375_v24 = vsel %vm7663_vm2, %v8489_v34, 0 }
 0x389   : > { %5625 = vmatmul.bf16.gmra.mxu1 %v9350_v43  ;;  %12202 = vst [vmem:[#allocation71_spill] sm:$0xff] %v9375_v24 }
 0x38a   : > { %v9355_v17 = vrot.slane %v3489_v26, 7  ;;  %v2213_v2 = vpop.permute.xlu0 %2212 }
 0x38b   : > { %v789_v22 = vpop.permute.xlu2 %788  ;;  %v2723_v25 = vsel %vm2675_vm13, %v2659_v39, %v2213_v2  ;;  %1870 = vrot.lane.b32.xlu0 %v9229_v52, %s7540_s15  ;;  %v3806_v39 = vshrl.u32 %v8495_v19, 16 }
 0x38c   : > { %v3494_v61 = vor.u32 %v3492_v31, %v9355_v17  ;;  %v884_v33 = vsel %vm794_vm5, %v7291_v13, %v789_v22  ;;  %v9365_v59 = vpop.f32.mrf.mxu0  ;;  %2024 = vrot.lane.b32.xlu2 %v9334_v6, %s7544_s28  ;;  %v2787_v41 = vsel %vm2739_vm14, %v2723_v25, %v2275_v51  ;;  %v3813_v31 = vshll.u32 %v9375_v24, 16 }
 0x38d   : > { %12200 = vst [vmem:[#allocation69_spill] sm:$0xff] %v9365_v59  ;;  %v1072_v18 = vshrl.u32 %v884_v33, 16  ;;  %v1075_v29 = vshll.u32 %v884_v33, 16  ;;  %v3011_v49 = vpop.f32.mrf.mxu3  ;;  %6957 = vmatmul.msk.bf16.gmra.mxu3 %vm2843_vm15, %v2787_v41  ;;  %v3811_v33 = vor.u32 %v3810_v30, %v3806_v39 }
 0x38e   : > { %v9380_v52 = vsel %vm7663_vm2, 0, %v3494_v61  ;;  %v3012_v13 = vadd.f32 %v9290_v50, %v3011_v49  ;;  %v1863_v51 = vpop.permute.xlu1 %1862 }
 0x38f   : > { %v1074_v26 = vrot.slane %v1072_v18, 7  ;;  %5009 = vmatmul.bf16.gmra.mxu2 %v9380_v52  ;;  %5486 = vmatmul.bf16.gmra.mxu0 %v8782_v15 }
 0x390   : > { %v3117_v18 = vmax.f32 %v3012_v13, 0.0 }
 0x391   : > { %v1077_v2 = vor.u32 %v1075_v29, %v1074_v26  ;;  %v1222_v34 = vsel %vm7663_vm2, %v1074_v26, 0  ;;  %v3815_v29 = vrot.slane %v3813_v31, 1 }
 0x392   : > { %v1582_v61 = vshll.u32 %v1222_v34, 16  ;;  %v1645_v25 = vpop.permute.xlu0 %1644  ;;  %v1811_v49 = vrot.slane %v1222_v34, 1  ;;  %v3181_v34 = vpack.c.bf16 %v3117_v18, %v3117_v18 }
 0x393   : > { %v9391_v22 = vsel %vm7663_vm2, 0, %v1077_v2  ;;  %2096 = vrot.lane.b32.xlu0 %v9318_v40, %s7543_s26  ;;  %v2338_v13 = vsel %vm2290_vm7, %v8875_v11, %v1645_v25  ;;  %v9408_v59 = vsel %vm1225_vm4, %v3811_v33, %v3815_v29 }
 0x394   : > { %v9395_v38 = vpop.f32.mrf.mxu0  ;;  %2160 = vrot.lane.b32.xlu1 %v9391_v22, %s7545_s29  ;;  %v1810_v2 = vrot.slane %v9391_v22, 1  ;;  %v1575_v63 = vshrl.u32 %v9391_v22, 16  ;;  %v1577_v30 = vshll.u32 %v9391_v22, 16  ;;  %12205 = vst [vmem:[#allocation74_spill] sm:$0xff] %v9408_v59  ;;  %v3309_v33 = vunpack.c.l.b16 %v3181_v34 }
 0x395   : > { %12203 = vst [vmem:[#allocation72_spill] sm:$0xff] %v9395_v38  ;;  %v3013_v41 = vpop.f32.mrf.mxu3  ;;  %v1584_v38 = vrot.slane %v1582_v61, 1  ;;  %v3820_v61 = vshll.u32 %v8522_v56, 16 }
 0x396   : > { %v9399_v26 = vpop.f32.mrf.mxu1  ;;  %v3014_v39 = vadd.f32 %v9290_v50, %v3013_v41  ;;  %v1579_v31 = vrot.slane %v1577_v30, 1  ;;  %v9413_v12 = vsel %vm1722_vm3, %v1810_v2, %v1811_v49  ;;  %v2089_v19 = vpop.permute.xlu1 %2088  ;;  %v2997_v41 = vadd.f32 %v9290_v50, %v9038_v23 }
 0x397   : > { %12204 = vst [vmem:[#allocation73_spill] sm:$0xff] %v9399_v26  ;;  %v2401_v26 = vsel %vm2353_vm8, %v2338_v13, %v1863_v51  ;;  %v9434_v51 = vpop.permute.xlu2 %1930  ;;  %v3822_v49 = vrot.slane %v3820_v61, 1  ;;  %v3818_v2 = vshrl.u32 %v8522_v56, 16 }
 0x398   : > { %v3118_v44 = vmax.f32 %v3014_v39, 0.0  ;;  %v1580_v43 = vor.u32 %v1579_v31, %v1575_v63  ;;  %v2466_v18 = vsel %vm2416_vm9, %v2401_v26, %v9302_v58 }
 0x399   : > { %5630 = vmatmul.bf16.gmra.mxu1 %v9408_v59  ;;  %v3823_v34 = vor.u32 %v3822_v49, %v3818_v2 }
 0x39a   : > { %v3182_v24 = vpack.c.bf16 %v3118_v44, %v3118_v44  ;;  %v2017_v11 = vpop.permute.xlu0 %2016  ;;  %v9416_v25 = vsel %vm1225_vm4, %v1580_v43, %v1584_v38  ;;  %v9439_v38 = vsel %vm7663_vm2, %v8513_v62, 0 }
 0x39b   : > { %2284 = vrot.lane.b32.xlu0 %v9413_v12, %s7546_s9  ;;  %2222 = vrot.lane.b32.xlu2 %v9416_v25, %s7547_s10  ;;  %v2531_v44 = vsel %vm2481_vm10, %v2466_v18, %v2017_v11  ;;  %12208 = vst [vmem:[#allocation77_spill] sm:$0xff] %v9439_v38  ;;  %v3111_v11 = vmax.f32 %v2997_v41, 0.0 }
 0x39c   : > { %v3310_v29 = vunpack.c.l.b16 %v3182_v24  ;;  %v9425_v63 = vpop.f32.mrf.mxu0  ;;  %1654 = vrot.lane.b32.xlu1 %v9334_v6, %s7541_s16  ;;  %v2999_v24 = vadd.f32 %v9290_v50, %v9074_v5  ;;  %v2596_v26 = vsel %vm2546_vm11, %v2531_v44, %v2089_v19  ;;  %v3825_v5 = vshll.u32 %v9439_v38, 16 }
 0x39d   : > { %12206 = vst [vmem:[#allocation75_spill] sm:$0xff] %v9425_v63  ;;  %v2661_v62 = vsel %vm2611_vm12, %v2596_v26, %v9336_v4  ;;  %v3175_v41 = vpack.c.bf16 %v3111_v11, %v3111_v11  ;;  %v3832_v26 = vshll.u32 %v8569_v9, 16 }
 0x39e   : > { %v9430_v43 = vpop.f32.mrf.mxu1  ;;  %v3355_v58 = vpack.c.b16 %v3310_v29, %v3309_v33  ;;  %v3112_v30 = vmax.f32 %v2999_v24, 0.0  ;;  %v2277_v23 = vpop.permute.xlu1 %2276  ;;  %v3827_v44 = vrot.slane %v3825_v5, 1  ;;  %v7292_v5 = vld [vmem:[%s7691_s19 + $0xf0] sm:$0xff] }
 0x39f   : > { %12207 = vst [vmem:[#allocation76_spill] sm:$0xff] %v9430_v43  ;;  %5491 = vmatmul.bf16.gmra.mxu0 %v8907_v53 }
 0x3a0   : > { %v3496_v6 = vshrl.u32 %v3355_v58, 16  ;;  %v3499_v39 = vshll.u32 %v3355_v58, 16  ;;  %v3176_v24 = vpack.c.bf16 %v3112_v30, %v3112_v30  ;;  %v9473_v49 = vsel %vm1225_vm4, %v3823_v34, %v3827_v44 }
 0x3a1   : > { %12212 = vst [vmem:[#allocation81_spill] sm:$0xff] %v9473_v49  ;;  %v3303_v30 = vunpack.c.l.b16 %v3175_v41 }
 0x3a2   : > { %v9447_v13 = vrot.slane %v3496_v6, 7  ;;  %v2215_v31 = vpop.permute.xlu0 %2214  ;;  %v3304_v2 = vunpack.c.l.b16 %v3176_v24  ;;  %v3830_v24 = vshrl.u32 %v8569_v9, 16 }
 0x3a3   : > { %v2725_v33 = vsel %vm2675_vm13, %v2661_v62, %v2215_v31  ;;  %1938 = vrot.lane.b32.xlu0 %v9391_v22, %s7542_s20  ;;  %1872 = vrot.lane.b32.xlu2 %v9318_v40, %s7540_s15  ;;  %v9486_v62 = vsel %vm7663_vm2, %v8555_v55, 0 }
 0x3a4   : > { %v3501_v61 = vor.u32 %v3499_v39, %v9447_v13  ;;  %v9457_v19 = vpop.f32.mrf.mxu0  ;;  %2026 = vrot.lane.b32.xlu1 %v9416_v25, %s7544_s28  ;;  %v2789_v29 = vsel %vm2739_vm14, %v2725_v33, %v2277_v23  ;;  %12214 = vst [vmem:[#allocation83_spill] sm:$0xff] %v9486_v62  ;;  %v3352_v23 = vpack.c.b16 %v3304_v2, %v3303_v30  ;;  %v3837_v41 = vshll.u32 %v9486_v62, 16 }
 0x3a5   : > { %12209 = vst [vmem:[#allocation78_spill] sm:$0xff] %v9457_v19  ;;  %v3016_v4 = vpop.f32.mrf.mxu3  ;;  %6958 = vmatmul.msk.bf16.gmra.mxu3 %vm2843_vm15, %v2789_v29 }
 0x3a6   : > { %v9462_v18 = vpop.f32.mrf.mxu1  ;;  %v9465_v58 = vpop.permute.xlu2 %2154  ;;  %v9469_v40 = vsel %vm7663_vm2, 0, %v3501_v61  ;;  %v3017_v6 = vadd.f32 %v9290_v50, %v3016_v4  ;;  %v3834_v61 = vrot.slane %v3832_v26, 1  ;;  %v3475_v63 = vshrl.u32 %v3352_v23, 16 }
 0x3a7   : > { %12210 = vst [vmem:[#allocation79_spill] sm:$0xff] %v9462_v18  ;;  %5014 = vmatmul.bf16.gmra.mxu2 %v9469_v40  ;;  %v1865_v33 = vpop.permute.xlu1 %1864  ;;  %v3839_v18 = vrot.slane %v3837_v41, 1 }
 0x3a8   : > { %12211 = vst [vmem:[#allocation80_spill] sm:$0xff] %v9469_v40  ;;  %v3119_v39 = vmax.f32 %v3017_v6, 0.0  ;;  %v3835_v19 = vor.u32 %v3834_v61, %v3830_v24 }
 0x3a9   : > { %5635 = vmatmul.bf16.gmra.mxu1 %v9473_v49 }
 0x3aa   : > { %v3183_v6 = vpack.c.bf16 %v3119_v39, %v3119_v39  ;;  %v9501_v39 = vrot.slane %v3475_v63, 7 }
 0x3ab   : > { %2098 = vrot.lane.b32.xlu2 %v9413_v12, %s7543_s26 }
 0x3ac   : > { %v9481_v31 = vpop.f32.mrf.mxu0 }
 0x3ad   : > { %12213 = vst [vmem:[#allocation82_spill] sm:$0xff] %v9481_v31  ;;  %v3018_v34 = vpop.f32.mrf.mxu3 }
 0x3ae   : > { %v9488_v11 = vpop.f32.mrf.mxu1  ;;  %v3019_v4 = vadd.f32 %v9290_v50, %v3018_v34  ;;  %v791_v29 = vpop.permute.xlu2 %790  ;;  %v3311_v34 = vunpack.c.l.b16 %v3183_v6 }
 0x3af   : > { %12215 = vst [vmem:[#allocation84_spill] sm:$0xff] %v9488_v11  ;;  %v887_v44 = vsel %vm794_vm5, %v7292_v5, %v791_v29  ;;  %5496 = vmatmul.bf16.gmra.mxu0 %v8981_v20  ;;  %v1647_v11 = vpop.permute.xlu0 %1646 }
 0x3b0   : > { %v3120_v55 = vmax.f32 %v3019_v4, 0.0  ;;  %v1078_v31 = vshrl.u32 %v887_v44, 16  ;;  %v1081_v30 = vshll.u32 %v887_v44, 16  ;;  %v9510_v44 = vsel %vm1225_vm4, %v3835_v19, %v3839_v18 }
 0x3b1   : > { %12218 = vst [vmem:[#allocation87_spill] sm:$0xff] %v9510_v44 }
 0x3b2   : > { %v3184_v26 = vpack.c.bf16 %v3120_v55, %v3120_v55  ;;  %v1080_v2 = vrot.slane %v1078_v31, 7  ;;  %v3478_v55 = vshll.u32 %v3352_v23, 16 }
 0x3b4   : > { %v3312_v43 = vunpack.c.l.b16 %v3184_v26  ;;  %v1083_v49 = vor.u32 %v1081_v30, %v1080_v2  ;;  %v1223_v5 = vsel %vm7663_vm2, %v1080_v2, 0  ;;  %v9497_v29 = vpop.f32.mrf.mxu0  ;;  %v2091_v26 = vpop.permute.xlu1 %2090  ;;  %v3480_v23 = vor.u32 %v3478_v55, %v9501_v39 }
 0x3b5   : > { %12216 = vst [vmem:[#allocation85_spill] sm:$0xff] %v9497_v29  ;;  %v1594_v24 = vshll.u32 %v1223_v5, 16  ;;  %v1814_v41 = vrot.slane %v1223_v5, 1 }
 0x3b6   : > { %v9499_v59 = vpop.f32.mrf.mxu1  ;;  %v3356_v4 = vpack.c.b16 %v3312_v43, %v3311_v34  ;;  %v9505_v61 = vsel %vm7663_vm2, 0, %v1083_v49  ;;  %v9507_v31 = vpop.permute.xlu2 %1932  ;;  %v2340_v43 = vsel %vm2290_vm7, %v8954_v14, %v1647_v11 }
 0x3b7   : > { %12217 = vst [vmem:[#allocation86_spill] sm:$0xff] %v9499_v59  ;;  %2162 = vrot.lane.b32.xlu0 %v9505_v61, %s7545_s29  ;;  %v1813_v6 = vrot.slane %v9505_v61, 1  ;;  %v1589_v63 = vshll.u32 %v9505_v61, 16  ;;  %v1587_v18 = vshrl.u32 %v9505_v61, 16  ;;  %v2403_v14 = vsel %vm2353_vm8, %v2340_v43, %v1865_v33  ;;  %v2019_v59 = vpop.permute.xlu0 %2018 }
 0x3b8   : > { %v3503_v49 = vshrl.u32 %v3356_v4, 16  ;;  %v3506_v34 = vshll.u32 %v3356_v4, 16  ;;  %v1596_v11 = vrot.slane %v1594_v24, 1  ;;  %v2468_v55 = vsel %vm2416_vm9, %v2403_v14, %v9434_v51 }
 0x3b9   : > { %5640 = vmatmul.bf16.gmra.mxu1 %v9510_v44  ;;  %v9520_v19 = vsel %vm1722_vm3, %v1813_v6, %v1814_v41  ;;  %v1591_v2 = vrot.slane %v1589_v63, 1  ;;  %v3844_v6 = vshll.u32 %v8655_v21, 16  ;;  %v9550_v43 = vsel %vm7663_vm2, 0, %v3480_v23 }
 0x3ba   : > { %v9523_v30 = vrot.slane %v3503_v49, 7  ;;  %2286 = vrot.lane.b32.xlu2 %v9520_v19, %s7546_s9  ;;  %12221 = vst [vmem:[#allocation90_spill] sm:$0xff] %v9550_v43  ;;  %v9558_v51 = vsel %vm7663_vm2, %v8631_v35, 0 }
 0x3bb   : > { %v1592_v5 = vor.u32 %v1591_v2, %v1587_v18  ;;  %v2533_v18 = vsel %vm2481_vm10, %v2468_v55, %v2019_v59  ;;  %12222 = vst [vmem:[#allocation91_spill] sm:$0xff] %v9558_v51  ;;  %v3842_v59 = vshrl.u32 %v8655_v21, 16  ;;  %v3849_v14 = vshll.u32 %v9558_v51, 16 }
 0x3bc   : > { %v3508_v29 = vor.u32 %v3506_v34, %v9523_v30  ;;  %v9530_v41 = vpop.f32.mrf.mxu0  ;;  %v3846_v34 = vrot.slane %v3844_v6, 1  ;;  %v2598_v23 = vsel %vm2546_vm11, %v2533_v18, %v2091_v26 }
 0x3bd   : > { %12219 = vst [vmem:[#allocation88_spill] sm:$0xff] %v9530_v41  ;;  %v3021_v63 = vpop.f32.mrf.mxu3  ;;  %v9536_v4 = vsel %vm1225_vm4, %v1592_v5, %v1596_v11  ;;  %v7293_v11 = vld [vmem:[%s7691_s19 + $0xf8] sm:$0xff]  ;;  %v3851_v44 = vrot.slane %v3849_v14, 1  ;;  %s6576_s19 = sshll.u32 %s6573_s13, 4  ;;  %s6577_s19 = int_to_ptr.hbm [resolvable:$true] %s6576_s19 }
 0x3be   : > { %v9533_v49 = vpop.f32.mrf.mxu1  ;;  %2224 = vrot.lane.b32.xlu1 %v9536_v4, %s7547_s10  ;;  %v9542_v33 = vpop.permute.xlu2 %2156  ;;  %v9546_v24 = vsel %vm7663_vm2, 0, %v3508_v29  ;;  %v3022_v2 = vadd.f32 %v9290_v50, %v3021_v63  ;;  %v3847_v55 = vor.u32 %v3846_v34, %v3842_v59 }
 0x3bf   : > { %12220 = vst [vmem:[#allocation89_spill] sm:$0xff] %v9533_v49  ;;  %5019 = vmatmul.bf16.gmra.mxu2 %v9546_v24  ;;  %5501 = vmatmul.bf16.gmra.mxu0 %v9550_v43 }
 0x3c0   : > { %1656 = vrot.lane.b32.xlu0 %v9416_v25, %s7541_s16  ;;  %v3121_v5 = vmax.f32 %v3022_v2, 0.0  ;;  %v2663_v25 = vsel %vm2611_vm12, %v2598_v23, %v9465_v58  ;;  %v9585_v58 = vsel %vm1225_vm4, %v3847_v55, %v3851_v44 }
 0x3c1   : > { %v2279_v29 = vpop.permute.xlu1 %2278  ;;  %12225 = vst [vmem:[#allocation94_spill] sm:$0xff] %v9585_v58 }
 0x3c2   : > { %1940 = vrot.lane.b32.xlu2 %v9505_v61, %s7542_s20  ;;  %v3185_v59 = vpack.c.bf16 %v3121_v5, %v3121_v5 }
 0x3c4   : > { %v9569_v35 = vpop.f32.mrf.mxu0 }
 0x3c5   : > { %12223 = vst [vmem:[#allocation92_spill] sm:$0xff] %v9569_v35  ;;  %v3023_v63 = vpop.f32.mrf.mxu3  ;;  %v2217_v41 = vpop.permute.xlu0 %2216 }
 0x3c6   : > { %v3024_v6 = vadd.f32 %v9290_v50, %v3023_v63  ;;  %v2727_v26 = vsel %vm2675_vm13, %v2663_v25, %v2217_v41  ;;  %v9575_v18 = vpop.f32.mrf.mxu1  ;;  %1874 = vrot.lane.b32.xlu1 %v9413_v12, %s7540_s15  ;;  %v793_v49 = vpop.permute.xlu2 %792 }
 0x3c7   : > { %12224 = vst [vmem:[#allocation93_spill] sm:$0xff] %v9575_v18  ;;  %v890_v2 = vsel %vm794_vm5, %v7293_v11, %v793_v49  ;;  %v2791_v34 = vsel %vm2739_vm14, %v2727_v26, %v2279_v29  ;;  %v3856_v49 = vshll.u32 %v8723_v57, 16  ;;  %v3313_v29 = vunpack.c.l.b16 %v3185_v59 }
 0x3c8   : > { %v3122_v35 = vmax.f32 %v3024_v6, 0.0  ;;  %v1084_v51 = vshrl.u32 %v890_v2, 16  ;;  %2028 = vrot.lane.b32.xlu0 %v9536_v4, %s7544_s28  ;;  %6959 = vmatmul.msk.bf16.gmra.mxu3 %vm2843_vm15, %v2791_v34  ;;  %v1087_v14 = vshll.u32 %v890_v2, 16 }
 0x3c9   : > { %v1867_v41 = vpop.permute.xlu1 %1866  ;;  %5645 = vmatmul.bf16.gmra.mxu1 %v9585_v58  ;;  %v3858_v55 = vrot.slane %v3856_v49, 1 }
 0x3ca   : > { %v3186_v12 = vpack.c.bf16 %v3122_v35, %v3122_v35  ;;  %v1086_v23 = vrot.slane %v1084_v51, 7  ;;  %v9602_v35 = vsel %vm7663_vm2, %v8713_v32, 0 }
 0x3cc   : > { %v3314_v11 = vunpack.c.l.b16 %v3186_v12  ;;  %v1089_v5 = vor.u32 %v1087_v14, %v1086_v23  ;;  %v9589_v63 = vpop.f32.mrf.mxu0  ;;  %v1224_v25 = vsel %vm7663_vm2, %v1086_v23, 0 }
 0x3cd   : > { %12226 = vst [vmem:[#allocation95_spill] sm:$0xff] %v9589_v63  ;;  %v1649_v6 = vpop.permute.xlu0 %1648  ;;  %v1964_v34 = vshll.u32 %v1224_v25, 16  ;;  %v2038_v18 = vrot.slane %v1224_v25, 1 }
 0x3ce   : > { %v3357_v26 = vpack.c.b16 %v3314_v11, %v3313_v29  ;;  %v9593_v44 = vpop.f32.mrf.mxu1  ;;  %2100 = vrot.lane.b32.xlu1 %v9520_v19, %s7543_s26  ;;  %v1191_v51 = vsel %vm7663_vm2, 0, %v1089_v5  ;;  %v2342_v23 = vsel %vm2290_vm7, %v9031_v16, %v1649_v6  ;;  %v3854_v29 = vshrl.u32 %v8723_v57, 16 }
 0x3cf   : > { %12227 = vst [vmem:[#allocation96_spill] sm:$0xff] %v9593_v44  ;;  %5506 = vmatmul.bf16.gmra.mxu0 %v9172_v36  ;;  %2164 = vrot.lane.b32.xlu2 %v1191_v51, %s7545_s29  ;;  %v1959_v12 = vshll.u32 %v1191_v51, 16  ;;  %v2037_v14 = vrot.slane %v1191_v51, 1  ;;  %v3861_v11 = vshll.u32 %v9602_v35, 16  ;;  %v1957_v63 = vshrl.u32 %v1191_v51, 16 }
 0x3d0   : > { %v3510_v2 = vshrl.u32 %v3357_v26, 16  ;;  %v3513_v32 = vshll.u32 %v3357_v26, 16  ;;  %v3859_v58 = vor.u32 %v3858_v55, %v3854_v29  ;;  %v1966_v21 = vrot.slane %v1964_v34, 1 }
 0x3d1   : > { %v2093_v59 = vpop.permute.xlu1 %2092  ;;  %v1961_v44 = vrot.slane %v1959_v12, 1  ;;  %v2405_v62 = vsel %vm2353_vm8, %v2342_v23, %v1867_v41  ;;  %v2039_v57 = vsel %vm1722_vm3, %v2037_v14, %v2038_v18  ;;  %v3863_v55 = vrot.slane %v3861_v11, 1 }
 0x3d2   : > { %v9610_v5 = vrot.slane %v3510_v2, 7  ;;  %v2470_v41 = vsel %vm2416_vm9, %v2405_v62, %v9507_v31  ;;  %v3868_v62 = vshll.u32 %v8782_v15, 16  ;;  %v3866_v29 = vshrl.u32 %v8782_v15, 16 }
 0x3d3   : > { %v1962_v16 = vor.u32 %v1961_v44, %v1957_v63  ;;  %v9633_v63 = vsel %vm1225_vm4, %v3859_v58, %v3863_v55  ;;  %v1935_v55 = vpop.permute.xlu2 %1934 }
 0x3d4   : > { %v3515_v49 = vor.u32 %v3513_v32, %v9610_v5  ;;  %v9614_v9 = vpop.f32.mrf.mxu0  ;;  %v3870_v23 = vrot.slane %v3868_v62, 1 }
 0x3d5   : > { %12228 = vst [vmem:[#allocation97_spill] sm:$0xff] %v9614_v9  ;;  %v2021_v6 = vpop.permute.xlu0 %2020  ;;  %v1967_v26 = vsel %vm1225_vm4, %v1962_v16, %v1966_v21 }
 0x3d6   : > { %v9617_v38 = vpop.f32.mrf.mxu1  ;;  %2288 = vrot.lane.b32.xlu1 %v2039_v57, %s7546_s9  ;;  %v9623_v25 = vsel %vm7663_vm2, 0, %v3515_v49  ;;  %2226 = vrot.lane.b32.xlu0 %v1967_v26, %s7547_s10  ;;  %v2535_v18 = vsel %vm2481_vm10, %v2470_v41, %v2021_v6  ;;  %v3871_v32 = vor.u32 %v3870_v23, %v3866_v29  ;;  %s7494_s10 = scalar_lea.hbm %s12004_s6, 1024 }
 0x3d7   : > { %12229 = vst [vmem:[#allocation98_spill] sm:$0xff] %v9617_v38  ;;  %5024 = vmatmul.bf16.gmra.mxu2 %v9623_v25  ;;  %1658 = vrot.lane.b32.xlu2 %v9536_v4, %s7541_s16  ;;  %v2600_v44 = vsel %vm2546_vm11, %v2535_v18, %v2093_v59  ;;  %v9652_v59 = vsel %vm7663_vm2, %v8770_v37, 0 }
 0x3d8   : > { %12230 = vst [vmem:[#allocation99_spill] sm:$0xff] %v9623_v25  ;;  %v2665_v34 = vsel %vm2611_vm12, %v2600_v44, %v9542_v33  ;;  %v3873_v11 = vshll.u32 %v9652_v59, 16 }
 0x3d9   : > { %5650 = vmatmul.bf16.gmra.mxu1 %v9633_v63  ;;  %v2281_v21 = vpop.permute.xlu1 %2280 }
 0x3dc   : > { %v9637_v2 = vpop.f32.mrf.mxu0 }
 0x3dd   : > { %12231 = vst [vmem:[#allocation100_spill] sm:$0xff] %v9637_v2  ;;  %v2219_v31 = vpop.permute.xlu0 %2218 }
 0x3de   : > { %v9642_v12 = vpop.f32.mrf.mxu1  ;;  %1942 = vrot.lane.b32.xlu1 %v1191_v51, %s7542_s20  ;;  %v2729_v4 = vsel %vm2675_vm13, %v2665_v34, %v2219_v31  ;;  %1876 = vrot.lane.b32.xlu0 %v9520_v19, %s7540_s15  ;;  %v7345_v51 = vld [vmem:[%s12002_s4 + $0x78] sm:$0xff]  ;;  %s263_s15 = sand.u32 1, %s7528_s22   ;;  %s7488_s20 = sshra.s32 %s6577_s19, 4  ;;  %s7489_s20 = int_to_ptr.hbm [resolvable:$true] %s7488_s20 }
 0x3df   : > { %12232 = vst [vmem:[#allocation101_spill] sm:$0xff] %v9642_v12  ;;  %5511 = vmatmul.bf16.gmra.mxu0 %v9380_v52  ;;  %2030 = vrot.lane.b32.xlu2 %v1967_v26, %s7544_s28  ;;  %v2793_v33 = vsel %vm2739_vm14, %v2729_v4, %v2281_v21  ;;  %v3875_v26 = vrot.slane %v3873_v11, 1  ;;  %s6561_s25 = scalar_lea.sflag [#allocation3], %s263_s15  ;;  %p7495_p0 = scmp.lt.s32.totalorder %s7489_s20, %s12004_s6 }
 0x3e0   : > { %v3026_v58 = vpop.f32.mrf.mxu3  ;;  %6960 = vmatmul.msk.bf16.gmra.mxu3 %vm2843_vm15, %v2793_v33  ;;  %5080 = vmatpush.bf16.msrb.mxu2 %v7345_v51 }
 0x3e1   : > { %v3027_v19 = vadd.f32 %v9290_v50, %v3026_v58  ;;  %v1869_v14 = vpop.permute.xlu1 %1868  ;;  %v9670_v21 = vsel %vm1225_vm4, %v3871_v32, %v3875_v26  ;;  %v2159_v26 = vpop.permute.xlu2 %2158 }
 0x3e3   : > { %v3123_v49 = vmax.f32 %v3027_v19, 0.0 }
 0x3e4   : > { %v9663_v37 = vpop.f32.mrf.mxu0 }
 0x3e5   : > { %12233 = vst [vmem:[#allocation102_spill] sm:$0xff] %v9663_v37  ;;  %v1651_v16 = vpop.permute.xlu0 %1650  ;;  %v3187_v62 = vpack.c.bf16 %v3123_v49, %v3123_v49 }
 0x3e6   : > { %v9665_v6 = vpop.f32.mrf.mxu1  ;;  %2102 = vrot.lane.b32.xlu0 %v2039_v57, %s7543_s26  ;;  %v2344_v44 = vsel %vm2290_vm7, %v9123_v1, %v1651_v16  ;;  %v3880_v57 = vshll.u32 %v8907_v53, 16  ;;  %v9686_v1 = vsel %vm7663_vm2, %v8888_v0, 0  ;;  %v7353_v16 = vld [vmem:[%s12002_s4 + $0xb8] sm:$0xff]  ;;  %s6655_s26 = sshll.u32 %s263_s15, 9 }
 0x3e7   : > { %12234 = vst [vmem:[#allocation103_spill] sm:$0xff] %v9665_v6  ;;  %v2407_v34 = vsel %vm2353_vm8, %v2344_v44, %v1869_v14  ;;  %v3315_v23 = vunpack.c.l.b16 %v3187_v62  ;;  %5249 = vmatpush.bf16.msrb.mxu3 %v7353_v16  ;;  %s11342_s28 = scalar_lea.vmem [#allocation2], %s6655_s26  ;;  %s7490_s26 = scalar_lea.hbm %s7489_s20, 512 }
 0x3e8   : > { %v3028_v41 = vpop.f32.mrf.mxu3  ;;  %v2472_v11 = vsel %vm2416_vm9, %v2407_v34, %v1935_v55  ;;  %v3882_v49 = vrot.slane %v3880_v57, 1  ;;  %v3885_v55 = vshll.u32 %v9686_v1, 16  ;;  %s6574_s14 = sshll.u32 %s11342_s28, 4  ;;  %p7491_p11 = scmp.ne.s32.totalorder %s7489_s20, %s7490_s26  ;;  %s6575_s14 = int_to_ptr.vmem [resolvable:$true] %s6574_s14 }
 0x3e9   : > { %v3029_v18 = vadd.f32 %v9290_v50, %v3028_v41  ;;  %5655 = vmatmul.bf16.gmra.mxu1 %v9670_v21  ;;  %v2095_v58 = vpop.permute.xlu1 %2094  ;;  %p7496_p1 = scmp.lt.s32.totalorder %s7494_s10, %s7490_s26 }
 0x3ea   : > { %p7492_p12 = pnand %p7491_p11, %p7622_p5 }
 0x3eb   : > { %v3124_v31 = vmax.f32 %v3029_v18, 0.0  ;;  %v3878_v18 = vshrl.u32 %v8907_v53, 16  ;;  %p7497_p2 = por %p7496_p1, %p7495_p0 }
 0x3ec   : > { %v9676_v33 = vpop.f32.mrf.mxu0  ;;  %p7493_p13 = pneg %p7492_p12 }
 0x3ed   : > { %v3188_v4 = vpack.c.bf16 %v3124_v31, %v3124_v31  ;;  %12235 = vst [vmem:[#allocation104_spill] sm:$0xff] %v9676_v33  ;;  %v2023_v19 = vpop.permute.xlu0 %2022  ;;  %v3883_v34 = vor.u32 %v3882_v49, %v3878_v18  ;;  %v1653_v49 = vpop.permute.xlu2 %1652  ;;  %v3892_v18 = vshll.u32 %v8981_v20, 16 }
 0x3ee   : > { %v9679_v29 = vpop.f32.mrf.mxu1  ;;  %v2537_v32 = vsel %vm2481_vm10, %v2472_v11, %v2023_v19  ;;  %v3887_v19 = vrot.slane %v3885_v55, 1  ;;  %p7498_p3 = pnand %p7497_p2, %p7493_p13 }
 0x3ef   : > { %v3316_v51 = vunpack.c.l.b16 %v3188_v4  ;;  %12236 = vst [vmem:[#allocation105_spill] sm:$0xff] %v9679_v29  ;;  %5516 = vmatmul.bf16.gmra.mxu0 %v9469_v40  ;;  %v2602_v44 = vsel %vm2546_vm11, %v2537_v32, %v2095_v58 }
 0x3f0   : > { %v9706_v58 = vsel %vm1225_vm4, %v3883_v34, %v3887_v19  ;;  %v2346_v34 = vsel %vm2290_vm7, %v9214_v60, %v1653_v49 }
 0x3f1   : > { %v3358_v14 = vpack.c.b16 %v3316_v51, %v3315_v23  ;;  %v2283_v57 = vpop.permute.xlu1 %2282  ;;  %v2667_v51 = vsel %vm2611_vm12, %v2602_v44, %v2159_v26 }
 0x3f3   : > { %v3517_v41 = vshrl.u32 %v3358_v14, 16  ;;  %v3520_v0 = vshll.u32 %v3358_v14, 16 }
 0x3f4   : > { %v9697_v31 = vpop.f32.mrf.mxu0 }
 0x3f5   : > { %v9695_v62 = vrot.slane %v3517_v41, 7  ;;  %12237 = vst [vmem:[#allocation106_spill] sm:$0xff] %v9697_v31  ;;  %v2221_v23 = vpop.permute.xlu0 %2220  ;;  %v2025_v60 = vpop.permute.xlu2 %2024 }
 0x3f6   : > { %v2731_v11 = vsel %vm2675_vm13, %v2667_v51, %v2221_v23  ;;  %v9702_v33 = vpop.f32.mrf.mxu1  ;;  %v3894_v23 = vrot.slane %v3892_v18, 1 }
 0x3f7   : > { %v3522_v4 = vor.u32 %v3520_v0, %v9695_v62  ;;  %12238 = vst [vmem:[#allocation107_spill] sm:$0xff] %v9702_v33  ;;  %v2795_v16 = vsel %vm2739_vm14, %v2731_v11, %v2283_v57  ;;  %v9725_v0 = vsel %vm7663_vm2, %v8967_v8, 0 }
 0x3f8   : > { %v3031_v32 = vpop.f32.mrf.mxu3  ;;  %6961 = vmatmul.msk.bf16.gmra.mxu3 %vm2843_vm15, %v2795_v16  ;;  %v3890_v16 = vshrl.u32 %v8981_v20, 16 }
 0x3f9   : > { %v9710_v14 = vsel %vm7663_vm2, 0, %v3522_v4  ;;  %5660 = vmatmul.bf16.gmra.mxu1 %v9706_v58  ;;  %v3032_v26 = vadd.f32 %v9290_v50, %v3031_v32  ;;  %v1937_v57 = vpop.permute.xlu1 %1936  ;;  %v3897_v32 = vshll.u32 %v9725_v0, 16 }
 0x3fa   : > { %12239 = vst [vmem:[#allocation108_spill] sm:$0xff] %v9710_v14  ;;  %5029 = vmatmul.bf16.gmra.mxu2 %v9710_v14  ;;  %v3895_v2 = vor.u32 %v3894_v23, %v3890_v16 }
 0x3fb   : > { %v3125_v4 = vmax.f32 %v3032_v26, 0.0  ;;  %v3899_v18 = vrot.slane %v3897_v32, 1 }
 0x3fc   : > { %v9716_v41 = vpop.f32.mrf.mxu0 }
 0x3fd   : > { %12240 = vst [vmem:[#allocation109_spill] sm:$0xff] %v9716_v41  ;;  %v1871_v55 = vpop.permute.xlu0 %1870  ;;  %v3189_v41 = vpack.c.bf16 %v3125_v4, %v3125_v4  ;;  %v9741_v4 = vsel %vm1225_vm4, %v3895_v2, %v3899_v18  ;;  %v2223_v16 = vpop.permute.xlu2 %2222  ;;  %v7352_v18 = vld [vmem:[%s12002_s4 + $0xb0] sm:$0xff] }
 0x3fe   : > { %v9719_v44 = vpop.f32.mrf.mxu1  ;;  %v2409_v51 = vsel %vm2353_vm8, %v2346_v34, %v1871_v55  ;;  %5250 = vmatpush.bf16.msrb.mxu3 %v7352_v18 }
 0x3ff   : > { %12241 = vst [vmem:[#allocation110_spill] sm:$0xff] %v9719_v44  ;;  %5521 = vmatmul.bf16.gmra.mxu0 %v9546_v24  ;;  %v2474_v31 = vsel %vm2416_vm9, %v2409_v51, %v1937_v57  ;;  %v7344_v57 = vld [vmem:[%s12002_s4 + $0x70] sm:$0xff] }
 0x400   : > { %v3033_v19 = vpop.f32.mrf.mxu3  ;;  %v2539_v55 = vsel %vm2481_vm10, %v2474_v31, %v2025_v60  ;;  %5081 = vmatpush.bf16.msrb.mxu2 %v7344_v57  ;;  %v4294_v57 = vshrl.u32 %v9550_v43, 16 }
 0x401   : > { %v3034_v11 = vadd.f32 %v9290_v50, %v3033_v19  ;;  %v3317_v19 = vunpack.c.l.b16 %v3189_v41  ;;  %v4296_v41 = vshll.u32 %v9550_v43, 16 }
 0x403   : > { %v3126_v8 = vmax.f32 %v3034_v11, 0.0 }
 0x404   : > { %v9734_v37 = vpop.f32.mrf.mxu0 }
 0x405   : > { %12242 = vst [vmem:[#allocation111_spill] sm:$0xff] %v9734_v37  ;;  %v3190_v49 = vpack.c.bf16 %v3126_v8, %v3126_v8  ;;  %v2097_v26 = vpop.permute.xlu0 %2096 }
 0x406   : > { %v9737_v34 = vpop.f32.mrf.mxu1  ;;  %v2604_v44 = vsel %vm2546_vm11, %v2539_v55, %v2097_v26  ;;  %v2161_v33 = vpop.permute.xlu1 %2160 }
 0x407   : > { %12243 = vst [vmem:[#allocation112_spill] sm:$0xff] %v9737_v34  ;;  %v3318_v9 = vunpack.c.l.b16 %v3190_v49  ;;  %v2669_v31 = vsel %vm2611_vm12, %v2604_v44, %v2161_v33  ;;  %v4298_v44 = vrot.slane %v4296_v41, 1 }
 0x408   : > { %v2733_v60 = vsel %vm2675_vm13, %v2669_v31, %v2223_v16 }
 0x409   : > { %5665 = vmatmul.bf16.gmra.mxu1 %v9741_v4  ;;  %v3359_v23 = vpack.c.b16 %v3318_v9, %v3317_v19  ;;  %v9761_v9 = vsel %vm7663_vm2, %v9501_v39, 0 }
 0x40a   : > { %12246 = vst [vmem:[#allocation115_spill] sm:$0xff] %v9761_v9 }
 0x40b   : > { %v3524_v51 = vshrl.u32 %v3359_v23, 16  ;;  %v3527_v2 = vshll.u32 %v3359_v23, 16  ;;  %v4301_v23 = vshll.u32 %v9761_v9, 16 }
 0x40c   : > { %v9748_v11 = vpop.f32.mrf.mxu0 }
 0x40d   : > { %12244 = vst [vmem:[#allocation113_spill] sm:$0xff] %v9748_v11  ;;  %v9751_v32 = vrot.slane %v3524_v51, 7  ;;  %v2285_v8 = vpop.permute.xlu0 %2284  ;;  %v4299_v51 = vor.u32 %v4298_v44, %v4294_v57  ;;  %v4303_v41 = vrot.slane %v4301_v23, 1  ;;  %v3904_v11 = vshll.u32 %v9172_v36, 16  ;;  %v1873_v44 = vpop.permute.xlu2 %1872 }
 0x40e   : > { %v9754_v49 = vpop.f32.mrf.mxu1  ;;  %v2797_v26 = vsel %vm2739_vm14, %v2733_v60, %v2285_v8  ;;  %v9794_v23 = vsel %vm7663_vm2, %v9152_v3, 0  ;;  %v7351_v3 = vld [vmem:[%s12002_s4 + $0xa8] sm:$0xff] }
 0x40f   : > { %12245 = vst [vmem:[#allocation114_spill] sm:$0xff] %v9754_v49  ;;  %5526 = vmatmul.bf16.gmra.mxu0 %v9623_v25  ;;  %v3529_v33 = vor.u32 %v3527_v2, %v9751_v32  ;;  %6962 = vmatmul.msk.bf16.gmra.mxu3 %vm2843_vm15, %v2797_v26  ;;  %v9781_v8 = vsel %vm1225_vm4, %v4299_v51, %v4303_v41  ;;  %v3906_v41 = vrot.slane %v3904_v11, 1 }
 0x410   : > { %v3036_v55 = vpop.f32.mrf.mxu3  ;;  %5251 = vmatpush.bf16.msrb.mxu3 %v7351_v3  ;;  %v9834_v3 = vsel %vm7663_vm2, %v9355_v17, 0 }
 0x411   : > { %v9770_v19 = vsel %vm7663_vm2, 0, %v3529_v33  ;;  %v3037_v39 = vadd.f32 %v9290_v50, %v3036_v55  ;;  %v1655_v55 = vpop.permute.xlu1 %1654 }
 0x412   : > { %12247 = vst [vmem:[#allocation116_spill] sm:$0xff] %v9770_v19  ;;  %5034 = vmatmul.bf16.gmra.mxu2 %v9770_v19 }
 0x413   : > { %v3127_v2 = vmax.f32 %v3037_v39, 0.0 }
 0x414   : > { %v9776_v31 = vpop.f32.mrf.mxu0 }
 0x415   : > { %12248 = vst [vmem:[#allocation117_spill] sm:$0xff] %v9776_v31  ;;  %v3191_v33 = vpack.c.bf16 %v3127_v2, %v3127_v2  ;;  %v7343_v2 = vld [vmem:[%s12002_s4 + $0x68] sm:$0xff]  ;;  %v1939_v11 = vpop.permute.xlu0 %1938  ;;  %v2099_v29 = vpop.permute.xlu2 %2098 }
 0x416   : > { %v9778_v16 = vpop.f32.mrf.mxu1  ;;  %5082 = vmatpush.bf16.msrb.mxu2 %v7343_v2 }
 0x417   : > { %12249 = vst [vmem:[#allocation118_spill] sm:$0xff] %v9778_v16  ;;  %v3319_v39 = vunpack.c.l.b16 %v3191_v33 }
 0x418   : > { %v3038_v60 = vpop.f32.mrf.mxu3 }
 0x419   : > { %5670 = vmatmul.bf16.gmra.mxu1 %v9781_v8  ;;  %v3039_v26 = vadd.f32 %v9290_v50, %v3038_v60  ;;  %v2027_v2 = vpop.permute.xlu1 %2026 }
 0x41b   : > { %v3128_v18 = vmax.f32 %v3039_v26, 0.0  ;;  %v3902_v26 = vshrl.u32 %v9172_v36, 16 }
 0x41c   : > { %v9786_v31 = vpop.f32.mrf.mxu0 }
 0x41d   : > { %v3192_v37 = vpack.c.bf16 %v3128_v18, %v3128_v18  ;;  %12250 = vst [vmem:[#allocation119_spill] sm:$0xff] %v9786_v31  ;;  %v3909_v18 = vshll.u32 %v9794_v23, 16 }
 0x41e   : > { %v9788_v57 = vpop.f32.mrf.mxu1 }
 0x41f   : > { %12251 = vst [vmem:[#allocation120_spill] sm:$0xff] %v9788_v57  ;;  %5531 = vmatmul.bf16.gmra.mxu0 %v9710_v14  ;;  %v3320_v51 = vunpack.c.l.b16 %v3192_v37  ;;  %v3907_v57 = vor.u32 %v3906_v41, %v3902_v26  ;;  %v2348_v37 = vsel %vm2290_vm7, %v9300_v46, %v1655_v55  ;;  %v3911_v49 = vrot.slane %v3909_v18, 1 }
 0x421   : > { %v3360_v60 = vpack.c.b16 %v3320_v51, %v3319_v39  ;;  %v2411_v51 = vsel %vm2353_vm8, %v2348_v37, %v1873_v44  ;;  %v9815_v34 = vsel %vm1225_vm4, %v3907_v57, %v3911_v49 }
 0x422   : > { %12254 = vst [vmem:[#allocation123_spill] sm:$0xff] %v9815_v34  ;;  %v2476_v46 = vsel %vm2416_vm9, %v2411_v51, %v1939_v11 }
 0x423   : > { %v3531_v31 = vshrl.u32 %v3360_v60, 16  ;;  %v3534_v16 = vshll.u32 %v3360_v60, 16  ;;  %v2541_v44 = vsel %vm2481_vm10, %v2476_v46, %v2027_v2  ;;  %v3916_v60 = vshll.u32 %v9380_v52, 16 }
 0x424   : > { %v9812_v26 = vpop.f32.mrf.mxu0  ;;  %v2606_v57 = vsel %vm2546_vm11, %v2541_v44, %v2099_v29  ;;  %v9843_v29 = vld [vmem:[%s12001_s3] ss:$0 sm:$0xff] }
 0x425   : > { %v9806_v33 = vrot.slane %v3531_v31, 7  ;;  %12253 = vst [vmem:[#allocation122_spill] sm:$0xff] %v9812_v26  ;;  %v3918_v2 = vrot.slane %v3916_v60, 1 }
 0x426   : > { %v9808_v39 = vpop.f32.mrf.mxu1 }
 0x427   : > { %12252 = vst [vmem:[#allocation121_spill] sm:$0xff] %v9808_v39  ;;  %v3536_v41 = vor.u32 %v3534_v16, %v9806_v33 }
 0x428   : > { %v3041_v31 = vpop.f32.mrf.mxu3 }
 0x429   : > { %5675 = vmatmul.bf16.gmra.mxu1 %v9815_v34  ;;  %v9821_v55 = vsel %vm7663_vm2, 0, %v3536_v41  ;;  %v3042_v16 = vadd.f32 %v9290_v50, %v3041_v31  ;;  %v2163_v49 = vpop.permute.xlu0 %2162  ;;  %v2287_v50 = vpop.permute.xlu2 %2286 }
 0x42a   : > { %5039 = vmatmul.bf16.gmra.mxu2 %v9821_v55  ;;  %v2671_v11 = vsel %vm2611_vm12, %v2606_v57, %v2163_v49  ;;  %v3921_v49 = vshll.u32 %v9834_v3, 16 }
 0x42b   : > { %v3129_v37 = vmax.f32 %v3042_v16, 0.0  ;;  %v3914_v16 = vshrl.u32 %v9380_v52, 16 }
 0x42c   : > { %v9838_v31 = vpop.f32.mrf.mxu0 }
 0x42d   : > { %12256 = vst [vmem:[#allocation125_spill] sm:$0xff] %v9838_v31  ;;  %v3193_v60 = vpack.c.bf16 %v3129_v37, %v3129_v37  ;;  %v3923_v31 = vrot.slane %v3921_v49, 1  ;;  %v7350_v37 = vld [vmem:[%s12002_s4 + $0xa0] sm:$0xff] }
 0x42e   : > { %v9828_v18 = vpop.f32.mrf.mxu1  ;;  %5252 = vmatpush.bf16.msrb.mxu3 %v7350_v37  ;;  %v3926_v37 = vshrl.u32 %v9469_v40, 16 }
 0x42f   : > { %12255 = vst [vmem:[#allocation124_spill] sm:$0xff] %v9828_v18  ;;  %5536 = vmatmul.bf16.gmra.mxu0 %v9770_v19  ;;  %v3321_v39 = vunpack.c.l.b16 %v3193_v60 }
 0x430   : > { %v2225_v51 = vpop.permute.xlu1 %2224  ;;  %v3043_v41 = vpop.f32.mrf.mxu3 }
 0x431   : > { %v2735_v46 = vsel %vm2675_vm13, %v2671_v11, %v2225_v51  ;;  %v3044_v44 = vadd.f32 %v9843_v29, %v3043_v41  ;;  %v3919_v11 = vor.u32 %v3918_v2, %v3914_v16 }
 0x432   : > { %v2799_v17 = vsel %vm2739_vm14, %v2735_v46, %v2287_v50  ;;  %v1657_v26 = vpop.permute.xlu0 %1656  ;;  %v1941_v46 = vpop.permute.xlu2 %1940 }
 0x433   : > { %6963 = vmatmul.msk.bf16.gmra.mxu3 %vm2843_vm15, %v2799_v17  ;;  %v3130_v57 = vmax.f32 %v3044_v44, 0.0  ;;  %v9853_v41 = vsel %vm1225_vm4, %v3919_v11, %v3923_v31  ;;  %v3928_v17 = vshll.u32 %v9469_v40, 16  ;;  %v2350_v31 = vsel %vm2290_vm7, %v9391_v22, %v1657_v26 }
 0x434   : > { %12258 = vst [vmem:[#allocation127_spill] sm:$0xff] %v9853_v41  ;;  %v9859_v44 = vpop.f32.mrf.mxu0 }
 0x435   : > { %v3194_v51 = vpack.c.bf16 %v3130_v57, %v3130_v57  ;;  %12259 = vst [vmem:[#allocation128_spill] sm:$0xff] %v9859_v44  ;;  %v9876_v57 = vsel %vm7663_vm2, %v9447_v13, 0  ;;  %v7342_v13 = vld [vmem:[%s12002_s4 + $0x60] sm:$0xff]  ;;  %v7347_v44 = vld [vmem:[%s12002_s4 + $0x88] sm:$0xff] }
 0x436   : > { %v9850_v18 = vpop.f32.mrf.mxu1  ;;  %5083 = vmatpush.bf16.msrb.mxu2 %v7342_v13  ;;  %v3940_v13 = vshll.u32 %v9546_v24, 16 }
 0x437   : > { %12257 = vst [vmem:[#allocation126_spill] sm:$0xff] %v9850_v18  ;;  %v3322_v6 = vunpack.c.l.b16 %v3194_v51 }
 0x438   : > { %v1875_v12 = vpop.permute.xlu1 %1874 }
 0x439   : > { %5680 = vmatmul.bf16.gmra.mxu1 %v9853_v41  ;;  %v3361_v50 = vpack.c.b16 %v3322_v6, %v3321_v39  ;;  %v7349_v6 = vld [vmem:[%s12002_s4 + $0x98] sm:$0xff]  ;;  %v2413_v39 = vsel %vm2353_vm8, %v2350_v31, %v1875_v12 }
 0x43a   : > { %5253 = vmatpush.bf16.msrb.mxu3 %v7349_v6  ;;  %v2029_v22 = vpop.permute.xlu0 %2028  ;;  %v2478_v26 = vsel %vm2416_vm9, %v2413_v39, %v1941_v46 }
 0x43b   : > { %v3538_v2 = vshrl.u32 %v3361_v50, 16  ;;  %v3541_v49 = vshll.u32 %v3361_v50, 16  ;;  %v3930_v50 = vrot.slane %v3928_v17, 1  ;;  %v7348_v17 = vld [vmem:[%s12002_s4 + $0x90] sm:$0xff]  ;;  %v2543_v31 = vsel %vm2481_vm10, %v2478_v26, %v2029_v22 }
 0x43c   : > { %v9894_v6 = vpop.f32.mrf.mxu0 }
 0x43d   : > { %v9862_v16 = vrot.slane %v3538_v2, 7  ;;  %v3933_v2 = vshll.u32 %v9876_v57, 16  ;;  %v3931_v46 = vor.u32 %v3930_v50, %v3926_v37  ;;  %12262 = vst [vmem:[#allocation131_spill] sm:$0xff] %v9894_v6 }
 0x43e   : > { %v9870_v60 = vpop.f32.mrf.mxu1  ;;  %5254 = vmatpush.bf16.msrb.mxu3 %v7348_v17 }
 0x43f   : > { %12260 = vst [vmem:[#allocation129_spill] sm:$0xff] %v9870_v60  ;;  %5541 = vmatmul.bf16.gmra.mxu0 %v9821_v55  ;;  %v3543_v11 = vor.u32 %v3541_v49, %v9862_v16  ;;  %v2165_v49 = vpop.permute.xlu2 %2164 }
 0x440   : > { %v2101_v51 = vpop.permute.xlu1 %2100 }
 0x441   : > { %v9882_v12 = vsel %vm7663_vm2, 0, %v3543_v11  ;;  %v2608_v39 = vsel %vm2546_vm11, %v2543_v31, %v2101_v51  ;;  %v3935_v11 = vrot.slane %v3933_v2, 1  ;;  %v7346_v51 = vld [vmem:[%s12002_s4 + $0x80] sm:$0xff] }
 0x442   : > { %12261 = vst [vmem:[#allocation130_spill] sm:$0xff] %v9882_v12  ;;  %5044 = vmatmul.bf16.gmra.mxu2 %v9882_v12  ;;  %5255 = vmatpush.bf16.msrb.mxu3 %v7347_v44  ;;  %v2673_v37 = vsel %vm2611_vm12, %v2608_v39, %v2165_v49 }
 0x443   : > { %v9903_v38 = vsel %vm1225_vm4, %v3931_v46, %v3935_v11  ;;  %v9921_v46 = vsel %vm7663_vm2, %v9523_v30, 0 }
 0x444   : > { %12264 = vst [vmem:[#allocation133_spill] sm:$0xff] %v9903_v38  ;;  %v9923_v31 = vpop.f32.mrf.mxu0 }
 0x445   : > { %12266 = vst [vmem:[#allocation135_spill] sm:$0xff] %v9923_v31 }
 0x446   : > { %v9900_v60 = vpop.f32.mrf.mxu1  ;;  %5256 = vmatpush.bf16.msrb.mxu3 %v7346_v51 }
 0x447   : > { %12263 = vst [vmem:[#allocation132_spill] sm:$0xff] %v9900_v60  ;;  %v1659_v44 = vpop.permute.xlu2 %1658 }
 0x448   : > { %v2289_v18 = vpop.permute.xlu1 %2288  ;;  %v2227_v50 = vpop.permute.xlu0 %2226  ;;  %v2352_v11 = vsel %vm2290_vm7, %v9505_v61, %v1659_v44 }
 0x449   : > { %5685 = vmatmul.bf16.gmra.mxu1 %v9903_v38  ;;  %v2737_v22 = vsel %vm2675_vm13, %v2673_v37, %v2227_v50  ;;  %v3938_v37 = vshrl.u32 %v9546_v24, 16 }
 0x44a   : > { %v2801_v2 = vsel %vm2739_vm14, %v2737_v22, %v2289_v18  ;;  %v3942_v18 = vrot.slane %v3940_v13, 1  ;;  %v3945_v22 = vshll.u32 %v9921_v46, 16 }
 0x44b   : > { %v3046_v26 = vpop.f32.mrf.mxu3  ;;  %6964 = vmatmul.msk.bf16.gmra.mxu3 %vm2843_vm15, %v2801_v2 }
 0x44c   : > { %v3047_v17 = vadd.f32 %v9843_v29, %v3046_v26  ;;  %v3943_v30 = vor.u32 %v3942_v18, %v3938_v37  ;;  %v3947_v60 = vrot.slane %v3945_v22, 1  ;;  %v7341_v37 = vld [vmem:[%s12002_s4 + $0x58] sm:$0xff] }
 0x44d   : > { %5084 = vmatpush.bf16.msrb.mxu2 %v7341_v37 }
 0x44e   : > { %v9915_v49 = vpop.f32.mrf.mxu1  ;;  %v3131_v50 = vmax.f32 %v3047_v17, 0.0  ;;  %v9935_v17 = vsel %vm1225_vm4, %v3943_v30, %v3947_v60  ;;  %v9947_v60 = vpop.f32.mrf.mxu2 }
 0x44f   : > { %12265 = vst [vmem:[#allocation134_spill] sm:$0xff] %v9915_v49  ;;  %5546 = vmatmul.bf16.gmra.mxu0 %v9882_v12  ;;  %v2031_v61 = vpop.permute.xlu2 %2030 }
 0x450   : > { %v1877_v39 = vpop.permute.xlu0 %1876  ;;  %v1943_v51 = vpop.permute.xlu1 %1942  ;;  %v3195_v49 = vpack.c.bf16 %v3131_v50, %v3131_v50  ;;  %12268 = vst [vmem:[#allocation137_spill] sm:$0xff] %v9935_v17 }
 0x451   : > { %v2415_v26 = vsel %vm2353_vm8, %v2352_v11, %v1877_v39  ;;  %v9939_v11 = vpop.f32.mrf.mxu0  ;;  %12270 = vst [vmem:[#allocation139_spill] sm:$0xff] %v9947_v60 }
 0x452   : > { %v2480_v31 = vsel %vm2416_vm9, %v2415_v26, %v1943_v51  ;;  %v3323_v39 = vunpack.c.l.b16 %v3195_v49  ;;  %12269 = vst [vmem:[#allocation138_spill] sm:$0xff] %v9939_v11  ;;  %v3952_v49 = vshll.u32 %v9623_v25, 16 }
 0x453   : > { %v3048_v2 = vpop.f32.mrf.mxu3  ;;  %v2545_v34 = vsel %vm2481_vm10, %v2480_v31, %v2031_v61 }
 0x454   : > { %v3049_v6 = vadd.f32 %v9843_v29, %v3048_v2 }
 0x456   : > { %v3132_v13 = vmax.f32 %v3049_v6, 0.0  ;;  %v9932_v38 = vpop.f32.mrf.mxu1 }
 0x457   : > { %12267 = vst [vmem:[#allocation136_spill] sm:$0xff] %v9932_v38 }
 0x458   : > { %v3196_v44 = vpack.c.bf16 %v3132_v13, %v3132_v13  ;;  %v2103_v41 = vpop.permute.xlu0 %2102  ;;  %v3950_v13 = vshrl.u32 %v9623_v25, 16 }
 0x459   : > { %5690 = vmatmul.bf16.gmra.mxu1 %v9935_v17  ;;  %v2610_v50 = vsel %vm2546_vm11, %v2545_v34, %v2103_v41  ;;  %v9960_v41 = vsel %vm7663_vm2, %v9610_v5, 0  ;;  %v9967_v61 = vpop.f32.mrf.mxu0  ;;  %v9975_v5 = vpop.f32.mrf.mxu2 }
 0x45a   : > { %v3324_v18 = vunpack.c.l.b16 %v3196_v44  ;;  %v2674_v6 = vsel %vm2611_vm12, %v2610_v50, %v8624_v42  ;;  %12272 = vst [vmem:[#allocation141_spill] sm:$0xff] %v9967_v61  ;;  %v3962_v61 = vshrl.u32 %v9710_v14, 16 }
 0x45b   : > { %v2738_v31 = vsel %vm2675_vm13, %v2674_v6, %v8591_v47  ;;  %v3954_v47 = vrot.slane %v3952_v49, 1  ;;  %12274 = vst [vmem:[#allocation143_spill] sm:$0xff] %v9975_v5 }
 0x45c   : > { %v3362_v22 = vpack.c.b16 %v3324_v18, %v3323_v39  ;;  %v2802_v51 = vsel %vm2739_vm14, %v2738_v31, %v8644_v45  ;;  %v3957_v45 = vshll.u32 %v9960_v41, 16 }
 0x45d   : > { %6965 = vmatmul.msk.bf16.gmra.mxu3 %vm2843_vm15, %v2802_v51  ;;  %v3955_v18 = vor.u32 %v3954_v47, %v3950_v13  ;;  %v3964_v51 = vshll.u32 %v9710_v14, 16  ;;  %v12278_v47 = vld [vmem:[#allocation6_spill] sm:$0xff] }
 0x45e   : > { %v3545_v34 = vshrl.u32 %v3362_v22, 16  ;;  %v9955_v42 = vpop.f32.mrf.mxu1  ;;  %v3548_v2 = vshll.u32 %v3362_v22, 16  ;;  %v3959_v50 = vrot.slane %v3957_v45, 1 }
 0x45f   : > { %12271 = vst [vmem:[#allocation140_spill] sm:$0xff] %v9955_v42 }
 0x460   : > { %v9962_v26 = vrot.slane %v3545_v34, 7  ;;  %v9981_v22 = vsel %vm1225_vm4, %v3955_v18, %v3959_v50  ;;  %v3966_v50 = vrot.slane %v3964_v51, 1 }
 0x461   : > { %12276 = vst [vmem:[#allocation145_spill] sm:$0xff] %v9981_v22  ;;  %v9996_v18 = vpop.f32.mrf.mxu2 }
 0x462   : > { %v3550_v30 = vor.u32 %v3548_v2, %v9962_v26  ;;  %v9986_v2 = vpop.f32.mrf.mxu0  ;;  %12280 = vst [vmem:[#allocation147_spill] sm:$0xff] %v9996_v18  ;;  %v3967_v5 = vor.u32 %v3966_v50, %v3962_v61 }
 0x463   : > { %v3051_v44 = vpop.f32.mrf.mxu3  ;;  %12277 = vst [vmem:[#allocation146_spill] sm:$0xff] %v9986_v2 }
 0x464   : > { %v9971_v39 = vsel %vm7663_vm2, 0, %v3550_v30  ;;  %v3052_v6 = vadd.f32 %v9843_v29, %v3051_v44  ;;  %v9994_v44 = vsel %vm7663_vm2, %v9695_v62, 0 }
 0x465   : > { %12273 = vst [vmem:[#allocation142_spill] sm:$0xff] %v9971_v39  ;;  %5049 = vmatmul.bf16.gmra.mxu2 %v9971_v39  ;;  %5551 = vmatmul.bf16.gmra.mxu0 %v9971_v39 }
 0x466   : > { %v9978_v37 = vpop.f32.mrf.mxu1  ;;  %v3133_v31 = vmax.f32 %v3052_v6, 0.0 }
 0x467   : > { %12275 = vst [vmem:[#allocation144_spill] sm:$0xff] %v9978_v37 }
 0x468   : > { %v3197_v30 = vpack.c.bf16 %v3133_v31, %v3133_v31 }
 0x469   : > { %5695 = vmatmul.bf16.gmra.mxu1 %v9981_v22 }
 0x46a   : > { %v3325_v2 = vunpack.c.l.b16 %v3197_v30  ;;  %v10002_v42 = vpop.f32.mrf.mxu0  ;;  %v10011_v30 = vpop.f32.mrf.mxu2 }
 0x46b   : > { %v3053_v49 = vpop.f32.mrf.mxu3  ;;  %12282 = vst [vmem:[#allocation149_spill] sm:$0xff] %v10002_v42 }
 0x46c   : > { %v3054_v34 = vadd.f32 %v9843_v29, %v3053_v49  ;;  %v3969_v49 = vshll.u32 %v9994_v44, 16  ;;  %12284 = vst [vmem:[#allocation151_spill] sm:$0xff] %v10011_v30 }
 0x46d   : > { %5257 = vmatmul.bf16.vlgmr.msrb.gmra.mxu3 %v12278_v47 }
 0x46e   : > { %v3134_v13 = vmax.f32 %v3054_v34, 0.0  ;;  %v9989_v45 = vpop.f32.mrf.mxu1  ;;  %v3971_v34 = vrot.slane %v3969_v49, 1 }
 0x46f   : > { %12279 = vst [vmem:[#allocation6_spill] sm:$0xff] %v9989_v45 }
 0x470   : > { %v3198_v6 = vpack.c.bf16 %v3134_v13, %v3134_v13  ;;  %v10005_v62 = vsel %vm1225_vm4, %v3967_v5, %v3971_v34  ;;  %v4172_v13 = vrot.slane %v8208_v48, 1  ;;  %v3976_v5 = vshll.u32 %v9770_v19, 16 }
 0x471   : > { %12283 = vst [vmem:[#allocation150_spill] sm:$0xff] %v10005_v62  ;;  %v10035_v34 = vsel %vm7663_vm2, %v9751_v32, 0 }
 0x472   : > { %v3326_v11 = vunpack.c.l.b16 %v3198_v6 }
 0x474   : > { %v3363_v31 = vpack.c.b16 %v3326_v11, %v3325_v2  ;;  %v7340_v11 = vld [vmem:[%s12002_s4 + $0x50] sm:$0xff]  ;;  %v12285_v2 = vld [vmem:[#allocation37_spill] sm:$0xff] }
 0x475   : > { %v4173_v50 = vrot.slane %v12285_v2, 1  ;;  %5085 = vmatpush.bf16.msrb.mxu2 %v7340_v11  ;;  %v10037_v11 = vpop.f32.mrf.mxu2  ;;  %v3981_v2 = vshll.u32 %v10035_v34, 16 }
 0x476   : > { %v3552_v37 = vshrl.u32 %v3363_v31, 16  ;;  %v10000_v45 = vpop.f32.mrf.mxu1  ;;  %v3555_v51 = vshll.u32 %v3363_v31, 16  ;;  %12289 = vst [vmem:[#allocation154_spill] sm:$0xff] %v10037_v11 }
 0x477   : > { %12281 = vst [vmem:[#allocation148_spill] sm:$0xff] %v10000_v45  ;;  %v10024_v48 = vsel %vm1722_vm3, %v4172_v13, %v4173_v50  ;;  %v10039_v13 = vpop.f32.mrf.mxu0 }
 0x478   : > { %v10007_v38 = vrot.slane %v3552_v37, 7  ;;  %12287 = vst [vmem:[#allocation152_spill] sm:$0xff] %v10024_v48 }
 0x479   : > { %5700 = vmatmul.bf16.gmra.mxu1 %v10005_v62  ;;  %12290 = vst [vmem:[#allocation155_spill] sm:$0xff] %v10039_v13  ;;  %v12293_v13 = vld [vmem:[#allocation8_spill] sm:$0xff] }
 0x47a   : > { %v3557_v61 = vor.u32 %v3555_v51, %v10007_v38  ;;  %v3978_v51 = vrot.slane %v3976_v5, 1  ;;  %v4175_v11 = vrot.slane %v12293_v13, 1 }
 0x47b   : > { %v3056_v6 = vpop.f32.mrf.mxu3 }
 0x47c   : > { %v10021_v37 = vsel %vm7663_vm2, 0, %v3557_v61  ;;  %v3057_v49 = vadd.f32 %v9843_v29, %v3056_v6  ;;  %v3974_v61 = vshrl.u32 %v9770_v19, 16 }
 0x47d   : > { %12286 = vst [vmem:[#allocation37_spill] sm:$0xff] %v10021_v37  ;;  %5054 = vmatmul.bf16.gmra.mxu2 %v10021_v37  ;;  %5262 = vmatmul.bf16.gmra.mxu3 %v10024_v48 }
 0x47e   : > { %5556 = vmatmul.bf16.gmra.mxu0 %v10021_v37  ;;  %v10030_v31 = vpop.f32.mrf.mxu1  ;;  %v3135_v50 = vmax.f32 %v3057_v49, 0.0  ;;  %v3979_v42 = vor.u32 %v3978_v51, %v3974_v61  ;;  %v12294_v49 = vld [vmem:[#allocation41_spill] sm:$0xff]  ;;  %v10052_v51 = vpop.f32.mrf.mxu2 }
 0x47f   : > { %12288 = vst [vmem:[#allocation153_spill] sm:$0xff] %v10030_v31  ;;  %v3983_v31 = vrot.slane %v3981_v2, 1  ;;  %v4176_v22 = vrot.slane %v12294_v49, 1  ;;  %v10054_v61 = vpop.f32.mrf.mxu0  ;;  %v3986_v49 = vshrl.u32 %v9821_v55, 16 }
 0x480   : > { %v3199_v45 = vpack.c.bf16 %v3135_v50, %v3135_v50  ;;  %12295 = vst [vmem:[#allocation41_spill] sm:$0xff] %v10052_v51 }
 0x481   : > { %v10047_v32 = vsel %vm1225_vm4, %v3979_v42, %v3983_v31  ;;  %12296 = vst [vmem:[#allocation158_spill] sm:$0xff] %v10054_v61  ;;  %v10058_v50 = vsel %vm1722_vm3, %v4175_v11, %v4176_v22 }
 0x482   : > { %12292 = vst [vmem:[#allocation157_spill] sm:$0xff] %v10047_v32  ;;  %v3327_v60 = vunpack.c.l.b16 %v3199_v45  ;;  %v10066_v45 = vsel %vm7663_vm2, %v9806_v33, 0 }
 0x483   : > { %v3058_v6 = vpop.f32.mrf.mxu3 }
 0x484   : > { %v3059_v30 = vadd.f32 %v9843_v29, %v3058_v6 }
 0x486   : > { %v3136_v48 = vmax.f32 %v3059_v30, 0.0  ;;  %v10044_v18 = vpop.f32.mrf.mxu1  ;;  %v3988_v30 = vshll.u32 %v9821_v55, 16  ;;  %v10073_v11 = vpop.f32.mrf.mxu2 }
 0x487   : > { %12291 = vst [vmem:[#allocation156_spill] sm:$0xff] %v10044_v18  ;;  %v10079_v33 = vpop.f32.mrf.mxu0  ;;  %v12304_v18 = vld [vmem:[#allocation45_spill] sm:$0xff] }
 0x488   : > { %v3200_v5 = vpack.c.bf16 %v3136_v48, %v3136_v48  ;;  %v3990_v31 = vrot.slane %v3988_v30, 1  ;;  %12298 = vst [vmem:[#allocation160_spill] sm:$0xff] %v10073_v11  ;;  %v4000_v11 = vshll.u32 %v9882_v12, 16 }
 0x489   : > { %5705 = vmatmul.bf16.gmra.mxu1 %v10047_v32  ;;  %12300 = vst [vmem:[#allocation162_spill] sm:$0xff] %v10079_v33  ;;  %v4179_v33 = vrot.slane %v12304_v18, 1  ;;  %v10108_v18 = vsel %vm7663_vm2, %v9862_v16, 0 }
 0x48a   : > { %v3328_v62 = vunpack.c.l.b16 %v3200_v5  ;;  %v3991_v61 = vor.u32 %v3990_v31, %v3986_v49  ;;  %v12303_v31 = vld [vmem:[#allocation9_spill] sm:$0xff] }
 0x48b   : > { %v4178_v49 = vrot.slane %v12303_v31, 1 }
 0x48c   : > { %v3364_v2 = vpack.c.b16 %v3328_v62, %v3327_v60  ;;  %v3993_v60 = vshll.u32 %v10066_v45, 16 }
 0x48d   : > { %5267 = vmatmul.bf16.gmra.mxu3 %v10058_v50  ;;  %v10095_v13 = vsel %vm1722_vm3, %v4178_v49, %v4179_v33  ;;  %v4002_v49 = vrot.slane %v4000_v11, 1  ;;  %v4181_v11 = vrot.slane %v8327_v28, 1 }
 0x48e   : > { %v3559_v42 = vshrl.u32 %v3364_v2, 16  ;;  %v10061_v48 = vpop.f32.mrf.mxu1  ;;  %v3562_v5 = vshll.u32 %v3364_v2, 16  ;;  %v3995_v2 = vrot.slane %v3993_v60, 1  ;;  %v10100_v60 = vpop.f32.mrf.mxu2 }
 0x48f   : > { %12297 = vst [vmem:[#allocation159_spill] sm:$0xff] %v10061_v48 }
 0x490   : > { %v10068_v6 = vrot.slane %v3559_v42, 7  ;;  %12305 = vst [vmem:[#allocation45_spill] sm:$0xff] %v10100_v60  ;;  %v3998_v60 = vshrl.u32 %v9882_v12, 16 }
 0x492   : > { %v3564_v22 = vor.u32 %v3562_v5, %v10068_v6  ;;  %v3061_v62 = vpop.f32.mrf.mxu3  ;;  %v10087_v5 = vsel %vm1225_vm4, %v3991_v61, %v3995_v2  ;;  %v7339_v61 = vld [vmem:[%s12002_s4 + $0x48] sm:$0xff]  ;;  %v4003_v32 = vor.u32 %v4002_v49, %v3998_v60 }
 0x493   : > { %v3062_v30 = vadd.f32 %v9843_v29, %v3061_v62  ;;  %12302 = vst [vmem:[#allocation164_spill] sm:$0xff] %v10087_v5  ;;  %5086 = vmatpush.bf16.msrb.mxu2 %v7339_v61 }
 0x494   : > { %v10077_v51 = vsel %vm7663_vm2, 0, %v3564_v22 }
 0x495   : > { %12299 = vst [vmem:[#allocation161_spill] sm:$0xff] %v10077_v51  ;;  %5059 = vmatmul.bf16.gmra.mxu2 %v10077_v51  ;;  %5561 = vmatmul.bf16.gmra.mxu0 %v10077_v51  ;;  %v3137_v22 = vmax.f32 %v3062_v30, 0.0 }
 0x496   : > { %v10084_v42 = vpop.f32.mrf.mxu1  ;;  %v10114_v17 = vpop.f32.mrf.mxu2 }
 0x497   : > { %12301 = vst [vmem:[#allocation163_spill] sm:$0xff] %v10084_v42  ;;  %v3201_v2 = vpack.c.bf16 %v3137_v22, %v3137_v22  ;;  %v4005_v22 = vshll.u32 %v10108_v18, 16 }
 0x498   : > { %12308 = vst [vmem:[#allocation167_spill] sm:$0xff] %v10114_v17 }
 0x499   : > { %5710 = vmatmul.bf16.gmra.mxu1 %v10087_v5  ;;  %v3329_v31 = vunpack.c.l.b16 %v3201_v2  ;;  %v4007_v9 = vrot.slane %v4005_v22, 1  ;;  %v4010_v22 = vshrl.u32 %v9971_v39, 16 }
 0x49a   : > { %v3063_v48 = vpop.f32.mrf.mxu3 }
 0x49b   : > { %v3064_v62 = vadd.f32 %v9843_v29, %v3063_v48  ;;  %v10110_v48 = vpop.f32.mrf.mxu0 }
 0x49c   : > { %12307 = vst [vmem:[#allocation166_spill] sm:$0xff] %v10110_v48 }
 0x49d   : > { %v3138_v42 = vmax.f32 %v3064_v62, 0.0  ;;  %5272 = vmatmul.bf16.gmra.mxu3 %v10095_v13 }
 0x49e   : > { %v10103_v30 = vpop.f32.mrf.mxu1 }
 0x49f   : > { %12306 = vst [vmem:[#allocation165_spill] sm:$0xff] %v10103_v30  ;;  %v3202_v33 = vpack.c.bf16 %v3138_v42, %v3138_v42  ;;  %v10121_v42 = vsel %vm1225_vm4, %v4003_v32, %v4007_v9 }
 0x4a0   : > { %12310 = vst [vmem:[#allocation169_spill] sm:$0xff] %v10121_v42 }
 0x4a1   : > { %v3330_v5 = vunpack.c.l.b16 %v3202_v33  ;;  %v10147_v33 = vpop.f32.mrf.mxu2 }
 0x4a2   : > { %12315 = vst [vmem:[#allocation174_spill] sm:$0xff] %v10147_v33 }
 0x4a3   : > { %v3365_v62 = vpack.c.b16 %v3330_v5, %v3329_v31  ;;  %v10125_v2 = vpop.f32.mrf.mxu0  ;;  %v4182_v31 = vrot.slane %v9147_v54, 1  ;;  %v10145_v54 = vsel %vm7663_vm2, %v9962_v26, 0 }
 0x4a4   : > { %12311 = vst [vmem:[#allocation170_spill] sm:$0xff] %v10125_v2 }
 0x4a5   : > { %v3566_v30 = vshrl.u32 %v3365_v62, 16  ;;  %v3569_v61 = vshll.u32 %v3365_v62, 16  ;;  %v10137_v9 = vsel %vm1722_vm3, %v4181_v11, %v4182_v31  ;;  %12314 = vst [vmem:[#allocation173_spill] sm:$0xff] %v10145_v54  ;;  %v4017_v62 = vshll.u32 %v10145_v54, 16 }
 0x4a6   : > { %v10116_v43 = vpop.f32.mrf.mxu1 }
 0x4a7   : > { %12309 = vst [vmem:[#allocation168_spill] sm:$0xff] %v10116_v43  ;;  %v10118_v16 = vrot.slane %v3566_v30, 7  ;;  %v4012_v30 = vshll.u32 %v9971_v39, 16  ;;  %v4019_v31 = vrot.slane %v4017_v62, 1  ;;  %v12321_v43 = vld [vmem:[#allocation55_spill] sm:$0xff] }
 0x4a8   : > { %v4185_v17 = vrot.slane %v12321_v43, 1 }
 0x4a9   : > { %5715 = vmatmul.bf16.gmra.mxu1 %v10121_v42  ;;  %v3571_v5 = vor.u32 %v3569_v61, %v10118_v16  ;;  %v4014_v49 = vrot.slane %v4012_v30, 1  ;;  %v10155_v48 = vpop.f32.mrf.mxu2  ;;  %v12320_v30 = vld [vmem:[#allocation11_spill] sm:$0xff] }
 0x4aa   : > { %12318 = vst [vmem:[#allocation177_spill] sm:$0xff] %v10155_v48  ;;  %v4184_v33 = vrot.slane %v12320_v30, 1 }
 0x4ab   : > { %v10131_v60 = vsel %vm7663_vm2, 0, %v3571_v5  ;;  %v10151_v61 = vpop.f32.mrf.mxu0  ;;  %v4015_v11 = vor.u32 %v4014_v49, %v4010_v22 }
 0x4ac   : > { %12312 = vst [vmem:[#allocation171_spill] sm:$0xff] %v10131_v60  ;;  %5064 = vmatmul.bf16.gmra.mxu2 %v10131_v60  ;;  %5566 = vmatmul.bf16.gmra.mxu0 %v10131_v60  ;;  %v10166_v22 = vsel %vm1722_vm3, %v4184_v33, %v4185_v17  ;;  %v4022_v17 = vshrl.u32 %v10021_v37, 16 }
 0x4ad   : > { %5277 = vmatmul.bf16.gmra.mxu3 %v10137_v9  ;;  %12316 = vst [vmem:[#allocation175_spill] sm:$0xff] %v10151_v61  ;;  %v4024_v61 = vshll.u32 %v10021_v37, 16 }
 0x4ae   : > { %v10140_v32 = vpop.f32.mrf.mxu1  ;;  %12322 = vst [vmem:[#allocation55_spill] sm:$0xff] %v10166_v22 }
 0x4af   : > { %12313 = vst [vmem:[#allocation172_spill] sm:$0xff] %v10140_v32  ;;  %v10158_v32 = vsel %vm1225_vm4, %v4015_v11, %v4019_v31  ;;  %v4026_v43 = vrot.slane %v4024_v61, 1 }
 0x4b0   : > { %12319 = vst [vmem:[#allocation178_spill] sm:$0xff] %v10158_v32 }
 0x4b1   : > { %v10179_v30 = vpop.f32.mrf.mxu2  ;;  %v4027_v28 = vor.u32 %v4026_v43, %v4022_v17  ;;  %v12329_v43 = vld [vmem:[#allocation12_spill] sm:$0xff] }
 0x4b2   : > { %12325 = vst [vmem:[#allocation181_spill] sm:$0xff] %v10179_v30 }
 0x4b3   : > { %v10168_v62 = vpop.f32.mrf.mxu0 }
 0x4b4   : > { %12323 = vst [vmem:[#allocation179_spill] sm:$0xff] %v10168_v62 }
 0x4b6   : > { %v3066_v5 = vpop.f32.mrf.mxu3  ;;  %v10153_v2 = vpop.f32.mrf.mxu1 }
 0x4b7   : > { %12317 = vst [vmem:[#allocation176_spill] sm:$0xff] %v10153_v2  ;;  %v3067_v26 = vadd.f32 %v9843_v29, %v3066_v5  ;;  %v10177_v2 = vsel %vm7663_vm2, %v10007_v38, 0 }
 0x4b8   : > { %v4029_v33 = vshll.u32 %v10177_v2, 16 }
 0x4b9   : > { %5720 = vmatmul.bf16.gmra.mxu1 %v10158_v32  ;;  %v3139_v49 = vmax.f32 %v3067_v26, 0.0 }
 0x4ba   : > { %v4031_v42 = vrot.slane %v4029_v33, 1  ;;  %v12331_v33 = vld [vmem:[#allocation60_spill] sm:$0xff] }
 0x4bb   : > { %v3203_v48 = vpack.c.bf16 %v3139_v49, %v3139_v49  ;;  %v10188_v61 = vpop.f32.mrf.mxu0 }
 0x4bc   : > { %12327 = vst [vmem:[#allocation183_spill] sm:$0xff] %v10188_v61  ;;  %v10191_v49 = vsel %vm1225_vm4, %v4027_v28, %v4031_v42  ;;  %v7393_v28 = vld [vmem:[%s12002_s4 + $0x1f8] sm:$0xff] }
 0x4bd   : > { %5282 = vmatmul.bf16.gmra.mxu3 %v10166_v22  ;;  %v3331_v32 = vunpack.c.l.b16 %v3203_v48  ;;  %12328 = vst [vmem:[#allocation184_spill] sm:$0xff] %v10191_v49  ;;  %v4187_v48 = vrot.slane %v12329_v43, 1  ;;  %6094 = vmatpush.bf16.msra.mxu0 %v7393_v28 }
 0x4be   : > { %v3068_v11 = vpop.f32.mrf.mxu3  ;;  %v10172_v5 = vpop.f32.mrf.mxu1 }
 0x4bf   : > { %v3069_v31 = vadd.f32 %v9843_v29, %v3068_v11  ;;  %12324 = vst [vmem:[#allocation180_spill] sm:$0xff] %v10172_v5  ;;  %v7338_v5 = vld [vmem:[%s12002_s4 + $0x40] sm:$0xff] }
 0x4c0   : > { %5087 = vmatpush.bf16.msrb.mxu2 %v7338_v5 }
 0x4c1   : > { %v3140_v26 = vmax.f32 %v3069_v31, 0.0 }
 0x4c3   : > { %v3204_v62 = vpack.c.bf16 %v3140_v26, %v3140_v26 }
 0x4c5   : > { %v3332_v11 = vunpack.c.l.b16 %v3204_v62  ;;  %v10195_v62 = vpop.f32.mrf.mxu2 }
 0x4c6   : > { %v10186_v54 = vpop.f32.mrf.mxu1  ;;  %12330 = vst [vmem:[#allocation185_spill] sm:$0xff] %v10195_v62 }
 0x4c7   : > { %v3366_v38 = vpack.c.b16 %v3332_v11, %v3331_v32  ;;  %12326 = vst [vmem:[#allocation182_spill] sm:$0xff] %v10186_v54  ;;  %v4188_v32 = vrot.slane %v12331_v33, 1  ;;  %v4036_v11 = vshll.u32 %v10077_v51, 16  ;;  %v10218_v33 = vsel %vm7663_vm2, %v10068_v6, 0 }
 0x4c8   : > { %12334 = vst [vmem:[#allocation187_spill] sm:$0xff] %v10218_v33  ;;  %v4041_v30 = vshll.u32 %v10218_v33, 16 }
 0x4c9   : > { %v3573_v31 = vshrl.u32 %v3366_v38, 16  ;;  %5725 = vmatmul.bf16.gmra.mxu1 %v10191_v49  ;;  %v3576_v17 = vshll.u32 %v3366_v38, 16  ;;  %v10206_v5 = vsel %vm1722_vm3, %v4187_v48, %v4188_v32  ;;  %v4038_v48 = vrot.slane %v4036_v11, 1  ;;  %v10225_v32 = vpop.f32.mrf.mxu0  ;;  %v7391_v11 = vld [vmem:[%s12002_s4 + $0x1e8] sm:$0xff] }
 0x4ca   : > { %12335 = vst [vmem:[#allocation188_spill] sm:$0xff] %v10225_v32  ;;  %v4043_v62 = vrot.slane %v4041_v30, 1  ;;  %v7377_v30 = vld [vmem:[%s12002_s4 + $0x178] sm:$0xff] }
 0x4cb   : > { %v10197_v26 = vrot.slane %v3573_v31, 7  ;;  %5756 = vmatpush.bf16.msra.mxu2 %v7377_v30 }
 0x4cd   : > { %v3578_v42 = vor.u32 %v3576_v17, %v10197_v26  ;;  %5287 = vmatmul.bf16.gmra.mxu3 %v10206_v5  ;;  %v7392_v17 = vld [vmem:[%s12002_s4 + $0x1f0] sm:$0xff]  ;;  %v10230_v6 = vpop.f32.mrf.mxu2 }
 0x4ce   : > { %v3071_v61 = vpop.f32.mrf.mxu3  ;;  %v10209_v31 = vpop.f32.mrf.mxu1  ;;  %6095 = vmatpush.bf16.msra.mxu0 %v7392_v17  ;;  %12336 = vst [vmem:[#allocation189_spill] sm:$0xff] %v10230_v6 }
 0x4cf   : > { %12332 = vst [vmem:[#allocation60_spill] sm:$0xff] %v10209_v31  ;;  %v10213_v38 = vsel %vm7663_vm2, 0, %v3578_v42  ;;  %v3072_v28 = vadd.f32 %v9843_v29, %v3071_v61  ;;  %v4034_v42 = vshrl.u32 %v10077_v51, 16  ;;  %v7390_v61 = vld [vmem:[%s12002_s4 + $0x1e0] sm:$0xff] }
 0x4d0   : > { %12333 = vst [vmem:[#allocation186_spill] sm:$0xff] %v10213_v38  ;;  %5069 = vmatmul.bf16.gmra.mxu2 %v10213_v38  ;;  %5571 = vmatmul.bf16.gmra.mxu0 %v10213_v38 }
 0x4d1   : > { %v4039_v31 = vor.u32 %v4038_v48, %v4034_v42  ;;  %v3141_v54 = vmax.f32 %v3072_v28, 0.0  ;;  %v4190_v48 = vrot.slane %v8452_v27, 1 }
 0x4d2   : > { %6096 = vmatpush.bf16.msra.mxu0 %v7391_v11  ;;  %v4191_v11 = vrot.slane %v9323_v7, 1 }
 0x4d3   : > { %v10242_v17 = vsel %vm1225_vm4, %v4039_v31, %v4043_v62  ;;  %v3205_v28 = vpack.c.bf16 %v3141_v54, %v3141_v54  ;;  %v7385_v31 = vld [vmem:[%s12002_s4 + $0x1b8] sm:$0xff] }
 0x4d4   : > { %12338 = vst [vmem:[#allocation191_spill] sm:$0xff] %v10242_v17  ;;  %v10261_v54 = vsel %vm1722_vm3, %v4190_v48, %v4191_v11  ;;  %5925 = vmatpush.bf16.msra.mxu3 %v7385_v31  ;;  %v10273_v48 = vsel %vm7663_vm2, %v10118_v16, 0  ;;  %v7401_v16 = vld [vmem:[%s12002_s4 + $0x238] sm:$0xff] }
 0x4d5   : > { %v10250_v6 = vpop.f32.mrf.mxu2  ;;  %12341 = vst [vmem:[#allocation194_spill] sm:$0xff] %v10261_v54  ;;  %v3333_v7 = vunpack.c.l.b16 %v3205_v28  ;;  %6263 = vmatpush.bf16.msra.mxu1 %v7401_v16 }
 0x4d6   : > { %v3073_v43 = vpop.f32.mrf.mxu3  ;;  %v10235_v49 = vpop.f32.mrf.mxu1  ;;  %6097 = vmatpush.bf16.msra.mxu0 %v7390_v61  ;;  %12339 = vst [vmem:[#allocation192_spill] sm:$0xff] %v10250_v6 }
 0x4d7   : > { %12337 = vst [vmem:[#allocation190_spill] sm:$0xff] %v10235_v49  ;;  %v3074_v32 = vadd.f32 %v9843_v29, %v3073_v43  ;;  %v10252_v43 = vpop.f32.mrf.mxu0  ;;  %v7389_v49 = vld [vmem:[%s12002_s4 + $0x1d8] sm:$0xff] }
 0x4d8   : > { %12340 = vst [vmem:[#allocation193_spill] sm:$0xff] %v10252_v43 }
 0x4d9   : > { %5730 = vmatmul.bf16.gmra.mxu1 %v10242_v17  ;;  %v3142_v42 = vmax.f32 %v3074_v32, 0.0  ;;  %v4048_v32 = vshll.u32 %v10131_v60, 16  ;;  %12343 = vst [vmem:[#allocation196_spill] sm:$0xff] %v10273_v48 }
 0x4da   : > { %6098 = vmatpush.bf16.msra.mxu0 %v7389_v49  ;;  %v4053_v49 = vshll.u32 %v10273_v48, 16 }
 0x4db   : > { %v3206_v62 = vpack.c.bf16 %v3142_v42, %v3142_v42  ;;  %v7388_v42 = vld [vmem:[%s12002_s4 + $0x1d0] sm:$0xff]  ;;  %v4050_v6 = vrot.slane %v4048_v32, 1 }
 0x4dd   : > { %v3334_v61 = vunpack.c.l.b16 %v3206_v62  ;;  %5292 = vmatmul.bf16.gmra.mxu3 %v10261_v54  ;;  %v4046_v62 = vshrl.u32 %v10131_v60, 16 }
 0x4de   : > { %v10265_v30 = vpop.f32.mrf.mxu1  ;;  %6099 = vmatpush.bf16.msra.mxu0 %v7388_v42 }
 0x4df   : > { %12342 = vst [vmem:[#allocation195_spill] sm:$0xff] %v10265_v30  ;;  %v3367_v43 = vpack.c.b16 %v3334_v61, %v3333_v7  ;;  %v7387_v7 = vld [vmem:[%s12002_s4 + $0x1c8] sm:$0xff]  ;;  %v4051_v32 = vor.u32 %v4050_v6, %v4046_v62  ;;  %v10286_v61 = vpop.f32.mrf.mxu2  ;;  %v10288_v42 = vpop.f32.mrf.mxu0 }
 0x4e0   : > { %v3076_v11 = vpop.f32.mrf.mxu3  ;;  %12344 = vst [vmem:[#allocation197_spill] sm:$0xff] %v10286_v61 }
 0x4e1   : > { %v3580_v28 = vshrl.u32 %v3367_v43, 16  ;;  %v3583_v31 = vshll.u32 %v3367_v43, 16  ;;  %v3077_v27 = vadd.f32 %v9843_v29, %v3076_v11  ;;  %12345 = vst [vmem:[#allocation198_spill] sm:$0xff] %v10288_v42  ;;  %v4055_v11 = vrot.slane %v4053_v49, 1 }
 0x4e2   : > { %6100 = vmatpush.bf16.msra.mxu0 %v7387_v7 }
 0x4e3   : > { %v10277_v30 = vrot.slane %v3580_v28, 7  ;;  %v7386_v28 = vld [vmem:[%s12002_s4 + $0x1c0] sm:$0xff]  ;;  %v3143_v48 = vmax.f32 %v3077_v27, 0.0  ;;  %v10303_v62 = vsel %vm1225_vm4, %v4051_v32, %v4055_v11  ;;  %v12350_v27 = vld [vmem:[#allocation71_spill] sm:$0xff] }
 0x4e4   : > { %12348 = vst [vmem:[#allocation201_spill] sm:$0xff] %v10303_v62  ;;  %v4194_v16 = vrot.slane %v12350_v27, 1 }
 0x4e5   : > { %v3585_v17 = vor.u32 %v3583_v31, %v10277_v30  ;;  %v12349_v31 = vld [vmem:[#allocation14_spill] sm:$0xff]  ;;  %v3207_v42 = vpack.c.bf16 %v3143_v48, %v3143_v48 }
 0x4e6   : > { %v10291_v43 = vpop.f32.mrf.mxu1  ;;  %v4193_v7 = vrot.slane %v12349_v31, 1  ;;  %6101 = vmatpush.bf16.msra.mxu0 %v7386_v28 }
 0x4e7   : > { %12346 = vst [vmem:[#allocation199_spill] sm:$0xff] %v10291_v43  ;;  %v10298_v60 = vsel %vm7663_vm2, 0, %v3585_v17  ;;  %v4060_v43 = vshll.u32 %v10213_v38, 16  ;;  %v10313_v33 = vpop.f32.mrf.mxu2  ;;  %v10321_v28 = vpop.f32.mrf.mxu0  ;;  %v3335_v48 = vunpack.c.l.b16 %v3207_v42 }
 0x4e8   : > { %12347 = vst [vmem:[#allocation200_spill] sm:$0xff] %v10298_v60  ;;  %v3078_v6 = vpop.f32.mrf.mxu3  ;;  %5074 = vmatmul.bf16.gmra.mxu2 %v10298_v60  ;;  %5576 = vmatmul.bf16.gmra.mxu0 %v10298_v60  ;;  %v10310_v61 = vsel %vm1722_vm3, %v4193_v7, %v4194_v16  ;;  %v10326_v7 = vsel %vm7663_vm2, %v10197_v26, 0 }
 0x4e9   : > { %v3079_v49 = vadd.f32 %v9843_v29, %v3078_v6  ;;  %5735 = vmatmul.bf16.gmra.mxu1 %v10303_v62  ;;  %12351 = vst [vmem:[#allocation71_spill] sm:$0xff] %v10313_v33  ;;  %v7400_v29 = vld [vmem:[%s12002_s4 + $0x230] sm:$0xff]  ;;  %v4062_v27 = vrot.slane %v4060_v43, 1  ;;  %v7398_v43 = vld [vmem:[%s12002_s4 + $0x220] sm:$0xff] }
 0x4ea   : > { %12353 = vst [vmem:[#allocation203_spill] sm:$0xff] %v10321_v28  ;;  %6264 = vmatpush.bf16.msra.mxu1 %v7400_v29  ;;  %v7399_v28 = vld [vmem:[%s12002_s4 + $0x228] sm:$0xff] }
 0x4eb   : > { %v3144_v17 = vmax.f32 %v3079_v49, 0.0  ;;  %12354 = vst [vmem:[#allocation204_spill] sm:$0xff] %v10326_v7 }
 0x4ed   : > { %v3208_v32 = vpack.c.bf16 %v3144_v17, %v3144_v17  ;;  %5297 = vmatmul.bf16.gmra.mxu3 %v10310_v61  ;;  %v4058_v17 = vshrl.u32 %v10213_v38, 16 }
 0x4ee   : > { %v10316_v11 = vpop.f32.mrf.mxu1  ;;  %6265 = vmatpush.bf16.msra.mxu1 %v7399_v28  ;;  %v4196_v28 = vrot.slane %v8522_v56, 1  ;;  %v12371_v56 = vld [vmem:[#allocation16_spill] sm:$0xff] }
 0x4ef   : > { %12352 = vst [vmem:[#allocation202_spill] sm:$0xff] %v10316_v11  ;;  %v3336_v6 = vunpack.c.l.b16 %v3208_v32  ;;  %v4065_v11 = vshll.u32 %v10326_v7, 16  ;;  %v4063_v32 = vor.u32 %v4062_v27, %v4058_v17  ;;  %v10340_v29 = vpop.f32.mrf.mxu2  ;;  %v10349_v27 = vpop.f32.mrf.mxu0 }
 0x4f0   : > { %v10328_v49 = vpop.f32.mrf.mxu3  ;;  %12357 = vst [vmem:[#allocation207_spill] sm:$0xff] %v10340_v29 }
 0x4f1   : > { %12355 = vst [vmem:[#allocation205_spill] sm:$0xff] %v10328_v49  ;;  %v3368_v16 = vpack.c.b16 %v3336_v6, %v3335_v48  ;;  %v4067_v62 = vrot.slane %v4065_v11, 1  ;;  %v12358_v6 = vld [vmem:[#allocation7_spill] sm:$0xff] }
 0x4f2   : > { %6266 = vmatpush.bf16.msra.mxu1 %v7398_v43  ;;  %12361 = vst [vmem:[#allocation209_spill] sm:$0xff] %v10349_v27  ;;  %v7396_v43 = vld [vmem:[%s12002_s4 + $0x210] sm:$0xff]  ;;  %v4070_v27 = vshrl.u32 %v10298_v60, 16 }
 0x4f3   : > { %v3587_v42 = vshrl.u32 %v3368_v16, 16  ;;  %v3590_v31 = vshll.u32 %v3368_v16, 16  ;;  %v10346_v7 = vsel %vm1225_vm4, %v4063_v32, %v4067_v62  ;;  %v7397_v62 = vld [vmem:[%s12002_s4 + $0x218] sm:$0xff] }
 0x4f4   : > { %12360 = vst [vmem:[#allocation208_spill] sm:$0xff] %v10346_v7 }
 0x4f5   : > { %v3589_v33 = vrot.slane %v3587_v42, 7  ;;  %v4072_v42 = vshll.u32 %v10298_v60, 16 }
 0x4f6   : > { %v10335_v26 = vpop.f32.mrf.mxu1  ;;  %6267 = vmatpush.bf16.msra.mxu1 %v7397_v62  ;;  %v7395_v62 = vld [vmem:[%s12002_s4 + $0x208] sm:$0xff] }
 0x4f7   : > { %12356 = vst [vmem:[#allocation206_spill] sm:$0xff] %v10335_v26  ;;  %v3592_v48 = vor.u32 %v3590_v31, %v3589_v33  ;;  %v12362_v31 = vld [vmem:[#allocation77_spill] sm:$0xff] }
 0x4f8   : > { %5088 = vmatmul.bf16.vlgmr.msrb.gmra.mxu2 %v12358_v6  ;;  %v10343_v49 = vpop.f32.mrf.mxu3  ;;  %v4197_v16 = vrot.slane %v12362_v31, 1  ;;  %v10376_v31 = vsel %vm7663_vm2, %v10277_v30, 0 }
 0x4f9   : > { %12359 = vst [vmem:[#allocation7_spill] sm:$0xff] %v10343_v49  ;;  %5740 = vmatmul.bf16.gmra.mxu1 %v10346_v7  ;;  %v10354_v11 = vsel %vm7663_vm2, 0, %v3592_v48  ;;  %v10371_v48 = vpop.f32.mrf.mxu2  ;;  %v4077_v29 = vshll.u32 %v10376_v31, 16  ;;  %v4199_v7 = vrot.slane %v12371_v56, 1 }
 0x4fa   : > { %5581 = vmatmul.bf16.gmra.mxu0 %v10354_v11  ;;  %v10362_v17 = vsel %vm1722_vm3, %v4196_v28, %v4197_v16  ;;  %12364 = vst [vmem:[#allocation210_spill] sm:$0xff] %v10371_v48  ;;  %v4074_v16 = vrot.slane %v4072_v42, 1  ;;  %6268 = vmatpush.bf16.msra.mxu1 %v7396_v43  ;;  %v7394_v42 = vld [vmem:[%s12002_s4 + $0x200] sm:$0xff]  ;;  %v12368_v43 = vld [vmem:[#allocation39_spill] sm:$0xff] }
 0x4fb   : > { %v4079_v30 = vrot.slane %v4077_v29, 1  ;;  %v12374_v29 = vld [vmem:[#allocation83_spill] sm:$0xff] }
 0x4fc   : > { %v4075_v26 = vor.u32 %v4074_v16, %v4070_v27  ;;  %v12373_v27 = vld [vmem:[#allocation43_spill] sm:$0xff]  ;;  %v4200_v16 = vrot.slane %v12374_v29, 1  ;;  %v4306_v29 = vshrl.u32 %v10354_v11, 16 }
 0x4fd   : > { %5302 = vmatmul.bf16.gmra.mxu3 %v10362_v17 }
 0x4fe   : > { %v10366_v32 = vpop.f32.mrf.mxu1  ;;  %6269 = vmatpush.bf16.msra.mxu1 %v7395_v62  ;;  %v10396_v48 = vsel %vm1225_vm4, %v4075_v26, %v4079_v30  ;;  %v10415_v30 = vsel %vm7663_vm2, %v3589_v33, 0 }
 0x4ff   : > { %12363 = vst [vmem:[#allocation77_spill] sm:$0xff] %v10366_v32  ;;  %v10385_v32 = vpop.f32.mrf.mxu0 }
 0x500   : > { %v10378_v28 = vpop.f32.mrf.mxu3  ;;  %12366 = vst [vmem:[#allocation212_spill] sm:$0xff] %v10385_v32 }
 0x501   : > { %12365 = vst [vmem:[#allocation211_spill] sm:$0xff] %v10378_v28  ;;  %v10399_v32 = vpop.f32.mrf.mxu2 }
 0x502   : > { %12370 = vst [vmem:[#allocation214_spill] sm:$0xff] %v10396_v48  ;;  %6270 = vmatpush.bf16.msra.mxu1 %v7394_v42 }
 0x503   : > { %12372 = vst [vmem:[#allocation215_spill] sm:$0xff] %v10399_v32 }
 0x504   : > { %12377 = vst [vmem:[#allocation216_spill] sm:$0xff] %v10415_v30 }
 0x506   : > { %v10387_v49 = vpop.f32.mrf.mxu1 }
 0x507   : > { %12367 = vst [vmem:[#allocation213_spill] sm:$0xff] %v10387_v49  ;;  %v10404_v62 = vpop.f32.mrf.mxu0  ;;  %v4308_v49 = vshll.u32 %v10354_v11, 16 }
 0x508   : > { %5093 = vmatmul.bf16.gmra.mxu2 %v12368_v43  ;;  %v10393_v28 = vpop.f32.mrf.mxu3  ;;  %12375 = vst [vmem:[#allocation43_spill] sm:$0xff] %v10404_v62  ;;  %v10407_v43 = vsel %vm1722_vm3, %v4199_v7, %v4200_v16  ;;  %v4313_v7 = vshll.u32 %v10415_v30, 16 }
 0x509   : > { %12369 = vst [vmem:[#allocation39_spill] sm:$0xff] %v10393_v28  ;;  %5745 = vmatmul.bf16.gmra.mxu1 %v10396_v48  ;;  %v4310_v32 = vrot.slane %v4308_v49, 1  ;;  %v10419_v28 = vpop.f32.mrf.mxu2  ;;  %v12383_v49 = vld [vmem:[#allocation20_spill] sm:$0xff] }
 0x50a   : > { %6102 = vmatmul.bf16.vlgmr.msra.gmra.mxu0 %v12373_v27  ;;  %12379 = vst [vmem:[#allocation218_spill] sm:$0xff] %v10419_v28  ;;  %v4315_v48 = vrot.slane %v4313_v7, 1 }
 0x50b   : > { %v4311_v16 = vor.u32 %v4310_v32, %v4306_v29  ;;  %v7384_v32 = vld [vmem:[%s12002_s4 + $0x1b0] sm:$0xff] }
 0x50c   : > { %v12384_v29 = vld [vmem:[#allocation47_spill] sm:$0xff]  ;;  %5926 = vmatpush.bf16.msra.mxu3 %v7384_v32 }
 0x50d   : > { %5307 = vmatmul.bf16.gmra.mxu3 %v10407_v43  ;;  %v10431_v33 = vsel %vm1225_vm4, %v4311_v16, %v4315_v48 }
 0x50e   : > { %v10411_v26 = vpop.f32.mrf.mxu1 }
 0x50f   : > { %12376 = vst [vmem:[#allocation83_spill] sm:$0xff] %v10411_v26  ;;  %v10423_v62 = vpop.f32.mrf.mxu0  ;;  %v4202_v26 = vrot.slane %v12383_v49, 1 }
 0x510   : > { %v10417_v42 = vpop.f32.mrf.mxu3  ;;  %12380 = vst [vmem:[#allocation219_spill] sm:$0xff] %v10423_v62 }
 0x511   : > { %12378 = vst [vmem:[#allocation217_spill] sm:$0xff] %v10417_v42  ;;  %v7376_v42 = vld [vmem:[%s12002_s4 + $0x170] sm:$0xff]  ;;  %v10443_v62 = vpop.f32.mrf.mxu2 }
 0x512   : > { %5757 = vmatpush.bf16.msra.mxu2 %v7376_v42  ;;  %12386 = vst [vmem:[#allocation20_spill] sm:$0xff] %v10443_v62 }
 0x516   : > { %v10425_v56 = vpop.f32.mrf.mxu1 }
 0x517   : > { %12381 = vst [vmem:[#allocation220_spill] sm:$0xff] %v10425_v56  ;;  %v10448_v16 = vpop.f32.mrf.mxu0 }
 0x518   : > { %5098 = vmatmul.bf16.gmra.mxu2 %v12373_v27  ;;  %v10428_v10 = vpop.f32.mrf.mxu3  ;;  %v12385_v27 = vld [vmem:[#allocation91_spill] sm:$0xff]  ;;  %12387 = vst [vmem:[#allocation47_spill] sm:$0xff] %v10448_v16  ;;  %v4206_v16 = vrot.slane %v9602_v35, 1 }
 0x519   : > { %12382 = vst [vmem:[#allocation221_spill] sm:$0xff] %v10428_v10  ;;  %5750 = vmatmul.bf16.gmra.mxu1 %v10431_v33  ;;  %v4203_v7 = vrot.slane %v12385_v27, 1  ;;  %v10455_v28 = vpop.f32.mrf.mxu2 }
 0x51a   : > { %6107 = vmatmul.bf16.gmra.mxu0 %v12384_v29 }
 0x51b   : > { %v10446_v48 = vsel %vm1722_vm3, %v4202_v26, %v4203_v7  ;;  %v12393_v26 = vld [vmem:[#allocation23_spill] sm:$0xff]  ;;  %v12394_v7 = vld [vmem:[#allocation52_spill] sm:$0xff] }
 0x51c   : > { %v4205_v32 = vrot.slane %v12393_v26, 1 }
 0x51d   : > { %5312 = vmatmul.bf16.gmra.mxu3 %v10446_v48 }
 0x51e   : > { %v10451_v56 = vpop.f32.mrf.mxu1  ;;  %v10469_v62 = vsel %vm1722_vm3, %v4205_v32, %v4206_v16  ;;  %v4208_v16 = vrot.slane %v8782_v15, 1 }
 0x51f   : > { %12388 = vst [vmem:[#allocation91_spill] sm:$0xff] %v10451_v56  ;;  %v10459_v27 = vpop.f32.mrf.mxu0 }
 0x520   : > { %v10453_v10 = vpop.f32.mrf.mxu3  ;;  %12391 = vst [vmem:[#allocation224_spill] sm:$0xff] %v10459_v27 }
 0x521   : > { %12389 = vst [vmem:[#allocation222_spill] sm:$0xff] %v10453_v10  ;;  %v10471_v56 = vpop.f32.mrf.mxu2 }
 0x522   : > { %12395 = vst [vmem:[#allocation23_spill] sm:$0xff] %v10471_v56  ;;  %v12403_v56 = vld [vmem:[#allocation57_spill] sm:$0xff] }
 0x526   : > { %v10457_v30 = vpop.f32.mrf.mxu1 }
 0x527   : > { %12390 = vst [vmem:[#allocation223_spill] sm:$0xff] %v10457_v30 }
 0x528   : > { %5103 = vmatmul.bf16.gmra.mxu2 %v12384_v29  ;;  %v10462_v42 = vpop.f32.mrf.mxu3  ;;  %v10476_v29 = vpop.f32.mrf.mxu0 }
 0x529   : > { %12392 = vst [vmem:[#allocation225_spill] sm:$0xff] %v10462_v42  ;;  %6271 = vmatmul.bf16.vlgmr.msra.gmra.mxu1 %v10058_v50  ;;  %v10480_v42 = vpop.f32.mrf.mxu2 }
 0x52a   : > { %6112 = vmatmul.bf16.gmra.mxu0 %v12394_v7  ;;  %12397 = vst [vmem:[#allocation226_spill] sm:$0xff] %v10476_v29  ;;  %v4209_v29 = vrot.slane %v9652_v59, 1 }
 0x52b   : > { %12399 = vst [vmem:[#allocation228_spill] sm:$0xff] %v10480_v42 }
 0x52d   : > { %5317 = vmatmul.bf16.gmra.mxu3 %v10469_v62 }
 0x52e   : > { %v10474_v27 = vpop.f32.mrf.mxu1 }
 0x52f   : > { %12396 = vst [vmem:[#allocation52_spill] sm:$0xff] %v10474_v27  ;;  %v10494_v27 = vsel %vm1722_vm3, %v4208_v16, %v4209_v29  ;;  %v4211_v29 = vrot.slane %v8907_v53, 1  ;;  %v12412_v16 = vld [vmem:[#allocation63_spill] sm:$0xff] }
 0x530   : > { %v10478_v30 = vpop.f32.mrf.mxu3  ;;  %v10488_v32 = vpop.f32.mrf.mxu0  ;;  %12404 = vst [vmem:[#allocation57_spill] sm:$0xff] %v10494_v27 }
 0x531   : > { %12398 = vst [vmem:[#allocation227_spill] sm:$0xff] %v10478_v30 }
 0x532   : > { %12402 = vst [vmem:[#allocation231_spill] sm:$0xff] %v10488_v32 }
 0x536   : > { %v10482_v10 = vpop.f32.mrf.mxu1 }
 0x537   : > { %12400 = vst [vmem:[#allocation229_spill] sm:$0xff] %v10482_v10 }
 0x538   : > { %5108 = vmatmul.bf16.gmra.mxu2 %v12394_v7  ;;  %v10485_v35 = vpop.f32.mrf.mxu3  ;;  %v10499_v7 = vpop.f32.mrf.mxu2 }
 0x539   : > { %12401 = vst [vmem:[#allocation230_spill] sm:$0xff] %v10485_v35  ;;  %6276 = vmatmul.bf16.gmra.mxu1 %v10095_v13  ;;  %v10503_v30 = vpop.f32.mrf.mxu0 }
 0x53a   : > { %6117 = vmatmul.bf16.gmra.mxu0 %v12403_v56  ;;  %12406 = vst [vmem:[#allocation233_spill] sm:$0xff] %v10499_v7  ;;  %v4212_v7 = vrot.slane %v9686_v1, 1 }
 0x53b   : > { %12408 = vst [vmem:[#allocation235_spill] sm:$0xff] %v10503_v30 }
 0x53c   : > { %v10519_v30 = vsel %vm1722_vm3, %v4211_v29, %v4212_v7  ;;  %v7375_v7 = vld [vmem:[%s12002_s4 + $0x168] sm:$0xff] }
 0x53d   : > { %5322 = vmatmul.bf16.gmra.mxu3 %v10494_v27  ;;  %5758 = vmatpush.bf16.msra.mxu2 %v7375_v7 }
 0x53e   : > { %v10497_v10 = vpop.f32.mrf.mxu1 }
 0x53f   : > { %12405 = vst [vmem:[#allocation232_spill] sm:$0xff] %v10497_v10 }
 0x540   : > { %v10501_v35 = vpop.f32.mrf.mxu3  ;;  %v10507_v42 = vpop.f32.mrf.mxu2 }
 0x541   : > { %12407 = vst [vmem:[#allocation234_spill] sm:$0xff] %v10501_v35  ;;  %v10516_v10 = vpop.f32.mrf.mxu0 }
 0x542   : > { %12410 = vst [vmem:[#allocation237_spill] sm:$0xff] %v10507_v42 }
 0x543   : > { %12413 = vst [vmem:[#allocation63_spill] sm:$0xff] %v10516_v10  ;;  %v4214_v10 = vrot.slane %v8981_v20, 1 }
 0x546   : > { %v10505_v32 = vpop.f32.mrf.mxu1 }
 0x547   : > { %12409 = vst [vmem:[#allocation236_spill] sm:$0xff] %v10505_v32 }
 0x548   : > { %5113 = vmatmul.bf16.gmra.mxu2 %v12403_v56  ;;  %v10510_v59 = vpop.f32.mrf.mxu3 }
 0x549   : > { %12411 = vst [vmem:[#allocation238_spill] sm:$0xff] %v10510_v59  ;;  %6281 = vmatmul.bf16.gmra.mxu1 %v10137_v9  ;;  %v10526_v59 = vpop.f32.mrf.mxu2 }
 0x54a   : > { %6122 = vmatmul.bf16.gmra.mxu0 %v12412_v16  ;;  %12416 = vst [vmem:[#allocation241_spill] sm:$0xff] %v10526_v59  ;;  %v12421_v59 = vld [vmem:[#allocation68_spill] sm:$0xff] }
 0x54d   : > { %5327 = vmatmul.bf16.gmra.mxu3 %v10519_v30  ;;  %v10528_v35 = vpop.f32.mrf.mxu0 }
 0x54e   : > { %v10522_v32 = vpop.f32.mrf.mxu1  ;;  %12417 = vst [vmem:[#allocation242_spill] sm:$0xff] %v10528_v35  ;;  %v7383_v35 = vld [vmem:[%s12002_s4 + $0x1a8] sm:$0xff] }
 0x54f   : > { %12414 = vst [vmem:[#allocation239_spill] sm:$0xff] %v10522_v32  ;;  %5927 = vmatpush.bf16.msra.mxu3 %v7383_v35 }
 0x550   : > { %v10524_v56 = vpop.f32.mrf.mxu3 }
 0x551   : > { %12415 = vst [vmem:[#allocation240_spill] sm:$0xff] %v10524_v56 }
 0x553   : > { %v10539_v29 = vpop.f32.mrf.mxu2 }
 0x554   : > { %12420 = vst [vmem:[#allocation245_spill] sm:$0xff] %v10539_v29 }
 0x555   : > { %v10550_v32 = vpop.f32.mrf.mxu0 }
 0x556   : > { %v10530_v42 = vpop.f32.mrf.mxu1  ;;  %12423 = vst [vmem:[#allocation246_spill] sm:$0xff] %v10550_v32 }
 0x557   : > { %12418 = vst [vmem:[#allocation243_spill] sm:$0xff] %v10530_v42 }
 0x558   : > { %5118 = vmatmul.bf16.gmra.mxu2 %v12412_v16  ;;  %v10533_v1 = vpop.f32.mrf.mxu3  ;;  %v4215_v16 = vrot.slane %v9725_v0, 1 }
 0x559   : > { %12419 = vst [vmem:[#allocation244_spill] sm:$0xff] %v10533_v1  ;;  %6286 = vmatmul.bf16.gmra.mxu1 %v10166_v22 }
 0x55a   : > { %6127 = vmatmul.bf16.gmra.mxu0 %v12421_v59  ;;  %v10548_v42 = vsel %vm1722_vm3, %v4214_v10, %v4215_v16  ;;  %v12430_v10 = vld [vmem:[#allocation74_spill] sm:$0xff] }
 0x55b   : > { %12422 = vst [vmem:[#allocation68_spill] sm:$0xff] %v10548_v42  ;;  %v10557_v29 = vpop.f32.mrf.mxu2 }
 0x55c   : > { %12426 = vst [vmem:[#allocation249_spill] sm:$0xff] %v10557_v29 }
 0x55d   : > { %5332 = vmatmul.bf16.gmra.mxu3 %v10548_v42 }
 0x55e   : > { %v10553_v1 = vpop.f32.mrf.mxu1 }
 0x55f   : > { %12424 = vst [vmem:[#allocation247_spill] sm:$0xff] %v10553_v1  ;;  %v10586_v1 = vld [vmem:[%s12003_s5] ss:$0 sm:$0xff] }
 0x560   : > { %v10555_v56 = vpop.f32.mrf.mxu3 }
 0x561   : > { %12425 = vst [vmem:[#allocation248_spill] sm:$0xff] %v10555_v56  ;;  %v12440_v56 = vld [vmem:[#allocation81_spill] sm:$0xff] }
 0x565   : > { %v10559_v20 = vpop.f32.mrf.mxu0 }
 0x566   : > { %12427 = vst [vmem:[#allocation250_spill] sm:$0xff] %v10559_v20  ;;  %v10561_v22 = vpop.f32.mrf.mxu1 }
 0x567   : > { %12428 = vst [vmem:[#allocation251_spill] sm:$0xff] %v10561_v22 }
 0x568   : > { %5123 = vmatmul.bf16.gmra.mxu2 %v12421_v59  ;;  %v10564_v0 = vpop.f32.mrf.mxu3 }
 0x569   : > { %12429 = vst [vmem:[#allocation252_spill] sm:$0xff] %v10564_v0  ;;  %6291 = vmatmul.bf16.gmra.mxu1 %v10206_v5 }
 0x56a   : > { %6132 = vmatmul.bf16.gmra.mxu0 %v12430_v10 }
 0x56b   : > { %v10568_v35 = vpop.f32.mrf.mxu2 }
 0x56c   : > { %12431 = vst [vmem:[#allocation74_spill] sm:$0xff] %v10568_v35 }
 0x56d   : > { %5337 = vmatmul.bf16.gmra.mxu3 %v12278_v47  ;;  %v10573_v16 = vpop.f32.mrf.mxu0 }
 0x56e   : > { %v10571_v7 = vpop.f32.mrf.mxu1  ;;  %12433 = vst [vmem:[#allocation254_spill] sm:$0xff] %v10573_v16  ;;  %v12439_v16 = vld [vmem:[#allocation17_spill] sm:$0xff] }
 0x56f   : > { %12432 = vst [vmem:[#allocation253_spill] sm:$0xff] %v10571_v7  ;;  %v4217_v7 = vrot.slane %v9172_v36, 1 }
 0x570   : > { %v10575_v32 = vpop.f32.mrf.mxu3 }
 0x571   : > { %12434 = vst [vmem:[#allocation255_spill] sm:$0xff] %v10575_v32  ;;  %v4921_v32 = vadd.f32 %v10586_v1, %v12439_v16 }
 0x573   : > { %v10577_v20 = vpop.f32.mrf.mxu2 }
 0x574   : > { %12435 = vst [vmem:[#allocation256_spill] sm:$0xff] %v10577_v20 }
 0x576   : > { %v10579_v22 = vpop.f32.mrf.mxu1 }
 0x577   : > { %12436 = vst [vmem:[#allocation257_spill] sm:$0xff] %v10579_v22  ;;  %v10581_v59 = vpop.f32.mrf.mxu0 }
 0x578   : > { %12437 = vst [vmem:[#allocation258_spill] sm:$0xff] %v10581_v59  ;;  %5128 = vmatmul.bf16.gmra.mxu2 %v12430_v10  ;;  %v10589_v0 = vpop.f32.mrf.mxu3  ;;  %v4218_v59 = vrot.slane %v9794_v23, 1 }
 0x579   : > { %12438 = vst [vmem:[#allocation259_spill] sm:$0xff] %v10589_v0  ;;  %6296 = vmatmul.bf16.gmra.mxu1 %v10261_v54 }
 0x57a   : > { %6137 = vmatmul.bf16.gmra.mxu0 %v12440_v56  ;;  %v10600_v35 = vsel %vm1722_vm3, %v4217_v7, %v4218_v59  ;;  %v12450_v59 = vld [vmem:[#allocation87_spill] sm:$0xff] }
 0x57b   : > { %v5089_v22 = vpop.f32.mrf.mxu2  ;;  %12441 = vst [vmem:[#allocation17_spill] sm:$0xff] %v10600_v35 }
 0x57c   : > { %v10597_v20 = vadd.f32 %v5089_v22, %v4921_v32  ;;  %v4220_v22 = vrot.slane %v9380_v52, 1  ;;  %v12449_v32 = vld [vmem:[#allocation19_spill] sm:$0xff] }
 0x57d   : > { %5342 = vmatmul.bf16.gmra.mxu3 %v10600_v35  ;;  %v4926_v7 = vadd.f32 %v10586_v1, %v12449_v32 }
 0x57e   : > { %v10603_v10 = vpop.f32.mrf.mxu1 }
 0x57f   : > { %12442 = vst [vmem:[#allocation81_spill] sm:$0xff] %v10603_v10  ;;  %v10605_v36 = vpop.f32.mrf.mxu0 }
 0x580   : > { %12443 = vst [vmem:[#allocation260_spill] sm:$0xff] %v10605_v36  ;;  %v10607_v0 = vpop.f32.mrf.mxu3  ;;  %v4221_v36 = vrot.slane %v9834_v3, 1 }
 0x581   : > { %12444 = vst [vmem:[#allocation261_spill] sm:$0xff] %v10607_v0 }
 0x583   : > { %v10609_v29 = vpop.f32.mrf.mxu2 }
 0x584   : > { %12445 = vst [vmem:[#allocation262_spill] sm:$0xff] %v10609_v29 }
 0x586   : > { %v10611_v16 = vpop.f32.mrf.mxu1 }
 0x587   : > { %12446 = vst [vmem:[#allocation263_spill] sm:$0xff] %v10611_v16  ;;  %v10613_v54 = vpop.f32.mrf.mxu0  ;;  %v10627_v16 = vsel %vm1722_vm3, %v4220_v22, %v4221_v36  ;;  %v7374_v36 = vld [vmem:[%s12002_s4 + $0x160] sm:$0xff] }
 0x588   : > { %12447 = vst [vmem:[#allocation264_spill] sm:$0xff] %v10613_v54  ;;  %5133 = vmatmul.bf16.gmra.mxu2 %v12440_v56  ;;  %v10616_v23 = vpop.f32.mrf.mxu3  ;;  %v7382_v22 = vld [vmem:[%s12002_s4 + $0x1a0] sm:$0xff] }
 0x589   : > { %12448 = vst [vmem:[#allocation265_spill] sm:$0xff] %v10616_v23  ;;  %6301 = vmatmul.bf16.gmra.mxu1 %v10310_v61  ;;  %5759 = vmatpush.bf16.msra.mxu2 %v7374_v36 }
 0x58a   : > { %6142 = vmatmul.bf16.gmra.mxu0 %v12450_v59  ;;  %12452 = vst [vmem:[#allocation87_spill] sm:$0xff] %v10627_v16  ;;  %5928 = vmatpush.bf16.msra.mxu3 %v7382_v22  ;;  %v4227_v22 = vrot.slane %v9921_v46, 1 }
 0x58b   : > { %v5094_v10 = vpop.f32.mrf.mxu2 }
 0x58c   : > { %v10624_v0 = vadd.f32 %v5094_v10, %v4926_v7  ;;  %v4223_v10 = vrot.slane %v9469_v40, 1  ;;  %v12460_v7 = vld [vmem:[#allocation22_spill] sm:$0xff] }
 0x58d   : > { %5347 = vmatmul.bf16.gmra.mxu3 %v10627_v16 }
 0x58e   : > { %12451 = vst [vmem:[#allocation19_spill] sm:$0xff] %v10624_v0  ;;  %v10630_v56 = vpop.f32.mrf.mxu1 }
 0x58f   : > { %12453 = vst [vmem:[#allocation266_spill] sm:$0xff] %v10630_v56  ;;  %v10632_v23 = vpop.f32.mrf.mxu0  ;;  %v12461_v56 = vld [vmem:[#allocation94_spill] sm:$0xff] }
 0x590   : > { %12454 = vst [vmem:[#allocation267_spill] sm:$0xff] %v10632_v23  ;;  %v10634_v35 = vpop.f32.mrf.mxu3 }
 0x591   : > { %12455 = vst [vmem:[#allocation268_spill] sm:$0xff] %v10634_v35 }
 0x593   : > { %v10636_v54 = vpop.f32.mrf.mxu2 }
 0x594   : > { %12456 = vst [vmem:[#allocation269_spill] sm:$0xff] %v10636_v54 }
 0x596   : > { %v10638_v32 = vpop.f32.mrf.mxu1 }
 0x597   : > { %12457 = vst [vmem:[#allocation270_spill] sm:$0xff] %v10638_v32  ;;  %v10640_v29 = vpop.f32.mrf.mxu0  ;;  %v4931_v32 = vadd.f32 %v10586_v1, %v12460_v7 }
 0x598   : > { %12458 = vst [vmem:[#allocation271_spill] sm:$0xff] %v10640_v29  ;;  %5138 = vmatmul.bf16.gmra.mxu2 %v12450_v59  ;;  %v10643_v3 = vpop.f32.mrf.mxu3  ;;  %v4224_v59 = vrot.slane %v9876_v57, 1 }
 0x599   : > { %12459 = vst [vmem:[#allocation272_spill] sm:$0xff] %v10643_v3  ;;  %6306 = vmatmul.bf16.gmra.mxu1 %v10362_v17 }
 0x59a   : > { %6147 = vmatmul.bf16.gmra.mxu0 %v12461_v56  ;;  %v10660_v29 = vsel %vm1722_vm3, %v4223_v10, %v4224_v59  ;;  %v12469_v10 = vld [vmem:[#allocation25_spill] sm:$0xff] }
 0x59b   : > { %v5099_v3 = vpop.f32.mrf.mxu2  ;;  %12462 = vst [vmem:[#allocation22_spill] sm:$0xff] %v10660_v29  ;;  %v4936_v36 = vadd.f32 %v10586_v1, %v12469_v10 }
 0x59c   : > { %v10657_v35 = vadd.f32 %v5099_v3, %v4931_v32  ;;  %v4226_v3 = vrot.slane %v9546_v24, 1 }
 0x59d   : > { %5352 = vmatmul.bf16.gmra.mxu3 %v10660_v29 }
 0x59e   : > { %v10663_v23 = vpop.f32.mrf.mxu1 }
 0x59f   : > { %12463 = vst [vmem:[#allocation94_spill] sm:$0xff] %v10663_v23  ;;  %v10665_v54 = vpop.f32.mrf.mxu0 }
 0x5a0   : > { %12464 = vst [vmem:[#allocation273_spill] sm:$0xff] %v10665_v54  ;;  %v10667_v0 = vpop.f32.mrf.mxu3 }
 0x5a1   : > { %12465 = vst [vmem:[#allocation274_spill] sm:$0xff] %v10667_v0  ;;  %v10687_v0 = vsel %vm1722_vm3, %v4226_v3, %v4227_v22  ;;  %v4229_v3 = vrot.slane %v9623_v25, 1 }
 0x5a2   : > { %12471 = vst [vmem:[#allocation278_spill] sm:$0xff] %v10687_v0 }
 0x5a3   : > { %v10669_v7 = vpop.f32.mrf.mxu2 }
 0x5a4   : > { %12466 = vst [vmem:[#allocation275_spill] sm:$0xff] %v10669_v7 }
 0x5a6   : > { %v10671_v40 = vpop.f32.mrf.mxu1 }
 0x5a7   : > { %v10673_v57 = vpop.f32.mrf.mxu0 }
 0x5a8   : > { %12467 = vst [vmem:[#allocation276_spill] sm:$0xff] %v10673_v57  ;;  %5143 = vmatmul.bf16.gmra.mxu2 %v12461_v56  ;;  %v10676_v32 = vpop.f32.mrf.mxu3 }
 0x5a9   : > { %12468 = vst [vmem:[#allocation277_spill] sm:$0xff] %v10676_v32  ;;  %6311 = vmatmul.bf16.gmra.mxu1 %v10407_v43 }
 0x5aa   : > { %6152 = vmatmul.bf16.gmra.mxu0 %v9633_v63 }
 0x5ab   : > { %v5104_v59 = vpop.f32.mrf.mxu2 }
 0x5ac   : > { %v10684_v23 = vadd.f32 %v5104_v59, %v4936_v36  ;;  %v12477_v36 = vld [vmem:[#allocation27_spill] sm:$0xff]  ;;  %v4230_v59 = vrot.slane %v9960_v41, 1 }
 0x5ad   : > { %5357 = vmatmul.bf16.gmra.mxu3 %v10687_v0  ;;  %v4941_v22 = vadd.f32 %v10586_v1, %v12477_v36 }
 0x5ae   : > { %12470 = vst [vmem:[#allocation25_spill] sm:$0xff] %v10684_v23  ;;  %v10690_v56 = vpop.f32.mrf.mxu1 }
 0x5af   : > { %v10692_v32 = vpop.f32.mrf.mxu0 }
 0x5b0   : > { %12472 = vst [vmem:[#allocation279_spill] sm:$0xff] %v10692_v32  ;;  %v10694_v57 = vpop.f32.mrf.mxu3 }
 0x5b1   : > { %12473 = vst [vmem:[#allocation280_spill] sm:$0xff] %v10694_v57 }
 0x5b3   : > { %v10696_v54 = vpop.f32.mrf.mxu2 }
 0x5b4   : > { %12474 = vst [vmem:[#allocation281_spill] sm:$0xff] %v10696_v54 }
 0x5b6   : > { %v10698_v10 = vpop.f32.mrf.mxu1 }
 0x5b7   : > { %v10700_v7 = vpop.f32.mrf.mxu0 }
 0x5b8   : > { %12475 = vst [vmem:[#allocation282_spill] sm:$0xff] %v10700_v7  ;;  %5148 = vmatmul.bf16.gmra.mxu2 %v9633_v63  ;;  %v10703_v46 = vpop.f32.mrf.mxu3  ;;  %v10714_v7 = vsel %vm1722_vm3, %v4229_v3, %v4230_v59  ;;  %v12485_v3 = vld [vmem:[#allocation29_spill] sm:$0xff]  ;;  %v4233_v59 = vrot.slane %v9994_v44, 1 }
 0x5b9   : > { %12476 = vst [vmem:[#allocation283_spill] sm:$0xff] %v10703_v46  ;;  %6316 = vmatmul.bf16.gmra.mxu1 %v10446_v48 }
 0x5ba   : > { %6157 = vmatmul.bf16.gmra.mxu0 %v9670_v21  ;;  %12479 = vst [vmem:[#allocation284_spill] sm:$0xff] %v10714_v7 }
 0x5bb   : > { %v5109_v57 = vpop.f32.mrf.mxu2 }
 0x5bc   : > { %v10711_v32 = vadd.f32 %v5109_v57, %v4941_v22  ;;  %v4232_v57 = vrot.slane %v9710_v14, 1  ;;  %v4946_v22 = vadd.f32 %v10586_v1, %v12485_v3 }
 0x5bd   : > { %5362 = vmatmul.bf16.gmra.mxu3 %v10714_v7 }
 0x5be   : > { %12478 = vst [vmem:[#allocation27_spill] sm:$0xff] %v10711_v32  ;;  %v10717_v63 = vpop.f32.mrf.mxu1 }
 0x5bf   : > { %v10719_v46 = vpop.f32.mrf.mxu0 }
 0x5c0   : > { %12480 = vst [vmem:[#allocation285_spill] sm:$0xff] %v10719_v46  ;;  %v10721_v54 = vpop.f32.mrf.mxu3 }
 0x5c1   : > { %12481 = vst [vmem:[#allocation286_spill] sm:$0xff] %v10721_v54 }
 0x5c3   : > { %v10723_v23 = vpop.f32.mrf.mxu2 }
 0x5c4   : > { %12482 = vst [vmem:[#allocation287_spill] sm:$0xff] %v10723_v23 }
 0x5c6   : > { %v10725_v36 = vpop.f32.mrf.mxu1 }
 0x5c7   : > { %v10727_v25 = vpop.f32.mrf.mxu0 }
 0x5c8   : > { %12483 = vst [vmem:[#allocation288_spill] sm:$0xff] %v10727_v25  ;;  %5153 = vmatmul.bf16.gmra.mxu2 %v9670_v21  ;;  %v10730_v41 = vpop.f32.mrf.mxu3  ;;  %v10741_v25 = vsel %vm1722_vm3, %v4232_v57, %v4233_v59  ;;  %v7373_v57 = vld [vmem:[%s12002_s4 + $0x158] sm:$0xff]  ;;  %v12493_v59 = vld [vmem:[#allocation31_spill] sm:$0xff] }
 0x5c9   : > { %12484 = vst [vmem:[#allocation289_spill] sm:$0xff] %v10730_v41  ;;  %6321 = vmatmul.bf16.gmra.mxu1 %v10469_v62  ;;  %5760 = vmatpush.bf16.msra.mxu2 %v7373_v57  ;;  %v4239_v57 = vrot.slane %v10066_v45, 1 }
 0x5ca   : > { %6162 = vmatmul.bf16.gmra.mxu0 %v9706_v58  ;;  %12487 = vst [vmem:[#allocation290_spill] sm:$0xff] %v10741_v25 }
 0x5cb   : > { %v5114_v54 = vpop.f32.mrf.mxu2 }
 0x5cc   : > { %v10738_v46 = vadd.f32 %v5114_v54, %v4946_v22  ;;  %v4235_v54 = vrot.slane %v9770_v19, 1  ;;  %v7381_v22 = vld [vmem:[%s12002_s4 + $0x198] sm:$0xff] }
 0x5cd   : > { %5367 = vmatmul.bf16.gmra.mxu3 %v10741_v25 }
 0x5ce   : > { %12486 = vst [vmem:[#allocation29_spill] sm:$0xff] %v10738_v46  ;;  %v10744_v21 = vpop.f32.mrf.mxu1  ;;  %5929 = vmatpush.bf16.msra.mxu3 %v7381_v22 }
 0x5cf   : > { %v10746_v41 = vpop.f32.mrf.mxu0 }
 0x5d0   : > { %12488 = vst [vmem:[#allocation291_spill] sm:$0xff] %v10746_v41  ;;  %v10748_v23 = vpop.f32.mrf.mxu3 }
 0x5d1   : > { %12489 = vst [vmem:[#allocation292_spill] sm:$0xff] %v10748_v23  ;;  %v4951_v23 = vadd.f32 %v10586_v1, %v12493_v59 }
 0x5d3   : > { %v10750_v32 = vpop.f32.mrf.mxu2 }
 0x5d4   : > { %12490 = vst [vmem:[#allocation293_spill] sm:$0xff] %v10750_v32 }
 0x5d6   : > { %v10752_v3 = vpop.f32.mrf.mxu1 }
 0x5d7   : > { %v10754_v14 = vpop.f32.mrf.mxu0 }
 0x5d8   : > { %12491 = vst [vmem:[#allocation294_spill] sm:$0xff] %v10754_v14  ;;  %5158 = vmatmul.bf16.gmra.mxu2 %v9706_v58  ;;  %v10757_v44 = vpop.f32.mrf.mxu3  ;;  %v4236_v58 = vrot.slane %v10035_v34, 1 }
 0x5d9   : > { %12492 = vst [vmem:[#allocation295_spill] sm:$0xff] %v10757_v44  ;;  %6326 = vmatmul.bf16.gmra.mxu1 %v10494_v27 }
 0x5da   : > { %6167 = vmatmul.bf16.gmra.mxu0 %v9741_v4  ;;  %v10774_v41 = vsel %vm1722_vm3, %v4235_v54, %v4236_v58 }
 0x5db   : > { %v5119_v44 = vpop.f32.mrf.mxu2  ;;  %12495 = vst [vmem:[#allocation296_spill] sm:$0xff] %v10774_v41 }
 0x5dc   : > { %v10771_v14 = vadd.f32 %v5119_v44, %v4951_v23  ;;  %v4238_v23 = vrot.slane %v9821_v55, 1  ;;  %v12500_v44 = vld [vmem:[#allocation33_spill] sm:$0xff] }
 0x5dd   : > { %5372 = vmatmul.bf16.gmra.mxu3 %v10774_v41  ;;  %v4956_v54 = vadd.f32 %v10586_v1, %v12500_v44 }
 0x5de   : > { %12494 = vst [vmem:[#allocation31_spill] sm:$0xff] %v10771_v14  ;;  %v10777_v32 = vpop.f32.mrf.mxu1  ;;  %v12518_v14 = vld [vmem:[#allocation123_spill] sm:$0xff] }
 0x5df   : > { %v10781_v19 = vpop.f32.mrf.mxu0 }
 0x5e0   : > { %v10779_v46 = vpop.f32.mrf.mxu3  ;;  %12497 = vst [vmem:[#allocation298_spill] sm:$0xff] %v10781_v19 }
 0x5e1   : > { %12496 = vst [vmem:[#allocation297_spill] sm:$0xff] %v10779_v46 }
 0x5e3   : > { %v10783_v59 = vpop.f32.mrf.mxu2 }
 0x5e4   : > { %12498 = vst [vmem:[#allocation299_spill] sm:$0xff] %v10783_v59 }
 0x5e6   : > { %v10785_v27 = vpop.f32.mrf.mxu1 }
 0x5e7   : > { %v10796_v58 = vpop.f32.mrf.mxu0 }
 0x5e8   : > { %5163 = vmatmul.bf16.gmra.mxu2 %v9741_v4  ;;  %v10788_v34 = vpop.f32.mrf.mxu3  ;;  %12501 = vst [vmem:[#allocation33_spill] sm:$0xff] %v10796_v58  ;;  %v10801_v4 = vsel %vm1722_vm3, %v4238_v23, %v4239_v57  ;;  %v12509_v23 = vld [vmem:[#allocation35_spill] sm:$0xff] }
 0x5e9   : > { %12499 = vst [vmem:[#allocation300_spill] sm:$0xff] %v10788_v34  ;;  %6331 = vmatmul.bf16.gmra.mxu1 %v10519_v30  ;;  %v4961_v57 = vadd.f32 %v10586_v1, %v12509_v23  ;;  %v12516_v23 = vld [vmem:[#allocation90_spill] sm:$0xff] }
 0x5ea   : > { %6172 = vmatmul.bf16.gmra.mxu0 %v9781_v8  ;;  %12503 = vst [vmem:[#allocation302_spill] sm:$0xff] %v10801_v4 }
 0x5eb   : > { %v5124_v22 = vpop.f32.mrf.mxu2 }
 0x5ec   : > { %v10798_v46 = vadd.f32 %v5124_v22, %v4956_v54  ;;  %v4241_v54 = vrot.slane %v9882_v12, 1  ;;  %v4242_v22 = vrot.slane %v10108_v18, 1 }
 0x5ed   : > { %5377 = vmatmul.bf16.gmra.mxu3 %v10801_v4 }
 0x5ee   : > { %12502 = vst [vmem:[#allocation301_spill] sm:$0xff] %v10798_v46  ;;  %v10804_v34 = vpop.f32.mrf.mxu1 }
 0x5ef   : > { %v10810_v44 = vpop.f32.mrf.mxu0 }
 0x5f0   : > { %v10806_v19 = vpop.f32.mrf.mxu3  ;;  %12506 = vst [vmem:[#allocation305_spill] sm:$0xff] %v10810_v44  ;;  %v10826_v44 = vsel %vm1722_vm3, %v4241_v54, %v4242_v22  ;;  %v12521_v22 = vld [vmem:[#allocation40_spill] sm:$0xff] }
 0x5f1   : > { %12504 = vst [vmem:[#allocation303_spill] sm:$0xff] %v10806_v19 }
 0x5f2   : > { %12511 = vst [vmem:[#allocation308_spill] sm:$0xff] %v10826_v44 }
 0x5f3   : > { %v10808_v59 = vpop.f32.mrf.mxu2 }
 0x5f4   : > { %12505 = vst [vmem:[#allocation304_spill] sm:$0xff] %v10808_v59 }
 0x5f6   : > { %v10812_v8 = vpop.f32.mrf.mxu1 }
 0x5f7   : > { %12507 = vst [vmem:[#allocation306_spill] sm:$0xff] %v10812_v8  ;;  %v12517_v8 = vld [vmem:[#allocation115_spill] sm:$0xff] }
 0x5f8   : > { %5168 = vmatmul.bf16.gmra.mxu2 %v12358_v6  ;;  %v10815_v45 = vpop.f32.mrf.mxu3  ;;  %v4324_v18 = vrot.slane %v12517_v8, 1 }
 0x5f9   : > { %12508 = vst [vmem:[#allocation307_spill] sm:$0xff] %v10815_v45  ;;  %6336 = vmatmul.bf16.gmra.mxu1 %v10548_v42  ;;  %v10829_v45 = vpop.f32.mrf.mxu0  ;;  %v4323_v42 = vrot.slane %v12516_v23, 1 }
 0x5fa   : > { %6177 = vmatmul.bf16.gmra.mxu0 %v12358_v6  ;;  %12512 = vst [vmem:[#allocation309_spill] sm:$0xff] %v10829_v45  ;;  %v12524_v45 = vld [vmem:[#allocation173_spill] sm:$0xff] }
 0x5fb   : > { %v5129_v19 = vpop.f32.mrf.mxu2  ;;  %v10843_v54 = vsel %vm1722_vm3, %v4323_v42, %v4324_v18  ;;  %v4245_v8 = vrot.slane %v12524_v45, 1 }
 0x5fc   : > { %v10823_v59 = vadd.f32 %v5129_v19, %v4961_v57  ;;  %12520 = vst [vmem:[#allocation115_spill] sm:$0xff] %v10843_v54  ;;  %v4244_v57 = vrot.slane %v9971_v39, 1 }
 0x5fd   : > { %5382 = vmatmul.bf16.gmra.mxu3 %v10826_v44 }
 0x5fe   : > { %12510 = vst [vmem:[#allocation35_spill] sm:$0xff] %v10823_v59  ;;  %v10833_v58 = vpop.f32.mrf.mxu1  ;;  %v10858_v42 = vsel %vm1722_vm3, %v4244_v57, %v4245_v8  ;;  %v7372_v57 = vld [vmem:[%s12002_s4 + $0x150] sm:$0xff] }
 0x5ff   : > { %12514 = vst [vmem:[#allocation311_spill] sm:$0xff] %v10833_v58  ;;  %v7380_v8 = vld [vmem:[%s12002_s4 + $0x190] sm:$0xff]  ;;  %5761 = vmatpush.bf16.msra.mxu2 %v7372_v57 }
 0x600   : > { %v10831_v46 = vpop.f32.mrf.mxu3  ;;  %12527 = vst [vmem:[#allocation173_spill] sm:$0xff] %v10858_v42  ;;  %5930 = vmatpush.bf16.msra.mxu3 %v7380_v8  ;;  %v12543_v8 = vld [vmem:[#allocation137_spill] sm:$0xff] }
 0x601   : > { %12513 = vst [vmem:[#allocation310_spill] sm:$0xff] %v10831_v46  ;;  %v4966_v46 = vadd.f32 %v10586_v1, %v12521_v22  ;;  %v10849_v59 = vpop.f32.mrf.mxu0 }
 0x602   : > { %12522 = vst [vmem:[#allocation123_spill] sm:$0xff] %v10849_v59 }
 0x603   : > { %v10835_v12 = vpop.f32.mrf.mxu2 }
 0x604   : > { %12515 = vst [vmem:[#allocation312_spill] sm:$0xff] %v10835_v12  ;;  %v12523_v12 = vld [vmem:[#allocation127_spill] sm:$0xff] }
 0x606   : > { %v10853_v58 = vpop.f32.mrf.mxu1 }
 0x607   : > { %12525 = vst [vmem:[#allocation40_spill] sm:$0xff] %v10853_v58 }
 0x608   : > { %5173 = vmatmul.bf16.gmra.mxu2 %v12518_v14  ;;  %v10840_v19 = vpop.f32.mrf.mxu3 }
 0x609   : > { %12519 = vst [vmem:[#allocation90_spill] sm:$0xff] %v10840_v19  ;;  %6341 = vmatmul.bf16.gmra.mxu1 %v10843_v54  ;;  %v10865_v22 = vpop.f32.mrf.mxu0 }
 0x60a   : > { %6182 = vmatmul.bf16.gmra.mxu0 %v12523_v12  ;;  %12530 = vst [vmem:[#allocation315_spill] sm:$0xff] %v10865_v22 }
 0x60b   : > { %v5134_v14 = vpop.f32.mrf.mxu2 }
 0x60c   : > { %v10855_v19 = vadd.f32 %v5134_v14, %v4966_v46  ;;  %v4247_v46 = vrot.slane %v10021_v37, 1  ;;  %v12533_v14 = vld [vmem:[#allocation44_spill] sm:$0xff] }
 0x60d   : > { %5387 = vmatmul.bf16.gmra.mxu3 %v10858_v42 }
 0x60e   : > { %12526 = vst [vmem:[#allocation127_spill] sm:$0xff] %v10855_v19  ;;  %v10867_v59 = vpop.f32.mrf.mxu1 }
 0x60f   : > { %12531 = vst [vmem:[#allocation316_spill] sm:$0xff] %v10867_v59 }
 0x610   : > { %v10861_v18 = vpop.f32.mrf.mxu3 }
 0x611   : > { %12528 = vst [vmem:[#allocation313_spill] sm:$0xff] %v10861_v18  ;;  %v4971_v18 = vadd.f32 %v10586_v1, %v12533_v14  ;;  %v10890_v37 = vpop.f32.mrf.mxu0 }
 0x612   : > { %12537 = vst [vmem:[#allocation318_spill] sm:$0xff] %v10890_v37 }
 0x613   : > { %v10863_v39 = vpop.f32.mrf.mxu2 }
 0x614   : > { %12529 = vst [vmem:[#allocation314_spill] sm:$0xff] %v10863_v39  ;;  %v12534_v39 = vld [vmem:[#allocation133_spill] sm:$0xff] }
 0x616   : > { %v10892_v59 = vpop.f32.mrf.mxu1 }
 0x618   : > { %5178 = vmatmul.bf16.gmra.mxu2 %v12523_v12  ;;  %v10870_v45 = vpop.f32.mrf.mxu3  ;;  %v4248_v12 = vrot.slane %v10177_v2, 1 }
 0x619   : > { %12532 = vst [vmem:[#allocation317_spill] sm:$0xff] %v10870_v45  ;;  %6346 = vmatmul.bf16.gmra.mxu1 %v12278_v47  ;;  %v10898_v58 = vpop.f32.mrf.mxu0 }
 0x61a   : > { %6187 = vmatmul.bf16.gmra.mxu0 %v12534_v39  ;;  %v10887_v22 = vsel %vm1722_vm3, %v4247_v46, %v4248_v12  ;;  %12540 = vst [vmem:[#allocation321_spill] sm:$0xff] %v10898_v58  ;;  %v12542_v46 = vld [vmem:[#allocation48_spill] sm:$0xff]  ;;  %v12544_v12 = vld [vmem:[#allocation187_spill] sm:$0xff] }
 0x61b   : > { %v5139_v45 = vpop.f32.mrf.mxu2  ;;  %12536 = vst [vmem:[#allocation133_spill] sm:$0xff] %v10887_v22  ;;  %v4976_v57 = vadd.f32 %v10586_v1, %v12542_v46 }
 0x61c   : > { %v10884_v19 = vadd.f32 %v5139_v45, %v4971_v18  ;;  %v4250_v18 = vrot.slane %v10077_v51, 1 }
 0x61d   : > { %5392 = vmatmul.bf16.gmra.mxu3 %v10887_v22 }
 0x61e   : > { %12535 = vst [vmem:[#allocation44_spill] sm:$0xff] %v10884_v19  ;;  %v10904_v45 = vpop.f32.mrf.mxu1 }
 0x620   : > { %v10894_v54 = vpop.f32.mrf.mxu3 }
 0x621   : > { %12538 = vst [vmem:[#allocation319_spill] sm:$0xff] %v10894_v54  ;;  %v4251_v54 = vrot.slane %v12544_v12, 1  ;;  %v10919_v58 = vpop.f32.mrf.mxu0  ;;  %v12552_v12 = vld [vmem:[#allocation171_spill] sm:$0xff] }
 0x622   : > { %12548 = vst [vmem:[#allocation323_spill] sm:$0xff] %v10919_v58 }
 0x623   : > { %v10896_v14 = vpop.f32.mrf.mxu2 }
 0x624   : > { %12539 = vst [vmem:[#allocation320_spill] sm:$0xff] %v10896_v14 }
 0x626   : > { %v10921_v51 = vpop.f32.mrf.mxu1 }
 0x627   : > { %12549 = vst [vmem:[#allocation324_spill] sm:$0xff] %v10921_v51 }
 0x628   : > { %5183 = vmatmul.bf16.gmra.mxu2 %v12534_v39  ;;  %v10901_v2 = vpop.f32.mrf.mxu3  ;;  %v10914_v39 = vsel %vm1722_vm3, %v4250_v18, %v4251_v54  ;;  %v12553_v54 = vld [vmem:[#allocation54_spill] sm:$0xff] }
 0x629   : > { %12541 = vst [vmem:[#allocation322_spill] sm:$0xff] %v10901_v2  ;;  %6351 = vmatmul.bf16.gmra.mxu1 %v10627_v16  ;;  %v4981_v18 = vadd.f32 %v10586_v1, %v12553_v54  ;;  %v10934_v37 = vpop.f32.mrf.mxu0 }
 0x62a   : > { %6192 = vmatmul.bf16.gmra.mxu0 %v12543_v8  ;;  %12546 = vst [vmem:[#allocation137_spill] sm:$0xff] %v10914_v39 }
 0x62b   : > { %v5144_v14 = vpop.f32.mrf.mxu2  ;;  %12556 = vst [vmem:[#allocation54_spill] sm:$0xff] %v10934_v37 }
 0x62c   : > { %v10911_v19 = vadd.f32 %v5144_v14, %v4976_v57  ;;  %v4253_v14 = vrot.slane %v12552_v12, 1  ;;  %v12554_v57 = vld [vmem:[#allocation145_spill] sm:$0xff] }
 0x62d   : > { %5397 = vmatmul.bf16.gmra.mxu3 %v10914_v39 }
 0x62e   : > { %12545 = vst [vmem:[#allocation48_spill] sm:$0xff] %v10911_v19 }
 0x630   : > { %v10917_v2 = vpop.f32.mrf.mxu3 }
 0x631   : > { %12547 = vst [vmem:[#allocation187_spill] sm:$0xff] %v10917_v2  ;;  %v12555_v2 = vld [vmem:[#allocation196_spill] sm:$0xff]  ;;  %v10948_v54 = vpop.f32.mrf.mxu0 }
 0x632   : > { %v4254_v19 = vrot.slane %v12555_v2, 1  ;;  %12561 = vst [vmem:[#allocation329_spill] sm:$0xff] %v10948_v54  ;;  %v7379_v2 = vld [vmem:[%s12002_s4 + $0x188] sm:$0xff] }
 0x633   : > { %v10923_v16 = vpop.f32.mrf.mxu2  ;;  %5931 = vmatpush.bf16.msra.mxu3 %v7379_v2 }
 0x634   : > { %12550 = vst [vmem:[#allocation325_spill] sm:$0xff] %v10923_v16 }
 0x638   : > { %5188 = vmatmul.bf16.gmra.mxu2 %v12543_v8  ;;  %v10926_v46 = vpop.f32.mrf.mxu3  ;;  %v10939_v8 = vsel %vm1722_vm3, %v4253_v14, %v4254_v19  ;;  %v4256_v19 = vrot.slane %v10213_v38, 1  ;;  %v7378_v14 = vld [vmem:[%s12002_s4 + $0x180] sm:$0xff] }
 0x639   : > { %12551 = vst [vmem:[#allocation326_spill] sm:$0xff] %v10926_v46  ;;  %6356 = vmatmul.bf16.gmra.mxu1 %v10660_v29  ;;  %v10941_v46 = vpop.f32.mrf.mxu1  ;;  %5932 = vmatpush.bf16.msra.mxu3 %v7378_v14  ;;  %v10973_v2 = vpop.f32.mrf.mxu0 }
 0x63a   : > { %6197 = vmatmul.bf16.gmra.mxu0 %v12554_v57  ;;  %12558 = vst [vmem:[#allocation196_spill] sm:$0xff] %v10939_v8 }
 0x63b   : > { %v5149_v58 = vpop.f32.mrf.mxu2 }
 0x63c   : > { %v10936_v51 = vadd.f32 %v5149_v58, %v4981_v18  ;;  %v12563_v18 = vld [vmem:[#allocation61_spill] sm:$0xff] }
 0x63d   : > { %5402 = vmatmul.bf16.gmra.mxu3 %v10939_v8 }
 0x63e   : > { %12557 = vst [vmem:[#allocation145_spill] sm:$0xff] %v10936_v51  ;;  %v12565_v51 = vld [vmem:[#allocation204_spill] sm:$0xff] }
 0x63f   : > { %v4257_v54 = vrot.slane %v12565_v51, 1  ;;  %12568 = vst [vmem:[#allocation204_spill] sm:$0xff] %v10973_v2 }
 0x640   : > { %v10944_v16 = vpop.f32.mrf.mxu3 }
 0x641   : > { %12559 = vst [vmem:[#allocation327_spill] sm:$0xff] %v10944_v16  ;;  %v10953_v37 = vpop.f32.mrf.mxu1  ;;  %v4986_v16 = vadd.f32 %v10586_v1, %v12563_v18  ;;  %v10991_v14 = vpop.f32.mrf.mxu0 }
 0x643   : > { %v10946_v12 = vpop.f32.mrf.mxu2 }
 0x644   : > { %12560 = vst [vmem:[#allocation328_spill] sm:$0xff] %v10946_v12  ;;  %v12564_v12 = vld [vmem:[#allocation150_spill] sm:$0xff] }
 0x648   : > { %5193 = vmatmul.bf16.gmra.mxu2 %v12554_v57  ;;  %v10956_v58 = vpop.f32.mrf.mxu3 }
 0x649   : > { %12562 = vst [vmem:[#allocation330_spill] sm:$0xff] %v10956_v58  ;;  %6361 = vmatmul.bf16.gmra.mxu1 %v10687_v0  ;;  %v10970_v58 = vsel %vm1722_vm3, %v4256_v19, %v4257_v54  ;;  %v10977_v0 = vpop.f32.mrf.mxu1  ;;  %v12572_v54 = vld [vmem:[#allocation66_spill] sm:$0xff] }
 0x64a   : > { %6202 = vmatmul.bf16.gmra.mxu0 %v12564_v12  ;;  %12567 = vst [vmem:[#allocation150_spill] sm:$0xff] %v10970_v58  ;;  %v4991_v19 = vadd.f32 %v10586_v1, %v12572_v54 }
 0x64b   : > { %v5154_v29 = vpop.f32.mrf.mxu2  ;;  %12573 = vst [vmem:[#allocation66_spill] sm:$0xff] %v10991_v14  ;;  %v11007_v14 = vpop.f32.mrf.mxu0 }
 0x64c   : > { %v10967_v57 = vadd.f32 %v5154_v29, %v4986_v16  ;;  %v4259_v29 = vrot.slane %v10298_v60, 1  ;;  %v7371_v16 = vld [vmem:[%s12002_s4 + $0x148] sm:$0xff]  ;;  %12579 = vst [vmem:[#allocation337_spill] sm:$0xff] %v11007_v14 }
 0x64d   : > { %5407 = vmatmul.bf16.gmra.mxu3 %v10970_v58  ;;  %5762 = vmatpush.bf16.msra.mxu2 %v7371_v16 }
 0x64e   : > { %12566 = vst [vmem:[#allocation61_spill] sm:$0xff] %v10967_v57 }
 0x650   : > { %v10975_v38 = vpop.f32.mrf.mxu3 }
 0x651   : > { %12569 = vst [vmem:[#allocation331_spill] sm:$0xff] %v10975_v38  ;;  %v12574_v38 = vld [vmem:[#allocation157_spill] sm:$0xff] }
 0x653   : > { %v10979_v18 = vpop.f32.mrf.mxu2 }
 0x654   : > { %12570 = vst [vmem:[#allocation332_spill] sm:$0xff] %v10979_v18  ;;  %v4260_v18 = vrot.slane %v10376_v31, 1 }
 0x656   : > { %v11000_v60 = vsel %vm1722_vm3, %v4259_v29, %v4260_v18  ;;  %v12583_v29 = vld [vmem:[#allocation164_spill] sm:$0xff] }
 0x657   : > { %12576 = vst [vmem:[#allocation334_spill] sm:$0xff] %v11000_v60 }
 0x658   : > { %5198 = vmatmul.bf16.gmra.mxu2 %v12564_v12  ;;  %v10982_v51 = vpop.f32.mrf.mxu3  ;;  %v10995_v12 = vpop.f32.mrf.mxu1 }
 0x659   : > { %12571 = vst [vmem:[#allocation333_spill] sm:$0xff] %v10982_v51  ;;  %6366 = vmatmul.bf16.gmra.mxu1 %v10714_v7 }
 0x65a   : > { %6207 = vmatmul.bf16.gmra.mxu0 %v12574_v38 }
 0x65b   : > { %v5159_v51 = vpop.f32.mrf.mxu2 }
 0x65c   : > { %v10997_v57 = vadd.f32 %v5159_v51, %v4991_v19  ;;  %v12582_v51 = vld [vmem:[#allocation73_spill] sm:$0xff] }
 0x65d   : > { %5412 = vmatmul.bf16.gmra.mxu3 %v11000_v60  ;;  %v4996_v18 = vadd.f32 %v10586_v1, %v12582_v51 }
 0x65e   : > { %12575 = vst [vmem:[#allocation157_spill] sm:$0xff] %v10997_v57 }
 0x660   : > { %v11003_v7 = vpop.f32.mrf.mxu3  ;;  %v11009_v2 = vpop.f32.mrf.mxu1 }
 0x661   : > { %12577 = vst [vmem:[#allocation335_spill] sm:$0xff] %v11003_v7  ;;  %v12585_v7 = vld [vmem:[#allocation8_spill] sm:$0xff] }
 0x662   : > { %12580 = vst [vmem:[#allocation338_spill] sm:$0xff] %v11009_v2 }
 0x663   : > { %v11005_v54 = vpop.f32.mrf.mxu2 }
 0x664   : > { %12578 = vst [vmem:[#allocation336_spill] sm:$0xff] %v11005_v54  ;;  %v11021_v54 = vpop.f32.mrf.mxu0 }
 0x665   : > { %12586 = vst [vmem:[#allocation164_spill] sm:$0xff] %v11021_v54 }
 0x668   : > { %5203 = vmatmul.bf16.gmra.mxu2 %v12574_v38  ;;  %v11012_v31 = vpop.f32.mrf.mxu3  ;;  %v11023_v57 = vpop.f32.mrf.mxu1  ;;  %v12588_v38 = vld [vmem:[#allocation76_spill] sm:$0xff] }
 0x669   : > { %12581 = vst [vmem:[#allocation339_spill] sm:$0xff] %v11012_v31  ;;  %6371 = vmatmul.bf16.gmra.mxu1 %v10741_v25  ;;  %v4998_v31 = vadd.f32 %v10586_v1, %v12588_v38 }
 0x66a   : > { %6212 = vmatmul.bf16.gmra.mxu0 %v12583_v29 }
 0x66b   : > { %v5164_v16 = vpop.f32.mrf.mxu2 }
 0x66c   : > { %v11018_v19 = vadd.f32 %v5164_v16, %v4996_v18  ;;  %v11031_v51 = vpop.f32.mrf.mxu0 }
 0x66d   : > { %5933 = vmatmul.bf16.vlgmr.msra.gmra.mxu3 %v12585_v7  ;;  %12590 = vst [vmem:[#allocation340_spill] sm:$0xff] %v11031_v51  ;;  %v12592_v7 = vld [vmem:[#allocation139_spill] sm:$0xff]  ;;  %v12604_v51 = vld [vmem:[#allocation10_spill] sm:$0xff] }
 0x66e   : > { %12584 = vst [vmem:[#allocation73_spill] sm:$0xff] %v11018_v19  ;;  %v5001_v19 = vadd.f32 %v10586_v1, %v12592_v7  ;;  %v12600_v7 = vld [vmem:[#allocation147_spill] sm:$0xff] }
 0x670   : > { %v11025_v14 = vpop.f32.mrf.mxu3  ;;  %v11036_v16 = vpop.f32.mrf.mxu1 }
 0x671   : > { %12587 = vst [vmem:[#allocation8_spill] sm:$0xff] %v11025_v14  ;;  %v12593_v14 = vld [vmem:[#allocation169_spill] sm:$0xff] }
 0x673   : > { %v5166_v25 = vpop.f32.mrf.mxu2 }
 0x674   : > { %v11029_v2 = vadd.f32 %v5166_v25, %v4998_v31  ;;  %v12595_v25 = vld [vmem:[#allocation9_spill] sm:$0xff] }
 0x676   : > { %12589 = vst [vmem:[#allocation76_spill] sm:$0xff] %v11029_v2  ;;  %v11047_v2 = vpop.f32.mrf.mxu0 }
 0x677   : > { %12597 = vst [vmem:[#allocation9_spill] sm:$0xff] %v11047_v2 }
 0x678   : > { %5208 = vmatmul.bf16.gmra.mxu2 %v12583_v29  ;;  %v11034_v18 = vpop.f32.mrf.mxu3  ;;  %v11049_v29 = vpop.f32.mrf.mxu1 }
 0x679   : > { %12591 = vst [vmem:[#allocation341_spill] sm:$0xff] %v11034_v18  ;;  %6376 = vmatmul.bf16.gmra.mxu1 %v10774_v41 }
 0x67a   : > { %6217 = vmatmul.bf16.gmra.mxu0 %v12593_v14 }
 0x67b   : > { %v5169_v54 = vpop.f32.mrf.mxu2 }
 0x67c   : > { %v11042_v38 = vadd.f32 %v5169_v54, %v5001_v19  ;;  %v5006_v54 = vadd.f32 %v10586_v1, %v12600_v7  ;;  %v12601_v19 = vld [vmem:[#allocation178_spill] sm:$0xff] }
 0x67d   : > { %5938 = vmatmul.bf16.gmra.mxu3 %v12595_v25 }
 0x67e   : > { %12594 = vst [vmem:[#allocation139_spill] sm:$0xff] %v11042_v38  ;;  %v11060_v38 = vpop.f32.mrf.mxu0 }
 0x67f   : > { %12602 = vst [vmem:[#allocation147_spill] sm:$0xff] %v11060_v38 }
 0x680   : > { %v11045_v31 = vpop.f32.mrf.mxu3  ;;  %v11064_v2 = vpop.f32.mrf.mxu1 }
 0x681   : > { %12596 = vst [vmem:[#allocation169_spill] sm:$0xff] %v11045_v31 }
 0x683   : > { %v11051_v18 = vpop.f32.mrf.mxu2 }
 0x684   : > { %12598 = vst [vmem:[#allocation342_spill] sm:$0xff] %v11051_v18 }
 0x688   : > { %5213 = vmatmul.bf16.gmra.mxu2 %v12593_v14  ;;  %v11054_v41 = vpop.f32.mrf.mxu3 }
 0x689   : > { %12599 = vst [vmem:[#allocation343_spill] sm:$0xff] %v11054_v41  ;;  %6381 = vmatmul.bf16.gmra.mxu1 %v10801_v4  ;;  %v11071_v41 = vpop.f32.mrf.mxu0  ;;  %v11073_v4 = vpop.f32.mrf.mxu1 }
 0x68a   : > { %6222 = vmatmul.bf16.gmra.mxu0 %v12601_v19  ;;  %12607 = vst [vmem:[#allocation345_spill] sm:$0xff] %v11071_v41  ;;  %v12613_v41 = vld [vmem:[#allocation11_spill] sm:$0xff] }
 0x68b   : > { %v5174_v25 = vpop.f32.mrf.mxu2  ;;  %12608 = vst [vmem:[#allocation346_spill] sm:$0xff] %v11073_v4 }
 0x68c   : > { %v11062_v31 = vadd.f32 %v5174_v25, %v5006_v54  ;;  %v7370_v54 = vld [vmem:[%s12002_s4 + $0x140] sm:$0xff]  ;;  %v12610_v25 = vld [vmem:[#allocation154_spill] sm:$0xff] }
 0x68d   : > { %5943 = vmatmul.bf16.gmra.mxu3 %v12604_v51  ;;  %v5011_v51 = vadd.f32 %v10586_v1, %v12610_v25  ;;  %5763 = vmatpush.bf16.msra.mxu2 %v7370_v54  ;;  %v12619_v54 = vld [vmem:[#allocation160_spill] sm:$0xff] }
 0x68e   : > { %12603 = vst [vmem:[#allocation178_spill] sm:$0xff] %v11062_v31 }
 0x690   : > { %v11067_v18 = vpop.f32.mrf.mxu3 }
 0x691   : > { %12605 = vst [vmem:[#allocation10_spill] sm:$0xff] %v11067_v18  ;;  %v12611_v18 = vld [vmem:[#allocation184_spill] sm:$0xff]  ;;  %v11092_v38 = vpop.f32.mrf.mxu1 }
 0x692   : > { %12616 = vst [vmem:[#allocation348_spill] sm:$0xff] %v11092_v38  ;;  %v12709_v38 = vld [vmem:[#allocation80_spill] sm:$0xff] }
 0x693   : > { %v11069_v14 = vpop.f32.mrf.mxu2 }
 0x694   : > { %12606 = vst [vmem:[#allocation344_spill] sm:$0xff] %v11069_v14 }
 0x698   : > { %5218 = vmatmul.bf16.gmra.mxu2 %v12601_v19  ;;  %v11076_v7 = vpop.f32.mrf.mxu3  ;;  %v11088_v19 = vpop.f32.mrf.mxu0 }
 0x699   : > { %12609 = vst [vmem:[#allocation347_spill] sm:$0xff] %v11076_v7  ;;  %6386 = vmatmul.bf16.gmra.mxu1 %v10826_v44 }
 0x69a   : > { %6227 = vmatmul.bf16.gmra.mxu0 %v12611_v18  ;;  %12614 = vst [vmem:[#allocation184_spill] sm:$0xff] %v11088_v19  ;;  %v12624_v19 = vld [vmem:[#allocation12_spill] sm:$0xff] }
 0x69b   : > { %v5179_v14 = vpop.f32.mrf.mxu2 }
 0x69c   : > { %v11085_v31 = vadd.f32 %v5179_v14, %v5011_v51  ;;  %v5016_v14 = vadd.f32 %v10586_v1, %v12619_v54  ;;  %v11105_v51 = vpop.f32.mrf.mxu1 }
 0x69d   : > { %5948 = vmatmul.bf16.gmra.mxu3 %v12613_v41  ;;  %v12621_v41 = vld [vmem:[#allocation191_spill] sm:$0xff] }
 0x69e   : > { %12612 = vst [vmem:[#allocation154_spill] sm:$0xff] %v11085_v31 }
 0x69f   : > { %12622 = vst [vmem:[#allocation191_spill] sm:$0xff] %v11105_v51  ;;  %v12708_v51 = vld [vmem:[#allocation79_spill] sm:$0xff] }
 0x6a0   : > { %v11090_v7 = vpop.f32.mrf.mxu3  ;;  %v11102_v25 = vpop.f32.mrf.mxu0 }
 0x6a1   : > { %12615 = vst [vmem:[#allocation11_spill] sm:$0xff] %v11090_v7 }
 0x6a2   : > { %12620 = vst [vmem:[#allocation160_spill] sm:$0xff] %v11102_v25  ;;  %v12630_v25 = vld [vmem:[#allocation167_spill] sm:$0xff] }
 0x6a3   : > { %v11094_v4 = vpop.f32.mrf.mxu2 }
 0x6a4   : > { %12617 = vst [vmem:[#allocation349_spill] sm:$0xff] %v11094_v4 }
 0x6a8   : > { %5223 = vmatmul.bf16.gmra.mxu2 %v12611_v18  ;;  %v11097_v44 = vpop.f32.mrf.mxu3 }
 0x6a9   : > { %12618 = vst [vmem:[#allocation350_spill] sm:$0xff] %v11097_v44  ;;  %6391 = vmatmul.bf16.gmra.mxu1 %v10858_v42  ;;  %v11114_v44 = vpop.f32.mrf.mxu0  ;;  %v11116_v42 = vpop.f32.mrf.mxu1 }
 0x6aa   : > { %6232 = vmatmul.bf16.gmra.mxu0 %v12621_v41  ;;  %12627 = vst [vmem:[#allocation353_spill] sm:$0xff] %v11114_v44 }
 0x6ab   : > { %v5184_v7 = vpop.f32.mrf.mxu2  ;;  %12628 = vst [vmem:[#allocation354_spill] sm:$0xff] %v11116_v42 }
 0x6ac   : > { %v11107_v31 = vadd.f32 %v5184_v7, %v5016_v14  ;;  %v5021_v7 = vadd.f32 %v10586_v1, %v12630_v25  ;;  %v12631_v14 = vld [vmem:[#allocation201_spill] sm:$0xff] }
 0x6ad   : > { %5953 = vmatmul.bf16.gmra.mxu3 %v12624_v19 }
 0x6ae   : > { %12623 = vst [vmem:[#allocation351_spill] sm:$0xff] %v11107_v31 }
 0x6b0   : > { %v11110_v4 = vpop.f32.mrf.mxu3 }
 0x6b1   : > { %12625 = vst [vmem:[#allocation12_spill] sm:$0xff] %v11110_v4  ;;  %v12633_v4 = vld [vmem:[#allocation13_spill] sm:$0xff]  ;;  %v11130_v44 = vpop.f32.mrf.mxu1 }
 0x6b2   : > { %12635 = vst [vmem:[#allocation13_spill] sm:$0xff] %v11130_v44 }
 0x6b3   : > { %v11112_v18 = vpop.f32.mrf.mxu2 }
 0x6b4   : > { %12626 = vst [vmem:[#allocation352_spill] sm:$0xff] %v11112_v18  ;;  %v11128_v18 = vpop.f32.mrf.mxu0 }
 0x6b5   : > { %12634 = vst [vmem:[#allocation201_spill] sm:$0xff] %v11128_v18 }
 0x6b8   : > { %5228 = vmatmul.bf16.gmra.mxu2 %v12621_v41  ;;  %v11119_v54 = vpop.f32.mrf.mxu3 }
 0x6b9   : > { %12629 = vst [vmem:[#allocation355_spill] sm:$0xff] %v11119_v54  ;;  %6396 = vmatmul.bf16.gmra.mxu1 %v10887_v22  ;;  %v11141_v22 = vpop.f32.mrf.mxu1 }
 0x6ba   : > { %6237 = vmatmul.bf16.gmra.mxu0 %v12631_v14  ;;  %12640 = vst [vmem:[#allocation360_spill] sm:$0xff] %v11141_v22 }
 0x6bb   : > { %v5189_v19 = vpop.f32.mrf.mxu2 }
 0x6bc   : > { %v11125_v31 = vadd.f32 %v5189_v19, %v5021_v7  ;;  %v11136_v54 = vpop.f32.mrf.mxu0  ;;  %v12641_v7 = vld [vmem:[#allocation177_spill] sm:$0xff]  ;;  %v12642_v19 = vld [vmem:[#allocation208_spill] sm:$0xff] }
 0x6bd   : > { %5958 = vmatmul.bf16.gmra.mxu3 %v12633_v4  ;;  %12638 = vst [vmem:[#allocation358_spill] sm:$0xff] %v11136_v54  ;;  %v5026_v4 = vadd.f32 %v10586_v1, %v12641_v7  ;;  %v12650_v7 = vld [vmem:[#allocation185_spill] sm:$0xff] }
 0x6be   : > { %12632 = vst [vmem:[#allocation167_spill] sm:$0xff] %v11125_v31 }
 0x6c0   : > { %v11132_v42 = vpop.f32.mrf.mxu3 }
 0x6c1   : > { %12636 = vst [vmem:[#allocation356_spill] sm:$0xff] %v11132_v42  ;;  %v12644_v42 = vld [vmem:[#allocation14_spill] sm:$0xff] }
 0x6c3   : > { %v11134_v41 = vpop.f32.mrf.mxu2 }
 0x6c4   : > { %12637 = vst [vmem:[#allocation357_spill] sm:$0xff] %v11134_v41  ;;  %v11152_v54 = vpop.f32.mrf.mxu0 }
 0x6c5   : > { %12646 = vst [vmem:[#allocation14_spill] sm:$0xff] %v11152_v54 }
 0x6c8   : > { %5233 = vmatmul.bf16.gmra.mxu2 %v12631_v14  ;;  %v11139_v25 = vpop.f32.mrf.mxu3  ;;  %v11154_v14 = vpop.f32.mrf.mxu1 }
 0x6c9   : > { %12639 = vst [vmem:[#allocation359_spill] sm:$0xff] %v11139_v25  ;;  %6401 = vmatmul.bf16.gmra.mxu1 %v10914_v39 }
 0x6ca   : > { %6242 = vmatmul.bf16.gmra.mxu0 %v12642_v19  ;;  %12647 = vst [vmem:[#allocation361_spill] sm:$0xff] %v11154_v14  ;;  %v12655_v14 = vld [vmem:[#allocation15_spill] sm:$0xff] }
 0x6cb   : > { %v5194_v31 = vpop.f32.mrf.mxu2 }
 0x6cc   : > { %v11147_v18 = vadd.f32 %v5194_v31, %v5026_v4  ;;  %v5031_v31 = vadd.f32 %v10586_v1, %v12650_v7  ;;  %v12651_v4 = vld [vmem:[#allocation214_spill] sm:$0xff] }
 0x6cd   : > { %5963 = vmatmul.bf16.gmra.mxu3 %v12644_v42 }
 0x6ce   : > { %12643 = vst [vmem:[#allocation177_spill] sm:$0xff] %v11147_v18  ;;  %v11165_v18 = vpop.f32.mrf.mxu0 }
 0x6cf   : > { %12652 = vst [vmem:[#allocation185_spill] sm:$0xff] %v11165_v18 }
 0x6d0   : > { %v11150_v41 = vpop.f32.mrf.mxu3  ;;  %v11169_v54 = vpop.f32.mrf.mxu1 }
 0x6d1   : > { %12645 = vst [vmem:[#allocation208_spill] sm:$0xff] %v11150_v41 }
 0x6d2   : > { %12654 = vst [vmem:[#allocation364_spill] sm:$0xff] %v11169_v54 }
 0x6d3   : > { %v11156_v25 = vpop.f32.mrf.mxu2 }
 0x6d4   : > { %12648 = vst [vmem:[#allocation362_spill] sm:$0xff] %v11156_v25 }
 0x6d8   : > { %5238 = vmatmul.bf16.gmra.mxu2 %v12642_v19  ;;  %v11159_v39 = vpop.f32.mrf.mxu3 }
 0x6d9   : > { %12649 = vst [vmem:[#allocation363_spill] sm:$0xff] %v11159_v39  ;;  %6406 = vmatmul.bf16.gmra.mxu1 %v10939_v8  ;;  %v11176_v39 = vpop.f32.mrf.mxu0  ;;  %v11178_v8 = vpop.f32.mrf.mxu1 }
 0x6da   : > { %6247 = vmatmul.bf16.gmra.mxu0 %v12651_v4  ;;  %12658 = vst [vmem:[#allocation366_spill] sm:$0xff] %v11176_v39 }
 0x6db   : > { %v5199_v42 = vpop.f32.mrf.mxu2  ;;  %12659 = vst [vmem:[#allocation367_spill] sm:$0xff] %v11178_v8 }
 0x6dc   : > { %v11167_v41 = vadd.f32 %v5199_v42, %v5031_v31  ;;  %v12661_v31 = vld [vmem:[#allocation192_spill] sm:$0xff] }
 0x6dd   : > { %5968 = vmatmul.bf16.gmra.mxu3 %v12655_v14  ;;  %v5036_v42 = vadd.f32 %v10586_v1, %v12661_v31 }
 0x6de   : > { %12653 = vst [vmem:[#allocation214_spill] sm:$0xff] %v11167_v41 }
 0x6e0   : > { %v11172_v25 = vpop.f32.mrf.mxu3 }
 0x6e1   : > { %12656 = vst [vmem:[#allocation15_spill] sm:$0xff] %v11172_v25  ;;  %v12663_v25 = vld [vmem:[#allocation16_spill] sm:$0xff]  ;;  %v11194_v18 = vpop.f32.mrf.mxu1 }
 0x6e2   : > { %12665 = vst [vmem:[#allocation369_spill] sm:$0xff] %v11194_v18 }
 0x6e3   : > { %v11174_v19 = vpop.f32.mrf.mxu2 }
 0x6e4   : > { %12657 = vst [vmem:[#allocation365_spill] sm:$0xff] %v11174_v19  ;;  %v11190_v19 = vpop.f32.mrf.mxu0 }
 0x6e5   : > { %12664 = vst [vmem:[#allocation16_spill] sm:$0xff] %v11190_v19 }
 0x6e8   : > { %5243 = vmatmul.bf16.gmra.mxu2 %v12651_v4  ;;  %v11181_v7 = vpop.f32.mrf.mxu3 }
 0x6e9   : > { %12660 = vst [vmem:[#allocation368_spill] sm:$0xff] %v11181_v7  ;;  %6411 = vmatmul.bf16.gmra.mxu1 %v10970_v58  ;;  %v12667_v7 = vld [vmem:[#allocation152_spill] sm:$0xff] }
 0x6ea   : > { %6252 = vmatmul.bf16.gmra.mxu0 %v10431_v33  ;;  %v12668_v33 = vld [vmem:[#allocation71_spill] sm:$0xff] }
 0x6eb   : > { %v5204_v14 = vpop.f32.mrf.mxu2  ;;  %v5041_v31 = vadd.f32 %v10586_v1, %v12668_v33  ;;  %v12674_v33 = vld [vmem:[#allocation216_spill] sm:$0xff] }
 0x6ec   : > { %v11187_v41 = vadd.f32 %v5204_v14, %v5036_v42  ;;  %v11204_v42 = vpop.f32.mrf.mxu0  ;;  %v4327_v18 = vrot.slane %v12674_v33, 1 }
 0x6ed   : > { %5973 = vmatmul.bf16.gmra.mxu3 %v12663_v25  ;;  %12669 = vst [vmem:[#allocation152_spill] sm:$0xff] %v11204_v42  ;;  %v11207_v25 = vpop.f32.mrf.mxu1 }
 0x6ee   : > { %12662 = vst [vmem:[#allocation192_spill] sm:$0xff] %v11187_v41 }
 0x6ef   : > { %12670 = vst [vmem:[#allocation71_spill] sm:$0xff] %v11207_v25 }
 0x6f0   : > { %v11192_v39 = vpop.f32.mrf.mxu3 }
 0x6f3   : > { %v11196_v4 = vpop.f32.mrf.mxu2 }
 0x6f4   : > { %12666 = vst [vmem:[#allocation370_spill] sm:$0xff] %v11196_v4 }
 0x6f5   : > { %v11217_v19 = vpop.f32.mrf.mxu1 }
 0x6f6   : > { %12673 = vst [vmem:[#allocation373_spill] sm:$0xff] %v11217_v19 }
 0x6f8   : > { %5764 = vmatmul.bf16.vlgmr.msra.gmra.mxu2 %v12667_v7  ;;  %v11199_v58 = vpop.f32.mrf.mxu3 }
 0x6f9   : > { %6416 = vmatmul.bf16.gmra.mxu1 %v11000_v60  ;;  %v4326_v60 = vrot.slane %v10354_v11, 1 }
 0x6fa   : > { %6257 = vmatmul.bf16.gmra.mxu0 %v12358_v6 }
 0x6fb   : > { %v5209_v14 = vpop.f32.mrf.mxu2  ;;  %v11224_v42 = vsel %vm1722_vm3, %v4326_v60, %v4327_v18 }
 0x6fc   : > { %v11209_v41 = vadd.f32 %v5209_v14, %v5041_v31  ;;  %12675 = vst [vmem:[#allocation216_spill] sm:$0xff] %v11224_v42 }
 0x6fd   : > { %5978 = vmatmul.bf16.gmra.mxu3 %v12383_v49  ;;  %v12676_v49 = vld [vmem:[#allocation210_spill] sm:$0xff] }
 0x6fe   : > { %12671 = vst [vmem:[#allocation371_spill] sm:$0xff] %v11209_v41  ;;  %v5046_v31 = vadd.f32 %v10586_v1, %v12676_v49  ;;  %v11232_v41 = vpop.f32.mrf.mxu1  ;;  %v12681_v49 = vld [vmem:[#allocation218_spill] sm:$0xff] }
 0x6ff   : > { %12678 = vst [vmem:[#allocation374_spill] sm:$0xff] %v11232_v41 }
 0x700   : > { %v11212_v4 = vpop.f32.mrf.mxu3 }
 0x703   : > { %v11214_v7 = vpop.f32.mrf.mxu2 }
 0x704   : > { %12672 = vst [vmem:[#allocation372_spill] sm:$0xff] %v11214_v7 }
 0x706   : > { %v11241_v18 = vpop.f32.mrf.mxu1 }
 0x707   : > { %12680 = vst [vmem:[#allocation376_spill] sm:$0xff] %v11241_v18 }
 0x708   : > { %5769 = vmatmul.bf16.gmra.mxu2 %v10058_v50  ;;  %v11221_v6 = vpop.f32.mrf.mxu3 }
 0x709   : > { %6421 = vmatmul.bf16.gmra.mxu1 %v11224_v42 }
 0x70b   : > { %v5214_v14 = vpop.f32.mrf.mxu2 }
 0x70c   : > { %v11229_v7 = vadd.f32 %v5214_v14, %v5046_v31  ;;  %v5051_v31 = vadd.f32 %v10586_v1, %v12681_v49 }
 0x70d   : > { %5983 = vmatmul.bf16.gmra.mxu3 %v12393_v26 }
 0x70e   : > { %12677 = vst [vmem:[#allocation210_spill] sm:$0xff] %v11229_v7 }
 0x710   : > { %v11234_v33 = vpop.f32.mrf.mxu3 }
 0x713   : > { %v11236_v50 = vpop.f32.mrf.mxu2 }
 0x714   : > { %12679 = vst [vmem:[#allocation375_spill] sm:$0xff] %v11236_v50  ;;  %v5056_v50 = vadd.f32 %v10586_v1, %v10455_v28  ;;  %v12689_v28 = vld [vmem:[#allocation36_spill] sm:$0xff] }
 0x718   : > { %5774 = vmatmul.bf16.gmra.mxu2 %v10095_v13  ;;  %v11239_v60 = vpop.f32.mrf.mxu3 }
 0x719   : > { %6426 = vmatmul.bf16.gmra.mxu1 %v12278_v47 }
 0x71b   : > { %v5219_v14 = vpop.f32.mrf.mxu2 }
 0x71c   : > { %v11246_v7 = vadd.f32 %v5219_v14, %v5051_v31 }
 0x71d   : > { %5988 = vmatmul.bf16.gmra.mxu3 %v8782_v15  ;;  %v12686_v15 = vld [vmem:[#allocation55_spill] sm:$0xff] }
 0x71e   : > { %12682 = vst [vmem:[#allocation218_spill] sm:$0xff] %v11246_v7 }
 0x720   : > { %v11249_v26 = vpop.f32.mrf.mxu3 }
 0x723   : > { %v11251_v42 = vpop.f32.mrf.mxu2 }
 0x724   : > { %12683 = vst [vmem:[#allocation377_spill] sm:$0xff] %v11251_v42  ;;  %v12687_v42 = vld [vmem:[#allocation228_spill] sm:$0xff] }
 0x728   : > { %5779 = vmatmul.bf16.gmra.mxu2 %v10137_v9  ;;  %v11254_v13 = vpop.f32.mrf.mxu3  ;;  %v5061_v9 = vadd.f32 %v10586_v1, %v12687_v42 }
 0x72b   : > { %v5224_v47 = vpop.f32.mrf.mxu2 }
 0x72c   : > { %v11258_v18 = vadd.f32 %v5224_v47, %v5056_v50 }
 0x72d   : > { %5993 = vmatmul.bf16.gmra.mxu3 %v8907_v53 }
 0x72e   : > { %12684 = vst [vmem:[#allocation378_spill] sm:$0xff] %v11258_v18 }
 0x730   : > { %v11261_v49 = vpop.f32.mrf.mxu3 }
 0x733   : > { %v11263_v31 = vpop.f32.mrf.mxu2 }
 0x734   : > { %12685 = vst [vmem:[#allocation379_spill] sm:$0xff] %v11263_v31  ;;  %v12691_v31 = vld [vmem:[#allocation237_spill] sm:$0xff] }
 0x738   : > { %5784 = vmatmul.bf16.gmra.mxu2 %v12686_v15  ;;  %v11266_v14 = vpop.f32.mrf.mxu3  ;;  %v5066_v15 = vadd.f32 %v10586_v1, %v12691_v31  ;;  %v12697_v31 = vld [vmem:[#allocation5_spill] sm:$0xff] }
 0x73b   : > { %v5229_v7 = vpop.f32.mrf.mxu2 }
 0x73c   : > { %v11270_v41 = vadd.f32 %v5229_v7, %v5061_v9  ;;  %v12694_v9 = vld [vmem:[#allocation194_spill] sm:$0xff] }
 0x73d   : > { %5998 = vmatmul.bf16.gmra.mxu3 %v12689_v28 }
 0x73e   : > { %12688 = vst [vmem:[#allocation55_spill] sm:$0xff] %v11270_v41 }
 0x740   : > { %v11273_v50 = vpop.f32.mrf.mxu3 }
 0x743   : > { %v11275_v47 = vpop.f32.mrf.mxu2 }
 0x744   : > { %12690 = vst [vmem:[#allocation228_spill] sm:$0xff] %v11275_v47  ;;  %v12695_v47 = vld [vmem:[#allocation245_spill] sm:$0xff] }
 0x748   : > { %5789 = vmatmul.bf16.gmra.mxu2 %v10206_v5  ;;  %v11278_v53 = vpop.f32.mrf.mxu3  ;;  %v5071_v5 = vadd.f32 %v10586_v1, %v12695_v47 }
 0x74b   : > { %v5234_v18 = vpop.f32.mrf.mxu2 }
 0x74c   : > { %v11282_v19 = vadd.f32 %v5234_v18, %v5066_v15  ;;  %v12698_v18 = vld [vmem:[#allocation249_spill] sm:$0xff] }
 0x74d   : > { %6003 = vmatmul.bf16.gmra.mxu3 %v12516_v23  ;;  %v5073_v15 = vadd.f32 %v10586_v1, %v12698_v18 }
 0x74e   : > { %12692 = vst [vmem:[#allocation36_spill] sm:$0xff] %v11282_v19 }
 0x750   : > { %v11285_v42 = vpop.f32.mrf.mxu3 }
 0x753   : > { %v11287_v7 = vpop.f32.mrf.mxu2 }
 0x754   : > { %12693 = vst [vmem:[#allocation237_spill] sm:$0xff] %v11287_v7 }
 0x758   : > { %5794 = vmatmul.bf16.gmra.mxu2 %v12694_v9  ;;  %v11290_v28 = vpop.f32.mrf.mxu3  ;;  %v12700_v9 = vld [vmem:[#allocation74_spill] sm:$0xff] }
 0x759   : > { %v5076_v7 = vadd.f32 %v10586_v1, %v12700_v9 }
 0x75b   : > { %v5239_v41 = vpop.f32.mrf.mxu2 }
 0x75c   : > { %v11294_v25 = vadd.f32 %v5239_v41, %v5071_v5  ;;  %v12702_v5 = vld [vmem:[#allocation256_spill] sm:$0xff] }
 0x75d   : > { %6008 = vmatmul.bf16.gmra.mxu3 %v12697_v31  ;;  %v5078_v18 = vadd.f32 %v10586_v1, %v12702_v5 }
 0x75e   : > { %12696 = vst [vmem:[#allocation194_spill] sm:$0xff] %v11294_v25  ;;  %v12703_v25 = vld [vmem:[#allocation205_spill] sm:$0xff] }
 0x760   : > { %v11299_v23 = vpop.f32.mrf.mxu3 }
 0x763   : > { %v5241_v19 = vpop.f32.mrf.mxu2 }
 0x764   : > { %v11301_v8 = vadd.f32 %v5241_v19, %v5073_v15  ;;  %v5259_v19 = vadd.f32 %v12703_v25, %v10597_v20 }
 0x766   : > { %12699 = vst [vmem:[#allocation245_spill] sm:$0xff] %v11301_v8 }
 0x768   : > { %5799 = vmatmul.bf16.gmra.mxu2 %v10310_v61  ;;  %v11308_v41 = vpop.f32.mrf.mxu3  ;;  %v12704_v61 = vld [vmem:[#allocation18_spill] sm:$0xff] }
 0x769   : > { %v4923_v8 = vadd.f32 %v10586_v1, %v12704_v61 }
 0x76b   : > { %v5244_v54 = vpop.f32.mrf.mxu2 }
 0x76c   : > { %v11306_v47 = vadd.f32 %v5244_v54, %v5076_v7  ;;  %v12705_v54 = vld [vmem:[#allocation262_spill] sm:$0xff] }
 0x76d   : > { %6013 = vmatmul.bf16.gmra.mxu3 %v9380_v52  ;;  %v5092_v7 = vadd.f32 %v12705_v54, %v4923_v8  ;;  %v12707_v52 = vld [vmem:[#allocation7_spill] sm:$0xff]  ;;  %v12711_v8 = vld [vmem:[#allocation264_spill] sm:$0xff] }
 0x76e   : > { %12701 = vst [vmem:[#allocation249_spill] sm:$0xff] %v11306_v47  ;;  %v12706_v47 = vld [vmem:[#allocation49_spill] sm:$0xff]  ;;  %v12713_v54 = vld [vmem:[#allocation211_spill] sm:$0xff] }
 0x76f   : > { %v5428_v22 = vadd.f32 %v12706_v47, %v5259_v19  ;;  %v5261_v5 = vadd.f32 %v12707_v52, %v5092_v7 }
 0x770   : > { %v11321_v44 = vpop.f32.mrf.mxu3 }
 0x771   : > { %v5597_v31 = vadd.f32 %v12708_v51, %v5428_v22  ;;  %v12714_v51 = vld [vmem:[#allocation84_spill] sm:$0xff] }
 0x773   : > { %v5246_v15 = vpop.f32.mrf.mxu2 }
 0x774   : > { %v11317_v9 = vadd.f32 %v5246_v15, %v5078_v18  ;;  %v12710_v15 = vld [vmem:[#allocation50_spill] sm:$0xff] }
 0x775   : > { %v5430_v61 = vadd.f32 %v12710_v15, %v5261_v5  ;;  %v12716_v5 = vld [vmem:[#allocation269_spill] sm:$0xff] }
 0x778   : > { %5804 = vmatmul.bf16.gmra.mxu2 %v10362_v17  ;;  %v11333_v19 = vpop.f32.mrf.mxu3  ;;  %v12712_v17 = vld [vmem:[#allocation19_spill] sm:$0xff] }
 0x779   : > { %v5264_v7 = vadd.f32 %v12713_v54, %v12712_v17 }
 0x77b   : > { %v5765_v20 = vpop.f32.mrf.mxu2 }
 0x77c   : > { %v5766_v25 = vadd.f32 %v5765_v20, %v5597_v31  ;;  %v5599_v31 = vadd.f32 %v12714_v51, %v5430_v61  ;;  %v12715_v20 = vld [vmem:[#allocation21_spill] sm:$0xff]  ;;  %v12719_v61 = vld [vmem:[#allocation39_spill] sm:$0xff] }
 0x77d   : > { %6018 = vmatmul.bf16.gmra.mxu3 %v12709_v38  ;;  %v4928_v38 = vadd.f32 %v10586_v1, %v12715_v20 }
 0x77e   : > { %v5935_v18 = vadd.f32 %v11192_v39, %v5766_v25 }
 0x77f   : > { %v5097_v15 = vadd.f32 %v12716_v5, %v4928_v38  ;;  %v12723_v5 = vld [vmem:[#allocation217_spill] sm:$0xff] }
 0x780   : > { %v6104_v47 = vadd.f32 %v12711_v8, %v5935_v18  ;;  %v12717_v8 = vld [vmem:[#allocation53_spill] sm:$0xff] }
 0x781   : > { %v5433_v17 = vadd.f32 %v12717_v8, %v5264_v7  ;;  %v5266_v54 = vadd.f32 %v12719_v61, %v5097_v15  ;;  %v12721_v7 = vld [vmem:[#allocation56_spill] sm:$0xff] }
 0x782   : > { %v6273_v22 = vadd.f32 %v10671_v40, %v6104_v47  ;;  %v12718_v40 = vld [vmem:[#allocation267_spill] sm:$0xff] }
 0x783   : > { %v5767_v52 = vpop.f32.mrf.mxu2 }
 0x784   : > { %v6432_v39 = vmax.f32 %v6273_v22, 0.0  ;;  %v5768_v25 = vadd.f32 %v5767_v52, %v5599_v31  ;;  %v12720_v22 = vld [vmem:[#allocation86_spill] sm:$0xff]  ;;  %v11352_v31 = vpop.f32.mrf.mxu3 }
 0x785   : > { %v5602_v51 = vadd.f32 %v12720_v22, %v5433_v17  ;;  %v12727_v22 = vld [vmem:[#allocation59_spill] sm:$0xff] }
 0x786   : > { %6496 = vst [vmem:[%s11342_s28] sm:$0xff] %v6432_v39  ;;  %v5937_v18 = vadd.f32 %v11199_v58, %v5768_v25  ;;  %v5435_v39 = vadd.f32 %v12721_v7, %v5266_v54 }
 0x788   : > { %v6106_v47 = vadd.f32 %v12718_v40, %v5937_v18  ;;  %5809 = vmatmul.bf16.gmra.mxu2 %v10407_v43  ;;  %v12722_v43 = vld [vmem:[#allocation271_spill] sm:$0xff]  ;;  %v12724_v18 = vld [vmem:[#allocation89_spill] sm:$0xff] }
 0x789   : > { %v5604_v8 = vadd.f32 %v12724_v18, %v5435_v39  ;;  %v11366_v40 = vld [vmem:[%s12003_s5] ss:$0 sm:$0xff]  ;;  %v12731_v18 = vld [vmem:[#allocation99_spill] sm:$0xff] }
 0x78a   : > { %v6275_v1 = vadd.f32 %v10690_v56, %v6106_v47  ;;  %v5269_v56 = vadd.f32 %v12723_v5, %v10657_v35  ;;  %v12730_v39 = vld [vmem:[#allocation93_spill] sm:$0xff] }
 0x78b   : > { %v5770_v52 = vpop.f32.mrf.mxu2 }
 0x78c   : > { %v6433_v20 = vmax.f32 %v6275_v1, 0.0  ;;  %v5771_v38 = vadd.f32 %v5770_v52, %v5602_v51  ;;  %v11370_v54 = vpop.f32.mrf.mxu3  ;;  %v12726_v1 = vld [vmem:[#allocation275_spill] sm:$0xff]  ;;  %v5438_v51 = vadd.f32 %v12727_v22, %v5269_v56  ;;  %v12728_v52 = vld [vmem:[#allocation273_spill] sm:$0xff]  ;;  %v12732_v56 = vld [vmem:[#allocation62_spill] sm:$0xff] }
 0x78d   : > { %6023 = vmatmul.bf16.gmra.mxu3 %v9546_v24  ;;  %v12725_v24 = vld [vmem:[#allocation24_spill] sm:$0xff]  ;;  %v12737_v22 = vld [vmem:[#allocation26_spill] sm:$0xff] }
 0x78e   : > { %6497 = vst [vmem:[%s11342_s28 + $0x8] sm:$0xff] %v6433_v20  ;;  %v5940_v58 = vadd.f32 %v11212_v4, %v5771_v38  ;;  %v4933_v4 = vadd.f32 %v11366_v40, %v12725_v24  ;;  %v12729_v38 = vld [vmem:[#allocation221_spill] sm:$0xff] }
 0x790   : > { %v6109_v25 = vadd.f32 %v12722_v43, %v5940_v58  ;;  %v5102_v35 = vadd.f32 %v12726_v1, %v4933_v4  ;;  %v5607_v43 = vadd.f32 %v12730_v39, %v5438_v51  ;;  %v12734_v4 = vld [vmem:[#allocation25_spill] sm:$0xff]  ;;  %v12736_v1 = vld [vmem:[#allocation96_spill] sm:$0xff]  ;;  %v4938_v51 = vadd.f32 %v11366_v40, %v12737_v22 }
 0x791   : > { %v12748_v22 = vld [vmem:[#allocation101_spill] sm:$0xff] }
 0x792   : > { %v6278_v15 = vadd.f32 %v10698_v10, %v6109_v25  ;;  %v5271_v58 = vadd.f32 %v12729_v38, %v5102_v35 }
 0x793   : > { %v5772_v17 = vpop.f32.mrf.mxu2 }
 0x794   : > { %v6434_v47 = vmax.f32 %v6278_v15, 0.0  ;;  %v5773_v61 = vadd.f32 %v5772_v17, %v5604_v8  ;;  %v5440_v8 = vadd.f32 %v12732_v56, %v5271_v58  ;;  %v11385_v17 = vpop.f32.mrf.mxu3 }
 0x796   : > { %6498 = vst [vmem:[%s11342_s28 + $0x10] sm:$0xff] %v6434_v47  ;;  %v5942_v10 = vadd.f32 %v11221_v6, %v5773_v61  ;;  %v12735_v47 = vld [vmem:[#allocation222_spill] sm:$0xff]  ;;  %v5609_v35 = vadd.f32 %v12736_v1, %v5440_v8  ;;  %v12746_v1 = vld [vmem:[#allocation27_spill] sm:$0xff] }
 0x798   : > { %v6111_v20 = vadd.f32 %v12728_v52, %v5942_v10  ;;  %5814 = vmatmul.bf16.gmra.mxu2 %v10446_v48  ;;  %v12733_v48 = vld [vmem:[#allocation276_spill] sm:$0xff] }
 0x79a   : > { %v6280_v7 = vadd.f32 %v10717_v63, %v6111_v20  ;;  %v5274_v63 = vadd.f32 %v12735_v47, %v12734_v4  ;;  %v12738_v20 = vld [vmem:[#allocation281_spill] sm:$0xff]  ;;  %v12743_v4 = vld [vmem:[#allocation108_spill] sm:$0xff]  ;;  %v12744_v47 = vld [vmem:[#allocation67_spill] sm:$0xff] }
 0x79b   : > { %v5775_v25 = vpop.f32.mrf.mxu2  ;;  %v5107_v38 = vadd.f32 %v12738_v20, %v4938_v51  ;;  %v12749_v20 = vld [vmem:[#allocation28_spill] sm:$0xff] }
 0x79c   : > { %v6435_v5 = vmax.f32 %v6280_v7, 0.0  ;;  %v5776_v15 = vadd.f32 %v5775_v25, %v5607_v43  ;;  %v12739_v7 = vld [vmem:[#allocation65_spill] sm:$0xff]  ;;  %v12740_v43 = vld [vmem:[#allocation279_spill] sm:$0xff] }
 0x79d   : > { %6028 = vmatmul.bf16.gmra.mxu3 %v12731_v18  ;;  %v5443_v39 = vadd.f32 %v12739_v7, %v5274_v63  ;;  %v12750_v7 = vld [vmem:[#allocation287_spill] sm:$0xff] }
 0x79e   : > { %6499 = vst [vmem:[%s11342_s28 + $0x18] sm:$0xff] %v6435_v5  ;;  %v5945_v6 = vadd.f32 %v11234_v33, %v5776_v15  ;;  %v12741_v5 = vld [vmem:[#allocation225_spill] sm:$0xff] }
 0x79f   : > { %v5276_v15 = vadd.f32 %v12741_v5, %v5107_v38  ;;  %v4943_v38 = vadd.f32 %v11366_v40, %v12749_v20 }
 0x7a0   : > { %v6114_v24 = vadd.f32 %v12733_v48, %v5945_v6  ;;  %v12742_v6 = vld [vmem:[#allocation98_spill] sm:$0xff] }
 0x7a1   : > { %v5612_v56 = vadd.f32 %v12742_v6, %v5443_v39  ;;  %v5445_v63 = vadd.f32 %v12744_v47, %v5276_v15  ;;  %v5112_v39 = vadd.f32 %v12750_v7, %v4943_v38  ;;  %v12752_v15 = vld [vmem:[#allocation285_spill] sm:$0xff]  ;;  %v12754_v6 = vld [vmem:[#allocation230_spill] sm:$0xff] }
 0x7a2   : > { %v6283_v61 = vadd.f32 %v10725_v36, %v6114_v24  ;;  %v11400_v36 = vpop.f32.mrf.mxu3 }
 0x7a3   : > { %v5777_v10 = vpop.f32.mrf.mxu2  ;;  %v5614_v51 = vadd.f32 %v12748_v22, %v5445_v63  ;;  %v12760_v22 = vld [vmem:[#allocation234_spill] sm:$0xff] }
 0x7a4   : > { %v6436_v52 = vmax.f32 %v6283_v61, 0.0  ;;  %v5778_v33 = vadd.f32 %v5777_v10, %v5609_v35  ;;  %v12747_v35 = vld [vmem:[#allocation227_spill] sm:$0xff] }
 0x7a5   : > { %v5279_v10 = vadd.f32 %v12747_v35, %v12746_v1  ;;  %v12758_v35 = vld [vmem:[#allocation288_spill] sm:$0xff] }
 0x7a6   : > { %6500 = vst [vmem:[%s11342_s28 + $0x20] sm:$0xff] %v6436_v52  ;;  %v5947_v58 = vadd.f32 %v11239_v60, %v5778_v33 }
 0x7a8   : > { %v6116_v25 = vadd.f32 %v12740_v43, %v5947_v58  ;;  %5819 = vmatmul.bf16.gmra.mxu2 %v10469_v62  ;;  %v12745_v62 = vld [vmem:[#allocation282_spill] sm:$0xff] }
 0x7aa   : > { %v6285_v18 = vadd.f32 %v10744_v21, %v6116_v25  ;;  %v11414_v52 = vpop.f32.mrf.mxu3  ;;  %v12751_v25 = vld [vmem:[#allocation69_spill] sm:$0xff] }
 0x7ab   : > { %v5780_v8 = vpop.f32.mrf.mxu2  ;;  %v5448_v5 = vadd.f32 %v12751_v25, %v5279_v10 }
 0x7ac   : > { %v6437_v48 = vmax.f32 %v6285_v18, 0.0  ;;  %v5781_v24 = vadd.f32 %v5780_v8, %v5612_v56  ;;  %v12753_v18 = vld [vmem:[#allocation57_spill] sm:$0xff]  ;;  %v5281_v56 = vadd.f32 %v12754_v6, %v5112_v39  ;;  %v12766_v6 = vld [vmem:[#allocation238_spill] sm:$0xff] }
 0x7ad   : > { %6033 = vmatmul.bf16.gmra.mxu3 %v12743_v4 }
 0x7ae   : > { %6501 = vst [vmem:[%s11342_s28 + $0x28] sm:$0xff] %v6437_v48  ;;  %v5950_v60 = vadd.f32 %v11249_v26, %v5781_v24  ;;  %v12755_v48 = vld [vmem:[#allocation103_spill] sm:$0xff] }
 0x7af   : > { %v5617_v24 = vadd.f32 %v12755_v48, %v5448_v5  ;;  %v12764_v5 = vld [vmem:[#allocation75_spill] sm:$0xff] }
 0x7b0   : > { %v6119_v61 = vadd.f32 %v12745_v62, %v5950_v60  ;;  %v12756_v62 = vld [vmem:[#allocation116_spill] sm:$0xff]  ;;  %v12767_v48 = vld [vmem:[#allocation107_spill] sm:$0xff] }
 0x7b2   : > { %v6288_v21 = vadd.f32 %v10752_v3, %v6119_v61  ;;  %v11427_v63 = vpop.f32.mrf.mxu3  ;;  %v12757_v61 = vld [vmem:[#allocation72_spill] sm:$0xff] }
 0x7b3   : > { %v5782_v33 = vpop.f32.mrf.mxu2  ;;  %v5450_v1 = vadd.f32 %v12757_v61, %v5281_v56  ;;  %v12769_v61 = vld [vmem:[#allocation294_spill] sm:$0xff] }
 0x7b4   : > { %v6438_v58 = vmax.f32 %v6288_v21, 0.0  ;;  %v5783_v26 = vadd.f32 %v5782_v33, %v5614_v51  ;;  %v12759_v21 = vld [vmem:[#allocation29_spill] sm:$0xff] }
 0x7b5   : > { %v12761_v33 = vld [vmem:[#allocation105_spill] sm:$0xff] }
 0x7b6   : > { %6502 = vst [vmem:[%s11342_s28 + $0x30] sm:$0xff] %v6438_v58  ;;  %v5952_v43 = vadd.f32 %v11254_v13, %v5783_v26  ;;  %v5619_v20 = vadd.f32 %v12761_v33, %v5450_v1  ;;  %v12762_v58 = vld [vmem:[#allocation30_spill] sm:$0xff] }
 0x7b7   : > { %v4948_v26 = vadd.f32 %v11366_v40, %v12762_v58  ;;  %v12775_v58 = vld [vmem:[#allocation299_spill] sm:$0xff] }
 0x7b8   : > { %v6121_v3 = vadd.f32 %v12752_v15, %v5952_v43  ;;  %5824 = vmatmul.bf16.gmra.mxu2 %v12753_v18  ;;  %v12763_v43 = vld [vmem:[#allocation293_spill] sm:$0xff]  ;;  %v12765_v18 = vld [vmem:[#allocation291_spill] sm:$0xff] }
 0x7ba   : > { %v6290_v8 = vadd.f32 %v10777_v32, %v6121_v3  ;;  %v5284_v32 = vadd.f32 %v12760_v22, %v12759_v21  ;;  %v11444_v3 = vpop.f32.mrf.mxu3  ;;  %v12772_v21 = vld [vmem:[#allocation306_spill] sm:$0xff] }
 0x7bb   : > { %v5785_v4 = vpop.f32.mrf.mxu2 }
 0x7bc   : > { %v6439_v60 = vmax.f32 %v6290_v8, 0.0  ;;  %v5786_v47 = vadd.f32 %v5785_v4, %v5617_v24  ;;  %v5453_v15 = vadd.f32 %v12764_v5, %v5284_v32  ;;  %v12773_v32 = vld [vmem:[#allocation110_spill] sm:$0xff]  ;;  %v12778_v5 = vld [vmem:[#allocation68_spill] sm:$0xff] }
 0x7bd   : > { %6038 = vmatmul.bf16.gmra.mxu3 %v12756_v62  ;;  %v12768_v62 = vld [vmem:[#allocation78_spill] sm:$0xff] }
 0x7be   : > { %6503 = vst [vmem:[%s11342_s28 + $0x38] sm:$0xff] %v6439_v60  ;;  %v5955_v13 = vadd.f32 %v11261_v49, %v5786_v47  ;;  %v5117_v49 = vadd.f32 %v12763_v43, %v4948_v26  ;;  %v5622_v24 = vadd.f32 %v12767_v48, %v5453_v15  ;;  %v12779_v15 = vld [vmem:[#allocation244_spill] sm:$0xff] }
 0x7c0   : > { %v6124_v10 = vadd.f32 %v12758_v35, %v5955_v13  ;;  %v5286_v56 = vadd.f32 %v12766_v6, %v5117_v49  ;;  %v12770_v35 = vld [vmem:[#allocation31_spill] sm:$0xff]  ;;  %v12777_v49 = vld [vmem:[#allocation298_spill] sm:$0xff] }
 0x7c2   : > { %v6293_v51 = vadd.f32 %v10785_v27, %v6124_v10  ;;  %v5455_v13 = vadd.f32 %v12768_v62, %v5286_v56  ;;  %v12771_v10 = vld [vmem:[#allocation240_spill] sm:$0xff] }
 0x7c3   : > { %v5787_v38 = vpop.f32.mrf.mxu2  ;;  %v12781_v56 = vld [vmem:[#allocation112_spill] sm:$0xff] }
 0x7c4   : > { %v6440_v7 = vmax.f32 %v6293_v51, 0.0  ;;  %v5788_v39 = vadd.f32 %v5787_v38, %v5619_v20  ;;  %v5624_v51 = vadd.f32 %v12773_v32, %v5455_v13  ;;  %v12774_v20 = vld [vmem:[#allocation32_spill] sm:$0xff]  ;;  %v12784_v13 = vld [vmem:[#allocation33_spill] sm:$0xff] }
 0x7c6   : > { %6504 = vst [vmem:[%s11342_s28 + $0x40] sm:$0xff] %v6440_v7  ;;  %v5957_v25 = vadd.f32 %v11266_v14, %v5788_v39  ;;  %v12776_v39 = vld [vmem:[#allocation82_spill] sm:$0xff] }
 0x7c8   : > { %v6126_v27 = vadd.f32 %v12765_v18, %v5957_v25  ;;  %5829 = vmatmul.bf16.gmra.mxu2 %v10519_v30  ;;  %v11456_v30 = vpop.f32.mrf.mxu3 }
 0x7ca   : > { %v6295_v8 = vadd.f32 %v10804_v34, %v6126_v27  ;;  %v5289_v34 = vadd.f32 %v12771_v10, %v12770_v35  ;;  %v12780_v27 = vld [vmem:[#allocation311_spill] sm:$0xff]  ;;  %v12786_v35 = vld [vmem:[#allocation248_spill] sm:$0xff] }
 0x7cb   : > { %v5790_v4 = vpop.f32.mrf.mxu2 }
 0x7cc   : > { %v6441_v60 = vmax.f32 %v6295_v8, 0.0  ;;  %v5791_v47 = vadd.f32 %v5790_v4, %v5622_v24  ;;  %v5458_v43 = vadd.f32 %v12776_v39, %v5289_v34  ;;  %v12787_v34 = vld [vmem:[#allocation40_spill] sm:$0xff] }
 0x7cd   : > { %6043 = vmatmul.bf16.gmra.mxu3 %v9821_v55  ;;  %v4953_v55 = vadd.f32 %v11366_v40, %v12774_v20 }
 0x7ce   : > { %6505 = vst [vmem:[%s11342_s28 + $0x48] sm:$0xff] %v6441_v60  ;;  %v5960_v14 = vadd.f32 %v11273_v50, %v5791_v47  ;;  %v5627_v8 = vadd.f32 %v12781_v56, %v5458_v43  ;;  %v12782_v47 = vld [vmem:[#allocation130_spill] sm:$0xff]  ;;  %v12792_v43 = vld [vmem:[#allocation305_spill] sm:$0xff] }
 0x7cf   : > { %v5122_v26 = vadd.f32 %v12775_v58, %v4953_v55 }
 0x7d0   : > { %v6129_v1 = vadd.f32 %v12769_v61, %v5960_v14  ;;  %v11473_v48 = vpop.f32.mrf.mxu3  ;;  %v12783_v14 = vld [vmem:[#allocation85_spill] sm:$0xff] }
 0x7d1   : > { %v5291_v18 = vadd.f32 %v12779_v15, %v5122_v26 }
 0x7d2   : > { %v6298_v22 = vadd.f32 %v12772_v21, %v6129_v1  ;;  %v12785_v1 = vld [vmem:[#allocation301_spill] sm:$0xff] }
 0x7d3   : > { %v5792_v33 = vpop.f32.mrf.mxu2  ;;  %v5460_v62 = vadd.f32 %v12783_v14, %v5291_v18  ;;  %v5294_v10 = vadd.f32 %v12786_v35, %v12785_v1  ;;  %v12795_v18 = vld [vmem:[#allocation316_spill] sm:$0xff]  ;;  %v12801_v1 = vld [vmem:[#allocation255_spill] sm:$0xff] }
 0x7d4   : > { %v6442_v38 = vmax.f32 %v6298_v22, 0.0  ;;  %v5793_v50 = vadd.f32 %v5792_v33, %v5624_v51  ;;  %v12788_v22 = vld [vmem:[#allocation114_spill] sm:$0xff] }
 0x7d5   : > { %v5629_v32 = vadd.f32 %v12788_v22, %v5460_v62  ;;  %v12789_v33 = vld [vmem:[#allocation34_spill] sm:$0xff]  ;;  %v12799_v62 = vld [vmem:[#allocation309_spill] sm:$0xff] }
 0x7d6   : > { %6506 = vst [vmem:[%s11342_s28 + $0x50] sm:$0xff] %v6442_v38  ;;  %v5962_v7 = vadd.f32 %v11278_v53, %v5793_v50  ;;  %v4958_v20 = vadd.f32 %v11366_v40, %v12789_v33 }
 0x7d8   : > { %v6131_v25 = vadd.f32 %v12777_v49, %v5962_v7  ;;  %5834 = vmatmul.bf16.gmra.mxu2 %v12778_v5  ;;  %v11486_v50 = vpop.f32.mrf.mxu3  ;;  %v12791_v7 = vld [vmem:[#allocation88_spill] sm:$0xff] }
 0x7d9   : > { %v5463_v39 = vadd.f32 %v12791_v7, %v5294_v10  ;;  %v12794_v5 = vld [vmem:[#allocation252_spill] sm:$0xff] }
 0x7da   : > { %v6300_v6 = vadd.f32 %v12780_v27, %v6131_v25  ;;  %v12793_v25 = vld [vmem:[#allocation115_spill] sm:$0xff] }
 0x7db   : > { %v5795_v24 = vpop.f32.mrf.mxu2 }
 0x7dc   : > { %v6443_v4 = vmax.f32 %v6300_v6, 0.0  ;;  %v5796_v60 = vadd.f32 %v5795_v24, %v5627_v8  ;;  %v12796_v6 = vld [vmem:[#allocation118_spill] sm:$0xff] }
 0x7dd   : > { %6048 = vmatmul.bf16.gmra.mxu3 %v12782_v47  ;;  %v5632_v56 = vadd.f32 %v12796_v6, %v5463_v39  ;;  %v12798_v47 = vld [vmem:[#allocation92_spill] sm:$0xff]  ;;  %v12807_v39 = vld [vmem:[#allocation17_spill] sm:$0xff] }
 0x7de   : > { %6507 = vst [vmem:[%s11342_s28 + $0x58] sm:$0xff] %v6443_v4  ;;  %v5965_v53 = vadd.f32 %v11285_v42, %v5796_v60  ;;  %v12790_v42 = vld [vmem:[#allocation304_spill] sm:$0xff]  ;;  %v12797_v60 = vld [vmem:[#allocation142_spill] sm:$0xff] }
 0x7df   : > { %v5127_v58 = vadd.f32 %v12790_v42, %v4958_v20  ;;  %v12804_v20 = vld [vmem:[#allocation312_spill] sm:$0xff]  ;;  %v12805_v42 = vld [vmem:[#allocation95_spill] sm:$0xff] }
 0x7e0   : > { %v6134_v61 = vadd.f32 %v12784_v13, %v5965_v53  ;;  %v11501_v14 = vpop.f32.mrf.mxu3 }
 0x7e1   : > { %v5296_v15 = vadd.f32 %v12794_v5, %v5127_v58  ;;  %v12809_v5 = vld [vmem:[#allocation121_spill] sm:$0xff] }
 0x7e2   : > { %v6303_v21 = vadd.f32 %v12787_v34, %v6134_v61  ;;  %v12800_v61 = vld [vmem:[#allocation35_spill] sm:$0xff]  ;;  %v12802_v34 = vld [vmem:[#allocation120_spill] sm:$0xff] }
 0x7e3   : > { %v5797_v51 = vpop.f32.mrf.mxu2  ;;  %v5465_v53 = vadd.f32 %v12798_v47, %v5296_v15  ;;  %v5299_v35 = vadd.f32 %v12801_v1, %v12800_v61  ;;  %v12814_v47 = vld [vmem:[#allocation261_spill] sm:$0xff] }
 0x7e4   : > { %v6444_v55 = vmax.f32 %v6303_v21, 0.0  ;;  %v5798_v38 = vadd.f32 %v5797_v51, %v5629_v32  ;;  %v12803_v32 = vld [vmem:[#allocation38_spill] sm:$0xff] }
 0x7e5   : > { %v5634_v21 = vadd.f32 %v12802_v34, %v5465_v53  ;;  %v4963_v51 = vadd.f32 %v11366_v40, %v12803_v32  ;;  %v5468_v58 = vadd.f32 %v12805_v42, %v5299_v35  ;;  %v12822_v42 = vld [vmem:[#allocation265_spill] sm:$0xff] }
 0x7e6   : > { %6508 = vst [vmem:[%s11342_s28 + $0x60] sm:$0xff] %v6444_v55  ;;  %v5967_v26 = vadd.f32 %v11290_v28, %v5798_v38 }
 0x7e7   : > { %v5132_v55 = vadd.f32 %v12804_v20, %v4963_v51  ;;  %v5637_v15 = vadd.f32 %v12809_v5, %v5468_v58  ;;  %v12820_v20 = vld [vmem:[#allocation318_spill] sm:$0xff] }
 0x7e8   : > { %v6136_v49 = vadd.f32 %v12792_v43, %v5967_v26  ;;  %5839 = vmatmul.bf16.gmra.mxu2 %v12793_v25  ;;  %v12806_v26 = vld [vmem:[#allocation123_spill] sm:$0xff] }
 0x7e9   : > { %v12808_v43 = vld [vmem:[#allocation259_spill] sm:$0xff] }
 0x7ea   : > { %v6305_v27 = vadd.f32 %v12795_v18, %v6136_v49  ;;  %v5301_v49 = vadd.f32 %v12808_v43, %v5132_v55 }
 0x7eb   : > { %v5800_v8 = vpop.f32.mrf.mxu2 }
 0x7ec   : > { %v6445_v24 = vmax.f32 %v6305_v27, 0.0  ;;  %v5801_v4 = vadd.f32 %v5800_v8, %v5632_v56  ;;  %v12810_v56 = vld [vmem:[#allocation37_spill] sm:$0xff] }
 0x7ed   : > { %6053 = vmatmul.bf16.gmra.mxu3 %v12797_v60  ;;  %v12811_v8 = vld [vmem:[#allocation97_spill] sm:$0xff] }
 0x7ee   : > { %6509 = vst [vmem:[%s11342_s28 + $0x68] sm:$0xff] %v6445_v24  ;;  %v5970_v28 = vadd.f32 %v11299_v23, %v5801_v4  ;;  %v5470_v24 = vadd.f32 %v12811_v8, %v5301_v49  ;;  %v12812_v4 = vld [vmem:[#allocation315_spill] sm:$0xff]  ;;  %v12828_v8 = vld [vmem:[#allocation268_spill] sm:$0xff] }
 0x7f0   : > { %v6139_v13 = vadd.f32 %v12799_v62, %v5970_v28  ;;  %v12813_v28 = vld [vmem:[#allocation127_spill] sm:$0xff]  ;;  %v12815_v62 = vld [vmem:[#allocation324_spill] sm:$0xff] }
 0x7f1   : > { %v5304_v53 = vadd.f32 %v12814_v47, %v12813_v28  ;;  %v12830_v47 = vld [vmem:[#allocation46_spill] sm:$0xff] }
 0x7f2   : > { %v6308_v10 = vadd.f32 %v10892_v59, %v6139_v13  ;;  %v11516_v59 = vpop.f32.mrf.mxu3  ;;  %v12816_v13 = vld [vmem:[#allocation124_spill] sm:$0xff] }
 0x7f3   : > { %v5802_v22 = vpop.f32.mrf.mxu2  ;;  %v5639_v61 = vadd.f32 %v12816_v13, %v5470_v24  ;;  %v12831_v13 = vld [vmem:[#allocation320_spill] sm:$0xff] }
 0x7f4   : > { %v6446_v33 = vmax.f32 %v6308_v10, 0.0  ;;  %v5803_v23 = vadd.f32 %v5802_v22, %v5634_v21  ;;  %v12817_v10 = vld [vmem:[#allocation42_spill] sm:$0xff] }
 0x7f5   : > { %v4968_v34 = vadd.f32 %v11366_v40, %v12817_v10  ;;  %v12818_v22 = vld [vmem:[#allocation314_spill] sm:$0xff] }
 0x7f6   : > { %6510 = vst [vmem:[%s11342_s28 + $0x70] sm:$0xff] %v6446_v33  ;;  %v5972_v38 = vadd.f32 %v11308_v41, %v5803_v23  ;;  %v12819_v33 = vld [vmem:[#allocation100_spill] sm:$0xff] }
 0x7f7   : > { %v5137_v32 = vadd.f32 %v12818_v22, %v4968_v34  ;;  %v5473_v23 = vadd.f32 %v12819_v33, %v5304_v53  ;;  %v4973_v53 = vadd.f32 %v11366_v40, %v12830_v47  ;;  %v12835_v22 = vld [vmem:[#allocation272_spill] sm:$0xff] }
 0x7f8   : > { %v6141_v7 = vadd.f32 %v12806_v26, %v5972_v38  ;;  %5844 = vmatmul.bf16.gmra.mxu2 %v12807_v39  ;;  %v12821_v38 = vld [vmem:[#allocation87_spill] sm:$0xff]  ;;  %v12836_v33 = vld [vmem:[#allocation132_spill] sm:$0xff] }
 0x7f9   : > { %v5306_v58 = vadd.f32 %v12822_v42, %v5137_v32  ;;  %v12837_v42 = vld [vmem:[#allocation171_spill] sm:$0xff] }
 0x7fa   : > { %v6310_v25 = vadd.f32 %v10904_v45, %v6141_v7  ;;  %v11530_v1 = vpop.f32.mrf.mxu3  ;;  %v12823_v7 = vld [vmem:[#allocation126_spill] sm:$0xff] }
 0x7fb   : > { %v5805_v18 = vpop.f32.mrf.mxu2  ;;  %v5642_v39 = vadd.f32 %v12823_v7, %v5473_v23  ;;  %v12839_v7 = vld [vmem:[#allocation54_spill] sm:$0xff] }
 0x7fc   : > { %v6447_v27 = vmax.f32 %v6310_v25, 0.0  ;;  %v5806_v6 = vadd.f32 %v5805_v18, %v5637_v15  ;;  %v12824_v15 = vld [vmem:[#allocation161_spill] sm:$0xff]  ;;  %v12825_v18 = vld [vmem:[#allocation102_spill] sm:$0xff] }
 0x7fd   : > { %6058 = vmatmul.bf16.gmra.mxu3 %v12810_v56 }
 0x7fe   : > { %6511 = vst [vmem:[%s11342_s28 + $0x78] sm:$0xff] %v6447_v27  ;;  %v5975_v41 = vadd.f32 %v11321_v44, %v5806_v6  ;;  %v5475_v27 = vadd.f32 %v12825_v18, %v5306_v58  ;;  %v12826_v6 = vld [vmem:[#allocation321_spill] sm:$0xff]  ;;  %v12838_v58 = vld [vmem:[#allocation106_spill] sm:$0xff] }
 0x800   : > { %v6144_v60 = vadd.f32 %v12812_v4, %v5975_v41  ;;  %v12827_v41 = vld [vmem:[#allocation44_spill] sm:$0xff]  ;;  %v12829_v4 = vld [vmem:[#allocation129_spill] sm:$0xff] }
 0x802   : > { %v6313_v45 = vadd.f32 %v12815_v62, %v6144_v60  ;;  %v11543_v5 = vpop.f32.mrf.mxu3  ;;  %v5644_v60 = vadd.f32 %v12829_v4, %v5475_v27  ;;  %v12845_v4 = vld [vmem:[#allocation109_spill] sm:$0xff] }
 0x803   : > { %v5807_v35 = vpop.f32.mrf.mxu2 }
 0x804   : > { %v6448_v21 = vmax.f32 %v6313_v45, 0.0  ;;  %v5808_v44 = vadd.f32 %v5807_v35, %v5639_v61  ;;  %v12832_v35 = vld [vmem:[#allocation104_spill] sm:$0xff] }
 0x806   : > { %6512 = vst [vmem:[%s11342_s28 + $0x80] sm:$0xff] %v6448_v21  ;;  %v5977_v51 = vadd.f32 %v11333_v19, %v5808_v44  ;;  %v12833_v21 = vld [vmem:[#allocation323_spill] sm:$0xff]  ;;  %v12834_v44 = vld [vmem:[#allocation22_spill] sm:$0xff] }
 0x808   : > { %v6146_v55 = vadd.f32 %v12820_v20, %v5977_v51  ;;  %5849 = vmatmul.bf16.gmra.mxu2 %v12821_v38 }
 0x80a   : > { %v6315_v26 = vadd.f32 %v10941_v46, %v6146_v55  ;;  %v5309_v46 = vadd.f32 %v12828_v8, %v12827_v41  ;;  %v11560_v34 = vpop.f32.mrf.mxu3  ;;  %v12844_v8 = vld [vmem:[#allocation325_spill] sm:$0xff] }
 0x80b   : > { %v5810_v43 = vpop.f32.mrf.mxu2 }
 0x80c   : > { %v6449_v49 = vmax.f32 %v6315_v26, 0.0  ;;  %v5811_v25 = vadd.f32 %v5810_v43, %v5642_v39  ;;  %v5478_v10 = vadd.f32 %v12832_v35, %v5309_v46 }
 0x80d   : > { %6063 = vmatmul.bf16.gmra.mxu3 %v12824_v15 }
 0x80e   : > { %6513 = vst [vmem:[%s11342_s28 + $0x88] sm:$0xff] %v6449_v49  ;;  %v5980_v19 = vadd.f32 %v11352_v31, %v5811_v25  ;;  %v5142_v31 = vadd.f32 %v12831_v13, %v4973_v53  ;;  %v5647_v23 = vadd.f32 %v12836_v33, %v5478_v10  ;;  %v12840_v49 = vld [vmem:[#allocation48_spill] sm:$0xff]  ;;  %v12841_v25 = vld [vmem:[#allocation274_spill] sm:$0xff] }
 0x80f   : > { %v12847_v53 = vld [vmem:[#allocation278_spill] sm:$0xff] }
 0x810   : > { %v6149_v56 = vadd.f32 %v12826_v6, %v5980_v19  ;;  %v5311_v32 = vadd.f32 %v12835_v22, %v5142_v31  ;;  %v12842_v19 = vld [vmem:[#allocation134_spill] sm:$0xff]  ;;  %v12843_v6 = vld [vmem:[#allocation51_spill] sm:$0xff]  ;;  %v12850_v31 = vld [vmem:[#allocation136_spill] sm:$0xff] }
 0x811   : > { %v12852_v22 = vld [vmem:[#allocation111_spill] sm:$0xff] }
 0x812   : > { %v6318_v24 = vadd.f32 %v10953_v37, %v6149_v56  ;;  %v5480_v26 = vadd.f32 %v12838_v58, %v5311_v32  ;;  %v11572_v43 = vpop.f32.mrf.mxu3  ;;  %v4978_v56 = vadd.f32 %v11366_v40, %v12843_v6  ;;  %v12861_v6 = vld [vmem:[#allocation284_spill] sm:$0xff] }
 0x813   : > { %v5812_v28 = vpop.f32.mrf.mxu2 }
 0x814   : > { %v6450_v62 = vmax.f32 %v6318_v24, 0.0  ;;  %v5813_v45 = vadd.f32 %v5812_v28, %v5644_v60  ;;  %v5649_v18 = vadd.f32 %v12842_v19, %v5480_v26  ;;  %v5147_v46 = vadd.f32 %v12844_v8, %v4978_v56  ;;  %v12846_v28 = vld [vmem:[#allocation329_spill] sm:$0xff]  ;;  %v12857_v26 = vld [vmem:[#allocation58_spill] sm:$0xff]  ;;  %v12862_v56 = vld [vmem:[#allocation283_spill] sm:$0xff] }
 0x815   : > { %v12859_v19 = vld [vmem:[#allocation113_spill] sm:$0xff]  ;;  %v12863_v8 = vld [vmem:[#allocation144_spill] sm:$0xff] }
 0x816   : > { %6514 = vst [vmem:[%s11342_s28 + $0x90] sm:$0xff] %v6450_v62  ;;  %v5982_v61 = vadd.f32 %v11370_v54, %v5813_v45  ;;  %v12849_v45 = vld [vmem:[#allocation338_spill] sm:$0xff] }
 0x818   : > { %v6151_v37 = vadd.f32 %v12833_v21, %v5982_v61  ;;  %5854 = vmatmul.bf16.gmra.mxu2 %v12834_v44  ;;  %v12851_v44 = vld [vmem:[#allocation186_spill] sm:$0xff] }
 0x81a   : > { %v6320_v51 = vadd.f32 %v10977_v0, %v6151_v37  ;;  %v5314_v0 = vadd.f32 %v12841_v25, %v12840_v49  ;;  %v11589_v35 = vpop.f32.mrf.mxu3 }
 0x81b   : > { %v5815_v20 = vpop.f32.mrf.mxu2 }
 0x81c   : > { %v6451_v55 = vmax.f32 %v6320_v51, 0.0  ;;  %v5816_v38 = vadd.f32 %v5815_v20, %v5647_v23  ;;  %v5483_v60 = vadd.f32 %v12845_v4, %v5314_v0  ;;  %v12853_v51 = vld [vmem:[#allocation204_spill] sm:$0xff]  ;;  %v12854_v23 = vld [vmem:[#allocation145_spill] sm:$0xff] }
 0x81d   : > { %6068 = vmatmul.bf16.gmra.mxu3 %v12837_v42  ;;  %v12855_v20 = vld [vmem:[#allocation280_spill] sm:$0xff] }
 0x81e   : > { %6515 = vst [vmem:[%s11342_s28 + $0x98] sm:$0xff] %v6451_v55  ;;  %v5985_v54 = vadd.f32 %v11385_v17, %v5816_v38  ;;  %v5652_v61 = vadd.f32 %v12850_v31, %v5483_v60  ;;  %v5319_v55 = vadd.f32 %v12855_v20, %v12854_v23  ;;  %v12856_v42 = vld [vmem:[#allocation140_spill] sm:$0xff]  ;;  %v12868_v31 = vld [vmem:[#allocation286_spill] sm:$0xff]  ;;  %v12872_v23 = vld [vmem:[#allocation119_spill] sm:$0xff] }
 0x820   : > { %v6154_v39 = vadd.f32 %v12839_v7, %v5985_v54  ;;  %v4983_v7 = vadd.f32 %v11366_v40, %v12857_v26 }
 0x822   : > { %v6323_v15 = vadd.f32 %v10995_v12, %v6154_v39  ;;  %v12848_v12 = vld [vmem:[#allocation277_spill] sm:$0xff]  ;;  %v11602_v25 = vpop.f32.mrf.mxu3 }
 0x823   : > { %v5817_v27 = vpop.f32.mrf.mxu2  ;;  %v5316_v62 = vadd.f32 %v12848_v12, %v5147_v46 }
 0x824   : > { %v6452_v41 = vmax.f32 %v6323_v15, 0.0  ;;  %v5818_v17 = vadd.f32 %v5817_v27, %v5649_v18  ;;  %v5488_v18 = vadd.f32 %v12859_v19, %v5319_v55  ;;  %v12860_v27 = vld [vmem:[#allocation66_spill] sm:$0xff]  ;;  %v12873_v55 = vld [vmem:[#allocation164_spill] sm:$0xff] }
 0x825   : > { %v5485_v32 = vadd.f32 %v12852_v22, %v5316_v62  ;;  %v12866_v62 = vld [vmem:[#allocation337_spill] sm:$0xff] }
 0x826   : > { %6516 = vst [vmem:[%s11342_s28 + $0xa0] sm:$0xff] %v6452_v41  ;;  %v5987_v24 = vadd.f32 %v11400_v36, %v5818_v17  ;;  %v5657_v46 = vadd.f32 %v12863_v8, %v5488_v18  ;;  %v12878_v18 = vld [vmem:[#allocation340_spill] sm:$0xff] }
 0x827   : > { %v5654_v54 = vadd.f32 %v12856_v42, %v5485_v32  ;;  %v12871_v32 = vld [vmem:[#allocation332_spill] sm:$0xff]  ;;  %v12874_v42 = vld [vmem:[#allocation290_spill] sm:$0xff] }
 0x828   : > { %v6156_v47 = vadd.f32 %v12846_v28, %v5987_v24  ;;  %5859 = vmatmul.bf16.gmra.mxu2 %v12847_v53  ;;  %v12864_v28 = vld [vmem:[#allocation200_spill] sm:$0xff] }
 0x82a   : > { %v6325_v13 = vadd.f32 %v12849_v45, %v6156_v47  ;;  %v12865_v47 = vld [vmem:[#allocation117_spill] sm:$0xff]  ;;  %v11617_v12 = vpop.f32.mrf.mxu3 }
 0x82b   : > { %v5820_v10 = vpop.f32.mrf.mxu2 }
 0x82c   : > { %v6453_v21 = vmax.f32 %v6325_v13, 0.0  ;;  %v5821_v37 = vadd.f32 %v5820_v10, %v5652_v61  ;;  %v12867_v13 = vld [vmem:[#allocation61_spill] sm:$0xff]  ;;  %v12869_v10 = vld [vmem:[#allocation6_spill] sm:$0xff] }
 0x82d   : > { %6073 = vmatmul.bf16.gmra.mxu3 %v12851_v44  ;;  %v12870_v44 = vld [vmem:[#allocation64_spill] sm:$0xff] }
 0x82e   : > { %6517 = vst [vmem:[%s11342_s28 + $0xa8] sm:$0xff] %v6453_v21  ;;  %v5990_v36 = vadd.f32 %v11414_v52, %v5821_v37  ;;  %v12858_v52 = vld [vmem:[#allocation328_spill] sm:$0xff] }
 0x82f   : > { %v5152_v0 = vadd.f32 %v12858_v52, %v4983_v7  ;;  %v12876_v7 = vld [vmem:[#allocation148_spill] sm:$0xff] }
 0x830   : > { %v6159_v33 = vadd.f32 %v12853_v51, %v5990_v36  ;;  %v4988_v36 = vadd.f32 %v11366_v40, %v12870_v44 }
 0x831   : > { %v5321_v41 = vadd.f32 %v12862_v56, %v5152_v0 }
 0x832   : > { %v6328_v38 = vadd.f32 %v11023_v57, %v6159_v33  ;;  %v5157_v51 = vadd.f32 %v12871_v32, %v4988_v36 }
 0x833   : > { %v5822_v58 = vpop.f32.mrf.mxu2  ;;  %v5490_v53 = vadd.f32 %v12865_v47, %v5321_v41  ;;  %v12881_v41 = vld [vmem:[#allocation346_spill] sm:$0xff] }
 0x834   : > { %v6454_v39 = vmax.f32 %v6328_v38, 0.0  ;;  %v5823_v49 = vadd.f32 %v5822_v58, %v5654_v54  ;;  %v12875_v54 = vld [vmem:[#allocation289_spill] sm:$0xff] }
 0x835   : > { %v5659_v21 = vadd.f32 %v12869_v10, %v5490_v53  ;;  %v5326_v58 = vadd.f32 %v12875_v54, %v5157_v51  ;;  %v12885_v53 = vld [vmem:[#allocation125_spill] sm:$0xff]  ;;  %v12889_v10 = vld [vmem:[#allocation348_spill] sm:$0xff] }
 0x836   : > { %6518 = vst [vmem:[%s11342_s28 + $0xb0] sm:$0xff] %v6454_v39  ;;  %v5992_v15 = vadd.f32 %v11427_v63, %v5823_v49  ;;  %v12891_v51 = vld [vmem:[#allocation5_spill] sm:$0xff] }
 0x838   : > { %v6161_v57 = vadd.f32 %v12860_v27, %v5992_v15  ;;  %5864 = vmatmul.bf16.gmra.mxu2 %v12861_v6  ;;  %v12877_v15 = vld [vmem:[#allocation122_spill] sm:$0xff]  ;;  %v12880_v6 = vld [vmem:[#allocation292_spill] sm:$0xff] }
 0x839   : > { %v5495_v19 = vadd.f32 %v12877_v15, %v5326_v58  ;;  %v12896_v58 = vld [vmem:[#allocation191_spill] sm:$0xff] }
 0x83a   : > { %v6330_v17 = vadd.f32 %v11036_v16, %v6161_v57  ;;  %v5324_v16 = vadd.f32 %v12868_v31, %v12867_v13  ;;  %v12879_v57 = vld [vmem:[#allocation157_spill] sm:$0xff]  ;;  %v12887_v31 = vld [vmem:[#allocation296_spill] sm:$0xff]  ;;  %v12898_v15 = vld [vmem:[#allocation131_spill] sm:$0xff] }
 0x83b   : > { %v5825_v24 = vpop.f32.mrf.mxu2  ;;  %v5329_v56 = vadd.f32 %v12880_v6, %v12879_v57  ;;  %v12901_v57 = vld [vmem:[#allocation76_spill] sm:$0xff] }
 0x83c   : > { %v6455_v4 = vmax.f32 %v6330_v17, 0.0  ;;  %v5826_v60 = vadd.f32 %v5825_v24, %v5657_v46  ;;  %v5493_v20 = vadd.f32 %v12872_v23, %v5324_v16  ;;  %v12882_v17 = vld [vmem:[#allocation153_spill] sm:$0xff]  ;;  %v12888_v16 = vld [vmem:[#allocation295_spill] sm:$0xff]  ;;  %v12902_v6 = vld [vmem:[#allocation300_spill] sm:$0xff] }
 0x83d   : > { %6078 = vmatmul.bf16.gmra.mxu3 %v12864_v28  ;;  %v5664_v8 = vadd.f32 %v12882_v17, %v5495_v19  ;;  %v12884_v28 = vld [vmem:[#allocation336_spill] sm:$0xff]  ;;  %v12899_v19 = vld [vmem:[#allocation345_spill] sm:$0xff]  ;;  %v12904_v17 = vld [vmem:[#allocation163_spill] sm:$0xff] }
 0x83e   : > { %6519 = vst [vmem:[%s11342_s28 + $0xb8] sm:$0xff] %v6455_v4  ;;  %v5995_v63 = vadd.f32 %v11444_v3, %v5826_v60  ;;  %v5662_v39 = vadd.f32 %v12876_v7, %v5493_v20  ;;  %v12883_v4 = vld [vmem:[#allocation70_spill] sm:$0xff]  ;;  %v12893_v20 = vld [vmem:[#allocation147_spill] sm:$0xff] }
 0x83f   : > { %v12897_v7 = vld [vmem:[#allocation159_spill] sm:$0xff] }
 0x840   : > { %v6164_v45 = vadd.f32 %v12866_v62, %v5995_v63  ;;  %v5498_v62 = vadd.f32 %v12885_v53, %v5329_v56  ;;  %v5336_v56 = vadd.f32 %v12902_v6, %v12901_v57  ;;  %v12908_v53 = vld [vmem:[#allocation303_spill] sm:$0xff]  ;;  %v12924_v57 = vld [vmem:[#allocation172_spill] sm:$0xff] }
 0x842   : > { %v6333_v61 = vadd.f32 %v11049_v29, %v6164_v45  ;;  %v11632_v29 = vpop.f32.mrf.mxu3  ;;  %v12886_v45 = vld [vmem:[#allocation9_spill] sm:$0xff] }
 0x843   : > { %v5827_v37 = vpop.f32.mrf.mxu2 }
 0x844   : > { %v6456_v22 = vmax.f32 %v6333_v61, 0.0  ;;  %v5828_v3 = vadd.f32 %v5827_v37, %v5659_v21  ;;  %v12890_v37 = vld [vmem:[#allocation156_spill] sm:$0xff] }
 0x845   : > { %v5667_v44 = vadd.f32 %v12890_v37, %v5498_v62 }
 0x846   : > { %6520 = vst [vmem:[%s11342_s28 + $0xc0] sm:$0xff] %v6456_v22  ;;  %v5997_v33 = vadd.f32 %v11456_v30, %v5828_v3 }
 0x848   : > { %v6166_v38 = vadd.f32 %v12873_v55, %v5997_v33  ;;  %5869 = vmatmul.bf16.gmra.mxu2 %v12874_v42  ;;  %v12892_v33 = vld [vmem:[#allocation128_spill] sm:$0xff]  ;;  %v12895_v42 = vld [vmem:[#allocation297_spill] sm:$0xff] }
 0x84a   : > { %v6335_v26 = vadd.f32 %v11064_v2, %v6166_v38  ;;  %v11646_v46 = vpop.f32.mrf.mxu3  ;;  %v12894_v38 = vld [vmem:[#allocation73_spill] sm:$0xff] }
 0x84b   : > { %v5830_v49 = vpop.f32.mrf.mxu2  ;;  %v5334_v54 = vadd.f32 %v12895_v42, %v12894_v38  ;;  %v12917_v38 = vld [vmem:[#allocation360_spill] sm:$0xff] }
 0x84c   : > { %v6457_v52 = vmax.f32 %v6335_v26, 0.0  ;;  %v5831_v0 = vadd.f32 %v5830_v49, %v5662_v39 }
 0x84d   : > { %6083 = vmatmul.bf16.gmra.mxu3 %v10354_v11  ;;  %v4993_v11 = vadd.f32 %v11366_v40, %v12883_v4 }
 0x84e   : > { %6521 = vst [vmem:[%s11342_s28 + $0xc8] sm:$0xff] %v6457_v52  ;;  %v6000_v30 = vadd.f32 %v11473_v48, %v5831_v0 }
 0x84f   : > { %v5162_v63 = vadd.f32 %v12884_v28, %v4993_v11  ;;  %v12906_v28 = vld [vmem:[#allocation184_spill] sm:$0xff] }
 0x850   : > { %v6169_v27 = vadd.f32 %v12878_v18, %v6000_v30 }
 0x851   : > { %v5331_v61 = vadd.f32 %v12888_v16, %v5162_v63 }
 0x852   : > { %v6338_v2 = vadd.f32 %v12881_v41, %v6169_v27  ;;  %v11659_v32 = vpop.f32.mrf.mxu3  ;;  %v12900_v27 = vld [vmem:[#allocation302_spill] sm:$0xff] }
 0x853   : > { %v5832_v24 = vpop.f32.mrf.mxu2  ;;  %v5500_v23 = vadd.f32 %v12892_v33, %v5331_v61  ;;  %v12903_v41 = vld [vmem:[#allocation354_spill] sm:$0xff] }
 0x854   : > { %v6458_v60 = vmax.f32 %v6338_v2, 0.0  ;;  %v5833_v48 = vadd.f32 %v5832_v24, %v5664_v8 }
 0x855   : > { %v5669_v39 = vadd.f32 %v12897_v7, %v5500_v23  ;;  %v12915_v23 = vld [vmem:[#allocation308_spill] sm:$0xff] }
 0x856   : > { %6522 = vst [vmem:[%s11342_s28 + $0xd0] sm:$0xff] %v6458_v60  ;;  %v6002_v47 = vadd.f32 %v11486_v50, %v5833_v48  ;;  %v12905_v60 = vld [vmem:[#allocation135_spill] sm:$0xff] }
 0x857   : > { %v5505_v48 = vadd.f32 %v12905_v60, %v5336_v56  ;;  %v12928_v60 = vld [vmem:[#allocation201_spill] sm:$0xff] }
 0x858   : > { %v6171_v13 = vadd.f32 %v12886_v45, %v6002_v47  ;;  %5874 = vmatmul.bf16.gmra.mxu2 %v12887_v31  ;;  %v12907_v47 = vld [vmem:[#allocation139_spill] sm:$0xff]  ;;  %v12909_v45 = vld [vmem:[#allocation13_spill] sm:$0xff] }
 0x859   : > { %v5339_v62 = vadd.f32 %v12908_v53, %v12907_v47  ;;  %v12910_v31 = vld [vmem:[#allocation165_spill] sm:$0xff]  ;;  %v12931_v53 = vld [vmem:[#allocation364_spill] sm:$0xff] }
 0x85a   : > { %v6340_v21 = vadd.f32 %v12889_v10, %v6171_v13  ;;  %v5674_v16 = vadd.f32 %v12910_v31, %v5505_v48  ;;  %v12911_v10 = vld [vmem:[#allocation143_spill] sm:$0xff] }
 0x85b   : > { %v5835_v36 = vpop.f32.mrf.mxu2 }
 0x85c   : > { %v6459_v22 = vmax.f32 %v6340_v21, 0.0  ;;  %v5836_v3 = vadd.f32 %v5835_v36, %v5667_v44  ;;  %v5003_v21 = vadd.f32 %v11366_v40, %v12911_v10  ;;  %v12912_v36 = vld [vmem:[#allocation342_spill] sm:$0xff] }
 0x85d   : > { %6088 = vmatmul.bf16.gmra.mxu3 %v12891_v51 }
 0x85e   : > { %6523 = vst [vmem:[%s11342_s28 + $0xd8] sm:$0xff] %v6459_v22  ;;  %v6005_v50 = vadd.f32 %v11501_v14, %v5836_v3  ;;  %v5503_v14 = vadd.f32 %v12898_v15, %v5334_v54  ;;  %v12913_v3 = vld [vmem:[#allocation138_spill] sm:$0xff]  ;;  %v12918_v54 = vld [vmem:[#allocation168_spill] sm:$0xff] }
 0x85f   : > { %v5508_v51 = vadd.f32 %v12913_v3, %v5339_v62  ;;  %v12921_v15 = vld [vmem:[#allocation178_spill] sm:$0xff] }
 0x860   : > { %v6174_v55 = vadd.f32 %v12893_v20, %v6005_v50  ;;  %v5672_v8 = vadd.f32 %v12904_v17, %v5503_v14  ;;  %v12914_v50 = vld [vmem:[#allocation160_spill] sm:$0xff]  ;;  %v12916_v20 = vld [vmem:[#allocation307_spill] sm:$0xff]  ;;  %v12922_v14 = vld [vmem:[#allocation310_spill] sm:$0xff] }
 0x862   : > { %v6343_v26 = vadd.f32 %v12896_v58, %v6174_v55  ;;  %v5677_v58 = vadd.f32 %v12918_v54, %v5508_v51  ;;  %v12937_v51 = vld [vmem:[#allocation367_spill] sm:$0xff] }
 0x863   : > { %v5837_v49 = vpop.f32.mrf.mxu2 }
 0x864   : > { %v6460_v52 = vmax.f32 %v6343_v26, 0.0  ;;  %v5838_v0 = vadd.f32 %v5837_v49, %v5669_v39 }
 0x866   : > { %6524 = vst [vmem:[%s11342_s28 + $0xe0] sm:$0xff] %v6460_v52  ;;  %v6007_v30 = vadd.f32 %v11516_v59, %v5838_v0  ;;  %v12920_v0 = vld [vmem:[#allocation353_spill] sm:$0xff] }
 0x868   : > { %v6176_v18 = vadd.f32 %v12899_v19, %v6007_v30  ;;  %5879 = vmatmul.bf16.gmra.mxu2 %v12900_v27  ;;  %v5344_v19 = vadd.f32 %v12922_v14, %v12921_v15  ;;  %v12944_v15 = vld [vmem:[#allocation317_spill] sm:$0xff] }
 0x86a   : > { %v6345_v2 = vadd.f32 %v12903_v41, %v6176_v18  ;;  %v12923_v18 = vld [vmem:[#allocation361_spill] sm:$0xff]  ;;  %v12925_v41 = vld [vmem:[#allocation151_spill] sm:$0xff] }
 0x86b   : > { %v5840_v24 = vpop.f32.mrf.mxu2 }
 0x86c   : > { %v6461_v4 = vmax.f32 %v6345_v2, 0.0  ;;  %v5841_v11 = vadd.f32 %v5840_v24, %v5672_v8  ;;  %v5008_v2 = vadd.f32 %v11366_v40, %v12925_v41  ;;  %v12926_v24 = vld [vmem:[#allocation344_spill] sm:$0xff] }
 0x86e   : > { %6525 = vst [vmem:[%s11342_s28 + $0xe8] sm:$0xff] %v6461_v4  ;;  %v6010_v59 = vadd.f32 %v11530_v1, %v5841_v11  ;;  %v5172_v1 = vadd.f32 %v12912_v36, %v5003_v21  ;;  %v12927_v11 = vld [vmem:[#allocation146_spill] sm:$0xff]  ;;  %v11721_v36 = vpop.f32.mrf.mxu3 }
 0x870   : > { %v6179_v63 = vadd.f32 %v12906_v28, %v6010_v59  ;;  %v5341_v55 = vadd.f32 %v12916_v20, %v5172_v1  ;;  %v5513_v59 = vadd.f32 %v12927_v11, %v5344_v19  ;;  %v12929_v28 = vld [vmem:[#allocation173_spill] sm:$0xff]  ;;  %v12935_v1 = vld [vmem:[#allocation154_spill] sm:$0xff]  ;;  %v11727_v20 = vpop.f32.mrf.mxu0 }
 0x871   : > { %v12945_v19 = vld [vmem:[#allocation369_spill] sm:$0xff] }
 0x872   : > { %v6348_v13 = vadd.f32 %v12909_v45, %v6179_v63  ;;  %v12930_v63 = vld [vmem:[#allocation90_spill] sm:$0xff]  ;;  %v12932_v45 = vld [vmem:[#allocation176_spill] sm:$0xff] }
 0x873   : > { %v5842_v61 = vpop.f32.mrf.mxu2 }
 0x874   : > { %v6462_v37 = vmax.f32 %v6348_v13, 0.0  ;;  %v5843_v44 = vadd.f32 %v5842_v61, %v5674_v16  ;;  %v5682_v13 = vadd.f32 %v12932_v45, %v5513_v59  ;;  %v12949_v59 = vld [vmem:[#allocation351_spill] sm:$0xff]  ;;  %v12953_v45 = vld [vmem:[#allocation45_spill] sm:$0xff] }
 0x876   : > { %6526 = vst [vmem:[%s11342_s28 + $0xf0] sm:$0xff] %v6462_v37  ;;  %v6012_v22 = vadd.f32 %v11543_v5, %v5843_v44  ;;  %v12919_v5 = vld [vmem:[#allocation141_spill] sm:$0xff]  ;;  %v12934_v37 = vld [vmem:[#allocation358_spill] sm:$0xff] }
 0x877   : > { %v5510_v52 = vadd.f32 %v12919_v5, %v5341_v55 }
 0x878   : > { %v6181_v33 = vadd.f32 %v12914_v50, %v6012_v22  ;;  %5884 = vmatmul.bf16.gmra.mxu2 %v12915_v23  ;;  %v12936_v22 = vld [vmem:[#allocation313_spill] sm:$0xff] }
 0x879   : > { %v5679_v6 = vadd.f32 %v12924_v57, %v5510_v52  ;;  %v5349_v3 = vadd.f32 %v12936_v22, %v12935_v1  ;;  %v12942_v52 = vld [vmem:[#allocation14_spill] sm:$0xff] }
 0x87a   : > { %v6350_v42 = vadd.f32 %v12917_v38, %v6181_v33  ;;  %v12938_v33 = vld [vmem:[#allocation180_spill] sm:$0xff]  ;;  %v12939_v38 = vld [vmem:[#allocation41_spill] sm:$0xff]  ;;  %v12956_v1 = vld [vmem:[#allocation366_spill] sm:$0xff] }
 0x87b   : > { %v5845_v26 = vpop.f32.mrf.mxu2 }
 0x87c   : > { %v6463_v7 = vmax.f32 %v6350_v42, 0.0  ;;  %v5846_v39 = vadd.f32 %v5845_v26, %v5677_v58  ;;  %v5013_v42 = vadd.f32 %v11366_v40, %v12939_v38  ;;  %v11731_v58 = vpop.f32.mrf.mxu1  ;;  %v12940_v26 = vld [vmem:[#allocation349_spill] sm:$0xff]  ;;  %v12960_v38 = vld [vmem:[#allocation190_spill] sm:$0xff] }
 0x87e   : > { %6527 = vst [vmem:[%s11342_s28 + $0xf8] sm:$0xff] %v6463_v7  ;;  %v6015_v49 = vadd.f32 %v11560_v34, %v5846_v39  ;;  %v5177_v34 = vadd.f32 %v12926_v24, %v5008_v2  ;;  %v5182_v7 = vadd.f32 %v12940_v26, %v5013_v42 }
 0x880   : > { %v6184_v30 = vadd.f32 %v12920_v0, %v6015_v49  ;;  %v5346_v47 = vadd.f32 %v12930_v63, %v5177_v34  ;;  %v12941_v49 = vld [vmem:[#allocation155_spill] sm:$0xff]  ;;  %v5351_v14 = vadd.f32 %v12944_v15, %v5182_v7  ;;  %v12961_v7 = vld [vmem:[#allocation166_spill] sm:$0xff] }
 0x881   : > { %v5518_v5 = vadd.f32 %v12941_v49, %v5349_v3  ;;  %v12957_v3 = vld [vmem:[#allocation137_spill] sm:$0xff]  ;;  %v12964_v15 = vld [vmem:[#allocation187_spill] sm:$0xff] }
 0x882   : > { %v6353_v27 = vadd.f32 %v12923_v18, %v6184_v30  ;;  %v12943_v30 = vld [vmem:[#allocation133_spill] sm:$0xff] }
 0x883   : > { %v5847_v56 = vpop.f32.mrf.mxu2 }
 0x884   : > { %v6464_v17 = vmax.f32 %v6353_v27, 0.0  ;;  %v5848_v8 = vadd.f32 %v5847_v56, %v5679_v6  ;;  %v12946_v27 = vld [vmem:[#allocation182_spill] sm:$0xff]  ;;  %v11742_v6 = vpop.f32.mrf.mxu3  ;;  %v11749_v34 = vpop.f32.mrf.mxu1 }
 0x885   : > { %v5687_v57 = vadd.f32 %v12946_v27, %v5518_v5  ;;  %v12962_v5 = vld [vmem:[#allocation16_spill] sm:$0xff]  ;;  %v12966_v27 = vld [vmem:[#allocation195_spill] sm:$0xff] }
 0x886   : > { %6528 = vst [vmem:[%s11342_s28 + $0x100] sm:$0xff] %v6464_v17  ;;  %v6017_v4 = vadd.f32 %v11572_v43, %v5848_v8  ;;  %v12933_v43 = vld [vmem:[#allocation149_spill] sm:$0xff]  ;;  %v11744_v17 = vpop.f32.mrf.mxu0  ;;  %v12947_v8 = vld [vmem:[#allocation158_spill] sm:$0xff] }
 0x887   : > { %v5515_v21 = vadd.f32 %v12933_v43, %v5346_v47  ;;  %v5520_v24 = vadd.f32 %v12947_v8, %v5351_v14  ;;  %v12952_v47 = vld [vmem:[#allocation60_spill] sm:$0xff] }
 0x888   : > { %v6186_v48 = vadd.f32 %v12928_v60, %v6017_v4  ;;  %5889 = vmatmul.bf16.gmra.mxu2 %v12929_v28  ;;  %v12948_v4 = vld [vmem:[#allocation185_spill] sm:$0xff]  ;;  %v12950_v60 = vld [vmem:[#allocation319_spill] sm:$0xff] }
 0x889   : > { %v5684_v23 = vadd.f32 %v12938_v33, %v5515_v21  ;;  %v12951_v28 = vld [vmem:[#allocation71_spill] sm:$0xff]  ;;  %v12955_v21 = vld [vmem:[#allocation162_spill] sm:$0xff] }
 0x88a   : > { %v6355_v62 = vadd.f32 %v12931_v53, %v6186_v48  ;;  %v5354_v48 = vadd.f32 %v12950_v60, %v12949_v59  ;;  %v5689_v53 = vadd.f32 %v12952_v47, %v5520_v24  ;;  %v12968_v24 = vld [vmem:[#allocation357_spill] sm:$0xff]  ;;  %v12969_v59 = vld [vmem:[#allocation170_spill] sm:$0xff] }
 0x88b   : > { %v5850_v31 = vpop.f32.mrf.mxu2 }
 0x88c   : > { %v6465_v16 = vmax.f32 %v6355_v62, 0.0  ;;  %v5851_v61 = vadd.f32 %v5850_v31, %v5682_v13  ;;  %v5018_v13 = vadd.f32 %v11366_v40, %v12953_v45  ;;  %v12973_v45 = vld [vmem:[#allocation376_spill] sm:$0xff] }
 0x88e   : > { %6529 = vst [vmem:[%s11342_s28 + $0x108] sm:$0xff] %v6465_v16  ;;  %v6020_v10 = vadd.f32 %v11589_v35, %v5851_v61  ;;  %v12954_v61 = vld [vmem:[#allocation352_spill] sm:$0xff] }
 0x890   : > { %v6189_v44 = vadd.f32 %v12934_v37, %v6020_v10  ;;  %v5187_v10 = vadd.f32 %v12954_v61, %v5018_v13  ;;  %v5523_v37 = vadd.f32 %v12955_v21, %v5354_v48  ;;  %v12970_v48 = vld [vmem:[#allocation152_spill] sm:$0xff] }
 0x892   : > { %v6358_v50 = vadd.f32 %v12937_v51, %v6189_v44  ;;  %v11764_v44 = vpop.f32.mrf.mxu0  ;;  %v11768_v51 = vpop.f32.mrf.mxu1  ;;  %v5692_v42 = vadd.f32 %v12960_v38, %v5523_v37  ;;  %v12978_v38 = vld [vmem:[#allocation202_spill] sm:$0xff] }
 0x893   : > { %v5852_v55 = vpop.f32.mrf.mxu2 }
 0x894   : > { %v6466_v35 = vmax.f32 %v6358_v50, 0.0  ;;  %v5853_v54 = vadd.f32 %v5852_v55, %v5684_v23  ;;  %v12958_v50 = vld [vmem:[#allocation322_spill] sm:$0xff]  ;;  %v12959_v23 = vld [vmem:[#allocation373_spill] sm:$0xff] }
 0x895   : > { %v5356_v33 = vadd.f32 %v12958_v50, %v5187_v10  ;;  %v12976_v50 = vld [vmem:[#allocation177_spill] sm:$0xff] }
 0x896   : > { %6530 = vst [vmem:[%s11342_s28 + $0x110] sm:$0xff] %v6466_v35  ;;  %v6022_v39 = vadd.f32 %v11602_v25, %v5853_v54 }
 0x898   : > { %v6191_v0 = vadd.f32 %v12942_v52, %v6022_v39  ;;  %5894 = vmatmul.bf16.gmra.mxu2 %v12943_v30  ;;  %v5525_v39 = vadd.f32 %v12961_v7, %v5356_v33  ;;  %v12963_v30 = vld [vmem:[#allocation167_spill] sm:$0xff] }
 0x899   : > { %v5359_v14 = vadd.f32 %v12964_v15, %v12963_v30  ;;  %v12977_v33 = vld [vmem:[#allocation327_spill] sm:$0xff] }
 0x89a   : > { %v6360_v18 = vadd.f32 %v12945_v19, %v6191_v0  ;;  %v11779_v0 = vpop.f32.mrf.mxu0  ;;  %v12965_v19 = vld [vmem:[#allocation374_spill] sm:$0xff]  ;;  %v12981_v30 = vld [vmem:[#allocation179_spill] sm:$0xff] }
 0x89b   : > { %v5855_v56 = vpop.f32.mrf.mxu2  ;;  %v5528_v60 = vadd.f32 %v12969_v59, %v5359_v14 }
 0x89c   : > { %v6467_v41 = vmax.f32 %v6360_v18, 0.0  ;;  %v5856_v2 = vadd.f32 %v5855_v56, %v5687_v57  ;;  %v5694_v57 = vadd.f32 %v12966_v27, %v5525_v39  ;;  %v11785_v56 = vpop.f32.mrf.mxu1 }
 0x89e   : > { %6531 = vst [vmem:[%s11342_s28 + $0x118] sm:$0xff] %v6467_v41  ;;  %v6025_v25 = vadd.f32 %v11617_v12, %v5856_v2  ;;  %v11758_v12 = vpop.f32.mrf.mxu3  ;;  %v12967_v2 = vld [vmem:[#allocation174_spill] sm:$0xff] }
 0x8a0   : > { %v6194_v11 = vadd.f32 %v12948_v4, %v6025_v25 }
 0x8a2   : > { %v6363_v63 = vadd.f32 %v12951_v28, %v6194_v11  ;;  %v11800_v61 = vpop.f32.mrf.mxu0 }
 0x8a3   : > { %v5857_v62 = vpop.f32.mrf.mxu2 }
 0x8a4   : > { %v6468_v31 = vmax.f32 %v6363_v63, 0.0  ;;  %v5858_v16 = vadd.f32 %v5857_v62, %v5689_v53  ;;  %v12971_v63 = vld [vmem:[#allocation196_spill] sm:$0xff]  ;;  %v12972_v53 = vld [vmem:[#allocation326_spill] sm:$0xff] }
 0x8a6   : > { %6532 = vst [vmem:[%s11342_s28 + $0x120] sm:$0xff] %v6468_v31  ;;  %v6027_v43 = vadd.f32 %v11632_v29, %v5858_v16  ;;  %v11776_v49 = vpop.f32.mrf.mxu3  ;;  %v12974_v31 = vld [vmem:[#allocation199_spill] sm:$0xff] }
 0x8a7   : > { %v5697_v16 = vadd.f32 %v12974_v31, %v5528_v60  ;;  %v12986_v60 = vld [vmem:[#allocation214_spill] sm:$0xff] }
 0x8a8   : > { %v6196_v22 = vadd.f32 %v12956_v1, %v6027_v43  ;;  %5899 = vmatmul.bf16.gmra.mxu2 %v12957_v3  ;;  %v12975_v1 = vld [vmem:[#allocation175_spill] sm:$0xff] }
 0x8aa   : > { %v6365_v55 = vadd.f32 %v12959_v23, %v6196_v22  ;;  %v5364_v23 = vadd.f32 %v12977_v33, %v12976_v50  ;;  %v12993_v50 = vld [vmem:[#allocation333_spill] sm:$0xff] }
 0x8ab   : > { %v5860_v35 = vpop.f32.mrf.mxu2 }
 0x8ac   : > { %v6469_v54 = vmax.f32 %v6365_v55, 0.0  ;;  %v5861_v26 = vadd.f32 %v5860_v35, %v5692_v42  ;;  %v5533_v15 = vadd.f32 %v12981_v30, %v5364_v23 }
 0x8ae   : > { %6533 = vst [vmem:[%s11342_s28 + $0x128] sm:$0xff] %v6469_v54  ;;  %v6030_v29 = vadd.f32 %v11646_v46, %v5861_v26  ;;  %v5023_v46 = vadd.f32 %v11366_v40, %v12967_v2  ;;  %v11795_v47 = vpop.f32.mrf.mxu3  ;;  %v12979_v26 = vld [vmem:[#allocation181_spill] sm:$0xff] }
 0x8b0   : > { %v6199_v52 = vadd.f32 %v12962_v5, %v6030_v29  ;;  %v5192_v4 = vadd.f32 %v12968_v24, %v5023_v46  ;;  %v5028_v29 = vadd.f32 %v11366_v40, %v12979_v26  ;;  %v12980_v5 = vld [vmem:[#allocation362_spill] sm:$0xff]  ;;  %v12985_v24 = vld [vmem:[#allocation183_spill] sm:$0xff] }
 0x8b2   : > { %v6368_v18 = vadd.f32 %v12965_v19, %v6199_v52  ;;  %v5361_v62 = vadd.f32 %v12972_v53, %v5192_v4  ;;  %v5197_v52 = vadd.f32 %v12980_v5, %v5028_v29  ;;  %v12982_v19 = vld [vmem:[#allocation150_spill] sm:$0xff] }
 0x8b3   : > { %v5862_v41 = vpop.f32.mrf.mxu2 }
 0x8b4   : > { %v6470_v25 = vmax.f32 %v6368_v18, 0.0  ;;  %v5863_v8 = vadd.f32 %v5862_v41, %v5694_v57  ;;  %v5530_v22 = vadd.f32 %v12975_v1, %v5361_v62  ;;  %v12983_v18 = vld [vmem:[#allocation330_spill] sm:$0xff] }
 0x8b5   : > { %v5366_v27 = vadd.f32 %v12983_v18, %v5197_v52  ;;  %v12984_v57 = vld [vmem:[#allocation206_spill] sm:$0xff]  ;;  %v12996_v52 = vld [vmem:[#allocation192_spill] sm:$0xff] }
 0x8b6   : > { %6534 = vst [vmem:[%s11342_s28 + $0x130] sm:$0xff] %v6470_v25  ;;  %v6032_v11 = vadd.f32 %v11659_v32, %v5863_v8  ;;  %v11802_v32 = vpop.f32.mrf.mxu1  ;;  %v5699_v42 = vadd.f32 %v12978_v38, %v5530_v22  ;;  %v11812_v35 = vpop.f32.mrf.mxu3  ;;  %v5702_v41 = vadd.f32 %v12984_v57, %v5533_v15  ;;  %v12992_v22 = vld [vmem:[#allocation334_spill] sm:$0xff]  ;;  %v12998_v15 = vld [vmem:[#allocation83_spill] sm:$0xff] }
 0x8b7   : > { %v5535_v4 = vadd.f32 %v12985_v24, %v5366_v27  ;;  %v12999_v27 = vld [vmem:[#allocation197_spill] sm:$0xff] }
 0x8b8   : > { %v6201_v28 = vadd.f32 %v12970_v48, %v6032_v11  ;;  %5904 = vmatmul.bf16.gmra.mxu2 %v12971_v63  ;;  %v12987_v48 = vld [vmem:[#allocation331_spill] sm:$0xff]  ;;  %v12988_v63 = vld [vmem:[#allocation77_spill] sm:$0xff] }
 0x8b9   : > { %v5704_v53 = vadd.f32 %v12988_v63, %v5535_v4  ;;  %v13003_v4 = vld [vmem:[#allocation339_spill] sm:$0xff] }
 0x8ba   : > { %v6370_v13 = vadd.f32 %v12973_v45, %v6201_v28  ;;  %v5369_v28 = vadd.f32 %v12987_v48, %v12986_v60  ;;  %v11836_v45 = vld [vmem:[%s12003_s5] ss:$0 sm:$0xff]  ;;  %v13004_v48 = vld [vmem:[#allocation220_spill] sm:$0xff] }
 0x8bb   : > { %v5865_v10 = vpop.f32.mrf.mxu2 }
 0x8bc   : > { %v6471_v43 = vmax.f32 %v6370_v13, 0.0  ;;  %v5866_v21 = vadd.f32 %v5865_v10, %v5697_v16 }
 0x8be   : > { %6535 = vst [vmem:[%s11342_s28 + $0x138] sm:$0xff] %v6471_v43  ;;  %v6035_v37 = vadd.f32 %v11721_v36, %v5866_v21  ;;  %v6215_v36 = vpop.f32.mrf.mxu0  ;;  %v6049_v8 = vpop.f32.mrf.mxu3 }
 0x8c0   : > { %v6204_v3 = vadd.f32 %v11727_v20, %v6035_v37 }
 0x8c2   : > { %v6373_v55 = vadd.f32 %v11731_v58, %v6204_v3  ;;  %v6384_v58 = vpop.f32.mrf.mxu1 }
 0x8c3   : > { %v5867_v54 = vpop.f32.mrf.mxu2 }
 0x8c4   : > { %v6472_v7 = vmax.f32 %v6373_v55, 0.0  ;;  %v5868_v39 = vadd.f32 %v5867_v54, %v5699_v42  ;;  %v12994_v55 = vld [vmem:[#allocation213_spill] sm:$0xff] }
 0x8c6   : > { %6536 = vst [vmem:[%s11342_s28 + $0x140] sm:$0xff] %v6472_v7  ;;  %v6037_v20 = vadd.f32 %v11742_v6, %v5868_v39  ;;  %v6218_v11 = vpop.f32.mrf.mxu0  ;;  %v6051_v37 = vpop.f32.mrf.mxu3  ;;  %v12995_v7 = vld [vmem:[#allocation193_spill] sm:$0xff] }
 0x8c8   : > { %v6206_v14 = vadd.f32 %v11744_v17, %v6037_v20  ;;  %5909 = vmatmul.bf16.gmra.mxu2 %v12982_v19  ;;  %v12997_v20 = vld [vmem:[#allocation335_spill] sm:$0xff] }
 0x8c9   : > { %v5374_v30 = vadd.f32 %v12997_v20, %v12996_v52  ;;  %v13013_v52 = vld [vmem:[#allocation223_spill] sm:$0xff] }
 0x8ca   : > { %v6375_v40 = vadd.f32 %v11749_v34, %v6206_v14  ;;  %v6387_v59 = vpop.f32.mrf.mxu1 }
 0x8cb   : > { %v5870_v2 = vpop.f32.mrf.mxu2 }
 0x8cc   : > { %v6473_v46 = vmax.f32 %v6375_v40, 0.0  ;;  %v5871_v25 = vadd.f32 %v5870_v2, %v5702_v41  ;;  %v5038_v40 = vadd.f32 %v11836_v45, %v12999_v27  ;;  %v13000_v2 = vld [vmem:[#allocation370_spill] sm:$0xff] }
 0x8ce   : > { %6537 = vst [vmem:[%s11342_s28 + $0x148] sm:$0xff] %v6473_v46  ;;  %v6040_v6 = vadd.f32 %v11758_v12, %v5871_v25  ;;  %v12989_v12 = vld [vmem:[#allocation189_spill] sm:$0xff]  ;;  %v6220_v3 = vpop.f32.mrf.mxu0  ;;  %v6054_v5 = vpop.f32.mrf.mxu3  ;;  %v5207_v46 = vadd.f32 %v13000_v2, %v5038_v40  ;;  %v13001_v25 = vld [vmem:[#allocation198_spill] sm:$0xff] }
 0x8cf   : > { %v5033_v13 = vadd.f32 %v11836_v45, %v12989_v12  ;;  %v13016_v2 = vld [vmem:[#allocation169_spill] sm:$0xff] }
 0x8d0   : > { %v6209_v17 = vadd.f32 %v11764_v44, %v6040_v6  ;;  %v12990_v44 = vld [vmem:[#allocation365_spill] sm:$0xff]  ;;  %v5543_v6 = vadd.f32 %v13001_v25, %v5374_v30 }
 0x8d1   : > { %v5202_v10 = vadd.f32 %v12990_v44, %v5033_v13 }
 0x8d2   : > { %v6378_v34 = vadd.f32 %v11768_v51, %v6209_v17  ;;  %v12991_v51 = vld [vmem:[#allocation188_spill] sm:$0xff]  ;;  %v6389_v42 = vpop.f32.mrf.mxu1  ;;  %v5376_v17 = vadd.f32 %v13003_v4, %v5207_v46 }
 0x8d3   : > { %v5872_v62 = vpop.f32.mrf.mxu2  ;;  %v5538_v21 = vadd.f32 %v12991_v51, %v5369_v28  ;;  %v5371_v33 = vadd.f32 %v12993_v50, %v5202_v10  ;;  %v5712_v28 = vadd.f32 %v13004_v48, %v5543_v6  ;;  %v13007_v10 = vld [vmem:[#allocation8_spill] sm:$0xff] }
 0x8d4   : > { %v6474_v31 = vmax.f32 %v6378_v34, 0.0  ;;  %v5873_v16 = vadd.f32 %v5872_v62, %v5704_v53 }
 0x8d5   : > { %v5707_v38 = vadd.f32 %v12994_v55, %v5538_v21  ;;  %v5540_v39 = vadd.f32 %v12995_v7, %v5371_v33  ;;  %v13008_v21 = vld [vmem:[#allocation91_spill] sm:$0xff] }
 0x8d6   : > { %6538 = vst [vmem:[%s11342_s28 + $0x150] sm:$0xff] %v6474_v31  ;;  %v6042_v43 = vadd.f32 %v11776_v49, %v5873_v16  ;;  %v6223_v19 = vpop.f32.mrf.mxu0  ;;  %v6056_v34 = vpop.f32.mrf.mxu3  ;;  %v13005_v31 = vld [vmem:[#allocation203_spill] sm:$0xff] }
 0x8d7   : > { %v5709_v14 = vadd.f32 %v12998_v15, %v5540_v39 }
 0x8d8   : > { %v6211_v1 = vadd.f32 %v11779_v0, %v6042_v43  ;;  %5914 = vmatmul.bf16.gmra.mxu2 %v12992_v22  ;;  %v13009_v22 = vld [vmem:[#allocation207_spill] sm:$0xff] }
 0x8d9   : > { %v5043_v50 = vadd.f32 %v11836_v45, %v13009_v22  ;;  %v13024_v22 = vld [vmem:[#allocation218_spill] sm:$0xff] }
 0x8da   : > { %v6380_v23 = vadd.f32 %v11785_v56, %v6211_v1 }
 0x8db   : > { %v5875_v54 = vpop.f32.mrf.mxu2 }
 0x8dc   : > { %v6475_v26 = vmax.f32 %v6380_v23, 0.0  ;;  %v5876_v29 = vadd.f32 %v5875_v54, %v5707_v38  ;;  %v13010_v38 = vld [vmem:[#allocation372_spill] sm:$0xff] }
 0x8de   : > { %6539 = vst [vmem:[%s11342_s28 + $0x158] sm:$0xff] %v6475_v26  ;;  %v6045_v49 = vadd.f32 %v11795_v47, %v5876_v29  ;;  %v6392_v47 = vpop.f32.mrf.mxu1  ;;  %v6225_v12 = vpop.f32.mrf.mxu0  ;;  %v13011_v26 = vld [vmem:[#allocation209_spill] sm:$0xff] }
 0x8df   : > { %v6059_v55 = vpop.f32.mrf.mxu3 }
 0x8e0   : > { %v6214_v0 = vadd.f32 %v11800_v61, %v6045_v49 }
 0x8e2   : > { %v6383_v56 = vadd.f32 %v11802_v32, %v6214_v0  ;;  %v13002_v32 = vld [vmem:[#allocation216_spill] sm:$0xff] }
 0x8e3   : > { %v5877_v18 = vpop.f32.mrf.mxu2 }
 0x8e4   : > { %v6476_v57 = vmax.f32 %v6383_v56, 0.0  ;;  %v5878_v41 = vadd.f32 %v5877_v18, %v5709_v14  ;;  %v13014_v18 = vld [vmem:[#allocation212_spill] sm:$0xff] }
 0x8e6   : > { %6540 = vst [vmem:[%s11342_s28 + $0x160] sm:$0xff] %v6476_v57  ;;  %v6047_v61 = vadd.f32 %v11812_v35, %v5878_v41  ;;  %v5545_v35 = vadd.f32 %v13005_v31, %v5376_v17  ;;  %v6394_v16 = vpop.f32.mrf.mxu1  ;;  %v6228_v29 = vpop.f32.mrf.mxu0  ;;  %v13015_v41 = vld [vmem:[#allocation210_spill] sm:$0xff]  ;;  %v13022_v31 = vld [vmem:[#allocation229_spill] sm:$0xff] }
 0x8e7   : > { %v6061_v40 = vpop.f32.mrf.mxu3 }
 0x8e8   : > { %v6216_v24 = vadd.f32 %v6215_v36, %v6047_v61  ;;  %5919 = vmatmul.bf16.gmra.mxu2 %v13002_v32  ;;  %v13006_v36 = vld [vmem:[#allocation371_spill] sm:$0xff]  ;;  %v13017_v61 = vld [vmem:[#allocation52_spill] sm:$0xff] }
 0x8e9   : > { %v5379_v43 = vadd.f32 %v13007_v10, %v13006_v36 }
 0x8ea   : > { %v6385_v60 = vadd.f32 %v6384_v58, %v6216_v24  ;;  %v5714_v58 = vadd.f32 %v13008_v21, %v5545_v35  ;;  %v13018_v24 = vld [vmem:[#allocation215_spill] sm:$0xff] }
 0x8eb   : > { %v5880_v63 = vpop.f32.mrf.mxu2  ;;  %v5048_v32 = vadd.f32 %v11836_v45, %v13018_v24  ;;  %v13033_v24 = vld [vmem:[#allocation378_spill] sm:$0xff] }
 0x8ec   : > { %v6477_v53 = vmax.f32 %v6385_v60, 0.0  ;;  %v5881_v62 = vadd.f32 %v5880_v63, %v5712_v28 }
 0x8ee   : > { %6541 = vst [vmem:[%s11342_s28 + $0x168] sm:$0xff] %v6477_v53  ;;  %v6050_v13 = vadd.f32 %v6049_v8, %v5881_v62  ;;  %v5212_v8 = vadd.f32 %v13010_v38, %v5043_v50  ;;  %v6397_v7 = vpop.f32.mrf.mxu1  ;;  %v6230_v57 = vpop.f32.mrf.mxu0  ;;  %v13021_v62 = vld [vmem:[#allocation343_spill] sm:$0xff]  ;;  %v13025_v50 = vld [vmem:[#allocation10_spill] sm:$0xff] }
 0x8ef   : > { %v6064_v53 = vpop.f32.mrf.mxu3 }
 0x8f0   : > { %v6219_v44 = vadd.f32 %v6218_v11, %v6050_v13  ;;  %v5548_v11 = vadd.f32 %v13011_v26, %v5379_v43 }
 0x8f2   : > { %v6388_v51 = vadd.f32 %v6387_v59, %v6219_v44  ;;  %v13012_v59 = vld [vmem:[#allocation341_spill] sm:$0xff]  ;;  %v5717_v20 = vadd.f32 %v13013_v52, %v5548_v11 }
 0x8f3   : > { %v5882_v1 = vpop.f32.mrf.mxu2  ;;  %v5381_v39 = vadd.f32 %v13012_v59, %v5212_v8 }
 0x8f4   : > { %v6478_v33 = vmax.f32 %v6388_v51, 0.0  ;;  %v5883_v23 = vadd.f32 %v5882_v1, %v5714_v58  ;;  %v13023_v58 = vld [vmem:[#allocation219_spill] sm:$0xff] }
 0x8f5   : > { %v5550_v27 = vadd.f32 %v13014_v18, %v5381_v39  ;;  %v13028_v39 = vld [vmem:[#allocation377_spill] sm:$0xff] }
 0x8f6   : > { %6542 = vst [vmem:[%s11342_s28 + $0x170] sm:$0xff] %v6478_v33  ;;  %v6052_v54 = vadd.f32 %v6051_v37, %v5883_v23  ;;  %v6233_v44 = vpop.f32.mrf.mxu0  ;;  %v13026_v23 = vld [vmem:[#allocation232_spill] sm:$0xff] }
 0x8f7   : > { %v5719_v25 = vadd.f32 %v13017_v61, %v5550_v27 }
 0x8f8   : > { %v6221_v49 = vadd.f32 %v6220_v3, %v6052_v54  ;;  %v5384_v3 = vadd.f32 %v13016_v2, %v13015_v41  ;;  %v13027_v54 = vld [vmem:[#allocation20_spill] sm:$0xff] }
 0x8f9   : > { %v5053_v26 = vadd.f32 %v11836_v45, %v13027_v54 }
 0x8fa   : > { %v6390_v0 = vadd.f32 %v6389_v42, %v6221_v49  ;;  %v6399_v42 = vpop.f32.mrf.mxu1 }
 0x8fb   : > { %v5885_v30 = vpop.f32.mrf.mxu2 }
 0x8fc   : > { %v6479_v56 = vmax.f32 %v6390_v0, 0.0  ;;  %v5886_v15 = vadd.f32 %v5885_v30, %v5717_v20 }
 0x8fe   : > { %6543 = vst [vmem:[%s11342_s28 + $0x178] sm:$0xff] %v6479_v56  ;;  %v6055_v14 = vadd.f32 %v6054_v5, %v5886_v15  ;;  %v13019_v5 = vld [vmem:[#allocation375_spill] sm:$0xff]  ;;  %v6235_v59 = vpop.f32.mrf.mxu0 }
 0x8ff   : > { %v5217_v60 = vadd.f32 %v13019_v5, %v5048_v32  ;;  %v13034_v32 = vld [vmem:[#allocation11_spill] sm:$0xff] }
 0x900   : > { %v6224_v37 = vadd.f32 %v6223_v19, %v6055_v14  ;;  %v13020_v19 = vld [vmem:[#allocation43_spill] sm:$0xff]  ;;  %v13031_v14 = vld [vmem:[#allocation236_spill] sm:$0xff] }
 0x901   : > { %v5553_v28 = vadd.f32 %v13020_v19, %v5384_v3 }
 0x902   : > { %v6393_v46 = vadd.f32 %v6392_v47, %v6224_v37  ;;  %v5386_v47 = vadd.f32 %v13021_v62, %v5217_v60  ;;  %v6402_v51 = vpop.f32.mrf.mxu1  ;;  %v13036_v60 = vld [vmem:[#allocation23_spill] sm:$0xff] }
 0x903   : > { %v5887_v6 = vpop.f32.mrf.mxu2  ;;  %v5722_v35 = vadd.f32 %v13022_v31, %v5553_v28 }
 0x904   : > { %v6480_v4 = vmax.f32 %v6393_v46, 0.0  ;;  %v5888_v17 = vadd.f32 %v5887_v6, %v5719_v25  ;;  %v5555_v1 = vadd.f32 %v13023_v58, %v5386_v47  ;;  %v13032_v46 = vld [vmem:[#allocation224_spill] sm:$0xff]  ;;  %v13038_v47 = vld [vmem:[#allocation226_spill] sm:$0xff] }
 0x906   : > { %6544 = vst [vmem:[%s11342_s28 + $0x180] sm:$0xff] %v6480_v4  ;;  %v6057_v48 = vadd.f32 %v6056_v34, %v5888_v17  ;;  %v5724_v38 = vadd.f32 %v13026_v23, %v5555_v1  ;;  %v6238_v25 = vpop.f32.mrf.mxu0  ;;  %v13035_v17 = vld [vmem:[#allocation239_spill] sm:$0xff] }
 0x908   : > { %v6226_v63 = vadd.f32 %v6225_v12, %v6057_v48  ;;  %v5389_v12 = vadd.f32 %v13025_v50, %v13024_v22  ;;  %v5058_v48 = vadd.f32 %v11836_v45, %v13036_v60 }
 0x90a   : > { %v6395_v13 = vadd.f32 %v6394_v16, %v6226_v63  ;;  %v6066_v16 = vpop.f32.mrf.mxu3  ;;  %v6404_v20 = vpop.f32.mrf.mxu1  ;;  %v13037_v63 = vld [vmem:[#allocation379_spill] sm:$0xff] }
 0x90b   : > { %v5890_v36 = vpop.f32.mrf.mxu2 }
 0x90c   : > { %v6481_v10 = vmax.f32 %v6395_v13, 0.0  ;;  %v5891_v43 = vadd.f32 %v5890_v36, %v5722_v35  ;;  %v13039_v36 = vld [vmem:[#allocation350_spill] sm:$0xff] }
 0x90e   : > { %6545 = vst [vmem:[%s11342_s28 + $0x188] sm:$0xff] %v6481_v10  ;;  %v6060_v21 = vadd.f32 %v6059_v55, %v5891_v43  ;;  %v5222_v55 = vadd.f32 %v13028_v39, %v5053_v26 }
 0x910   : > { %v6229_v34 = vadd.f32 %v6228_v29, %v6060_v21  ;;  %v13029_v29 = vld [vmem:[#allocation47_spill] sm:$0xff] }
 0x911   : > { %v5558_v52 = vadd.f32 %v13029_v29, %v5389_v12  ;;  %v13041_v12 = vld [vmem:[#allocation231_spill] sm:$0xff] }
 0x912   : > { %v6398_v33 = vadd.f32 %v6397_v7, %v6229_v34  ;;  %v13030_v7 = vld [vmem:[#allocation347_spill] sm:$0xff]  ;;  %v6069_v2 = vpop.f32.mrf.mxu3  ;;  %v6407_v6 = vpop.f32.mrf.mxu1 }
 0x913   : > { %v5892_v8 = vpop.f32.mrf.mxu2  ;;  %v5391_v56 = vadd.f32 %v13030_v7, %v5222_v55  ;;  %v5727_v18 = vadd.f32 %v13031_v14, %v5558_v52  ;;  %v13045_v55 = vld [vmem:[#allocation233_spill] sm:$0xff] }
 0x914   : > { %v6482_v11 = vmax.f32 %v6398_v33, 0.0  ;;  %v5893_v49 = vadd.f32 %v5892_v8, %v5724_v38  ;;  %v13043_v8 = vld [vmem:[#allocation12_spill] sm:$0xff] }
 0x915   : > { %v5560_v61 = vadd.f32 %v13032_v46, %v5391_v56 }
 0x916   : > { %6546 = vst [vmem:[%s11342_s28 + $0x190] sm:$0xff] %v6482_v11  ;;  %v6062_v0 = vadd.f32 %v6061_v40, %v5893_v49  ;;  %v13044_v11 = vld [vmem:[#allocation247_spill] sm:$0xff] }
 0x918   : > { %v6231_v30 = vadd.f32 %v6230_v57, %v6062_v0  ;;  %v5394_v57 = vadd.f32 %v13034_v32, %v13033_v24  ;;  %v5063_v0 = vadd.f32 %v11836_v45, %v13045_v55  ;;  %v13050_v32 = vld [vmem:[#allocation63_spill] sm:$0xff] }
 0x91a   : > { %v6400_v15 = vadd.f32 %v6399_v42, %v6231_v30  ;;  %v5729_v42 = vadd.f32 %v13035_v17, %v5560_v61  ;;  %v5563_v13 = vadd.f32 %v13038_v47, %v5394_v57  ;;  %v6071_v31 = vpop.f32.mrf.mxu3  ;;  %v6409_v58 = vpop.f32.mrf.mxu1  ;;  %v13046_v30 = vld [vmem:[#allocation228_spill] sm:$0xff] }
 0x91b   : > { %v5895_v27 = vpop.f32.mrf.mxu2  ;;  %v5232_v7 = vadd.f32 %v13046_v30, %v5063_v0  ;;  %v13062_v0 = vld [vmem:[#allocation81_spill] sm:$0xff] }
 0x91c   : > { %v6483_v37 = vmax.f32 %v6400_v15, 0.0  ;;  %v5896_v41 = vadd.f32 %v5895_v27, %v5727_v18  ;;  %v13047_v15 = vld [vmem:[#allocation235_spill] sm:$0xff] }
 0x91d   : > { %v13048_v27 = vld [vmem:[#allocation355_spill] sm:$0xff] }
 0x91e   : > { %6547 = vst [vmem:[%s11342_s28 + $0x198] sm:$0xff] %v6483_v37  ;;  %v6065_v3 = vadd.f32 %v6064_v53, %v5896_v41  ;;  %v5227_v53 = vadd.f32 %v13037_v63, %v5058_v48  ;;  %v5401_v37 = vadd.f32 %v13048_v27, %v5232_v7 }
 0x920   : > { %v6234_v40 = vadd.f32 %v6233_v44, %v6065_v3  ;;  %v6240_v44 = vpop.f32.mrf.mxu0  ;;  %v5396_v10 = vadd.f32 %v13039_v36, %v5227_v53  ;;  %v5570_v57 = vadd.f32 %v13050_v32, %v5401_v37  ;;  %v13054_v53 = vld [vmem:[#allocation241_spill] sm:$0xff] }
 0x921   : > { %v13064_v37 = vld [vmem:[#allocation245_spill] sm:$0xff] }
 0x922   : > { %v6403_v4 = vadd.f32 %v6402_v51, %v6234_v40  ;;  %v13040_v51 = vld [vmem:[#allocation243_spill] sm:$0xff]  ;;  %v5565_v33 = vadd.f32 %v13041_v12, %v5396_v10  ;;  %v6074_v38 = vpop.f32.mrf.mxu3  ;;  %v13056_v10 = vld [vmem:[#allocation242_spill] sm:$0xff] }
 0x923   : > { %v5897_v5 = vpop.f32.mrf.mxu2  ;;  %v5732_v21 = vadd.f32 %v13040_v51, %v5563_v13 }
 0x924   : > { %v6484_v19 = vmax.f32 %v6403_v4, 0.0  ;;  %v5898_v28 = vadd.f32 %v5897_v5, %v5729_v42  ;;  %v5734_v49 = vadd.f32 %v13044_v11, %v5565_v33  ;;  %v13051_v42 = vld [vmem:[#allocation36_spill] sm:$0xff] }
 0x925   : > { %v13052_v5 = vld [vmem:[#allocation356_spill] sm:$0xff] }
 0x926   : > { %6548 = vst [vmem:[%s11342_s28 + $0x1a0] sm:$0xff] %v6484_v19  ;;  %v6067_v62 = vadd.f32 %v6066_v16, %v5898_v28  ;;  %v13042_v16 = vld [vmem:[#allocation55_spill] sm:$0xff]  ;;  %v5404_v60 = vadd.f32 %v13052_v5, %v13051_v42  ;;  %v13053_v19 = vld [vmem:[#allocation253_spill] sm:$0xff] }
 0x927   : > { %v5399_v54 = vadd.f32 %v13043_v8, %v13042_v16  ;;  %v5739_v28 = vadd.f32 %v13053_v19, %v5570_v57  ;;  %v13059_v16 = vld [vmem:[#allocation246_spill] sm:$0xff]  ;;  %v13068_v5 = vld [vmem:[#allocation249_spill] sm:$0xff] }
 0x928   : > { %v6236_v35 = vadd.f32 %v6235_v59, %v6067_v62  ;;  %v6243_v59 = vpop.f32.mrf.mxu0  ;;  %v5068_v62 = vadd.f32 %v11836_v45, %v13054_v53 }
 0x929   : > { %v5568_v14 = vadd.f32 %v13047_v15, %v5399_v54  ;;  %v13063_v15 = vld [vmem:[#allocation250_spill] sm:$0xff] }
 0x92a   : > { %v6405_v43 = vadd.f32 %v6404_v20, %v6236_v35  ;;  %v6412_v20 = vpop.f32.mrf.mxu1  ;;  %v6076_v46 = vpop.f32.mrf.mxu3  ;;  %v13055_v35 = vld [vmem:[#allocation237_spill] sm:$0xff] }
 0x92b   : > { %v5900_v1 = vpop.f32.mrf.mxu2 }
 0x92c   : > { %v6485_v34 = vmax.f32 %v6405_v43, 0.0  ;;  %v5901_v22 = vadd.f32 %v5900_v1, %v5732_v21  ;;  %v5573_v43 = vadd.f32 %v13056_v10, %v5404_v60  ;;  %v13057_v1 = vld [vmem:[#allocation359_spill] sm:$0xff] }
 0x92d   : > { %v13069_v60 = vld [vmem:[#allocation15_spill] sm:$0xff] }
 0x92e   : > { %6549 = vst [vmem:[%s11342_s28 + $0x1a8] sm:$0xff] %v6485_v34  ;;  %v6070_v50 = vadd.f32 %v6069_v2, %v5901_v22  ;;  %v13049_v2 = vld [vmem:[#allocation251_spill] sm:$0xff] }
 0x92f   : > { %v5737_v3 = vadd.f32 %v13049_v2, %v5568_v14 }
 0x930   : > { %v6239_v23 = vadd.f32 %v6238_v25, %v6070_v50  ;;  %v13058_v50 = vld [vmem:[#allocation257_spill] sm:$0xff] }
 0x931   : > { %v5742_v12 = vadd.f32 %v13058_v50, %v5573_v43 }
 0x932   : > { %v6408_v26 = vadd.f32 %v6407_v6, %v6239_v23  ;;  %v6245_v6 = vpop.f32.mrf.mxu0  ;;  %v6414_v4 = vpop.f32.mrf.mxu1 }
 0x933   : > { %v5902_v39 = vpop.f32.mrf.mxu2 }
 0x934   : > { %v6486_v29 = vmax.f32 %v6408_v26, 0.0  ;;  %v5903_v52 = vadd.f32 %v5902_v39, %v5734_v49  ;;  %v13060_v49 = vld [vmem:[#allocation194_spill] sm:$0xff] }
 0x936   : > { %6550 = vst [vmem:[%s11342_s28 + $0x1b0] sm:$0xff] %v6486_v29  ;;  %v6072_v56 = vadd.f32 %v6071_v31, %v5903_v52  ;;  %v6079_v31 = vpop.f32.mrf.mxu3 }
 0x938   : > { %v6241_v18 = vadd.f32 %v6240_v44, %v6072_v56  ;;  %v5237_v44 = vadd.f32 %v13055_v35, %v5068_v62 }
 0x93a   : > { %v6410_v41 = vadd.f32 %v6409_v58, %v6241_v18  ;;  %v6248_v51 = vpop.f32.mrf.mxu0  ;;  %v6417_v58 = vpop.f32.mrf.mxu1  ;;  %v5406_v34 = vadd.f32 %v13057_v1, %v5237_v44  ;;  %v13071_v44 = vld [vmem:[#allocation258_spill] sm:$0xff] }
 0x93b   : > { %v5905_v61 = vpop.f32.mrf.mxu2  ;;  %v13073_v1 = vld [vmem:[#allocation270_spill] sm:$0xff] }
 0x93c   : > { %v6487_v25 = vmax.f32 %v6410_v41, 0.0  ;;  %v5906_v40 = vadd.f32 %v5905_v61, %v5737_v3  ;;  %v5575_v8 = vadd.f32 %v13059_v16, %v5406_v34  ;;  %v13065_v41 = vld [vmem:[#allocation363_spill] sm:$0xff] }
 0x93d   : > { %v5411_v2 = vadd.f32 %v13065_v41, %v13064_v37 }
 0x93e   : > { %6551 = vst [vmem:[%s11342_s28 + $0x1b8] sm:$0xff] %v6487_v25  ;;  %v6075_v24 = vadd.f32 %v6074_v38, %v5906_v40  ;;  %v6081_v54 = vpop.f32.mrf.mxu3  ;;  %v5744_v29 = vadd.f32 %v13062_v0, %v5575_v8 }
 0x940   : > { %v6244_v17 = vadd.f32 %v6243_v59, %v6075_v24  ;;  %v13061_v59 = vld [vmem:[#allocation208_spill] sm:$0xff] }
 0x941   : > { %v5409_v39 = vadd.f32 %v13061_v59, %v13060_v49 }
 0x942   : > { %v6413_v48 = vadd.f32 %v6412_v20, %v6244_v17  ;;  %v6250_v11 = vpop.f32.mrf.mxu0  ;;  %v6419_v52 = vpop.f32.mrf.mxu1 }
 0x943   : > { %v5907_v63 = vpop.f32.mrf.mxu2  ;;  %v5578_v14 = vadd.f32 %v13063_v15, %v5409_v39 }
 0x944   : > { %v6488_v47 = vmax.f32 %v6413_v48, 0.0  ;;  %v5908_v13 = vadd.f32 %v5907_v63, %v5739_v28  ;;  %v5414_v48 = vadd.f32 %v13069_v60, %v13068_v5  ;;  %v13070_v28 = vld [vmem:[#allocation266_spill] sm:$0xff] }
 0x946   : > { %6552 = vst [vmem:[%s11342_s28 + $0x1c0] sm:$0xff] %v6488_v47  ;;  %v6077_v36 = vadd.f32 %v6076_v46, %v5908_v13  ;;  %v6084_v27 = vpop.f32.mrf.mxu3  ;;  %v13066_v46 = vld [vmem:[#allocation263_spill] sm:$0xff] }
 0x947   : > { %v5747_v61 = vadd.f32 %v13066_v46, %v5578_v14 }
 0x948   : > { %v6246_v21 = vadd.f32 %v6245_v6, %v6077_v36  ;;  %v5583_v36 = vadd.f32 %v13071_v44, %v5414_v48 }
 0x94a   : > { %v6415_v22 = vadd.f32 %v6414_v4, %v6246_v21  ;;  %v6253_v25 = vpop.f32.mrf.mxu0  ;;  %v6422_v32 = vpop.f32.mrf.mxu1  ;;  %v13067_v4 = vld [vmem:[#allocation254_spill] sm:$0xff]  ;;  %v5752_v34 = vadd.f32 %v13073_v1, %v5583_v36 }
 0x94b   : > { %v5910_v33 = vpop.f32.mrf.mxu2  ;;  %v5580_v17 = vadd.f32 %v13067_v4, %v5411_v2 }
 0x94c   : > { %v6489_v45 = vmax.f32 %v6415_v22, 0.0  ;;  %v5911_v23 = vadd.f32 %v5910_v33, %v5742_v12 }
 0x94d   : > { %v5749_v63 = vadd.f32 %v13070_v28, %v5580_v17 }
 0x94e   : > { %6553 = vst [vmem:[%s11342_s28 + $0x1c8] sm:$0xff] %v6489_v45  ;;  %v6080_v38 = vadd.f32 %v6079_v31, %v5911_v23  ;;  %v6086_v53 = vpop.f32.mrf.mxu3 }
 0x950   : > { %v6249_v26 = vadd.f32 %v6248_v51, %v6080_v38  ;;  %v13072_v51 = vld [vmem:[#allocation368_spill] sm:$0xff] }
 0x951   : > { %v5416_v21 = vadd.f32 %v13072_v51, %v11317_v9  ;;  %v13074_v38 = vld [vmem:[#allocation260_spill] sm:$0xff] }
 0x952   : > { %v6418_v55 = vadd.f32 %v6417_v58, %v6249_v26  ;;  %v6255_v31 = vpop.f32.mrf.mxu0  ;;  %v6424_v10 = vpop.f32.mrf.mxu1 }
 0x953   : > { %v5912_v20 = vpop.f32.mrf.mxu2  ;;  %v5585_v16 = vadd.f32 %v13074_v38, %v5416_v21 }
 0x954   : > { %v6490_v30 = vmax.f32 %v6418_v55, 0.0  ;;  %v5913_v7 = vadd.f32 %v5912_v20, %v5744_v29 }
 0x956   : > { %6554 = vst [vmem:[%s11342_s28 + $0x1d0] sm:$0xff] %v6490_v30  ;;  %v6082_v56 = vadd.f32 %v6081_v54, %v5913_v7  ;;  %v6089_v22 = vpop.f32.mrf.mxu3 }
 0x958   : > { %v6251_v18 = vadd.f32 %v6250_v11, %v6082_v56  ;;  %v13075_v11 = vld [vmem:[#allocation94_spill] sm:$0xff] }
 0x959   : > { %v5754_v9 = vadd.f32 %v13075_v11, %v5585_v16 }
 0x95a   : > { %v6420_v3 = vadd.f32 %v6419_v52, %v6251_v18  ;;  %v6258_v45 = vpop.f32.mrf.mxu0  ;;  %v6427_v8 = vpop.f32.mrf.mxu1 }
 0x95b   : > { %v5915_v40 = vpop.f32.mrf.mxu2 }
 0x95c   : > { %v6491_v6 = vmax.f32 %v6420_v3, 0.0  ;;  %v5916_v24 = vadd.f32 %v5915_v40, %v5747_v61 }
 0x95e   : > { %6555 = vst [vmem:[%s11342_s28 + $0x1d8] sm:$0xff] %v6491_v6  ;;  %v6085_v57 = vadd.f32 %v6084_v27, %v5916_v24  ;;  %v6091_v55 = vpop.f32.mrf.mxu3 }
 0x960   : > { %v6254_v42 = vadd.f32 %v6253_v25, %v6085_v57 }
 0x962   : > { %v6423_v19 = vadd.f32 %v6422_v32, %v6254_v42  ;;  %v6260_v29 = vpop.f32.mrf.mxu0  ;;  %v6429_v20 = vpop.f32.mrf.mxu1 }
 0x963   : > { %v5917_v62 = vpop.f32.mrf.mxu2 }
 0x964   : > { %v6492_v47 = vmax.f32 %v6423_v19, 0.0  ;;  %v5918_v13 = vadd.f32 %v5917_v62, %v5749_v63 }
 0x966   : > { %6556 = vst [vmem:[%s11342_s28 + $0x1e0] sm:$0xff] %v6492_v47  ;;  %v6087_v35 = vadd.f32 %v6086_v53, %v5918_v13 }
 0x968   : > { %v6256_v43 = vadd.f32 %v6255_v31, %v6087_v35 }
 0x96a   : > { %v6425_v58 = vadd.f32 %v6424_v10, %v6256_v43 }
 0x96b   : > { %v5920_v50 = vpop.f32.mrf.mxu2 }
 0x96c   : > { %v6493_v12 = vmax.f32 %v6425_v58, 0.0  ;;  %v5921_v33 = vadd.f32 %v5920_v50, %v5752_v34 }
 0x96e   : > { %6557 = vst [vmem:[%s11342_s28 + $0x1e8] sm:$0xff] %v6493_v12  ;;  %v6090_v23 = vadd.f32 %v6089_v22, %v5921_v33 }
 0x970   : > { %v6259_v54 = vadd.f32 %v6258_v45, %v6090_v23 }
 0x972   : > { %v6428_v26 = vadd.f32 %v6427_v8, %v6259_v54 }
 0x973   : > { %v5922_v49 = vpop.f32.mrf.mxu2 }
 0x974   : > { %v6494_v59 = vmax.f32 %v6428_v26, 0.0  ;;  %v5923_v39 = vadd.f32 %v5922_v49, %v5754_v9 }
 0x976   : > { %6558 = vst [vmem:[%s11342_s28 + $0x1f0] sm:$0xff] %v6494_v59  ;;  %v6092_v0 = vadd.f32 %v6091_v55, %v5923_v39 }
 0x978   : > { %v6261_v52 = vadd.f32 %v6260_v29, %v6092_v0 }
 0x97a   : > { %v6430_v30 = vadd.f32 %v6429_v20, %v6261_v52 }
 0x97c   : > { %v6495_v7 = vmax.f32 %v6430_v30, 0.0 }
 0x97e   : > { %6559 = vst [vmem:[%s11342_s28 + $0x1f8] sm:$0xff] %v6495_v7 }
 0x97f   : > { %7501 = shalt.err (!%p7498_p3)
}
 0x980   : > { %s7548_s15 = smov 128  }
 0x981   : > { %7417 = dma.vmem_to_hbm [thread:$0]  (%p7622_p5), %s6575_s14, 8192, %s6577_s19, %s6561_s25, %s7548_s15, %s7548_s15, %s7541_s16  }
 0x982 PF: > { %p7423_p4 = scmp.ge.s32.totalorder %s7536_s24, 2  ;;  %s6591_s28 = sand.u32 1, %s7524_s21  }
 0x983   : > { %s6592_s11 = scalar_lea.sflag [#allocation3], %s6591_s28 }
 0x984   : > { %p7420_p7 = pnand %p7423_p4, %p7626_p6 }
 0x986   : > { %p7421_p8 = pneg %p7420_p7 }
 0x988   : > { %7519 = dma.done.wait (%p7421_p8), %s6592_s11, 8192  }
 0x989   : > { %7521 = vsyncadd (%p7421_p8), %s6592_s11, 4294959104  ;;  %p16_p9 = scmp.ge.s32.totalorder %s7609_s27, 4   ;;  %s13076_s21 = smov %s7528_s22 }
 0x98a   : > { %s13077_s22 = smov %s7532_s23  ;;  %s13078_s23 = smov %s7620_s30 }
 0x98b   : > { %s13079_s24 = smov %s7609_s27  ;;  %18 = sbr.rel (!%p16_p9) target bundleno = 3 (0x3), region = 82 }
 0x990   :  { %6598 = vsyncpa [#allocation3], 1 }
 0x991   :  { %6600 = vsyncpa [#allocation3 + $0x1], 1 }

</bundles_post_ra>
